<compile_context>
chip_gen: v6e
topology: v6e:2x2x1
jax: 0.10.0
libtpu: 0.0.40
codegen_flags: <defaults>
</compile_context>

<pallas_src>
import jax
import jax.numpy as jnp
from jax import lax
from jax.experimental import pallas as pl
from jax.experimental.pallas import tpu as pltpu


# ----------------------------------------------------------------------------
# Fused conv backbone: [Conv2d(3x3, stride=1, pad=1) + ReLU] * L, one batch
# element per grid step, all layers in VMEM.
# ----------------------------------------------------------------------------
def make_conv_backbone_kernel(num_layers, H, W):
    def kernel(*refs):
        x_ref = refs[0]                             # (1, H, W, C0)
        wb_refs = refs[1:1 + 2 * num_layers]        # (w0, b0, w1, b1, ...)
        o_ref = refs[1 + 2 * num_layers]            # (1, H*W, C_last)
        pad_refs = refs[2 + 2 * num_layers:]        # per-layer padded VMEM scratch

        x = x_ref[0]                                # (H, W, C0)
        y = None
        for li in range(num_layers):
            w_ref = wb_refs[2 * li]                 # (3, 3, Cin, Cout)
            b_ref = wb_refs[2 * li + 1]             # (1, Cout)
            pad_ref = pad_refs[li]                  # (H+2, W+2, Cin)
            Cin = pad_ref.shape[-1]
            Cout = w_ref.shape[-1]

            # In-kernel zero padding: memset scratch, store interior.
            pad_ref[...] = jnp.zeros_like(pad_ref)
            pad_ref[1:H + 1, 1:W + 1, :] = x

            # 3x3 conv as 9 shifted (H*W, Cin) @ (Cin, Cout) MXU matmuls + bias + ReLU.
            acc = jnp.zeros((H * W, Cout), jnp.float32)
            for ky in range(3):
                for kx in range(3):
                    patch = pad_ref[ky:ky + H, kx:kx + W, :].reshape(H * W, Cin)
                    acc = acc + jnp.dot(patch, w_ref[ky, kx],
                                        preferred_element_type=jnp.float32)
            y = jnp.maximum(acc + b_ref[...], 0.0)  # (H*W, Cout)
            if li + 1 < num_layers:
                x = y.reshape(H, W, Cout)           # next layer input, stays in VMEM

        o_ref[0] = y.astype(o_ref.dtype)            # flat NHWC features (H*W, C_last)

    return kernel


def conv_backbone(x_nhwc, conv_params):
    N, H, W, C0 = x_nhwc.shape
    num_layers = len(conv_params)
    chans = [C0] + [w.shape[-1] for w, _ in conv_params]
    c_last = chans[-1]

    in_specs = [pl.BlockSpec((1, H, W, C0), lambda n: (n, 0, 0, 0))]
    args = [x_nhwc]
    for w, b in conv_params:
        in_specs.append(pl.BlockSpec(w.shape, lambda n: (0, 0, 0, 0)))
        in_specs.append(pl.BlockSpec(b.shape, lambda n: (0, 0)))
        args.extend([w, b])

    scratch = [pltpu.VMEM((H + 2, W + 2, c), jnp.float32) for c in chans[:-1]]

    return pl.pallas_call(
        make_conv_backbone_kernel(num_layers, H, W),
        out_shape=jax.ShapeDtypeStruct((N, H * W, c_last), x_nhwc.dtype),
        grid_spec=pltpu.PrefetchScalarGridSpec(
            num_scalar_prefetch=0,
            grid=(N,),
            in_specs=in_specs,
            out_specs=pl.BlockSpec((1, H * W, c_last), lambda n: (n, 0, 0)),
            scratch_shapes=scratch,
        ),
        compiler_params=pltpu.CompilerParams(dimension_semantics=("parallel",)),
    )(*args)


# ----------------------------------------------------------------------------
# Fused MLP head: [Linear + ReLU] * L  +  class head (Linear, padded to 128 lanes),
# single grid step, full weights in VMEM (2 MiB at demo sizes, no K tiling needed).
# ----------------------------------------------------------------------------
def make_fc_head_kernel(num_fc):
    def kernel(*refs):
        x_ref = refs[0]
        wb_refs = refs[1:1 + 2 * num_fc]
        wcls_ref = refs[1 + 2 * num_fc]
        bcls_ref = refs[2 + 2 * num_fc]
        feat_ref = refs[3 + 2 * num_fc]
        logit_ref = refs[4 + 2 * num_fc]

        h = x_ref[...]
        for li in range(num_fc):
            w_ref = wb_refs[2 * li]
            b_ref = wb_refs[2 * li + 1]
            h = jnp.dot(h, w_ref[...], preferred_element_type=jnp.float32)
            h = jnp.maximum(h + b_ref[...], 0.0)
        feat_ref[...] = h.astype(feat_ref.dtype)
        logits = jnp.dot(h.astype(wcls_ref.dtype), wcls_ref[...],
                         preferred_element_type=jnp.float32) + bcls_ref[...]
        logit_ref[...] = logits.astype(logit_ref.dtype)

    return kernel


def fc_head(feats_flat, fc_params, cls_params):
    # NOTE: weights are loaded as single full VMEM blocks. For production-size
    # linear_arch (e.g. 100352x512) this would need K/N tiling plus an explicit
    # vmem_limit_bytes (16/32 MiB scoped-VMEM defaults on v5e / v6e-v7x).
    N, _ = feats_flat.shape
    num_fc = len(fc_params)
    d_last = fc_params[-1][0].shape[1] if num_fc else feats_flat.shape[1]
    wcls, bcls = cls_params
    ncls_pad = wcls.shape[1]

    in_specs = [pl.BlockSpec(feats_flat.shape, lambda i: (0, 0))]
    args = [feats_flat]
    for w, b in fc_params:
        in_specs.append(pl.BlockSpec(w.shape, lambda i: (0, 0)))
        in_specs.append(pl.BlockSpec(b.shape, lambda i: (0, 0)))
        args.extend([w, b])
    in_specs.append(pl.BlockSpec(wcls.shape, lambda i: (0, 0)))
    in_specs.append(pl.BlockSpec(bcls.shape, lambda i: (0, 0)))
    args.extend([wcls, bcls])

    return pl.pallas_call(
        make_fc_head_kernel(num_fc),
        out_shape=(jax.ShapeDtypeStruct((N, d_last), feats_flat.dtype),
                   jax.ShapeDtypeStruct((N, ncls_pad), feats_flat.dtype)),
        grid_spec=pltpu.PrefetchScalarGridSpec(
            num_scalar_prefetch=0,
            grid=(1,),
            in_specs=in_specs,
            out_specs=[pl.BlockSpec((N, d_last), lambda i: (0, 0)),
                       pl.BlockSpec((N, ncls_pad), lambda i: (0, 0))],
        ),
        compiler_params=pltpu.CompilerParams(dimension_semantics=("arbitrary",)),
    )(*args)


# ----------------------------------------------------------------------------
# Parameter init (canonical / reference layout) + one-time host-side repack for
# the Pallas kernels.
# ----------------------------------------------------------------------------
def init_params(key, conv_arch, linear_arch, num_classes=10):
    params = {"conv": [], "fc": []}
    for cin, cout in zip(conv_arch[:-1], conv_arch[1:]):
        key, k1, k2 = jax.random.split(key, 3)
        w = jax.random.normal(k1, (3, 3, cin, cout), jnp.float32) / jnp.sqrt(9.0 * cin)
        b = 0.01 * jax.random.normal(k2, (cout,), jnp.float32)
        params["conv"].append((w, b))
    for din, dout in zip(linear_arch[:-1], linear_arch[1:]):
        key, k1, k2 = jax.random.split(key, 3)
        w = jax.random.normal(k1, (din, dout), jnp.float32) / jnp.sqrt(float(din))
        b = 0.01 * jax.random.normal(k2, (dout,), jnp.float32)
        params["fc"].append((w, b))
    key, k1, k2 = jax.random.split(key, 3)
    w = jax.random.normal(k1, (linear_arch[-1], num_classes), jnp.float32) \
        / jnp.sqrt(float(linear_arch[-1]))
    b = 0.01 * jax.random.normal(k2, (num_classes,), jnp.float32)
    params["class"] = (w, b)
    return params


def prepare_pallas_params(params, H, W, lane_pad=128):
    """One-time host-side repack: 2D biases, NCHW->NHWC row permutation of the first
    fc weight (kills the runtime transpose-before-flatten), zero-padded class head
    (10 -> 128 lanes) so the final store is unmasked."""
    kp = {"conv": [(w, b.reshape(1, -1)) for (w, b) in params["conv"]]}
    c_last = params["conv"][-1][0].shape[-1]

    fc = []
    for li, (w, b) in enumerate(params["fc"]):
        if li == 0:
            din, dout = w.shape
            assert din == c_last * H * W
            # row (c*H*W + hw) -> row (hw*C + c): flatten(NCHW)@W == flatten(NHWC)@W_perm
            w = w.reshape(c_last, H * W, dout).transpose(1, 0, 2).reshape(din, dout)
        fc.append((w, b.reshape(1, -1)))
    kp["fc"] = fc

    wc, bc = params["class"]
    ncls = wc.shape[1]
    npad = max(lane_pad, ncls)
    wc_pad = jnp.zeros((wc.shape[0], npad), wc.dtype).at[:, :ncls].set(wc)
    bc_pad = jnp.zeros((1, npad), bc.dtype).at[0, :ncls].set(bc)
    kp["class"] = (wc_pad, bc_pad)
    return kp


# ----------------------------------------------------------------------------
# Forward pass (two fused pallas_calls) and pure-JAX reference.
# ----------------------------------------------------------------------------
def net_forward(kparams, x_nchw, num_classes=10):
    x_nhwc = jnp.transpose(x_nchw, (0, 2, 3, 1))            # layout glue at boundary
    conv_feats = conv_backbone(x_nhwc, kparams["conv"])      # (N, H*W, C_last)
    feats_flat = conv_feats.reshape(x_nchw.shape[0], -1)     # free metadata reshape
    feats, logits_pad = fc_head(feats_flat, kparams["fc"], kparams["class"])
    return logits_pad[:, :num_classes], feats


def net_reference(params, x_nchw):
    x = x_nchw
    for w, b in params["conv"]:
        x = lax.conv_general_dilated(
            x, w, window_strides=(1, 1), padding=((1, 1), (1, 1)),
            dimension_numbers=("NCHW", "HWIO", "NCHW"))
        x = jnp.maximum(x + b.reshape(1, -1, 1, 1), 0.0)
    feats = x.reshape(x.shape[0], -1)                        # nn.Flatten on NCHW
    for w, b in params["fc"]:
        feats = jnp.maximum(feats @ w + b, 0.0)
    logits = feats @ params["class"][0] + params["class"][1]
    return logits, feats


if __name__ == "__main__":
    # Small instantiation of the module: Net(conv_arch=[1,8,16,32],
    # linear_arch=[8192, 64]) on 2x1x16x16 inputs.
    conv_arch = [1, 8, 16, 32]
    N, H, W = 2, 16, 16
    linear_arch = [conv_arch[-1] * H * W, 64]
    num_classes = 10

    key = jax.random.PRNGKey(0)
    key, pkey, xkey = jax.random.split(key, 3)
    params = init_params(pkey, conv_arch, linear_arch, num_classes)
    kparams = prepare_pallas_params(params, H, W)            # one-time host-side repack
    x = jax.random.normal(xkey, (N, conv_arch[0], H, W), jnp.float32)

    logits, feats = net_forward(kparams, x, num_classes)
    jax.block_until_ready((logits, feats))

    ref_logits, ref_feats = net_reference(params, x)
    assert logits.shape == (N, num_classes) and feats.shape == (N, linear_arch[-1])
    assert jnp.allclose(logits, ref_logits, atol=1e-3, rtol=1e-3)
    assert jnp.allclose(feats, ref_feats, atol=1e-3, rtol=1e-3)

    print("KERNEL_OK")
</pallas_src>

<mosaic_0001>
module attributes {stable_mosaic.version = 11 : i64} {
  func.func @kernel(%arg0: i32, %arg1: memref<1x16x16x1xf32, #tpu.memory_space<vmem>>, %arg2: memref<3x3x1x8xf32, #tpu.memory_space<vmem>>, %arg3: memref<1x8xf32, #tpu.memory_space<vmem>>, %arg4: memref<3x3x8x16xf32, #tpu.memory_space<vmem>>, %arg5: memref<1x16xf32, #tpu.memory_space<vmem>>, %arg6: memref<3x3x16x32xf32, #tpu.memory_space<vmem>>, %arg7: memref<1x32xf32, #tpu.memory_space<vmem>>, %arg8: memref<1x256x32xf32, #tpu.memory_space<vmem>>, %arg9: memref<18x18x1xf32, #tpu.memory_space<vmem>>, %arg10: memref<18x18x8xf32, #tpu.memory_space<vmem>>, %arg11: memref<18x18x16xf32, #tpu.memory_space<vmem>>) attributes {dimension_semantics = [#tpu.dimension_semantics<parallel>], iteration_bounds = array<i64: 2>, scalar_prefetch = 0 : i64, scratch_operands = 3 : i64, tpu.core_type = #tpu.core_type<tc>, window_params = [{transform_indices = @transform_0, window_bounds = array<i64: 1, 16, 16, 1>}, {pipeline_mode = #tpu.pipeline_mode<synchronous>, transform_indices = @transform_1, window_bounds = array<i64: 3, 3, 1, 8>}, {pipeline_mode = #tpu.pipeline_mode<synchronous>, transform_indices = @transform_2, window_bounds = array<i64: 1, 8>}, {pipeline_mode = #tpu.pipeline_mode<synchronous>, transform_indices = @transform_3, window_bounds = array<i64: 3, 3, 8, 16>}, {pipeline_mode = #tpu.pipeline_mode<synchronous>, transform_indices = @transform_4, window_bounds = array<i64: 1, 16>}, {pipeline_mode = #tpu.pipeline_mode<synchronous>, transform_indices = @transform_5, window_bounds = array<i64: 3, 3, 16, 32>}, {pipeline_mode = #tpu.pipeline_mode<synchronous>, transform_indices = @transform_6, window_bounds = array<i64: 1, 32>}, {transform_indices = @transform_7, window_bounds = array<i64: 1, 256, 32>}]} {
    %c0 = arith.constant 0 : index
    %c0_0 = arith.constant 0 : index
    %c0_1 = arith.constant 0 : index
    %c0_2 = arith.constant 0 : index
    %0 = vector.load %arg1[%c0, %c0_0, %c0_1, %c0_2] : memref<1x16x16x1xf32, #tpu.memory_space<vmem>>, vector<1x16x16x1xf32>
    %1 = vector.shape_cast %0 : vector<1x16x16x1xf32> to vector<16x16x1xf32>
    %cst = arith.constant 0.000000e+00 : f32
    %2 = vector.broadcast %cst : f32 to vector<18x18x1xf32>
    %c0_3 = arith.constant 0 : index
    %c0_4 = arith.constant 0 : index
    %c0_5 = arith.constant 0 : index
    %3 = vector.load %arg9[%c0_3, %c0_4, %c0_5] : memref<18x18x1xf32, #tpu.memory_space<vmem>>, vector<18x18x1xf32>
    tpu.vector_store %arg9[%c0_3, %c0_4, %c0_5], %2 {strides = array<i32>} : memref<18x18x1xf32, #tpu.memory_space<vmem>>, vector<18x18x1xf32>,
    %c1 = arith.constant 1 : index
    %c1_6 = arith.constant 1 : index
    %c0_7 = arith.constant 0 : index
    %4 = vector.load %arg9[%c1, %c1_6, %c0_7] : memref<18x18x1xf32, #tpu.memory_space<vmem>>, vector<16x16x1xf32>
    tpu.vector_store %arg9[%c1, %c1_6, %c0_7], %1 {strides = array<i32>} : memref<18x18x1xf32, #tpu.memory_space<vmem>>, vector<16x16x1xf32>,
    %cst_8 = arith.constant 0.000000e+00 : f32
    %5 = vector.broadcast %cst_8 : f32 to vector<256x8xf32>
    %c0_9 = arith.constant 0 : index
    %c0_10 = arith.constant 0 : index
    %c0_11 = arith.constant 0 : index
    %6 = vector.load %arg9[%c0_9, %c0_10, %c0_11] : memref<18x18x1xf32, #tpu.memory_space<vmem>>, vector<16x16x1xf32>
    %7 = vector.shape_cast %6 : vector<16x16x1xf32> to vector<256x1xf32>
    %c0_12 = arith.constant 0 : index
    %c0_13 = arith.constant 0 : index
    %c0_14 = arith.constant 0 : index
    %c0_15 = arith.constant 0 : index
    %8 = vector.load %arg2[%c0_12, %c0_13, %c0_14, %c0_15] : memref<3x3x1x8xf32, #tpu.memory_space<vmem>>, vector<1x1x1x8xf32>
    %9 = vector.shape_cast %8 : vector<1x1x1x8xf32> to vector<1x8xf32>
    %cst_16 = arith.constant dense<0.000000e+00> : vector<256x8xf32>
    %10 = tpu.matmul %7, %9, %cst_16 {dimension_numbers = #tpu.dot_dimension_numbers<[1], [0], [0], [1], [0, 0, 1, 1], [], []>} : vector<256x1xf32>, vector<1x8xf32>, vector<256x8xf32> -> vector<256x8xf32>
    %11 = arith.addf %5, %10 : vector<256x8xf32>
    %c0_17 = arith.constant 0 : index
    %c1_18 = arith.constant 1 : index
    %c0_19 = arith.constant 0 : index
    %12 = vector.load %arg9[%c0_17, %c1_18, %c0_19] : memref<18x18x1xf32, #tpu.memory_space<vmem>>, vector<16x16x1xf32>
    %13 = vector.shape_cast %12 : vector<16x16x1xf32> to vector<256x1xf32>
    %c0_20 = arith.constant 0 : index
    %c1_21 = arith.constant 1 : index
    %c0_22 = arith.constant 0 : index
    %c0_23 = arith.constant 0 : index
    %14 = vector.load %arg2[%c0_20, %c1_21, %c0_22, %c0_23] : memref<3x3x1x8xf32, #tpu.memory_space<vmem>>, vector<1x1x1x8xf32>
    %15 = vector.shape_cast %14 : vector<1x1x1x8xf32> to vector<1x8xf32>
    %cst_24 = arith.constant dense<0.000000e+00> : vector<256x8xf32>
    %16 = tpu.matmul %13, %15, %cst_24 {dimension_numbers = #tpu.dot_dimension_numbers<[1], [0], [0], [1], [0, 0, 1, 1], [], []>} : vector<256x1xf32>, vector<1x8xf32>, vector<256x8xf32> -> vector<256x8xf32>
    %17 = arith.addf %11, %16 : vector<256x8xf32>
    %c0_25 = arith.constant 0 : index
    %c2 = arith.constant 2 : index
    %c0_26 = arith.constant 0 : index
    %18 = vector.load %arg9[%c0_25, %c2, %c0_26] : memref<18x18x1xf32, #tpu.memory_space<vmem>>, vector<16x16x1xf32>
    %19 = vector.shape_cast %18 : vector<16x16x1xf32> to vector<256x1xf32>
    %c0_27 = arith.constant 0 : index
    %c2_28 = arith.constant 2 : index
    %c0_29 = arith.constant 0 : index
    %c0_30 = arith.constant 0 : index
    %20 = vector.load %arg2[%c0_27, %c2_28, %c0_29, %c0_30] : memref<3x3x1x8xf32, #tpu.memory_space<vmem>>, vector<1x1x1x8xf32>
    %21 = vector.shape_cast %20 : vector<1x1x1x8xf32> to vector<1x8xf32>
    %cst_31 = arith.constant dense<0.000000e+00> : vector<256x8xf32>
    %22 = tpu.matmul %19, %21, %cst_31 {dimension_numbers = #tpu.dot_dimension_numbers<[1], [0], [0], [1], [0, 0, 1, 1], [], []>} : vector<256x1xf32>, vector<1x8xf32>, vector<256x8xf32> -> vector<256x8xf32>
    %23 = arith.addf %17, %22 : vector<256x8xf32>
    %c1_32 = arith.constant 1 : index
    %c0_33 = arith.constant 0 : index
    %c0_34 = arith.constant 0 : index
    %24 = vector.load %arg9[%c1_32, %c0_33, %c0_34] : memref<18x18x1xf32, #tpu.memory_space<vmem>>, vector<16x16x1xf32>
    %25 = vector.shape_cast %24 : vector<16x16x1xf32> to vector<256x1xf32>
    %c1_35 = arith.constant 1 : index
    %c0_36 = arith.constant 0 : index
    %c0_37 = arith.constant 0 : index
    %c0_38 = arith.constant 0 : index
    %26 = vector.load %arg2[%c1_35, %c0_36, %c0_37, %c0_38] : memref<3x3x1x8xf32, #tpu.memory_space<vmem>>, vector<1x1x1x8xf32>
    %27 = vector.shape_cast %26 : vector<1x1x1x8xf32> to vector<1x8xf32>
    %cst_39 = arith.constant dense<0.000000e+00> : vector<256x8xf32>
    %28 = tpu.matmul %25, %27, %cst_39 {dimension_numbers = #tpu.dot_dimension_numbers<[1], [0], [0], [1], [0, 0, 1, 1], [], []>} : vector<256x1xf32>, vector<1x8xf32>, vector<256x8xf32> -> vector<256x8xf32>
    %29 = arith.addf %23, %28 : vector<256x8xf32>
    %c1_40 = arith.constant 1 : index
    %c1_41 = arith.constant 1 : index
    %c0_42 = arith.constant 0 : index
    %30 = vector.load %arg9[%c1_40, %c1_41, %c0_42] : memref<18x18x1xf32, #tpu.memory_space<vmem>>, vector<16x16x1xf32>
    %31 = vector.shape_cast %30 : vector<16x16x1xf32> to vector<256x1xf32>
    %c1_43 = arith.constant 1 : index
    %c1_44 = arith.constant 1 : index
    %c0_45 = arith.constant 0 : index
    %c0_46 = arith.constant 0 : index
    %32 = vector.load %arg2[%c1_43, %c1_44, %c0_45, %c0_46] : memref<3x3x1x8xf32, #tpu.memory_space<vmem>>, vector<1x1x1x8xf32>
    %33 = vector.shape_cast %32 : vector<1x1x1x8xf32> to vector<1x8xf32>
    %cst_47 = arith.constant dense<0.000000e+00> : vector<256x8xf32>
    %34 = tpu.matmul %31, %33, %cst_47 {dimension_numbers = #tpu.dot_dimension_numbers<[1], [0], [0], [1], [0, 0, 1, 1], [], []>} : vector<256x1xf32>, vector<1x8xf32>, vector<256x8xf32> -> vector<256x8xf32>
    %35 = arith.addf %29, %34 : vector<256x8xf32>
    %c1_48 = arith.constant 1 : index
    %c2_49 = arith.constant 2 : index
    %c0_50 = arith.constant 0 : index
    %36 = vector.load %arg9[%c1_48, %c2_49, %c0_50] : memref<18x18x1xf32, #tpu.memory_space<vmem>>, vector<16x16x1xf32>
    %37 = vector.shape_cast %36 : vector<16x16x1xf32> to vector<256x1xf32>
    %c1_51 = arith.constant 1 : index
    %c2_52 = arith.constant 2 : index
    %c0_53 = arith.constant 0 : index
    %c0_54 = arith.constant 0 : index
    %38 = vector.load %arg2[%c1_51, %c2_52, %c0_53, %c0_54] : memref<3x3x1x8xf32, #tpu.memory_space<vmem>>, vector<1x1x1x8xf32>
    %39 = vector.shape_cast %38 : vector<1x1x1x8xf32> to vector<1x8xf32>
    %cst_55 = arith.constant dense<0.000000e+00> : vector<256x8xf32>
    %40 = tpu.matmul %37, %39, %cst_55 {dimension_numbers = #tpu.dot_dimension_numbers<[1], [0], [0], [1], [0, 0, 1, 1], [], []>} : vector<256x1xf32>, vector<1x8xf32>, vector<256x8xf32> -> vector<256x8xf32>
    %41 = arith.addf %35, %40 : vector<256x8xf32>
    %c2_56 = arith.constant 2 : index
    %c0_57 = arith.constant 0 : index
    %c0_58 = arith.constant 0 : index
    %42 = vector.load %arg9[%c2_56, %c0_57, %c0_58] : memref<18x18x1xf32, #tpu.memory_space<vmem>>, vector<16x16x1xf32>
    %43 = vector.shape_cast %42 : vector<16x16x1xf32> to vector<256x1xf32>
    %c2_59 = arith.constant 2 : index
    %c0_60 = arith.constant 0 : index
    %c0_61 = arith.constant 0 : index
    %c0_62 = arith.constant 0 : index
    %44 = vector.load %arg2[%c2_59, %c0_60, %c0_61, %c0_62] : memref<3x3x1x8xf32, #tpu.memory_space<vmem>>, vector<1x1x1x8xf32>
    %45 = vector.shape_cast %44 : vector<1x1x1x8xf32> to vector<1x8xf32>
    %cst_63 = arith.constant dense<0.000000e+00> : vector<256x8xf32>
    %46 = tpu.matmul %43, %45, %cst_63 {dimension_numbers = #tpu.dot_dimension_numbers<[1], [0], [0], [1], [0, 0, 1, 1], [], []>} : vector<256x1xf32>, vector<1x8xf32>, vector<256x8xf32> -> vector<256x8xf32>
    %47 = arith.addf %41, %46 : vector<256x8xf32>
    %c2_64 = arith.constant 2 : index
    %c1_65 = arith.constant 1 : index
    %c0_66 = arith.constant 0 : index
    %48 = vector.load %arg9[%c2_64, %c1_65, %c0_66] : memref<18x18x1xf32, #tpu.memory_space<vmem>>, vector<16x16x1xf32>
    %49 = vector.shape_cast %48 : vector<16x16x1xf32> to vector<256x1xf32>
    %c2_67 = arith.constant 2 : index
    %c1_68 = arith.constant 1 : index
    %c0_69 = arith.constant 0 : index
    %c0_70 = arith.constant 0 : index
    %50 = vector.load %arg2[%c2_67, %c1_68, %c0_69, %c0_70] : memref<3x3x1x8xf32, #tpu.memory_space<vmem>>, vector<1x1x1x8xf32>
    %51 = vector.shape_cast %50 : vector<1x1x1x8xf32> to vector<1x8xf32>
    %cst_71 = arith.constant dense<0.000000e+00> : vector<256x8xf32>
    %52 = tpu.matmul %49, %51, %cst_71 {dimension_numbers = #tpu.dot_dimension_numbers<[1], [0], [0], [1], [0, 0, 1, 1], [], []>} : vector<256x1xf32>, vector<1x8xf32>, vector<256x8xf32> -> vector<256x8xf32>
    %53 = arith.addf %47, %52 : vector<256x8xf32>
    %c2_72 = arith.constant 2 : index
    %c2_73 = arith.constant 2 : index
    %c0_74 = arith.constant 0 : index
    %54 = vector.load %arg9[%c2_72, %c2_73, %c0_74] : memref<18x18x1xf32, #tpu.memory_space<vmem>>, vector<16x16x1xf32>
    %55 = vector.shape_cast %54 : vector<16x16x1xf32> to vector<256x1xf32>
    %c2_75 = arith.constant 2 : index
    %c2_76 = arith.constant 2 : index
    %c0_77 = arith.constant 0 : index
    %c0_78 = arith.constant 0 : index
    %56 = vector.load %arg2[%c2_75, %c2_76, %c0_77, %c0_78] : memref<3x3x1x8xf32, #tpu.memory_space<vmem>>, vector<1x1x1x8xf32>
    %57 = vector.shape_cast %56 : vector<1x1x1x8xf32> to vector<1x8xf32>
    %cst_79 = arith.constant dense<0.000000e+00> : vector<256x8xf32>
    %58 = tpu.matmul %55, %57, %cst_79 {dimension_numbers = #tpu.dot_dimension_numbers<[1], [0], [0], [1], [0, 0, 1, 1], [], []>} : vector<256x1xf32>, vector<1x8xf32>, vector<256x8xf32> -> vector<256x8xf32>
    %59 = arith.addf %53, %58 : vector<256x8xf32>
    %c0_80 = arith.constant 0 : index
    %c0_81 = arith.constant 0 : index
    %60 = vector.load %arg3[%c0_80, %c0_81] : memref<1x8xf32, #tpu.memory_space<vmem>>, vector<1x8xf32>
    %61 = vector.broadcast %60 : vector<1x8xf32> to vector<256x8xf32>
    %62 = arith.addf %59, %61 : vector<256x8xf32>
    %cst_82 = arith.constant 0.000000e+00 : f32
    %63 = vector.broadcast %cst_82 : f32 to vector<256x8xf32>
    %64 = arith.maximumf %62, %63 : vector<256x8xf32>
    %65 = vector.shape_cast %64 : vector<256x8xf32> to vector<16x16x8xf32>
    %cst_83 = arith.constant 0.000000e+00 : f32
    %66 = vector.broadcast %cst_83 : f32 to vector<18x18x8xf32>
    %c0_84 = arith.constant 0 : index
    %c0_85 = arith.constant 0 : index
    %c0_86 = arith.constant 0 : index
    %67 = vector.load %arg10[%c0_84, %c0_85, %c0_86] : memref<18x18x8xf32, #tpu.memory_space<vmem>>, vector<18x18x8xf32>
    tpu.vector_store %arg10[%c0_84, %c0_85, %c0_86], %66 {strides = array<i32>} : memref<18x18x8xf32, #tpu.memory_space<vmem>>, vector<18x18x8xf32>,
    %c1_87 = arith.constant 1 : index
    %c1_88 = arith.constant 1 : index
    %c0_89 = arith.constant 0 : index
    %68 = vector.load %arg10[%c1_87, %c1_88, %c0_89] : memref<18x18x8xf32, #tpu.memory_space<vmem>>, vector<16x16x8xf32>
    tpu.vector_store %arg10[%c1_87, %c1_88, %c0_89], %65 {strides = array<i32>} : memref<18x18x8xf32, #tpu.memory_space<vmem>>, vector<16x16x8xf32>,
    %cst_90 = arith.constant 0.000000e+00 : f32
    %69 = vector.broadcast %cst_90 : f32 to vector<256x16xf32>
    %c0_91 = arith.constant 0 : index
    %c0_92 = arith.constant 0 : index
    %c0_93 = arith.constant 0 : index
    %70 = vector.load %arg10[%c0_91, %c0_92, %c0_93] : memref<18x18x8xf32, #tpu.memory_space<vmem>>, vector<16x16x8xf32>
    %71 = vector.shape_cast %70 : vector<16x16x8xf32> to vector<256x8xf32>
    %c0_94 = arith.constant 0 : index
    %c0_95 = arith.constant 0 : index
    %c0_96 = arith.constant 0 : index
    %c0_97 = arith.constant 0 : index
    %72 = vector.load %arg4[%c0_94, %c0_95, %c0_96, %c0_97] : memref<3x3x8x16xf32, #tpu.memory_space<vmem>>, vector<1x1x8x16xf32>
    %73 = vector.shape_cast %72 : vector<1x1x8x16xf32> to vector<8x16xf32>
    %cst_98 = arith.constant dense<0.000000e+00> : vector<256x16xf32>
    %74 = tpu.matmul %71, %73, %cst_98 {dimension_numbers = #tpu.dot_dimension_numbers<[1], [0], [0], [1], [0, 0, 1, 1], [], []>} : vector<256x8xf32>, vector<8x16xf32>, vector<256x16xf32> -> vector<256x16xf32>
    %75 = arith.addf %69, %74 : vector<256x16xf32>
    %c0_99 = arith.constant 0 : index
    %c1_100 = arith.constant 1 : index
    %c0_101 = arith.constant 0 : index
    %76 = vector.load %arg10[%c0_99, %c1_100, %c0_101] : memref<18x18x8xf32, #tpu.memory_space<vmem>>, vector<16x16x8xf32>
    %77 = vector.shape_cast %76 : vector<16x16x8xf32> to vector<256x8xf32>
    %c0_102 = arith.constant 0 : index
    %c1_103 = arith.constant 1 : index
    %c0_104 = arith.constant 0 : index
    %c0_105 = arith.constant 0 : index
    %78 = vector.load %arg4[%c0_102, %c1_103, %c0_104, %c0_105] : memref<3x3x8x16xf32, #tpu.memory_space<vmem>>, vector<1x1x8x16xf32>
    %79 = vector.shape_cast %78 : vector<1x1x8x16xf32> to vector<8x16xf32>
    %cst_106 = arith.constant dense<0.000000e+00> : vector<256x16xf32>
    %80 = tpu.matmul %77, %79, %cst_106 {dimension_numbers = #tpu.dot_dimension_numbers<[1], [0], [0], [1], [0, 0, 1, 1], [], []>} : vector<256x8xf32>, vector<8x16xf32>, vector<256x16xf32> -> vector<256x16xf32>
    %81 = arith.addf %75, %80 : vector<256x16xf32>
    %c0_107 = arith.constant 0 : index
    %c2_108 = arith.constant 2 : index
    %c0_109 = arith.constant 0 : index
    %82 = vector.load %arg10[%c0_107, %c2_108, %c0_109] : memref<18x18x8xf32, #tpu.memory_space<vmem>>, vector<16x16x8xf32>
    %83 = vector.shape_cast %82 : vector<16x16x8xf32> to vector<256x8xf32>
    %c0_110 = arith.constant 0 : index
    %c2_111 = arith.constant 2 : index
    %c0_112 = arith.constant 0 : index
    %c0_113 = arith.constant 0 : index
    %84 = vector.load %arg4[%c0_110, %c2_111, %c0_112, %c0_113] : memref<3x3x8x16xf32, #tpu.memory_space<vmem>>, vector<1x1x8x16xf32>
    %85 = vector.shape_cast %84 : vector<1x1x8x16xf32> to vector<8x16xf32>
    %cst_114 = arith.constant dense<0.000000e+00> : vector<256x16xf32>
    %86 = tpu.matmul %83, %85, %cst_114 {dimension_numbers = #tpu.dot_dimension_numbers<[1], [0], [0], [1], [0, 0, 1, 1], [], []>} : vector<256x8xf32>, vector<8x16xf32>, vector<256x16xf32> -> vector<256x16xf32>
    %87 = arith.addf %81, %86 : vector<256x16xf32>
    %c1_115 = arith.constant 1 : index
    %c0_116 = arith.constant 0 : index
    %c0_117 = arith.constant 0 : index
    %88 = vector.load %arg10[%c1_115, %c0_116, %c0_117] : memref<18x18x8xf32, #tpu.memory_space<vmem>>, vector<16x16x8xf32>
    %89 = vector.shape_cast %88 : vector<16x16x8xf32> to vector<256x8xf32>
    %c1_118 = arith.constant 1 : index
    %c0_119 = arith.constant 0 : index
    %c0_120 = arith.constant 0 : index
    %c0_121 = arith.constant 0 : index
    %90 = vector.load %arg4[%c1_118, %c0_119, %c0_120, %c0_121] : memref<3x3x8x16xf32, #tpu.memory_space<vmem>>, vector<1x1x8x16xf32>
    %91 = vector.shape_cast %90 : vector<1x1x8x16xf32> to vector<8x16xf32>
    %cst_122 = arith.constant dense<0.000000e+00> : vector<256x16xf32>
    %92 = tpu.matmul %89, %91, %cst_122 {dimension_numbers = #tpu.dot_dimension_numbers<[1], [0], [0], [1], [0, 0, 1, 1], [], []>} : vector<256x8xf32>, vector<8x16xf32>, vector<256x16xf32> -> vector<256x16xf32>
    %93 = arith.addf %87, %92 : vector<256x16xf32>
    %c1_123 = arith.constant 1 : index
    %c1_124 = arith.constant 1 : index
    %c0_125 = arith.constant 0 : index
    %94 = vector.load %arg10[%c1_123, %c1_124, %c0_125] : memref<18x18x8xf32, #tpu.memory_space<vmem>>, vector<16x16x8xf32>
    %95 = vector.shape_cast %94 : vector<16x16x8xf32> to vector<256x8xf32>
    %c1_126 = arith.constant 1 : index
    %c1_127 = arith.constant 1 : index
    %c0_128 = arith.constant 0 : index
    %c0_129 = arith.constant 0 : index
    %96 = vector.load %arg4[%c1_126, %c1_127, %c0_128, %c0_129] : memref<3x3x8x16xf32, #tpu.memory_space<vmem>>, vector<1x1x8x16xf32>
    %97 = vector.shape_cast %96 : vector<1x1x8x16xf32> to vector<8x16xf32>
    %cst_130 = arith.constant dense<0.000000e+00> : vector<256x16xf32>
    %98 = tpu.matmul %95, %97, %cst_130 {dimension_numbers = #tpu.dot_dimension_numbers<[1], [0], [0], [1], [0, 0, 1, 1], [], []>} : vector<256x8xf32>, vector<8x16xf32>, vector<256x16xf32> -> vector<256x16xf32>
    %99 = arith.addf %93, %98 : vector<256x16xf32>
    %c1_131 = arith.constant 1 : index
    %c2_132 = arith.constant 2 : index
    %c0_133 = arith.constant 0 : index
    %100 = vector.load %arg10[%c1_131, %c2_132, %c0_133] : memref<18x18x8xf32, #tpu.memory_space<vmem>>, vector<16x16x8xf32>
    %101 = vector.shape_cast %100 : vector<16x16x8xf32> to vector<256x8xf32>
    %c1_134 = arith.constant 1 : index
    %c2_135 = arith.constant 2 : index
    %c0_136 = arith.constant 0 : index
    %c0_137 = arith.constant 0 : index
    %102 = vector.load %arg4[%c1_134, %c2_135, %c0_136, %c0_137] : memref<3x3x8x16xf32, #tpu.memory_space<vmem>>, vector<1x1x8x16xf32>
    %103 = vector.shape_cast %102 : vector<1x1x8x16xf32> to vector<8x16xf32>
    %cst_138 = arith.constant dense<0.000000e+00> : vector<256x16xf32>
    %104 = tpu.matmul %101, %103, %cst_138 {dimension_numbers = #tpu.dot_dimension_numbers<[1], [0], [0], [1], [0, 0, 1, 1], [], []>} : vector<256x8xf32>, vector<8x16xf32>, vector<256x16xf32> -> vector<256x16xf32>
    %105 = arith.addf %99, %104 : vector<256x16xf32>
    %c2_139 = arith.constant 2 : index
    %c0_140 = arith.constant 0 : index
    %c0_141 = arith.constant 0 : index
    %106 = vector.load %arg10[%c2_139, %c0_140, %c0_141] : memref<18x18x8xf32, #tpu.memory_space<vmem>>, vector<16x16x8xf32>
    %107 = vector.shape_cast %106 : vector<16x16x8xf32> to vector<256x8xf32>
    %c2_142 = arith.constant 2 : index
    %c0_143 = arith.constant 0 : index
    %c0_144 = arith.constant 0 : index
    %c0_145 = arith.constant 0 : index
    %108 = vector.load %arg4[%c2_142, %c0_143, %c0_144, %c0_145] : memref<3x3x8x16xf32, #tpu.memory_space<vmem>>, vector<1x1x8x16xf32>
    %109 = vector.shape_cast %108 : vector<1x1x8x16xf32> to vector<8x16xf32>
    %cst_146 = arith.constant dense<0.000000e+00> : vector<256x16xf32>
    %110 = tpu.matmul %107, %109, %cst_146 {dimension_numbers = #tpu.dot_dimension_numbers<[1], [0], [0], [1], [0, 0, 1, 1], [], []>} : vector<256x8xf32>, vector<8x16xf32>, vector<256x16xf32> -> vector<256x16xf32>
    %111 = arith.addf %105, %110 : vector<256x16xf32>
    %c2_147 = arith.constant 2 : index
    %c1_148 = arith.constant 1 : index
    %c0_149 = arith.constant 0 : index
    %112 = vector.load %arg10[%c2_147, %c1_148, %c0_149] : memref<18x18x8xf32, #tpu.memory_space<vmem>>, vector<16x16x8xf32>
    %113 = vector.shape_cast %112 : vector<16x16x8xf32> to vector<256x8xf32>
    %c2_150 = arith.constant 2 : index
    %c1_151 = arith.constant 1 : index
    %c0_152 = arith.constant 0 : index
    %c0_153 = arith.constant 0 : index
    %114 = vector.load %arg4[%c2_150, %c1_151, %c0_152, %c0_153] : memref<3x3x8x16xf32, #tpu.memory_space<vmem>>, vector<1x1x8x16xf32>
    %115 = vector.shape_cast %114 : vector<1x1x8x16xf32> to vector<8x16xf32>
    %cst_154 = arith.constant dense<0.000000e+00> : vector<256x16xf32>
    %116 = tpu.matmul %113, %115, %cst_154 {dimension_numbers = #tpu.dot_dimension_numbers<[1], [0], [0], [1], [0, 0, 1, 1], [], []>} : vector<256x8xf32>, vector<8x16xf32>, vector<256x16xf32> -> vector<256x16xf32>
    %117 = arith.addf %111, %116 : vector<256x16xf32>
    %c2_155 = arith.constant 2 : index
    %c2_156 = arith.constant 2 : index
    %c0_157 = arith.constant 0 : index
    %118 = vector.load %arg10[%c2_155, %c2_156, %c0_157] : memref<18x18x8xf32, #tpu.memory_space<vmem>>, vector<16x16x8xf32>
    %119 = vector.shape_cast %118 : vector<16x16x8xf32> to vector<256x8xf32>
    %c2_158 = arith.constant 2 : index
    %c2_159 = arith.constant 2 : index
    %c0_160 = arith.constant 0 : index
    %c0_161 = arith.constant 0 : index
    %120 = vector.load %arg4[%c2_158, %c2_159, %c0_160, %c0_161] : memref<3x3x8x16xf32, #tpu.memory_space<vmem>>, vector<1x1x8x16xf32>
    %121 = vector.shape_cast %120 : vector<1x1x8x16xf32> to vector<8x16xf32>
    %cst_162 = arith.constant dense<0.000000e+00> : vector<256x16xf32>
    %122 = tpu.matmul %119, %121, %cst_162 {dimension_numbers = #tpu.dot_dimension_numbers<[1], [0], [0], [1], [0, 0, 1, 1], [], []>} : vector<256x8xf32>, vector<8x16xf32>, vector<256x16xf32> -> vector<256x16xf32>
    %123 = arith.addf %117, %122 : vector<256x16xf32>
    %c0_163 = arith.constant 0 : index
    %c0_164 = arith.constant 0 : index
    %124 = vector.load %arg5[%c0_163, %c0_164] : memref<1x16xf32, #tpu.memory_space<vmem>>, vector<1x16xf32>
    %125 = vector.broadcast %124 : vector<1x16xf32> to vector<256x16xf32>
    %126 = arith.addf %123, %125 : vector<256x16xf32>
    %cst_165 = arith.constant 0.000000e+00 : f32
    %127 = vector.broadcast %cst_165 : f32 to vector<256x16xf32>
    %128 = arith.maximumf %126, %127 : vector<256x16xf32>
    %129 = vector.shape_cast %128 : vector<256x16xf32> to vector<16x16x16xf32>
    %cst_166 = arith.constant 0.000000e+00 : f32
    %130 = vector.broadcast %cst_166 : f32 to vector<18x18x16xf32>
    %c0_167 = arith.constant 0 : index
    %c0_168 = arith.constant 0 : index
    %c0_169 = arith.constant 0 : index
    %131 = vector.load %arg11[%c0_167, %c0_168, %c0_169] : memref<18x18x16xf32, #tpu.memory_space<vmem>>, vector<18x18x16xf32>
    tpu.vector_store %arg11[%c0_167, %c0_168, %c0_169], %130 {strides = array<i32>} : memref<18x18x16xf32, #tpu.memory_space<vmem>>, vector<18x18x16xf32>,
    %c1_170 = arith.constant 1 : index
    %c1_171 = arith.constant 1 : index
    %c0_172 = arith.constant 0 : index
    %132 = vector.load %arg11[%c1_170, %c1_171, %c0_172] : memref<18x18x16xf32, #tpu.memory_space<vmem>>, vector<16x16x16xf32>
    tpu.vector_store %arg11[%c1_170, %c1_171, %c0_172], %129 {strides = array<i32>} : memref<18x18x16xf32, #tpu.memory_space<vmem>>, vector<16x16x16xf32>,
    %cst_173 = arith.constant 0.000000e+00 : f32
    %133 = vector.broadcast %cst_173 : f32 to vector<256x32xf32>
    %c0_174 = arith.constant 0 : index
    %c0_175 = arith.constant 0 : index
    %c0_176 = arith.constant 0 : index
    %134 = vector.load %arg11[%c0_174, %c0_175, %c0_176] : memref<18x18x16xf32, #tpu.memory_space<vmem>>, vector<16x16x16xf32>
    %135 = vector.shape_cast %134 : vector<16x16x16xf32> to vector<256x16xf32>
    %c0_177 = arith.constant 0 : index
    %c0_178 = arith.constant 0 : index
    %c0_179 = arith.constant 0 : index
    %c0_180 = arith.constant 0 : index
    %136 = vector.load %arg6[%c0_177, %c0_178, %c0_179, %c0_180] : memref<3x3x16x32xf32, #tpu.memory_space<vmem>>, vector<1x1x16x32xf32>
    %137 = vector.shape_cast %136 : vector<1x1x16x32xf32> to vector<16x32xf32>
    %cst_181 = arith.constant dense<0.000000e+00> : vector<256x32xf32>
    %138 = tpu.matmul %135, %137, %cst_181 {dimension_numbers = #tpu.dot_dimension_numbers<[1], [0], [0], [1], [0, 0, 1, 1], [], []>} : vector<256x16xf32>, vector<16x32xf32>, vector<256x32xf32> -> vector<256x32xf32>
    %139 = arith.addf %133, %138 : vector<256x32xf32>
    %c0_182 = arith.constant 0 : index
    %c1_183 = arith.constant 1 : index
    %c0_184 = arith.constant 0 : index
    %140 = vector.load %arg11[%c0_182, %c1_183, %c0_184] : memref<18x18x16xf32, #tpu.memory_space<vmem>>, vector<16x16x16xf32>
    %141 = vector.shape_cast %140 : vector<16x16x16xf32> to vector<256x16xf32>
    %c0_185 = arith.constant 0 : index
    %c1_186 = arith.constant 1 : index
    %c0_187 = arith.constant 0 : index
    %c0_188 = arith.constant 0 : index
    %142 = vector.load %arg6[%c0_185, %c1_186, %c0_187, %c0_188] : memref<3x3x16x32xf32, #tpu.memory_space<vmem>>, vector<1x1x16x32xf32>
    %143 = vector.shape_cast %142 : vector<1x1x16x32xf32> to vector<16x32xf32>
    %cst_189 = arith.constant dense<0.000000e+00> : vector<256x32xf32>
    %144 = tpu.matmul %141, %143, %cst_189 {dimension_numbers = #tpu.dot_dimension_numbers<[1], [0], [0], [1], [0, 0, 1, 1], [], []>} : vector<256x16xf32>, vector<16x32xf32>, vector<256x32xf32> -> vector<256x32xf32>
    %145 = arith.addf %139, %144 : vector<256x32xf32>
    %c0_190 = arith.constant 0 : index
    %c2_191 = arith.constant 2 : index
    %c0_192 = arith.constant 0 : index
    %146 = vector.load %arg11[%c0_190, %c2_191, %c0_192] : memref<18x18x16xf32, #tpu.memory_space<vmem>>, vector<16x16x16xf32>
    %147 = vector.shape_cast %146 : vector<16x16x16xf32> to vector<256x16xf32>
    %c0_193 = arith.constant 0 : index
    %c2_194 = arith.constant 2 : index
    %c0_195 = arith.constant 0 : index
    %c0_196 = arith.constant 0 : index
    %148 = vector.load %arg6[%c0_193, %c2_194, %c0_195, %c0_196] : memref<3x3x16x32xf32, #tpu.memory_space<vmem>>, vector<1x1x16x32xf32>
    %149 = vector.shape_cast %148 : vector<1x1x16x32xf32> to vector<16x32xf32>
    %cst_197 = arith.constant dense<0.000000e+00> : vector<256x32xf32>
    %150 = tpu.matmul %147, %149, %cst_197 {dimension_numbers = #tpu.dot_dimension_numbers<[1], [0], [0], [1], [0, 0, 1, 1], [], []>} : vector<256x16xf32>, vector<16x32xf32>, vector<256x32xf32> -> vector<256x32xf32>
    %151 = arith.addf %145, %150 : vector<256x32xf32>
    %c1_198 = arith.constant 1 : index
    %c0_199 = arith.constant 0 : index
    %c0_200 = arith.constant 0 : index
    %152 = vector.load %arg11[%c1_198, %c0_199, %c0_200] : memref<18x18x16xf32, #tpu.memory_space<vmem>>, vector<16x16x16xf32>
    %153 = vector.shape_cast %152 : vector<16x16x16xf32> to vector<256x16xf32>
    %c1_201 = arith.constant 1 : index
    %c0_202 = arith.constant 0 : index
    %c0_203 = arith.constant 0 : index
    %c0_204 = arith.constant 0 : index
    %154 = vector.load %arg6[%c1_201, %c0_202, %c0_203, %c0_204] : memref<3x3x16x32xf32, #tpu.memory_space<vmem>>, vector<1x1x16x32xf32>
    %155 = vector.shape_cast %154 : vector<1x1x16x32xf32> to vector<16x32xf32>
    %cst_205 = arith.constant dense<0.000000e+00> : vector<256x32xf32>
    %156 = tpu.matmul %153, %155, %cst_205 {dimension_numbers = #tpu.dot_dimension_numbers<[1], [0], [0], [1], [0, 0, 1, 1], [], []>} : vector<256x16xf32>, vector<16x32xf32>, vector<256x32xf32> -> vector<256x32xf32>
    %157 = arith.addf %151, %156 : vector<256x32xf32>
    %c1_206 = arith.constant 1 : index
    %c1_207 = arith.constant 1 : index
    %c0_208 = arith.constant 0 : index
    %158 = vector.load %arg11[%c1_206, %c1_207, %c0_208] : memref<18x18x16xf32, #tpu.memory_space<vmem>>, vector<16x16x16xf32>
    %159 = vector.shape_cast %158 : vector<16x16x16xf32> to vector<256x16xf32>
    %c1_209 = arith.constant 1 : index
    %c1_210 = arith.constant 1 : index
    %c0_211 = arith.constant 0 : index
    %c0_212 = arith.constant 0 : index
    %160 = vector.load %arg6[%c1_209, %c1_210, %c0_211, %c0_212] : memref<3x3x16x32xf32, #tpu.memory_space<vmem>>, vector<1x1x16x32xf32>
    %161 = vector.shape_cast %160 : vector<1x1x16x32xf32> to vector<16x32xf32>
    %cst_213 = arith.constant dense<0.000000e+00> : vector<256x32xf32>
    %162 = tpu.matmul %159, %161, %cst_213 {dimension_numbers = #tpu.dot_dimension_numbers<[1], [0], [0], [1], [0, 0, 1, 1], [], []>} : vector<256x16xf32>, vector<16x32xf32>, vector<256x32xf32> -> vector<256x32xf32>
    %163 = arith.addf %157, %162 : vector<256x32xf32>
    %c1_214 = arith.constant 1 : index
    %c2_215 = arith.constant 2 : index
    %c0_216 = arith.constant 0 : index
    %164 = vector.load %arg11[%c1_214, %c2_215, %c0_216] : memref<18x18x16xf32, #tpu.memory_space<vmem>>, vector<16x16x16xf32>
    %165 = vector.shape_cast %164 : vector<16x16x16xf32> to vector<256x16xf32>
    %c1_217 = arith.constant 1 : index
    %c2_218 = arith.constant 2 : index
    %c0_219 = arith.constant 0 : index
    %c0_220 = arith.constant 0 : index
    %166 = vector.load %arg6[%c1_217, %c2_218, %c0_219, %c0_220] : memref<3x3x16x32xf32, #tpu.memory_space<vmem>>, vector<1x1x16x32xf32>
    %167 = vector.shape_cast %166 : vector<1x1x16x32xf32> to vector<16x32xf32>
    %cst_221 = arith.constant dense<0.000000e+00> : vector<256x32xf32>
    %168 = tpu.matmul %165, %167, %cst_221 {dimension_numbers = #tpu.dot_dimension_numbers<[1], [0], [0], [1], [0, 0, 1, 1], [], []>} : vector<256x16xf32>, vector<16x32xf32>, vector<256x32xf32> -> vector<256x32xf32>
    %169 = arith.addf %163, %168 : vector<256x32xf32>
    %c2_222 = arith.constant 2 : index
    %c0_223 = arith.constant 0 : index
    %c0_224 = arith.constant 0 : index
    %170 = vector.load %arg11[%c2_222, %c0_223, %c0_224] : memref<18x18x16xf32, #tpu.memory_space<vmem>>, vector<16x16x16xf32>
    %171 = vector.shape_cast %170 : vector<16x16x16xf32> to vector<256x16xf32>
    %c2_225 = arith.constant 2 : index
    %c0_226 = arith.constant 0 : index
    %c0_227 = arith.constant 0 : index
    %c0_228 = arith.constant 0 : index
    %172 = vector.load %arg6[%c2_225, %c0_226, %c0_227, %c0_228] : memref<3x3x16x32xf32, #tpu.memory_space<vmem>>, vector<1x1x16x32xf32>
    %173 = vector.shape_cast %172 : vector<1x1x16x32xf32> to vector<16x32xf32>
    %cst_229 = arith.constant dense<0.000000e+00> : vector<256x32xf32>
    %174 = tpu.matmul %171, %173, %cst_229 {dimension_numbers = #tpu.dot_dimension_numbers<[1], [0], [0], [1], [0, 0, 1, 1], [], []>} : vector<256x16xf32>, vector<16x32xf32>, vector<256x32xf32> -> vector<256x32xf32>
    %175 = arith.addf %169, %174 : vector<256x32xf32>
    %c2_230 = arith.constant 2 : index
    %c1_231 = arith.constant 1 : index
    %c0_232 = arith.constant 0 : index
    %176 = vector.load %arg11[%c2_230, %c1_231, %c0_232] : memref<18x18x16xf32, #tpu.memory_space<vmem>>, vector<16x16x16xf32>
    %177 = vector.shape_cast %176 : vector<16x16x16xf32> to vector<256x16xf32>
    %c2_233 = arith.constant 2 : index
    %c1_234 = arith.constant 1 : index
    %c0_235 = arith.constant 0 : index
    %c0_236 = arith.constant 0 : index
    %178 = vector.load %arg6[%c2_233, %c1_234, %c0_235, %c0_236] : memref<3x3x16x32xf32, #tpu.memory_space<vmem>>, vector<1x1x16x32xf32>
    %179 = vector.shape_cast %178 : vector<1x1x16x32xf32> to vector<16x32xf32>
    %cst_237 = arith.constant dense<0.000000e+00> : vector<256x32xf32>
    %180 = tpu.matmul %177, %179, %cst_237 {dimension_numbers = #tpu.dot_dimension_numbers<[1], [0], [0], [1], [0, 0, 1, 1], [], []>} : vector<256x16xf32>, vector<16x32xf32>, vector<256x32xf32> -> vector<256x32xf32>
    %181 = arith.addf %175, %180 : vector<256x32xf32>
    %c2_238 = arith.constant 2 : index
    %c2_239 = arith.constant 2 : index
    %c0_240 = arith.constant 0 : index
    %182 = vector.load %arg11[%c2_238, %c2_239, %c0_240] : memref<18x18x16xf32, #tpu.memory_space<vmem>>, vector<16x16x16xf32>
    %183 = vector.shape_cast %182 : vector<16x16x16xf32> to vector<256x16xf32>
    %c2_241 = arith.constant 2 : index
    %c2_242 = arith.constant 2 : index
    %c0_243 = arith.constant 0 : index
    %c0_244 = arith.constant 0 : index
    %184 = vector.load %arg6[%c2_241, %c2_242, %c0_243, %c0_244] : memref<3x3x16x32xf32, #tpu.memory_space<vmem>>, vector<1x1x16x32xf32>
    %185 = vector.shape_cast %184 : vector<1x1x16x32xf32> to vector<16x32xf32>
    %cst_245 = arith.constant dense<0.000000e+00> : vector<256x32xf32>
    %186 = tpu.matmul %183, %185, %cst_245 {dimension_numbers = #tpu.dot_dimension_numbers<[1], [0], [0], [1], [0, 0, 1, 1], [], []>} : vector<256x16xf32>, vector<16x32xf32>, vector<256x32xf32> -> vector<256x32xf32>
    %187 = arith.addf %181, %186 : vector<256x32xf32>
    %c0_246 = arith.constant 0 : index
    %c0_247 = arith.constant 0 : index
    %188 = vector.load %arg7[%c0_246, %c0_247] : memref<1x32xf32, #tpu.memory_space<vmem>>, vector<1x32xf32>
    %189 = vector.broadcast %188 : vector<1x32xf32> to vector<256x32xf32>
    %190 = arith.addf %187, %189 : vector<256x32xf32>
    %cst_248 = arith.constant 0.000000e+00 : f32
    %191 = vector.broadcast %cst_248 : f32 to vector<256x32xf32>
    %192 = arith.maximumf %190, %191 : vector<256x32xf32>
    %c0_249 = arith.constant 0 : index
    %c0_250 = arith.constant 0 : index
    %c0_251 = arith.constant 0 : index
    %193 = vector.load %arg8[%c0_249, %c0_250, %c0_251] : memref<1x256x32xf32, #tpu.memory_space<vmem>>, vector<1x256x32xf32>
    %194 = vector.shape_cast %193 : vector<1x256x32xf32> to vector<256x32xf32>
    %195 = vector.shape_cast %192 : vector<256x32xf32> to vector<1x256x32xf32>
    tpu.vector_store %arg8[%c0_249, %c0_250, %c0_251], %195 {strides = array<i32>} : memref<1x256x32xf32, #tpu.memory_space<vmem>>, vector<1x256x32xf32>,
    return
  }
  func.func @transform_0(%arg0: i32) -> (i32, i32, i32, i32) {
    %c0_i32 = arith.constant 0 : i32
    %c0_i32_0 = arith.constant 0 : i32
    %c0_i32_1 = arith.constant 0 : i32
    %c0_i32_2 = arith.constant 0 : i32
    return %arg0, %c0_i32, %c0_i32_0, %c0_i32_1 : i32, i32, i32, i32
  }
  func.func @transform_1(%arg0: i32) -> (i32, i32, i32, i32) {
    %c0_i32 = arith.constant 0 : i32
    %c0_i32_0 = arith.constant 0 : i32
    %c0_i32_1 = arith.constant 0 : i32
    %c0_i32_2 = arith.constant 0 : i32
    %c0_i32_3 = arith.constant 0 : i32
    return %c0_i32, %c0_i32_0, %c0_i32_1, %c0_i32_2 : i32, i32, i32, i32
  }
  func.func @transform_2(%arg0: i32) -> (i32, i32) {
    %c0_i32 = arith.constant 0 : i32
    %c0_i32_0 = arith.constant 0 : i32
    %c0_i32_1 = arith.constant 0 : i32
    return %c0_i32, %c0_i32_0 : i32, i32
  }
  func.func @transform_3(%arg0: i32) -> (i32, i32, i32, i32) {
    %c0_i32 = arith.constant 0 : i32
    %c0_i32_0 = arith.constant 0 : i32
    %c0_i32_1 = arith.constant 0 : i32
    %c0_i32_2 = arith.constant 0 : i32
    %c0_i32_3 = arith.constant 0 : i32
    return %c0_i32, %c0_i32_0, %c0_i32_1, %c0_i32_2 : i32, i32, i32, i32
  }
  func.func @transform_4(%arg0: i32) -> (i32, i32) {
    %c0_i32 = arith.constant 0 : i32
    %c0_i32_0 = arith.constant 0 : i32
    %c0_i32_1 = arith.constant 0 : i32
    return %c0_i32, %c0_i32_0 : i32, i32
  }
  func.func @transform_5(%arg0: i32) -> (i32, i32, i32, i32) {
    %c0_i32 = arith.constant 0 : i32
    %c0_i32_0 = arith.constant 0 : i32
    %c0_i32_1 = arith.constant 0 : i32
    %c0_i32_2 = arith.constant 0 : i32
    %c0_i32_3 = arith.constant 0 : i32
    return %c0_i32, %c0_i32_0, %c0_i32_1, %c0_i32_2 : i32, i32, i32, i32
  }
  func.func @transform_6(%arg0: i32) -> (i32, i32) {
    %c0_i32 = arith.constant 0 : i32
    %c0_i32_0 = arith.constant 0 : i32
    %c0_i32_1 = arith.constant 0 : i32
    return %c0_i32, %c0_i32_0 : i32, i32
  }
  func.func @transform_7(%arg0: i32) -> (i32, i32, i32) {
    %c0_i32 = arith.constant 0 : i32
    %c0_i32_0 = arith.constant 0 : i32
    %c0_i32_1 = arith.constant 0 : i32
    return %arg0, %c0_i32, %c0_i32_0 : i32, i32, i32
  }
}

</mosaic_0001>

<bundles_post_ra>
// kernel: tpu_custom_call.1
= control target key start
LH: loop header
LB: loop body
LE: loop exit
PB: predicated region body
PF: predicated region fallthrough
CT: control target
= control target key end

     0   :  { %s14423_s24 = smov 0   ;;  %s19242_s0 = inlined_call_operand.vmem [shape: f32[2,16,16,1], index: 0, kind: input, shape index: {}]   ;;  %s19243_s1 = inlined_call_operand.vmem [shape: f32[3,3,1,8], index: 1, kind: input, shape index: {}]   ;;  %s19244_s2 = inlined_call_operand.vmem [shape: f32[1,8], index: 2, kind: input, shape index: {}]   ;;  %s19245_s3 = inlined_call_operand.vmem [shape: f32[3,3,8,16], index: 3, kind: input, shape index: {}]   ;;  %s19246_s4 = inlined_call_operand.vmem [shape: f32[1,16], index: 4, kind: input, shape index: {}]   ;;  %s19247_s5 = inlined_call_operand.vmem [shape: f32[3,3,16,32], index: 5, kind: input, shape index: {}]   ;;  %s19248_s6 = inlined_call_operand.vmem [shape: f32[1,32], index: 6, kind: input, shape index: {}]   ;;  %s19249_s7 = inlined_call_operand.vmem [shape: f32[2,256,32], index: 7, kind: output, shape index: {}]  }
   0x1 LB: > { %s11173_s25 = sadd.s32 4294967295, %s14380_s24   ;;  %p11177_p0 = scmp.ge.s32.totalorder %s14380_s24, 1  ;;  %s14380_s24 = sphi %s14423_s24, %s17_s24  }
   0x2   : > { %p237_p1 = scmp.lt.s32.totalorder %s14380_s24, 3 }
   0x4   : > { %p238_p2 = pnand %p11177_p0, %p237_p1 }
   0x6   : > { %241 = sbr.rel (%p238_p2) target bundleno = 1474 (0x5c2), region = 48 }
   0xb   : > { %v11182_v0 = vld [vmem:[%s19243_s1 + $0x1] sm:$0x1]  ;;  %vm563_vm0 = vcmask 1040384   ;;  %vm311_vm1 = vcmask 7168   ;;  %p14436_p3 = scmp.lt.s32.totalorder %s11173_s25, 1  ;;  %v19250_v1 = vmov 0.0  }
   0xc   : > { %14362 = vmatprep.subr.msk.mxu1 %vm563_vm0, %v11182_v0  ;;  %12994 = vmatprep.subr.msk.mxu0 %vm563_vm0, %v11182_v0  ;;  %312 = vst.msk [vmem:[#allocation2] sm:$0xff] %vm311_vm1, %v19250_v1  ;;  %313 = vst.msk [vmem:[#allocation2 + $0x8] sm:$0xff] %vm311_vm1, %v19250_v1  ;;  %v14517_v2 = vld [vmem:[%s19243_s1] sm:$0x1]  ;;  %vm314_vm2 = vcmask 1024   ;;  %vm3918_vm3 = vcmask 64512  }
   0xd   : > { %316 = vst.msk [vmem:[#allocation2 + $0x18] sm:$0xff] %vm311_vm1, %v19250_v1  ;;  %317 = vst.msk [vmem:[#allocation2 + $0x20] sm:$0xff] %vm311_vm1, %v19250_v1  ;;  %v11249_v3 = vld [vmem:[%s19243_s1 + $0x2] sm:$0x1]  ;;  %14363 = vmatpush3.msk.msra.mxu1 %vm563_vm0, %v11182_v0  ;;  %12995 = vmatpush3.msk.msra.mxu0 %vm563_vm0, %v11182_v0  ;;  %s20025_s25 = smov (!%p14436_p3, %s11173_s25), 1  ;;  %vm3921_vm4 = vcmask 58368  }
   0xe   : > { %319 = vst.msk [vmem:[#allocation2 + $0x30] sm:$0xff] %vm311_vm1, %v19250_v1  ;;  %320 = vst.msk [vmem:[#allocation2 + $0x38] sm:$0xff] %vm311_vm1, %v19250_v1  ;;  %13044 = vmatprep.subr.msk.mxu1 %vm563_vm0, %v14517_v2  ;;  %13094 = vmatprep.subr.msk.mxu0 %vm563_vm0, %v11249_v3  ;;  %s12092_s10 = sshll.u32 %s20025_s25, 8  ;;  %v14589_v10 = vld [vmem:[%s19243_s1 + $0x4] sm:$0x1]  ;;  %vm7497_vm5 = vcmask 130048  }
   0xf   : > { %322 = vst.msk [vmem:[#allocation2 + $0x48] sm:$0xff] %vm311_vm1, %v19250_v1  ;;  %323 = vst.msk [vmem:[#allocation2 + $0x50] sm:$0xff] %vm311_vm1, %v19250_v1  ;;  %s14575_s13 = scalar_lea.vmem %s19242_s0, %s12092_s10  ;;  %v14648_v34 = vld [vmem:[%s19243_s1 + $0x3] sm:$0x1]  ;;  %vm7500_vm6 = vcmask 123904   ;;  %s19033_s9 = scalar_lea.vmem %s19249_s7, %s12092_s10  ;;  %vm11085_vm7 = vcmask 261120  }
  0x10   : > { %325 = vst.msk [vmem:[#allocation2 + $0x60] sm:$0xff] %vm311_vm1, %v19250_v1  ;;  %326 = vst.msk [vmem:[#allocation2 + $0x68] sm:$0xff] %vm311_vm1, %v19250_v1  ;;  %v293_v4 = vld [vmem:[%s14575_s13 + $0x70] sm:$0xff]  ;;  %v294_v5 = vld [vmem:[%s14575_s13 + $0x78] sm:$0xff] }
  0x11   : > { %328 = vst.msk [vmem:[#allocation2 + $0x78] sm:$0xff] %vm311_vm1, %v19250_v1  ;;  %329 = vst.msk [vmem:[#allocation2 + $0x80] sm:$0xff] %vm311_vm1, %v19250_v1  ;;  %v279_v6 = vld [vmem:[%s14575_s13] sm:$0xff]  ;;  %v280_v8 = vld [vmem:[%s14575_s13 + $0x8] sm:$0xff] }
  0x12   : > { %331 = vst.msk [vmem:[#allocation2 + $0x90] sm:$0xff] %vm311_vm1, %v19250_v1  ;;  %332 = vst.msk [vmem:[#allocation2 + $0x98] sm:$0xff] %vm311_vm1, %v19250_v1  ;;  %v295_v7 = vld [vmem:[%s14575_s13 + $0x80] sm:$0xff]  ;;  %v296_v9 = vld [vmem:[%s14575_s13 + $0x88] sm:$0xff] }
  0x13   : > { %334 = vst.msk [vmem:[#allocation2 + $0xa8] sm:$0xff] %vm311_vm1, %v19250_v1  ;;  %335 = vst.msk [vmem:[#allocation2 + $0xb0] sm:$0xff] %vm311_vm1, %v19250_v1  ;;  %v433_v11 = vld [vmem:[#allocation2 + $0x1] sm:$0xff]  ;;  %v281_v12 = vld [vmem:[%s14575_s13 + $0x10] sm:$0xff] }
  0x14   : > { %337 = vst.msk [vmem:[#allocation2 + $0xc0] sm:$0xff] %vm311_vm1, %v19250_v1  ;;  %338 = vst.msk [vmem:[#allocation2 + $0xc8] sm:$0xff] %vm311_vm1, %v19250_v1  ;;  %v297_v13 = vld [vmem:[%s14575_s13 + $0x90] sm:$0xff]  ;;  %12996 = vmatprep.mubr.msk.f32.mxu0 %vm311_vm1, %v433_v11  ;;  %v282_v15 = vld [vmem:[%s14575_s13 + $0x18] sm:$0xff] }
  0x15   : > { %340 = vst.msk [vmem:[#allocation2 + $0xd8] sm:$0xff] %vm311_vm1, %v19250_v1  ;;  %341 = vst.msk [vmem:[#allocation2 + $0xe0] sm:$0xff] %vm311_vm1, %v19250_v1  ;;  %v298_v16 = vld [vmem:[%s14575_s13 + $0x98] sm:$0xff]  ;;  %v283_v17 = vld [vmem:[%s14575_s13 + $0x20] sm:$0xff] }
  0x16   : > { %343 = vst.msk [vmem:[#allocation2 + $0xf0] sm:$0xff] %vm311_vm1, %v19250_v1  ;;  %344 = vst.msk [vmem:[#allocation2 + $0xf8] sm:$0xff] %vm311_vm1, %v19250_v1  ;;  %v299_v18 = vld [vmem:[%s14575_s13 + $0xa0] sm:$0xff]  ;;  %v284_v19 = vld [vmem:[%s14575_s13 + $0x28] sm:$0xff] }
  0x17   : > { %346 = vst.msk [vmem:[#allocation2 + $0x108] sm:$0xff] %vm311_vm1, %v19250_v1  ;;  %347 = vst.msk [vmem:[#allocation2 + $0x110] sm:$0xff] %vm311_vm1, %v19250_v1  ;;  %v300_v20 = vld [vmem:[%s14575_s13 + $0xa8] sm:$0xff]  ;;  %v285_v21 = vld [vmem:[%s14575_s13 + $0x30] sm:$0xff] }
  0x18   : > { %349 = vst.msk [vmem:[#allocation2 + $0x120] sm:$0xff] %vm311_vm1, %v19250_v1  ;;  %350 = vst.msk [vmem:[#allocation2 + $0x128] sm:$0xff] %vm311_vm1, %v19250_v1  ;;  %v301_v22 = vld [vmem:[%s14575_s13 + $0xb0] sm:$0xff]  ;;  %v286_v23 = vld [vmem:[%s14575_s13 + $0x38] sm:$0xff] }
  0x19   : > { %352 = vst.msk [vmem:[#allocation2 + $0x138] sm:$0xff] %vm311_vm1, %v19250_v1  ;;  %353 = vst.msk [vmem:[#allocation2 + $0x140] sm:$0xff] %vm311_vm1, %v19250_v1  ;;  %v302_v24 = vld [vmem:[%s14575_s13 + $0xb8] sm:$0xff]  ;;  %v287_v25 = vld [vmem:[%s14575_s13 + $0x40] sm:$0xff] }
  0x1a   : > { %355 = vst.msk [vmem:[#allocation2 + $0x150] sm:$0xff] %vm311_vm1, %v19250_v1  ;;  %356 = vst.msk [vmem:[#allocation2 + $0x158] sm:$0xff] %vm311_vm1, %v19250_v1  ;;  %v303_v26 = vld [vmem:[%s14575_s13 + $0xc0] sm:$0xff]  ;;  %v288_v27 = vld [vmem:[%s14575_s13 + $0x48] sm:$0xff] }
  0x1b   : > { %358 = vst.msk [vmem:[#allocation2 + $0x168] sm:$0xff] %vm311_vm1, %v19250_v1  ;;  %359 = vst.msk [vmem:[#allocation2 + $0x170] sm:$0xff] %vm311_vm1, %v19250_v1  ;;  %v304_v28 = vld [vmem:[%s14575_s13 + $0xc8] sm:$0xff]  ;;  %v289_v36 = vld [vmem:[%s14575_s13 + $0x50] sm:$0xff] }
  0x1c   : > { %361 = vst.msk [vmem:[#allocation2 + $0x180] sm:$0xff] %vm311_vm1, %v19250_v1  ;;  %362 = vst.msk [vmem:[#allocation2 + $0x188] sm:$0xff] %vm311_vm1, %v19250_v1  ;;  %v305_v39 = vld [vmem:[%s14575_s13 + $0xd0] sm:$0xff]  ;;  %v290_v46 = vld [vmem:[%s14575_s13 + $0x58] sm:$0xff] }
  0x1d   : > { %364 = vst.msk [vmem:[#allocation2 + $0x198] sm:$0xff] %vm311_vm1, %v19250_v1  ;;  %365 = vst.msk [vmem:[#allocation2 + $0x1a0] sm:$0xff] %vm311_vm1, %v19250_v1  ;;  %v306_v47 = vld [vmem:[%s14575_s13 + $0xd8] sm:$0xff]  ;;  %v291_v48 = vld [vmem:[%s14575_s13 + $0x60] sm:$0xff] }
  0x1e   : > { %315 = vst.msk [vmem:[#allocation2 + $0x10] sm:$0x3] %vm314_vm2, %v19250_v1  ;;  %318 = vst.msk [vmem:[#allocation2 + $0x28] sm:$0x3] %vm314_vm2, %v19250_v1  ;;  %v307_v49 = vld [vmem:[%s14575_s13 + $0xe0] sm:$0xff]  ;;  %v292_v50 = vld [vmem:[%s14575_s13 + $0x68] sm:$0xff] }
  0x1f   : > { %321 = vst.msk [vmem:[#allocation2 + $0x40] sm:$0x3] %vm314_vm2, %v19250_v1  ;;  %324 = vst.msk [vmem:[#allocation2 + $0x58] sm:$0x3] %vm314_vm2, %v19250_v1  ;;  %v308_v51 = vld [vmem:[%s14575_s13 + $0xe8] sm:$0xff] }
  0x20   : > { %327 = vst.msk [vmem:[#allocation2 + $0x70] sm:$0x3] %vm314_vm2, %v19250_v1  ;;  %330 = vst.msk [vmem:[#allocation2 + $0x88] sm:$0x3] %vm314_vm2, %v19250_v1  ;;  %v401_v11 = vld [vmem:[#allocation2 + $0x8] sm:$0xff] }
  0x21   : > { %333 = vst.msk [vmem:[#allocation2 + $0xa0] sm:$0x3] %vm314_vm2, %v19250_v1  ;;  %336 = vst.msk [vmem:[#allocation2 + $0xb8] sm:$0x3] %vm314_vm2, %v19250_v1 }
  0x22   : > { %339 = vst.msk [vmem:[#allocation2 + $0xd0] sm:$0x3] %vm314_vm2, %v19250_v1  ;;  %342 = vst.msk [vmem:[#allocation2 + $0xe8] sm:$0x3] %vm314_vm2, %v19250_v1 }
  0x23   : > { %345 = vst.msk [vmem:[#allocation2 + $0x100] sm:$0x3] %vm314_vm2, %v19250_v1  ;;  %348 = vst.msk [vmem:[#allocation2 + $0x118] sm:$0x3] %vm314_vm2, %v19250_v1 }
  0x24   : > { %351 = vst.msk [vmem:[#allocation2 + $0x130] sm:$0x3] %vm314_vm2, %v19250_v1  ;;  %354 = vst.msk [vmem:[#allocation2 + $0x148] sm:$0x3] %vm314_vm2, %v19250_v1 }
  0x25   : > { %357 = vst.msk [vmem:[#allocation2 + $0x160] sm:$0x3] %vm314_vm2, %v19250_v1  ;;  %360 = vst.msk [vmem:[#allocation2 + $0x178] sm:$0x3] %vm314_vm2, %v19250_v1  ;;  %v434_v14 = vld [vmem:[#allocation2 + $0x9] sm:$0xff] }
  0x26   : > { %363 = vst.msk [vmem:[#allocation2 + $0x190] sm:$0x3] %vm314_vm2, %v19250_v1  ;;  %366 = vst.msk [vmem:[#allocation2 + $0x1a8] sm:$0x3] %vm314_vm2, %v19250_v1  ;;  %12997 = vmatmul.mubr.msk.f32.vlgmr.msra.gmra.mxu0 %vm311_vm1, %v434_v14 }
  0x27   : > { %382 = vst.msk [vmem:[#allocation2 + $0xc1] sm:$0xff] %vm311_vm1, %v293_v4  ;;  %383 = vst.msk [vmem:[#allocation2 + $0xc9] sm:$0xff] %vm311_vm1, %v294_v5  ;;  %13095 = vmatpush3.msk.msra.mxu0 %vm563_vm0, %v11249_v3  ;;  %v1116_v4 = vld [vmem:[#allocation2 + $0x2] sm:$0xff] }
  0x28   : > { %368 = vst.msk [vmem:[#allocation2 + $0x19] sm:$0xff] %vm311_vm1, %v279_v6  ;;  %384 = vst.msk [vmem:[#allocation2 + $0xd9] sm:$0xff] %vm311_vm1, %v295_v7  ;;  %13194 = vmatprep.subr.msk.mxu0 %vm563_vm0, %v14589_v10  ;;  %v1117_v6 = vld [vmem:[#allocation2 + $0xa] sm:$0xff]  ;;  %v400_v7 = vld [vmem:[#allocation2] sm:$0xff] }
  0x29   : > { %369 = vst.msk [vmem:[#allocation2 + $0x21] sm:$0xff] %vm311_vm1, %v280_v8  ;;  %385 = vst.msk [vmem:[#allocation2 + $0xe1] sm:$0xff] %vm311_vm1, %v296_v9  ;;  %v14780_v9 = vld [vmem:[%s19243_s1 + $0x6] sm:$0x1] }
  0x2a   : > { %370 = vst.msk [vmem:[#allocation2 + $0x31] sm:$0xff] %vm311_vm1, %v281_v12  ;;  %386 = vst.msk [vmem:[#allocation2 + $0xf1] sm:$0xff] %vm311_vm1, %v297_v13 }
  0x2b   : > { %371 = vst.msk [vmem:[#allocation2 + $0x39] sm:$0xff] %vm311_vm1, %v282_v15  ;;  %387 = vst.msk [vmem:[#allocation2 + $0xf9] sm:$0xff] %vm311_vm1, %v298_v16  ;;  %v14801_v15 = vld [vmem:[%s19243_s1 + $0x5] sm:$0x1]  ;;  %v310_v16 = vld [vmem:[%s14575_s13 + $0xf8] sm:$0xff] }
  0x2c   : > { %372 = vst.msk [vmem:[#allocation2 + $0x49] sm:$0xff] %vm311_vm1, %v283_v17  ;;  %388 = vst.msk [vmem:[#allocation2 + $0x109] sm:$0xff] %vm311_vm1, %v299_v18 }
  0x2d   : > { %373 = vst.msk [vmem:[#allocation2 + $0x51] sm:$0xff] %vm311_vm1, %v284_v19  ;;  %389 = vst.msk [vmem:[#allocation2 + $0x111] sm:$0xff] %vm311_vm1, %v300_v20 }
  0x2e   : > { %374 = vst.msk [vmem:[#allocation2 + $0x61] sm:$0xff] %vm311_vm1, %v285_v21  ;;  %390 = vst.msk [vmem:[#allocation2 + $0x121] sm:$0xff] %vm311_vm1, %v301_v22  ;;  %v14628_v29 = vld [vmem:[#allocation2 + $0xc1] sm:$0xff]  ;;  %v14630_v30 = vld [vmem:[#allocation2 + $0xc9] sm:$0xff] }
  0x2f   : > { %375 = vst.msk [vmem:[#allocation2 + $0x69] sm:$0xff] %vm311_vm1, %v286_v23  ;;  %391 = vst.msk [vmem:[#allocation2 + $0x129] sm:$0xff] %vm311_vm1, %v302_v24  ;;  %v14632_v31 = vld [vmem:[#allocation2 + $0x19] sm:$0xff]  ;;  %13020 = vmatprep.mubr.msk.f32.mxu1 %vm311_vm1, %v14628_v29 }
  0x30   : > { %376 = vst.msk [vmem:[#allocation2 + $0x79] sm:$0xff] %vm311_vm1, %v287_v25  ;;  %392 = vst.msk [vmem:[#allocation2 + $0x139] sm:$0xff] %vm311_vm1, %v303_v26  ;;  %12999 = vmatprep.mubr.msk.f32.mxu0 %vm311_vm1, %v14632_v31  ;;  %v14641_v32 = vld [vmem:[#allocation2 + $0xd9] sm:$0xff]  ;;  %v14643_v33 = vld [vmem:[#allocation2 + $0x21] sm:$0xff]  ;;  %13021 = vmatmul.mubr.msk.f32.vlgmr.msra.gmra.mxu1 %vm311_vm1, %v14630_v30 }
  0x31   : > { %377 = vst.msk [vmem:[#allocation2 + $0x81] sm:$0xff] %vm311_vm1, %v288_v27  ;;  %393 = vst.msk [vmem:[#allocation2 + $0x141] sm:$0xff] %vm311_vm1, %v304_v28  ;;  %13000 = vmatmul.mubr.msk.f32.gmra.mxu0 %vm311_vm1, %v14643_v33  ;;  %v14654_v35 = vld [vmem:[#allocation2 + $0x31] sm:$0xff]  ;;  %13045 = vmatpush3.msk.msra.mxu1 %vm563_vm0, %v14517_v2  ;;  %v14661_v37 = vld [vmem:[#allocation2 + $0xe1] sm:$0xff] }
  0x32   : > { %13023 = vmatprep.mubr.msk.f32.mxu1 %vm311_vm1, %v14641_v32  ;;  %v14663_v38 = vld [vmem:[#allocation2 + $0x39] sm:$0xff]  ;;  %378 = vst.msk [vmem:[#allocation2 + $0x91] sm:$0xff] %vm311_vm1, %v289_v36  ;;  %13002 = vmatprep.mubr.msk.f32.mxu0 %vm311_vm1, %v14654_v35  ;;  %v14669_v40 = vld [vmem:[#allocation2 + $0xf1] sm:$0xff]  ;;  %394 = vst.msk [vmem:[#allocation2 + $0x151] sm:$0xff] %vm311_vm1, %v305_v39 }
  0x33   : > { %v14671_v41 = vld [vmem:[#allocation2 + $0x49] sm:$0xff]  ;;  %13144 = vmatprep.subr.msk.mxu1 %vm563_vm0, %v14648_v34  ;;  %v14680_v42 = vld [vmem:[#allocation2 + $0xf9] sm:$0xff]  ;;  %379 = vst.msk [vmem:[#allocation2 + $0x99] sm:$0xff] %vm311_vm1, %v290_v46  ;;  %395 = vst.msk [vmem:[#allocation2 + $0x159] sm:$0xff] %vm311_vm1, %v306_v47 }
  0x34   : > { %13024 = vmatmul.mubr.msk.f32.gmra.mxu1 %vm311_vm1, %v14661_v37  ;;  %v14686_v43 = vld [vmem:[#allocation2 + $0x109] sm:$0xff]  ;;  %v14688_v44 = vld [vmem:[#allocation2 + $0x51] sm:$0xff]  ;;  %380 = vst.msk [vmem:[#allocation2 + $0xa9] sm:$0xff] %vm311_vm1, %v291_v48  ;;  %396 = vst.msk [vmem:[#allocation2 + $0x169] sm:$0xff] %vm311_vm1, %v307_v49 }
  0x35   : > { %13003 = vmatmul.mubr.msk.f32.gmra.mxu0 %vm311_vm1, %v14663_v38  ;;  %13026 = vmatprep.mubr.msk.f32.mxu1 %vm311_vm1, %v14669_v40  ;;  %v14690_v45 = vld [vmem:[#allocation2 + $0x61] sm:$0xff]  ;;  %381 = vst.msk [vmem:[#allocation2 + $0xb1] sm:$0xff] %vm311_vm1, %v292_v50  ;;  %397 = vst.msk [vmem:[#allocation2 + $0x171] sm:$0xff] %vm311_vm1, %v308_v51  ;;  %v14710_v52 = vld [vmem:[#allocation2 + $0x111] sm:$0xff] }
  0x36   : > { %13005 = vmatprep.mubr.msk.f32.mxu0 %vm311_vm1, %v14671_v41  ;;  %v14714_v53 = vld [vmem:[#allocation2 + $0x69] sm:$0xff]  ;;  %v14716_v54 = vld [vmem:[#allocation2 + $0x121] sm:$0xff]  ;;  %v14790_v13 = vld [vmem:[#allocation2 + $0x18] sm:$0xff]  ;;  %399 = vst.msk [vmem:[#allocation2 + $0x189] sm:$0xff] %vm311_vm1, %v310_v16 }
  0x37   : > { %v14718_v55 = vld [vmem:[#allocation2 + $0x79] sm:$0xff]  ;;  %v14726_v56 = vld [vmem:[#allocation2 + $0x129] sm:$0xff] }
  0x38   : > { %13027 = vmatmul.mubr.msk.f32.gmra.mxu1 %vm311_vm1, %v14680_v42  ;;  %v14730_v57 = vld [vmem:[#allocation2 + $0x81] sm:$0xff]  ;;  %v14732_v58 = vld [vmem:[#allocation2 + $0x139] sm:$0xff]  ;;  %v14818_v19 = vld [vmem:[#allocation2 + $0x30] sm:$0xff] }
  0x39   : > { %13006 = vmatmul.mubr.msk.f32.gmra.mxu0 %vm311_vm1, %v14688_v44  ;;  %13029 = vmatprep.mubr.msk.f32.mxu1 %vm311_vm1, %v14686_v43  ;;  %v14734_v59 = vld [vmem:[#allocation2 + $0x91] sm:$0xff]  ;;  %v14742_v60 = vld [vmem:[#allocation2 + $0x141] sm:$0xff] }
  0x3a   : > { %13008 = vmatprep.mubr.msk.f32.mxu0 %vm311_vm1, %v14690_v45  ;;  %v14746_v61 = vld [vmem:[#allocation2 + $0x99] sm:$0xff]  ;;  %v14748_v62 = vld [vmem:[#allocation2 + $0x151] sm:$0xff]  ;;  %v14788_v12 = vld [vmem:[#allocation2 + $0x22] sm:$0xff] }
  0x3b   : > { %v14750_v63 = vld [vmem:[#allocation2 + $0xa9] sm:$0xff]  ;;  %v14758_v0 = vld [vmem:[#allocation2 + $0x159] sm:$0xff]  ;;  %19373 = vst [vmem:[#allocation6_spill] sm:$0xff] %v14788_v12 }
  0x3c   : > { %13030 = vmatmul.mubr.msk.f32.gmra.mxu1 %vm311_vm1, %v14710_v52  ;;  %v14762_v2 = vld [vmem:[#allocation2 + $0xb1] sm:$0xff]  ;;  %v14764_v3 = vld [vmem:[#allocation2 + $0x169] sm:$0xff]  ;;  %v14775_v8 = vld [vmem:[#allocation2 + $0x1a] sm:$0xff] }
  0x3d   : > { %13009 = vmatmul.mubr.msk.f32.gmra.mxu0 %vm311_vm1, %v14714_v53  ;;  %13032 = vmatprep.mubr.msk.f32.mxu1 %vm311_vm1, %v14716_v54  ;;  %v14772_v5 = vld [vmem:[#allocation2 + $0x171] sm:$0xff]  ;;  %19372 = vst [vmem:[#allocation5_spill] sm:$0xff] %v14775_v8  ;;  %v14812_v17 = vld [vmem:[#allocation2 + $0x20] sm:$0xff]  ;;  %v14838_v23 = vld [vmem:[#allocation2 + $0x48] sm:$0xff] }
  0x3e   : > { %13011 = vmatprep.mubr.msk.f32.mxu0 %vm311_vm1, %v14718_v55  ;;  %v14796_v14 = vld [vmem:[#allocation2 + $0x32] sm:$0xff]  ;;  %v14814_v18 = vld [vmem:[#allocation2 + $0x3a] sm:$0xff]  ;;  %v14822_v20 = vld [vmem:[#allocation2 + $0x4a] sm:$0xff] }
  0x3f   : > { %19374 = vst [vmem:[#allocation7_spill] sm:$0xff] %v14796_v14  ;;  %19375 = vst [vmem:[#allocation8_spill] sm:$0xff] %v14814_v18  ;;  %v14832_v21 = vld [vmem:[#allocation2 + $0x38] sm:$0xff]  ;;  %v14840_v24 = vld [vmem:[#allocation2 + $0x62] sm:$0xff] }
  0x40   : > { %13033 = vmatmul.mubr.msk.f32.gmra.mxu1 %vm311_vm1, %v14726_v56  ;;  %19376 = vst [vmem:[#allocation9_spill] sm:$0xff] %v14822_v20  ;;  %v14836_v22 = vld [vmem:[#allocation2 + $0x52] sm:$0xff]  ;;  %19378 = vst [vmem:[#allocation11_spill] sm:$0xff] %v14840_v24  ;;  %v14852_v26 = vld [vmem:[#allocation2 + $0x6a] sm:$0xff] }
  0x41   : > { %13012 = vmatmul.mubr.msk.f32.gmra.mxu0 %vm311_vm1, %v14730_v57  ;;  %13035 = vmatprep.mubr.msk.f32.mxu1 %vm311_vm1, %v14732_v58  ;;  %19377 = vst [vmem:[#allocation10_spill] sm:$0xff] %v14836_v22  ;;  %v14848_v25 = vld [vmem:[#allocation2 + $0x50] sm:$0xff]  ;;  %19379 = vst [vmem:[#allocation12_spill] sm:$0xff] %v14852_v26  ;;  %v14854_v27 = vld [vmem:[#allocation2 + $0x60] sm:$0xff] }
  0x42   : > { %13014 = vmatprep.mubr.msk.f32.mxu0 %vm311_vm1, %v14734_v59  ;;  %v14856_v28 = vld [vmem:[#allocation2 + $0x7a] sm:$0xff]  ;;  %v14868_v36 = vld [vmem:[#allocation2 + $0x82] sm:$0xff]  ;;  %v14872_v46 = vld [vmem:[#allocation2 + $0x92] sm:$0xff] }
  0x43   : > { %19380 = vst [vmem:[#allocation13_spill] sm:$0xff] %v14856_v28  ;;  %19381 = vst [vmem:[#allocation14_spill] sm:$0xff] %v14868_v36  ;;  %v14870_v39 = vld [vmem:[#allocation2 + $0x78] sm:$0xff]  ;;  %v14880_v47 = vld [vmem:[#allocation2 + $0x80] sm:$0xff] }
  0x44   : > { %13036 = vmatmul.mubr.msk.f32.gmra.mxu1 %vm311_vm1, %v14742_v60  ;;  %19382 = vst [vmem:[#allocation15_spill] sm:$0xff] %v14872_v46  ;;  %v14884_v48 = vld [vmem:[#allocation2 + $0x9a] sm:$0xff]  ;;  %v14886_v49 = vld [vmem:[#allocation2 + $0x90] sm:$0xff] }
  0x45   : > { %13015 = vmatmul.mubr.msk.f32.gmra.mxu0 %vm311_vm1, %v14746_v61  ;;  %13038 = vmatprep.mubr.msk.f32.mxu1 %vm311_vm1, %v14748_v62  ;;  %19383 = vst [vmem:[#allocation16_spill] sm:$0xff] %v14884_v48  ;;  %v14888_v50 = vld [vmem:[#allocation2 + $0xaa] sm:$0xff]  ;;  %v14896_v51 = vld [vmem:[#allocation2 + $0x98] sm:$0xff]  ;;  %v14918_v16 = vld [vmem:[#allocation2 + $0xc0] sm:$0xff] }
  0x46   : > { %13017 = vmatprep.mubr.msk.f32.mxu0 %vm311_vm1, %v14750_v63  ;;  %19384 = vst [vmem:[#allocation17_spill] sm:$0xff] %v14888_v50  ;;  %v14920_v1 = vld [vmem:[#allocation2 + $0xda] sm:$0xff] }
  0x47   : > { %19388 = vst [vmem:[#allocation21_spill] sm:$0xff] %v14920_v1 }
  0x48   : > { %13039 = vmatmul.mubr.msk.f32.gmra.mxu1 %vm311_vm1, %v14758_v0 }
  0x49   : > { %13018 = vmatmul.mubr.msk.f32.gmra.mxu0 %vm311_vm1, %v14762_v2  ;;  %13041 = vmatprep.mubr.msk.f32.mxu1 %vm311_vm1, %v14764_v3 }
  0x4a   : > { %13096 = vmatprep.mubr.msk.f32.mxu0 %vm311_vm1, %v1116_v4  ;;  %v14900_v4 = vld [vmem:[#allocation2 + $0xb2] sm:$0xff] }
  0x4b   : > { %19385 = vst [vmem:[#allocation18_spill] sm:$0xff] %v14900_v4 }
  0x4c   : > { %13042 = vmatmul.mubr.msk.f32.gmra.mxu1 %vm311_vm1, %v14772_v5 }
  0x4d   : > { %13097 = vmatmul.mubr.msk.f32.vlgmr.msra.gmra.mxu0 %vm311_vm1, %v1117_v6  ;;  %13046 = vmatprep.mubr.msk.f32.mxu1 %vm311_vm1, %v400_v7  ;;  %v14902_v6 = vld [vmem:[#allocation2 + $0xa8] sm:$0xff] }
  0x4e   : > { %13195 = vmatpush3.msk.msra.mxu0 %vm563_vm0, %v14589_v10  ;;  %13099 = vmatprep.mubr.msk.f32.mxu0 %vm311_vm1, %v14775_v8  ;;  %v309_v10 = vld [vmem:[%s14575_s13 + $0xf0] sm:$0xff]  ;;  %v14904_v7 = vld [vmem:[#allocation2 + $0xc2] sm:$0xff] }
  0x4f   : > { %13294 = vmatprep.subr.msk.mxu0 %vm563_vm0, %v14780_v9  ;;  %398 = vst.msk [vmem:[#allocation2 + $0x181] sm:$0xff] %vm311_vm1, %v309_v10  ;;  %19386 = vst [vmem:[#allocation19_spill] sm:$0xff] %v14904_v7  ;;  %v14916_v10 = vld [vmem:[#allocation2 + $0xca] sm:$0xff] }
  0x50   : > { %13047 = vmatmul.mubr.msk.f32.vlgmr.msra.gmra.mxu1 %vm311_vm1, %v401_v11  ;;  %v14912_v11 = vld [vmem:[#allocation2 + $0xb0] sm:$0xff]  ;;  %19387 = vst [vmem:[#allocation20_spill] sm:$0xff] %v14916_v10  ;;  %v15030_v8 = vld [vmem:[#allocation2 + $0x168] sm:$0xff] }
  0x51   : > { %13100 = vmatmul.mubr.msk.f32.gmra.mxu0 %vm311_vm1, %v14788_v12  ;;  %13145 = vmatpush3.msk.msra.mxu1 %vm563_vm0, %v14648_v34  ;;  %v14864_v34 = vld [vmem:[#allocation2 + $0x68] sm:$0xff] }
  0x52   : > { %13049 = vmatprep.mubr.msk.f32.mxu1 %vm311_vm1, %v14790_v13  ;;  %13102 = vmatprep.mubr.msk.f32.mxu0 %vm311_vm1, %v14796_v14  ;;  %v15014_v14 = vld [vmem:[#allocation2 + $0x150] sm:$0xff] }
  0x53   : > { %13244 = vmatprep.subr.msk.mxu1 %vm563_vm0, %v14801_v15  ;;  %v15016_v12 = vld [vmem:[#allocation2 + $0x16a] sm:$0xff] }
  0x54   : > { %13050 = vmatmul.mubr.msk.f32.gmra.mxu1 %vm311_vm1, %v14812_v17  ;;  %19400 = vst [vmem:[#allocation33_spill] sm:$0xff] %v15016_v12 }
  0x55   : > { %13103 = vmatmul.mubr.msk.f32.gmra.mxu0 %vm311_vm1, %v14814_v18  ;;  %13052 = vmatprep.mubr.msk.f32.mxu1 %vm311_vm1, %v14818_v19  ;;  %v15000_v18 = vld [vmem:[#allocation2 + $0x152] sm:$0xff] }
  0x56   : > { %13105 = vmatprep.mubr.msk.f32.mxu0 %vm311_vm1, %v14822_v20  ;;  %v14998_v20 = vld [vmem:[#allocation2 + $0x138] sm:$0xff]  ;;  %19398 = vst [vmem:[#allocation31_spill] sm:$0xff] %v15000_v18 }
  0x58   : > { %13053 = vmatmul.mubr.msk.f32.gmra.mxu1 %vm311_vm1, %v14832_v21 }
  0x59   : > { %13106 = vmatmul.mubr.msk.f32.gmra.mxu0 %vm311_vm1, %v14836_v22  ;;  %13055 = vmatprep.mubr.msk.f32.mxu1 %vm311_vm1, %v14838_v23  ;;  %v14984_v22 = vld [vmem:[#allocation2 + $0x13a] sm:$0xff] }
  0x5a   : > { %13108 = vmatprep.mubr.msk.f32.mxu0 %vm311_vm1, %v14840_v24  ;;  %v14982_v24 = vld [vmem:[#allocation2 + $0x120] sm:$0xff]  ;;  %19396 = vst [vmem:[#allocation29_spill] sm:$0xff] %v14984_v22 }
  0x5c   : > { %13056 = vmatmul.mubr.msk.f32.gmra.mxu1 %vm311_vm1, %v14848_v25 }
  0x5d   : > { %13109 = vmatmul.mubr.msk.f32.gmra.mxu0 %vm311_vm1, %v14852_v26  ;;  %13058 = vmatprep.mubr.msk.f32.mxu1 %vm311_vm1, %v14854_v27  ;;  %v14968_v26 = vld [vmem:[#allocation2 + $0x122] sm:$0xff] }
  0x5e   : > { %13111 = vmatprep.mubr.msk.f32.mxu0 %vm311_vm1, %v14856_v28  ;;  %v14966_v28 = vld [vmem:[#allocation2 + $0x108] sm:$0xff]  ;;  %19394 = vst [vmem:[#allocation27_spill] sm:$0xff] %v14968_v26 }
  0x60   : > { %13059 = vmatmul.mubr.msk.f32.gmra.mxu1 %vm311_vm1, %v14864_v34 }
  0x61   : > { %13112 = vmatmul.mubr.msk.f32.gmra.mxu0 %vm311_vm1, %v14868_v36  ;;  %13061 = vmatprep.mubr.msk.f32.mxu1 %vm311_vm1, %v14870_v39  ;;  %v14952_v36 = vld [vmem:[#allocation2 + $0x10a] sm:$0xff] }
  0x62   : > { %13114 = vmatprep.mubr.msk.f32.mxu0 %vm311_vm1, %v14872_v46  ;;  %v14950_v46 = vld [vmem:[#allocation2 + $0xf0] sm:$0xff]  ;;  %19392 = vst [vmem:[#allocation25_spill] sm:$0xff] %v14952_v36 }
  0x64   : > { %13062 = vmatmul.mubr.msk.f32.gmra.mxu1 %vm311_vm1, %v14880_v47 }
  0x65   : > { %13115 = vmatmul.mubr.msk.f32.gmra.mxu0 %vm311_vm1, %v14884_v48  ;;  %13064 = vmatprep.mubr.msk.f32.mxu1 %vm311_vm1, %v14886_v49  ;;  %v14936_v48 = vld [vmem:[#allocation2 + $0xf2] sm:$0xff] }
  0x66   : > { %13117 = vmatprep.mubr.msk.f32.mxu0 %vm311_vm1, %v14888_v50  ;;  %v14934_v50 = vld [vmem:[#allocation2 + $0xd8] sm:$0xff]  ;;  %19390 = vst [vmem:[#allocation23_spill] sm:$0xff] %v14936_v48 }
  0x68   : > { %13065 = vmatmul.mubr.msk.f32.gmra.mxu1 %vm311_vm1, %v14896_v51 }
  0x69   : > { %13118 = vmatmul.mubr.msk.f32.gmra.mxu0 %vm311_vm1, %v14900_v4  ;;  %13067 = vmatprep.mubr.msk.f32.mxu1 %vm311_vm1, %v14902_v6  ;;  %v14928_v4 = vld [vmem:[#allocation2 + $0xc8] sm:$0xff] }
  0x6a   : > { %13120 = vmatprep.mubr.msk.f32.mxu0 %vm311_vm1, %v14904_v7  ;;  %v14932_v7 = vld [vmem:[#allocation2 + $0xe2] sm:$0xff] }
  0x6b   : > { %19389 = vst [vmem:[#allocation22_spill] sm:$0xff] %v14932_v7 }
  0x6c   : > { %13068 = vmatmul.mubr.msk.f32.gmra.mxu1 %vm311_vm1, %v14912_v11 }
  0x6d   : > { %13121 = vmatmul.mubr.msk.f32.gmra.mxu0 %vm311_vm1, %v14916_v10  ;;  %13070 = vmatprep.mubr.msk.f32.mxu1 %vm311_vm1, %v14918_v16  ;;  %v14944_v10 = vld [vmem:[#allocation2 + $0xe0] sm:$0xff] }
  0x6e   : > { %13123 = vmatprep.mubr.msk.f32.mxu0 %vm311_vm1, %v14920_v1  ;;  %v14948_v1 = vld [vmem:[#allocation2 + $0xfa] sm:$0xff] }
  0x6f   : > { %19391 = vst [vmem:[#allocation24_spill] sm:$0xff] %v14948_v1 }
  0x70   : > { %13071 = vmatmul.mubr.msk.f32.gmra.mxu1 %vm311_vm1, %v14928_v4 }
  0x71   : > { %13124 = vmatmul.mubr.msk.f32.gmra.mxu0 %vm311_vm1, %v14932_v7  ;;  %13073 = vmatprep.mubr.msk.f32.mxu1 %vm311_vm1, %v14934_v50  ;;  %v14960_v7 = vld [vmem:[#allocation2 + $0xf8] sm:$0xff] }
  0x72   : > { %13126 = vmatprep.mubr.msk.f32.mxu0 %vm311_vm1, %v14936_v48  ;;  %v14964_v48 = vld [vmem:[#allocation2 + $0x112] sm:$0xff] }
  0x73   : > { %19393 = vst [vmem:[#allocation26_spill] sm:$0xff] %v14964_v48 }
  0x74   : > { %13074 = vmatmul.mubr.msk.f32.gmra.mxu1 %vm311_vm1, %v14944_v10 }
  0x75   : > { %13127 = vmatmul.mubr.msk.f32.gmra.mxu0 %vm311_vm1, %v14948_v1  ;;  %13076 = vmatprep.mubr.msk.f32.mxu1 %vm311_vm1, %v14950_v46  ;;  %v14976_v1 = vld [vmem:[#allocation2 + $0x110] sm:$0xff] }
  0x76   : > { %13129 = vmatprep.mubr.msk.f32.mxu0 %vm311_vm1, %v14952_v36  ;;  %v14980_v36 = vld [vmem:[#allocation2 + $0x12a] sm:$0xff] }
  0x77   : > { %19395 = vst [vmem:[#allocation28_spill] sm:$0xff] %v14980_v36 }
  0x78   : > { %13077 = vmatmul.mubr.msk.f32.gmra.mxu1 %vm311_vm1, %v14960_v7 }
  0x79   : > { %13130 = vmatmul.mubr.msk.f32.gmra.mxu0 %vm311_vm1, %v14964_v48  ;;  %13079 = vmatprep.mubr.msk.f32.mxu1 %vm311_vm1, %v14966_v28  ;;  %v14992_v48 = vld [vmem:[#allocation2 + $0x128] sm:$0xff] }
  0x7a   : > { %13132 = vmatprep.mubr.msk.f32.mxu0 %vm311_vm1, %v14968_v26  ;;  %v14996_v26 = vld [vmem:[#allocation2 + $0x142] sm:$0xff] }
  0x7b   : > { %19397 = vst [vmem:[#allocation30_spill] sm:$0xff] %v14996_v26 }
  0x7c   : > { %13080 = vmatmul.mubr.msk.f32.gmra.mxu1 %vm311_vm1, %v14976_v1 }
  0x7d   : > { %13133 = vmatmul.mubr.msk.f32.gmra.mxu0 %vm311_vm1, %v14980_v36  ;;  %13082 = vmatprep.mubr.msk.f32.mxu1 %vm311_vm1, %v14982_v24  ;;  %v15008_v36 = vld [vmem:[#allocation2 + $0x140] sm:$0xff] }
  0x7e   : > { %13135 = vmatprep.mubr.msk.f32.mxu0 %vm311_vm1, %v14984_v22  ;;  %v15012_v22 = vld [vmem:[#allocation2 + $0x15a] sm:$0xff] }
  0x7f   : > { %19399 = vst [vmem:[#allocation32_spill] sm:$0xff] %v15012_v22 }
  0x80   : > { %13083 = vmatmul.mubr.msk.f32.gmra.mxu1 %vm311_vm1, %v14992_v48 }
  0x81   : > { %13136 = vmatmul.mubr.msk.f32.gmra.mxu0 %vm311_vm1, %v14996_v26  ;;  %13085 = vmatprep.mubr.msk.f32.mxu1 %vm311_vm1, %v14998_v20  ;;  %v15024_v26 = vld [vmem:[#allocation2 + $0x158] sm:$0xff] }
  0x82   : > { %13138 = vmatprep.mubr.msk.f32.mxu0 %vm311_vm1, %v15000_v18  ;;  %v15028_v18 = vld [vmem:[#allocation2 + $0x172] sm:$0xff] }
  0x84   : > { %13086 = vmatmul.mubr.msk.f32.gmra.mxu1 %vm311_vm1, %v15008_v36 }
  0x85   : > { %13139 = vmatmul.mubr.msk.f32.gmra.mxu0 %vm311_vm1, %v15012_v22  ;;  %13088 = vmatprep.mubr.msk.f32.mxu1 %vm311_vm1, %v15014_v14  ;;  %v15038_v22 = vld [vmem:[#allocation2 + $0x170] sm:$0xff] }
  0x86   : > { %13141 = vmatprep.mubr.msk.f32.mxu0 %vm311_vm1, %v15016_v12  ;;  %v15045_v12 = vld [vmem:[%s19243_s1 + $0x8] sm:$0x1] }
  0x88   : > { %13089 = vmatmul.mubr.msk.f32.gmra.mxu1 %vm311_vm1, %v15024_v26 }
  0x89   : > { %13142 = vmatmul.mubr.msk.f32.gmra.mxu0 %vm311_vm1, %v15028_v18  ;;  %13091 = vmatprep.mubr.msk.f32.mxu1 %vm311_vm1, %v15030_v8 }
  0x8a   : > { %13196 = vmatprep.mubr.msk.f32.mxu0 %vm311_vm1, %v14632_v31  ;;  %v15062_v31 = vld [vmem:[%s19243_s1 + $0x7] sm:$0x1] }
  0x8c   : > { %13092 = vmatmul.mubr.msk.f32.gmra.mxu1 %vm311_vm1, %v15038_v22 }
  0x8d   : > { %13197 = vmatmul.mubr.msk.f32.vlgmr.msra.gmra.mxu0 %vm311_vm1, %v14643_v33  ;;  %13146 = vmatprep.mubr.msk.f32.mxu1 %vm311_vm1, %v14790_v13  ;;  %v15192_v33 = vld [vmem:[#allocation2 + $0x188] sm:$0xff] }
  0x8e   : > { %13295 = vmatpush3.msk.msra.mxu0 %vm563_vm0, %v14780_v9  ;;  %13199 = vmatprep.mubr.msk.f32.mxu0 %vm311_vm1, %v14654_v35  ;;  %v19401_v35 = vld [vmem:[#allocation5_spill] sm:$0xff] }
  0x8f   : > { %13394 = vmatprep.subr.msk.mxu0 %vm563_vm0, %v15045_v12 }
  0x90   : > { %13147 = vmatmul.mubr.msk.f32.vlgmr.msra.gmra.mxu1 %vm311_vm1, %v14812_v17 }
  0x91   : > { %13200 = vmatmul.mubr.msk.f32.gmra.mxu0 %vm311_vm1, %v14663_v38  ;;  %13245 = vmatpush3.msk.msra.mxu1 %vm563_vm0, %v14801_v15  ;;  %v19403_v38 = vld [vmem:[#allocation7_spill] sm:$0xff] }
  0x92   : > { %13149 = vmatprep.mubr.msk.f32.mxu1 %vm311_vm1, %v14818_v19  ;;  %13202 = vmatprep.mubr.msk.f32.mxu0 %vm311_vm1, %v14671_v41  ;;  %v19405_v41 = vld [vmem:[#allocation9_spill] sm:$0xff] }
  0x93   : > { %13344 = vmatprep.subr.msk.mxu1 %vm563_vm0, %v15062_v31 }
  0x94   : > { %13150 = vmatmul.mubr.msk.f32.gmra.mxu1 %vm311_vm1, %v14832_v21 }
  0x95   : > { %13203 = vmatmul.mubr.msk.f32.gmra.mxu0 %vm311_vm1, %v14688_v44  ;;  %13152 = vmatprep.mubr.msk.f32.mxu1 %vm311_vm1, %v14838_v23  ;;  %v19408_v44 = vld [vmem:[#allocation12_spill] sm:$0xff] }
  0x96   : > { %13205 = vmatprep.mubr.msk.f32.mxu0 %vm311_vm1, %v14690_v45  ;;  %v19409_v45 = vld [vmem:[#allocation13_spill] sm:$0xff] }
  0x98   : > { %13153 = vmatmul.mubr.msk.f32.gmra.mxu1 %vm311_vm1, %v14848_v25 }
  0x99   : > { %13206 = vmatmul.mubr.msk.f32.gmra.mxu0 %vm311_vm1, %v14714_v53  ;;  %13155 = vmatprep.mubr.msk.f32.mxu1 %vm311_vm1, %v14854_v27  ;;  %v19411_v53 = vld [vmem:[#allocation15_spill] sm:$0xff] }
  0x9a   : > { %13208 = vmatprep.mubr.msk.f32.mxu0 %vm311_vm1, %v14718_v55  ;;  %v19413_v55 = vld [vmem:[#allocation17_spill] sm:$0xff] }
  0x9c   : > { %13156 = vmatmul.mubr.msk.f32.gmra.mxu1 %vm311_vm1, %v14864_v34 }
  0x9d   : > { %13209 = vmatmul.mubr.msk.f32.gmra.mxu0 %vm311_vm1, %v14730_v57  ;;  %13158 = vmatprep.mubr.msk.f32.mxu1 %vm311_vm1, %v14870_v39  ;;  %v19415_v57 = vld [vmem:[#allocation19_spill] sm:$0xff] }
  0x9e   : > { %13211 = vmatprep.mubr.msk.f32.mxu0 %vm311_vm1, %v14734_v59  ;;  %v19416_v59 = vld [vmem:[#allocation20_spill] sm:$0xff] }
  0xa0   : > { %13159 = vmatmul.mubr.msk.f32.gmra.mxu1 %vm311_vm1, %v14880_v47 }
  0xa1   : > { %13212 = vmatmul.mubr.msk.f32.gmra.mxu0 %vm311_vm1, %v14746_v61  ;;  %13161 = vmatprep.mubr.msk.f32.mxu1 %vm311_vm1, %v14886_v49  ;;  %v19417_v61 = vld [vmem:[#allocation21_spill] sm:$0xff] }
  0xa2   : > { %13214 = vmatprep.mubr.msk.f32.mxu0 %vm311_vm1, %v14750_v63  ;;  %v19418_v63 = vld [vmem:[#allocation22_spill] sm:$0xff] }
  0xa4   : > { %13162 = vmatmul.mubr.msk.f32.gmra.mxu1 %vm311_vm1, %v14896_v51 }
  0xa5   : > { %13215 = vmatmul.mubr.msk.f32.gmra.mxu0 %vm311_vm1, %v14762_v2  ;;  %13164 = vmatprep.mubr.msk.f32.mxu1 %vm311_vm1, %v14902_v6  ;;  %v19419_v2 = vld [vmem:[#allocation23_spill] sm:$0xff] }
  0xa6   : > { %13217 = vmatprep.mubr.msk.f32.mxu0 %vm311_vm1, %v14628_v29  ;;  %v15172_v29 = vld [vmem:[#allocation2 + $0x181] sm:$0xff] }
  0xa8   : > { %13165 = vmatmul.mubr.msk.f32.gmra.mxu1 %vm311_vm1, %v14912_v11 }
  0xa9   : > { %13218 = vmatmul.mubr.msk.f32.gmra.mxu0 %vm311_vm1, %v14630_v30  ;;  %13167 = vmatprep.mubr.msk.f32.mxu1 %vm311_vm1, %v14918_v16  ;;  %v15182_v30 = vld [vmem:[#allocation2 + $0x189] sm:$0xff] }
  0xaa   : > { %13220 = vmatprep.mubr.msk.f32.mxu0 %vm311_vm1, %v14641_v32  ;;  %v15184_v32 = vld [vmem:[#allocation2 + $0x180] sm:$0xff] }
  0xac   : > { %13168 = vmatmul.mubr.msk.f32.gmra.mxu1 %vm311_vm1, %v14928_v4 }
  0xad   : > { %13221 = vmatmul.mubr.msk.f32.gmra.mxu0 %vm311_vm1, %v14661_v37  ;;  %13170 = vmatprep.mubr.msk.f32.mxu1 %vm311_vm1, %v14934_v50  ;;  %v19402_v37 = vld [vmem:[#allocation6_spill] sm:$0xff] }
  0xae   : > { %13223 = vmatprep.mubr.msk.f32.mxu0 %vm311_vm1, %v14669_v40  ;;  %v19404_v40 = vld [vmem:[#allocation8_spill] sm:$0xff] }
  0xb0   : > { %13171 = vmatmul.mubr.msk.f32.gmra.mxu1 %vm311_vm1, %v14944_v10 }
  0xb1   : > { %13224 = vmatmul.mubr.msk.f32.gmra.mxu0 %vm311_vm1, %v14680_v42  ;;  %13173 = vmatprep.mubr.msk.f32.mxu1 %vm311_vm1, %v14950_v46  ;;  %v19406_v42 = vld [vmem:[#allocation10_spill] sm:$0xff] }
  0xb2   : > { %13226 = vmatprep.mubr.msk.f32.mxu0 %vm311_vm1, %v14686_v43  ;;  %v19407_v43 = vld [vmem:[#allocation11_spill] sm:$0xff] }
  0xb4   : > { %13174 = vmatmul.mubr.msk.f32.gmra.mxu1 %vm311_vm1, %v14960_v7 }
  0xb5   : > { %13227 = vmatmul.mubr.msk.f32.gmra.mxu0 %vm311_vm1, %v14710_v52  ;;  %13176 = vmatprep.mubr.msk.f32.mxu1 %vm311_vm1, %v14966_v28  ;;  %v19410_v52 = vld [vmem:[#allocation14_spill] sm:$0xff] }
  0xb6   : > { %13229 = vmatprep.mubr.msk.f32.mxu0 %vm311_vm1, %v14716_v54  ;;  %v19412_v54 = vld [vmem:[#allocation16_spill] sm:$0xff] }
  0xb8   : > { %13177 = vmatmul.mubr.msk.f32.gmra.mxu1 %vm311_vm1, %v14976_v1 }
  0xb9   : > { %13230 = vmatmul.mubr.msk.f32.gmra.mxu0 %vm311_vm1, %v14726_v56  ;;  %13179 = vmatprep.mubr.msk.f32.mxu1 %vm311_vm1, %v14982_v24  ;;  %v19414_v56 = vld [vmem:[#allocation18_spill] sm:$0xff] }
  0xba   : > { %13232 = vmatprep.mubr.msk.f32.mxu0 %vm311_vm1, %v14732_v58 }
  0xbc   : > { %13180 = vmatmul.mubr.msk.f32.gmra.mxu1 %vm311_vm1, %v14992_v48 }
  0xbd   : > { %13233 = vmatmul.mubr.msk.f32.gmra.mxu0 %vm311_vm1, %v14742_v60  ;;  %13182 = vmatprep.mubr.msk.f32.mxu1 %vm311_vm1, %v14998_v20 }
  0xbe   : > { %13235 = vmatprep.mubr.msk.f32.mxu0 %vm311_vm1, %v14748_v62 }
  0xc0   : > { %13183 = vmatmul.mubr.msk.f32.gmra.mxu1 %vm311_vm1, %v15008_v36 }
  0xc1   : > { %13236 = vmatmul.mubr.msk.f32.gmra.mxu0 %vm311_vm1, %v14758_v0  ;;  %13185 = vmatprep.mubr.msk.f32.mxu1 %vm311_vm1, %v15014_v14 }
  0xc2   : > { %13238 = vmatprep.mubr.msk.f32.mxu0 %vm311_vm1, %v14764_v3 }
  0xc4   : > { %13186 = vmatmul.mubr.msk.f32.gmra.mxu1 %vm311_vm1, %v15024_v26 }
  0xc5   : > { %13239 = vmatmul.mubr.msk.f32.gmra.mxu0 %vm311_vm1, %v14772_v5  ;;  %13188 = vmatprep.mubr.msk.f32.mxu1 %vm311_vm1, %v15030_v8 }
  0xc6   : > { %13241 = vmatprep.mubr.msk.f32.mxu0 %vm311_vm1, %v15172_v29 }
  0xc8   : > { %13189 = vmatmul.mubr.msk.f32.gmra.mxu1 %vm311_vm1, %v15038_v22 }
  0xc9   : > { %13242 = vmatmul.mubr.msk.f32.gmra.mxu0 %vm311_vm1, %v15182_v30  ;;  %13191 = vmatprep.mubr.msk.f32.mxu1 %vm311_vm1, %v15184_v32 }
  0xca   : > { %13296 = vmatprep.mubr.msk.f32.mxu0 %vm311_vm1, %v14818_v19 }
  0xcc   : > { %13192 = vmatmul.mubr.msk.f32.gmra.mxu1 %vm311_vm1, %v15192_v33 }
  0xcd   : > { %13297 = vmatmul.mubr.msk.f32.vlgmr.msra.gmra.mxu0 %vm311_vm1, %v14832_v21  ;;  %13246 = vmatprep.mubr.msk.f32.mxu1 %vm311_vm1, %v19401_v35  ;;  %v19423_v21 = vld [vmem:[#allocation26_spill] sm:$0xff] }
  0xce   : > { %13395 = vmatpush3.msk.msra.mxu0 %vm563_vm0, %v15045_v12  ;;  %13299 = vmatprep.mubr.msk.f32.mxu0 %vm311_vm1, %v14838_v23  ;;  %v19420_v12 = vld [vmem:[#allocation24_spill] sm:$0xff] }
  0xd0   : > { %13247 = vmatmul.mubr.msk.f32.vlgmr.msra.gmra.mxu1 %vm311_vm1, %v19402_v37 }
  0xd1   : > { %13300 = vmatmul.mubr.msk.f32.gmra.mxu0 %vm311_vm1, %v14848_v25  ;;  %13345 = vmatpush3.msk.msra.mxu1 %vm563_vm0, %v15062_v31 }
  0xd2   : > { %13249 = vmatprep.mubr.msk.f32.mxu1 %vm311_vm1, %v19403_v38  ;;  %13302 = vmatprep.mubr.msk.f32.mxu0 %vm311_vm1, %v14854_v27 }
  0xd4   : > { %13250 = vmatmul.mubr.msk.f32.gmra.mxu1 %vm311_vm1, %v19404_v40 }
  0xd5   : > { %13303 = vmatmul.mubr.msk.f32.gmra.mxu0 %vm311_vm1, %v14864_v34  ;;  %13252 = vmatprep.mubr.msk.f32.mxu1 %vm311_vm1, %v19405_v41 }
  0xd6   : > { %13305 = vmatprep.mubr.msk.f32.mxu0 %vm311_vm1, %v14870_v39 }
  0xd8   : > { %13253 = vmatmul.mubr.msk.f32.gmra.mxu1 %vm311_vm1, %v19406_v42 }
  0xd9   : > { %13306 = vmatmul.mubr.msk.f32.gmra.mxu0 %vm311_vm1, %v14880_v47  ;;  %13255 = vmatprep.mubr.msk.f32.mxu1 %vm311_vm1, %v19407_v43  ;;  %v19429_v47 = vld [vmem:[#allocation30_spill] sm:$0xff] }
  0xda   : > { %13308 = vmatprep.mubr.msk.f32.mxu0 %vm311_vm1, %v14886_v49 }
  0xdc   : > { %13256 = vmatmul.mubr.msk.f32.gmra.mxu1 %vm311_vm1, %v19408_v44 }
  0xdd   : > { %13309 = vmatmul.mubr.msk.f32.gmra.mxu0 %vm311_vm1, %v14896_v51  ;;  %13258 = vmatprep.mubr.msk.f32.mxu1 %vm311_vm1, %v19409_v45 }
  0xde   : > { %13311 = vmatprep.mubr.msk.f32.mxu0 %vm311_vm1, %v14902_v6 }
  0xe0   : > { %13259 = vmatmul.mubr.msk.f32.gmra.mxu1 %vm311_vm1, %v19410_v52 }
  0xe1   : > { %13312 = vmatmul.mubr.msk.f32.gmra.mxu0 %vm311_vm1, %v14912_v11  ;;  %13261 = vmatprep.mubr.msk.f32.mxu1 %vm311_vm1, %v19411_v53 }
  0xe2   : > { %13314 = vmatprep.mubr.msk.f32.mxu0 %vm311_vm1, %v14918_v16  ;;  %v15371_v16 = vld [vmem:[#allocation2 + $0x182] sm:$0xff] }
  0xe4   : > { %13262 = vmatmul.mubr.msk.f32.gmra.mxu1 %vm311_vm1, %v19412_v54 }
  0xe5   : > { %13315 = vmatmul.mubr.msk.f32.gmra.mxu0 %vm311_vm1, %v14928_v4  ;;  %13264 = vmatprep.mubr.msk.f32.mxu1 %vm311_vm1, %v19413_v55  ;;  %v19432_v4 = vld [vmem:[#allocation32_spill] sm:$0xff] }
  0xe6   : > { %13317 = vmatprep.mubr.msk.f32.mxu0 %vm311_vm1, %v14934_v50  ;;  %v15264_v58 = vpop.f32.mrf.mxu0  ;;  %v2707_v50 = vld [vmem:[#allocation2 + $0x198] sm:$0xff] }
  0xe8   : > { %13265 = vmatmul.mubr.msk.f32.gmra.mxu1 %vm311_vm1, %v19414_v56  ;;  %v15270_v60 = vpop.f32.mrf.mxu0 }
  0xe9   : > { %13318 = vmatmul.mubr.msk.f32.gmra.mxu0 %vm311_vm1, %v14944_v10  ;;  %13267 = vmatprep.mubr.msk.f32.mxu1 %vm311_vm1, %v19415_v57 }
  0xea   : > { %13320 = vmatprep.mubr.msk.f32.mxu0 %vm311_vm1, %v14950_v46 }
  0xec   : > { %13268 = vmatmul.mubr.msk.f32.gmra.mxu1 %vm311_vm1, %v19416_v59 }
  0xed   : > { %13321 = vmatmul.mubr.msk.f32.gmra.mxu0 %vm311_vm1, %v14960_v7  ;;  %13270 = vmatprep.mubr.msk.f32.mxu1 %vm311_vm1, %v19417_v61  ;;  %v2708_v7 = vld [vmem:[#allocation2 + $0x1a0] sm:$0xff] }
  0xee   : > { %13323 = vmatprep.mubr.msk.f32.mxu0 %vm311_vm1, %v14966_v28  ;;  %v19426_v28 = vld [vmem:[#allocation28_spill] sm:$0xff] }
  0xf0   : > { %v15276_v62 = vpop.f32.mrf.mxu1  ;;  %13271 = vmatmul.mubr.msk.f32.gmra.mxu1 %vm311_vm1, %v19418_v63 }
  0xf1   : > { %v15280_v0 = vpop.f32.mrf.mxu0  ;;  %13324 = vmatmul.mubr.msk.f32.gmra.mxu0 %vm311_vm1, %v14976_v1  ;;  %13273 = vmatprep.mubr.msk.f32.mxu1 %vm311_vm1, %v19419_v2  ;;  %v19421_v1 = vld [vmem:[#allocation25_spill] sm:$0xff] }
  0xf2   : > { %13326 = vmatprep.mubr.msk.f32.mxu0 %vm311_vm1, %v14982_v24  ;;  %v15288_v3 = vpop.f32.mrf.mxu1  ;;  %v19424_v24 = vld [vmem:[#allocation27_spill] sm:$0xff] }
  0xf3   : > { %v15290_v5 = vpop.f32.mrf.mxu0 }
  0xf4   : > { %v15292_v9 = vpop.f32.mrf.mxu1  ;;  %13274 = vmatmul.mubr.msk.f32.gmra.mxu1 %vm311_vm1, %v19420_v12 }
  0xf5   : > { %v15296_v13 = vpop.f32.mrf.mxu0  ;;  %13327 = vmatmul.mubr.msk.f32.gmra.mxu0 %vm311_vm1, %v14992_v48  ;;  %13276 = vmatprep.mubr.msk.f32.mxu1 %vm311_vm1, %v19421_v1 }
  0xf6   : > { %13329 = vmatprep.mubr.msk.f32.mxu0 %vm311_vm1, %v14998_v20  ;;  %v15304_v15 = vpop.f32.mrf.mxu1 }
  0xf7   : > { %19422 = vst [vmem:[#allocation5_spill] sm:$0xff] %v15304_v15  ;;  %v15306_v17 = vpop.f32.mrf.mxu0 }
  0xf8   : > { %v15308_v19 = vpop.f32.mrf.mxu1  ;;  %13277 = vmatmul.mubr.msk.f32.gmra.mxu1 %vm311_vm1, %v19423_v21 }
  0xf9   : > { %v15312_v23 = vpop.f32.mrf.mxu0  ;;  %13330 = vmatmul.mubr.msk.f32.gmra.mxu0 %vm311_vm1, %v15008_v36  ;;  %13279 = vmatprep.mubr.msk.f32.mxu1 %vm311_vm1, %v19424_v24  ;;  %v19427_v36 = vld [vmem:[#allocation29_spill] sm:$0xff] }
  0xfa   : > { %13332 = vmatprep.mubr.msk.f32.mxu0 %vm311_vm1, %v15014_v14  ;;  %v15320_v20 = vpop.f32.mrf.mxu1 }
  0xfb   : > { %19425 = vst [vmem:[#allocation6_spill] sm:$0xff] %v15320_v20  ;;  %v15322_v25 = vpop.f32.mrf.mxu0 }
  0xfc   : > { %v15324_v27 = vpop.f32.mrf.mxu1  ;;  %13280 = vmatmul.mubr.msk.f32.gmra.mxu1 %vm311_vm1, %v19426_v28 }
  0xfd   : > { %v15328_v34 = vpop.f32.mrf.mxu0  ;;  %13333 = vmatmul.mubr.msk.f32.gmra.mxu0 %vm311_vm1, %v15024_v26  ;;  %13282 = vmatprep.mubr.msk.f32.mxu1 %vm311_vm1, %v19427_v36  ;;  %v19430_v26 = vld [vmem:[#allocation31_spill] sm:$0xff] }
  0xfe   : > { %13335 = vmatprep.mubr.msk.f32.mxu0 %vm311_vm1, %v15030_v8  ;;  %v15336_v14 = vpop.f32.mrf.mxu1 }
  0xff   : > { %19428 = vst [vmem:[#allocation7_spill] sm:$0xff] %v15336_v14  ;;  %v15338_v39 = vpop.f32.mrf.mxu0 }
 0x100   : > { %v15340_v46 = vpop.f32.mrf.mxu1  ;;  %13283 = vmatmul.mubr.msk.f32.gmra.mxu1 %vm311_vm1, %v19429_v47 }
 0x101   : > { %v15344_v48 = vpop.f32.mrf.mxu0  ;;  %13336 = vmatmul.mubr.msk.f32.gmra.mxu0 %vm311_vm1, %v15038_v22  ;;  %13285 = vmatprep.mubr.msk.f32.mxu1 %vm311_vm1, %v19430_v26  ;;  %v19433_v22 = vld [vmem:[#allocation33_spill] sm:$0xff] }
 0x102   : > { %13338 = vmatprep.mubr.msk.f32.mxu0 %vm311_vm1, %v15184_v32  ;;  %v15352_v8 = vpop.f32.mrf.mxu1 }
 0x103   : > { %19431 = vst [vmem:[#allocation8_spill] sm:$0xff] %v15352_v8  ;;  %v15354_v49 = vpop.f32.mrf.mxu0 }
 0x104   : > { %v15356_v51 = vpop.f32.mrf.mxu1  ;;  %13286 = vmatmul.mubr.msk.f32.gmra.mxu1 %vm311_vm1, %v19432_v4 }
 0x105   : > { %v15360_v6 = vpop.f32.mrf.mxu0  ;;  %13339 = vmatmul.mubr.msk.f32.gmra.mxu0 %vm311_vm1, %v15192_v33  ;;  %13288 = vmatprep.mubr.msk.f32.mxu1 %vm311_vm1, %v19433_v22  ;;  %v15382_v33 = vld [vmem:[#allocation2 + $0x18a] sm:$0xff]  ;;  %v3068_v22 = vld [vmem:[#allocation2 + $0x39] sm:$0xff] }
 0x106   : > { %13341 = vmatprep.mubr.msk.f32.mxu0 %vm311_vm1, %v2707_v50  ;;  %v15367_v11 = vpop.f32.mrf.mxu1  ;;  %v3067_v50 = vld [vmem:[#allocation2 + $0x31] sm:$0xff] }
 0x107   : > { %19434 = vst [vmem:[#allocation9_spill] sm:$0xff] %v15367_v11  ;;  %v15369_v10 = vpop.f32.mrf.mxu0 }
 0x108   : > { %v15373_v31 = vpop.f32.mrf.mxu1  ;;  %13289 = vmatmul.mubr.msk.f32.gmra.mxu1 %vm311_vm1, %v15028_v18 }
 0x109   : > { %v15377_v32 = vpop.f32.mrf.mxu0  ;;  %13342 = vmatmul.mubr.msk.f32.gmra.mxu0 %vm311_vm1, %v2708_v7  ;;  %13291 = vmatprep.mubr.msk.f32.mxu1 %vm311_vm1, %v15371_v16 }
 0x10a   : > { %13396 = vmatprep.mubr.msk.f32.mxu0 %vm311_vm1, %v19403_v38  ;;  %v15386_v35 = vpop.f32.mrf.mxu1 }
 0x10b   : > { %19435 = vst [vmem:[#allocation10_spill] sm:$0xff] %v15386_v35  ;;  %v15388_v37 = vpop.f32.mrf.mxu0  ;;  %v3069_v35 = vld [vmem:[#allocation2 + $0x49] sm:$0xff] }
 0x10c   : > { %v15390_v4 = vpop.f32.mrf.mxu1  ;;  %13292 = vmatmul.mubr.msk.f32.gmra.mxu1 %vm311_vm1, %v15382_v33 }
 0x10d   : > { %19436 = vst [vmem:[#allocation11_spill] sm:$0xff] %v15390_v4  ;;  %v13098_v18 = vpop.f32.mrf.mxu0  ;;  %13397 = vmatmul.mubr.msk.f32.vlgmr.msra.gmra.mxu0 %vm311_vm1, %v19404_v40  ;;  %13346 = vmatprep.mubr.msk.f32.mxu1 %vm311_vm1, %v3067_v50  ;;  %v3070_v40 = vld [vmem:[#allocation2 + $0x51] sm:$0xff] }
 0x10e   : > { %13399 = vmatprep.mubr.msk.f32.mxu0 %vm311_vm1, %v19405_v41  ;;  %v15399_v38 = vpop.f32.mrf.mxu1 }
 0x10f   : > { %19437 = vst [vmem:[#allocation12_spill] sm:$0xff] %v15399_v38  ;;  %v1315_v7 = vpop.f32.mrf.mxu0  ;;  %v3071_v38 = vld [vmem:[#allocation2 + $0x61] sm:$0xff] }
 0x110   : > { %v13048_v11 = vpop.f32.mrf.mxu1  ;;  %13347 = vmatmul.mubr.msk.f32.vlgmr.msra.gmra.mxu1 %vm311_vm1, %v3068_v22 }
 0x111   : > { %v13101_v8 = vpop.f32.mrf.mxu0  ;;  %13400 = vmatmul.mubr.msk.f32.gmra.mxu0 %vm311_vm1, %v19406_v42  ;;  %v963_v14 = vadd.f32 %v13048_v11, %v15264_v58  ;;  %13349 = vmatprep.mubr.msk.f32.mxu1 %vm311_vm1, %v3069_v35 }
 0x112   : > { %13402 = vmatprep.mubr.msk.f32.mxu0 %vm311_vm1, %v19407_v43  ;;  %v957_v41 = vpop.f32.mrf.mxu1  ;;  %v3072_v43 = vld [vmem:[#allocation2 + $0x69] sm:$0xff] }
 0x113   : > { %v1325_v50 = vpop.f32.mrf.mxu0  ;;  %v15408_v20 = vadd.f32 %v13098_v18, %v963_v14  ;;  %v958_v15 = vadd.f32 %v957_v41, %v15270_v60  ;;  %v3073_v60 = vld [vmem:[#allocation2 + $0x79] sm:$0xff] }
 0x114   : > { %v13051_v22 = vpop.f32.mrf.mxu1  ;;  %13350 = vmatmul.mubr.msk.f32.gmra.mxu1 %vm311_vm1, %v3070_v40 }
 0x115   : > { %v13104_v4 = vpop.f32.mrf.mxu0  ;;  %13403 = vmatmul.mubr.msk.f32.gmra.mxu0 %vm311_vm1, %v19408_v44  ;;  %v15414_v42 = vadd.f32 %v1315_v7, %v958_v15  ;;  %v973_v58 = vadd.f32 %v13051_v22, %v15280_v0  ;;  %13352 = vmatprep.mubr.msk.f32.mxu1 %vm311_vm1, %v3071_v38 }
 0x116   : > { %13405 = vmatprep.mubr.msk.f32.mxu0 %vm311_vm1, %v19409_v45  ;;  %v967_v14 = vpop.f32.mrf.mxu1  ;;  %v3074_v45 = vld [vmem:[#allocation2 + $0x81] sm:$0xff] }
 0x117   : > { %v1335_v11 = vpop.f32.mrf.mxu0  ;;  %v15420_v35 = vadd.f32 %v13101_v8, %v973_v58  ;;  %v968_v18 = vadd.f32 %v967_v14, %v15290_v5  ;;  %v3075_v5 = vld [vmem:[#allocation2 + $0x91] sm:$0xff] }
 0x118   : > { %v13054_v40 = vpop.f32.mrf.mxu1  ;;  %13353 = vmatmul.mubr.msk.f32.gmra.mxu1 %vm311_vm1, %v3072_v43 }
 0x119   : > { %v13107_v44 = vpop.f32.mrf.mxu0  ;;  %13406 = vmatmul.mubr.msk.f32.gmra.mxu0 %vm311_vm1, %v19410_v52  ;;  %v15426_v0 = vadd.f32 %v1325_v50, %v968_v18  ;;  %v983_v15 = vadd.f32 %v13054_v40, %v15296_v13  ;;  %13355 = vmatprep.mubr.msk.f32.mxu1 %vm311_vm1, %v3073_v60 }
 0x11a   : > { %13408 = vmatprep.mubr.msk.f32.mxu0 %vm311_vm1, %v19411_v53  ;;  %v977_v8 = vpop.f32.mrf.mxu1  ;;  %v3076_v53 = vld [vmem:[#allocation2 + $0x99] sm:$0xff] }
 0x11b   : > { %v1345_v38 = vpop.f32.mrf.mxu0  ;;  %v15432_v7 = vadd.f32 %v13104_v4, %v983_v15  ;;  %v978_v41 = vadd.f32 %v977_v8, %v15306_v17  ;;  %v3077_v17 = vld [vmem:[#allocation2 + $0xa9] sm:$0xff] }
 0x11c   : > { %v13057_v22 = vpop.f32.mrf.mxu1  ;;  %13356 = vmatmul.mubr.msk.f32.gmra.mxu1 %vm311_vm1, %v3074_v45 }
 0x11d   : > { %v13110_v52 = vpop.f32.mrf.mxu0  ;;  %13409 = vmatmul.mubr.msk.f32.gmra.mxu0 %vm311_vm1, %v19412_v54  ;;  %v15438_v13 = vadd.f32 %v1335_v11, %v978_v41  ;;  %v993_v50 = vadd.f32 %v13057_v22, %v15312_v23  ;;  %13358 = vmatprep.mubr.msk.f32.mxu1 %vm311_vm1, %v3075_v5  ;;  %v3081_v41 = vld [vmem:[#allocation2 + $0xd9] sm:$0xff] }
 0x11e   : > { %13411 = vmatprep.mubr.msk.f32.mxu0 %vm311_vm1, %v19413_v55  ;;  %v987_v4 = vpop.f32.mrf.mxu1  ;;  %v3078_v55 = vld [vmem:[#allocation2 + $0xb1] sm:$0xff] }
 0x11f   : > { %v1355_v58 = vpop.f32.mrf.mxu0  ;;  %v15444_v43 = vadd.f32 %v13107_v44, %v993_v50  ;;  %v988_v14 = vadd.f32 %v987_v4, %v15322_v25  ;;  %v11488_v25 = vld [vmem:[%s19245_s3 + $0x8] sm:$0xff] }
 0x120   : > { %v13060_v60 = vpop.f32.mrf.mxu1  ;;  %13359 = vmatmul.mubr.msk.f32.gmra.mxu1 %vm311_vm1, %v3076_v53  ;;  %v3079_v44 = vld [vmem:[#allocation2 + $0xc1] sm:$0xff]  ;;  %13444 = vmatprep.subr.mxu1 %v11488_v25 }
 0x121   : > { %v13113_v54 = vpop.f32.mrf.mxu0  ;;  %13412 = vmatmul.mubr.msk.f32.gmra.mxu0 %vm311_vm1, %v19414_v56  ;;  %v15450_v23 = vadd.f32 %v1345_v38, %v988_v14  ;;  %v1003_v11 = vadd.f32 %v13060_v60, %v15328_v34  ;;  %13361 = vmatprep.mubr.msk.f32.mxu1 %vm311_vm1, %v3077_v17  ;;  %v3080_v38 = vld [vmem:[#allocation2 + $0xc9] sm:$0xff] }
 0x122   : > { %13414 = vmatprep.mubr.msk.f32.mxu0 %vm311_vm1, %v19415_v57  ;;  %v997_v18 = vpop.f32.mrf.mxu1  ;;  %13445 = vmatpush3.msra.mxu1 %v11488_v25 }
 0x123   : > { %v1365_v40 = vpop.f32.mrf.mxu0  ;;  %v15459_v15 = vadd.f32 %v13110_v52, %v1003_v11  ;;  %v998_v56 = vadd.f32 %v997_v18, %v15338_v39 }
 0x124   : > { %v13063_v34 = vpop.f32.mrf.mxu1  ;;  %13362 = vmatmul.mubr.msk.f32.gmra.mxu1 %vm311_vm1, %v3078_v55 }
 0x125   : > { %v13116_v45 = vpop.f32.mrf.mxu0  ;;  %13415 = vmatmul.mubr.msk.f32.gmra.mxu0 %vm311_vm1, %v19416_v59  ;;  %v15465_v57 = vadd.f32 %v1355_v58, %v998_v56  ;;  %v1013_v8 = vadd.f32 %v13063_v34, %v15344_v48  ;;  %13364 = vmatprep.mubr.msk.f32.mxu1 %vm311_vm1, %v3079_v44 }
 0x126   : > { %13417 = vmatprep.mubr.msk.f32.mxu0 %vm311_vm1, %v19417_v61  ;;  %v1007_v5 = vpop.f32.mrf.mxu1  ;;  %v3082_v61 = vld [vmem:[#allocation2 + $0xe1] sm:$0xff] }
 0x127   : > { %v1375_v39 = vpop.f32.mrf.mxu0  ;;  %v15471_v22 = vadd.f32 %v13113_v54, %v1013_v8  ;;  %v1008_v52 = vadd.f32 %v1007_v5, %v15354_v49  ;;  %v3083_v49 = vld [vmem:[#allocation2 + $0xf1] sm:$0xff] }
 0x128   : > { %v13066_v50 = vpop.f32.mrf.mxu1  ;;  %13365 = vmatmul.mubr.msk.f32.gmra.mxu1 %vm311_vm1, %v3080_v38 }
 0x129   : > { %v13119_v59 = vpop.f32.mrf.mxu0  ;;  %13418 = vmatmul.mubr.msk.f32.gmra.mxu0 %vm311_vm1, %v19418_v63  ;;  %v15477_v48 = vadd.f32 %v1365_v40, %v1008_v52  ;;  %v1023_v53 = vadd.f32 %v13066_v50, %v15360_v6  ;;  %13367 = vmatprep.mubr.msk.f32.mxu1 %vm311_vm1, %v3081_v41  ;;  %v3089_v41 = vld [vmem:[#allocation2 + $0x139] sm:$0xff] }
 0x12a   : > { %13420 = vmatprep.mubr.msk.f32.mxu0 %vm311_vm1, %v19419_v2  ;;  %v1017_v4 = vpop.f32.mrf.mxu1  ;;  %v3084_v2 = vld [vmem:[#allocation2 + $0xf9] sm:$0xff] }
 0x12b   : > { %v1385_v58 = vpop.f32.mrf.mxu0  ;;  %v15483_v17 = vadd.f32 %v13116_v45, %v1023_v53  ;;  %v1018_v14 = vadd.f32 %v1017_v4, %v15369_v10  ;;  %v3085_v10 = vld [vmem:[#allocation2 + $0x109] sm:$0xff]  ;;  %v3091_v4 = vld [vmem:[#allocation2 + $0x151] sm:$0xff] }
 0x12c   : > { %v13069_v60 = vpop.f32.mrf.mxu1  ;;  %13368 = vmatmul.mubr.msk.f32.gmra.mxu1 %vm311_vm1, %v3082_v61 }
 0x12d   : > { %v13122_v63 = vpop.f32.mrf.mxu0  ;;  %13421 = vmatmul.mubr.msk.f32.gmra.mxu0 %vm311_vm1, %v19420_v12  ;;  %v15489_v6 = vadd.f32 %v1375_v39, %v1018_v14  ;;  %v1033_v54 = vadd.f32 %v13069_v60, %v15377_v32  ;;  %13370 = vmatprep.mubr.msk.f32.mxu1 %vm311_vm1, %v3083_v49  ;;  %v3484_v60 = vld [vmem:[#allocation2 + $0x172] sm:$0xff] }
 0x12e   : > { %13423 = vmatprep.mubr.msk.f32.mxu0 %vm311_vm1, %v19421_v1  ;;  %v1027_v11 = vpop.f32.mrf.mxu1  ;;  %v3086_v1 = vld [vmem:[#allocation2 + $0x111] sm:$0xff] }
 0x12f   : > { %v1395_v55 = vpop.f32.mrf.mxu0  ;;  %v15495_v25 = vadd.f32 %v13119_v59, %v1033_v54  ;;  %v1028_v18 = vadd.f32 %v1027_v11, %v15388_v37  ;;  %v3087_v37 = vld [vmem:[#allocation2 + $0x121] sm:$0xff] }
 0x130   : > { %v13072_v40 = vpop.f32.mrf.mxu1  ;;  %13371 = vmatmul.mubr.msk.f32.gmra.mxu1 %vm311_vm1, %v3084_v2  ;;  %v3090_v59 = vld [vmem:[#allocation2 + $0x141] sm:$0xff]  ;;  %v3093_v2 = vld [vmem:[#allocation2 + $0x169] sm:$0xff] }
 0x131   : > { %v13125_v12 = vpop.f32.mrf.mxu0  ;;  %13424 = vmatmul.mubr.msk.f32.gmra.mxu0 %vm311_vm1, %v19423_v21  ;;  %v15501_v32 = vadd.f32 %v1385_v58, %v1028_v18  ;;  %v1043_v44 = vadd.f32 %v13072_v40, %v15276_v62  ;;  %13373 = vmatprep.mubr.msk.f32.mxu1 %vm311_vm1, %v3085_v10  ;;  %v3483_v58 = vld [vmem:[#allocation2 + $0x16a] sm:$0xff] }
 0x132   : > { %13426 = vmatprep.mubr.msk.f32.mxu0 %vm311_vm1, %v19424_v24  ;;  %v1037_v56 = vpop.f32.mrf.mxu1  ;;  %v3088_v24 = vld [vmem:[#allocation2 + $0x129] sm:$0xff]  ;;  %v3094_v18 = vld [vmem:[#allocation2 + $0x171] sm:$0xff] }
 0x133   : > { %19438 = vst [vmem:[#allocation13_spill] sm:$0xff] %v15501_v32  ;;  %v15507_v34 = vpop.f32.mrf.mxu0  ;;  %v15509_v45 = vadd.f32 %v13122_v63, %v1043_v44  ;;  %v1038_v8 = vadd.f32 %v1037_v56, %v15288_v3  ;;  %v3487_v44 = vld [vmem:[#allocation2 + $0x19a] sm:$0xff] }
 0x134   : > { %v13075_v38 = vpop.f32.mrf.mxu1  ;;  %13374 = vmatmul.mubr.msk.f32.gmra.mxu1 %vm311_vm1, %v3086_v1 }
 0x135   : > { %v13128_v21 = vpop.f32.mrf.mxu0  ;;  %13427 = vmatmul.mubr.msk.f32.gmra.mxu0 %vm311_vm1, %v19426_v28  ;;  %v15515_v62 = vadd.f32 %v1395_v55, %v1038_v8  ;;  %v1053_v5 = vadd.f32 %v13075_v38, %v15292_v9  ;;  %13376 = vmatprep.mubr.msk.f32.mxu1 %vm311_vm1, %v3087_v37 }
 0x136   : > { %13429 = vmatprep.mubr.msk.f32.mxu0 %vm311_vm1, %v19427_v36  ;;  %v15521_v39 = vpop.f32.mrf.mxu1  ;;  %v3482_v36 = vld [vmem:[#allocation2 + $0x15a] sm:$0xff] }
 0x137   : > { %19439 = vst [vmem:[#allocation14_spill] sm:$0xff] %v15515_v62  ;;  %v15523_v3 = vpop.f32.mrf.mxu0  ;;  %v15525_v52 = vadd.f32 %v13125_v12, %v1053_v5 }
 0x138   : > { %v13078_v50 = vpop.f32.mrf.mxu1  ;;  %13377 = vmatmul.mubr.msk.f32.gmra.mxu1 %vm311_vm1, %v3088_v24 }
 0x139   : > { %v13131_v28 = vpop.f32.mrf.mxu0  ;;  %13430 = vmatmul.mubr.msk.f32.gmra.mxu0 %vm311_vm1, %v19429_v47  ;;  %v1063_v9 = vadd.f32 %v13078_v50, %v15308_v19  ;;  %13379 = vmatprep.mubr.msk.f32.mxu1 %vm311_vm1, %v3089_v41 }
 0x13a   : > { %13432 = vmatprep.mubr.msk.f32.mxu0 %vm311_vm1, %v19430_v26  ;;  %v15534_v53 = vpop.f32.mrf.mxu1  ;;  %v3092_v26 = vld [vmem:[#allocation2 + $0x159] sm:$0xff] }
 0x13b   : > { %v15536_v61 = vpop.f32.mrf.mxu0  ;;  %v15538_v49 = vadd.f32 %v13128_v21, %v1063_v9  ;;  %v3097_v21 = vld [vmem:[#allocation2 + $0x199] sm:$0xff] }
 0x13c   : > { %v13081_v14 = vpop.f32.mrf.mxu1  ;;  %13380 = vmatmul.mubr.msk.f32.gmra.mxu1 %vm311_vm1, %v3090_v59 }
 0x13d   : > { %v13134_v47 = vpop.f32.mrf.mxu0  ;;  %13433 = vmatmul.mubr.msk.f32.gmra.mxu0 %vm311_vm1, %v3482_v36  ;;  %v1073_v19 = vadd.f32 %v13081_v14, %v15324_v27  ;;  %13382 = vmatprep.mubr.msk.f32.mxu1 %vm311_vm1, %v3091_v4  ;;  %v19447_v36 = vld [vmem:[#allocation11_spill] sm:$0xff] }
 0x13e   : > { %13435 = vmatprep.mubr.msk.f32.mxu0 %vm311_vm1, %v3483_v58  ;;  %v15545_v63 = vpop.f32.mrf.mxu1 }
 0x13f   : > { %v15547_v54 = vpop.f32.mrf.mxu0  ;;  %v15549_v11 = vadd.f32 %v13131_v28, %v1073_v19 }
 0x140   : > { %19440 = vst [vmem:[#allocation15_spill] sm:$0xff] %v15547_v54  ;;  %v13084_v55 = vpop.f32.mrf.mxu1  ;;  %13383 = vmatmul.mubr.msk.f32.gmra.mxu1 %vm311_vm1, %v3092_v26 }
 0x141   : > { %v13137_v10 = vpop.f32.mrf.mxu0  ;;  %13436 = vmatmul.mubr.msk.f32.gmra.mxu0 %vm311_vm1, %v3484_v60  ;;  %v1083_v27 = vadd.f32 %v13084_v55, %v15340_v46  ;;  %13385 = vmatprep.mubr.msk.f32.mxu1 %vm311_vm1, %v3093_v2 }
 0x142   : > { %13438 = vmatprep.mubr.msk.f32.mxu0 %vm311_vm1, %v15371_v16  ;;  %v15557_v40 = vpop.f32.mrf.mxu1  ;;  %v3488_v16 = vld [vmem:[#allocation2 + $0x1a2] sm:$0xff] }
 0x143   : > { %19441 = vst [vmem:[#allocation16_spill] sm:$0xff] %v15557_v40  ;;  %v15559_v12 = vpop.f32.mrf.mxu0  ;;  %v15561_v1 = vadd.f32 %v13134_v47, %v1083_v27 }
 0x144   : > { %19442 = vst [vmem:[#allocation17_spill] sm:$0xff] %v15559_v12  ;;  %v13087_v56 = vpop.f32.mrf.mxu1  ;;  %13386 = vmatmul.mubr.msk.f32.gmra.mxu1 %vm311_vm1, %v3094_v18  ;;  %v19449_v18 = vmov 0.0  }
 0x145   : > { %v13140_v37 = vpop.f32.mrf.mxu0  ;;  %13439 = vmatmul.mubr.msk.f32.gmra.mxu0 %vm311_vm1, %v15382_v33  ;;  %v1093_v46 = vadd.f32 %v13087_v56, %v15356_v51  ;;  %13388 = vmatprep.mubr.msk.f32.mxu1 %vm311_vm1, %v15172_v29  ;;  %v3098_v29 = vld [vmem:[#allocation2 + $0x1a1] sm:$0xff]  ;;  %3924 = vst.msk [vmem:[#allocation3 + $0x20] sm:$0xff] %vm3918_vm3, %v19449_v18  ;;  %3919 = vst.msk [vmem:[#allocation3] sm:$0xff] %vm3918_vm3, %v19449_v18 }
 0x146   : > { %13441 = vmatprep.mubr.msk.f32.mxu0 %vm311_vm1, %v3487_v44  ;;  %v15570_v8 = vpop.f32.mrf.mxu1  ;;  %3920 = vst.msk [vmem:[#allocation3 + $0x8] sm:$0xff] %vm3918_vm3, %v19449_v18  ;;  %3923 = vst.msk [vmem:[#allocation3 + $0x18] sm:$0xff] %vm3918_vm3, %v19449_v18 }
 0x147   : > { %19443 = vst [vmem:[#allocation18_spill] sm:$0xff] %v15570_v8  ;;  %v15572_v38 = vpop.f32.mrf.mxu0  ;;  %v15574_v5 = vadd.f32 %v13137_v10, %v1093_v46  ;;  %3926 = vst.msk [vmem:[#allocation3 + $0x30] sm:$0xff] %vm3918_vm3, %v19449_v18 }
 0x148   : > { %19444 = vst [vmem:[#allocation19_spill] sm:$0xff] %v15572_v38  ;;  %v13090_v24 = vpop.f32.mrf.mxu1  ;;  %13389 = vmatmul.mubr.msk.f32.gmra.mxu1 %vm311_vm1, %v15182_v30  ;;  %3927 = vst.msk [vmem:[#allocation3 + $0x38] sm:$0xff] %vm3918_vm3, %v19449_v18 }
 0x149   : > { %v13143_v33 = vpop.f32.mrf.mxu0  ;;  %13442 = vmatmul.mubr.msk.f32.gmra.mxu0 %vm311_vm1, %v3488_v16  ;;  %v1103_v51 = vadd.f32 %v13090_v24, %v15373_v31  ;;  %13391 = vmatprep.mubr.msk.f32.mxu1 %vm311_vm1, %v3097_v21  ;;  %3929 = vst.msk [vmem:[#allocation3 + $0x48] sm:$0xff] %vm3918_vm3, %v19449_v18  ;;  %3930 = vst.msk [vmem:[#allocation3 + $0x50] sm:$0xff] %vm3918_vm3, %v19449_v18 }
 0x14a   : > { %v15581_v41 = vpop.f32.mrf.mxu1  ;;  %3932 = vst.msk [vmem:[#allocation3 + $0x60] sm:$0xff] %vm3918_vm3, %v19449_v18  ;;  %3933 = vst.msk [vmem:[#allocation3 + $0x68] sm:$0xff] %vm3918_vm3, %v19449_v18 }
 0x14b   : > { %19445 = vst [vmem:[#allocation20_spill] sm:$0xff] %v15581_v41  ;;  %v15583_v50 = vpop.f32.mrf.mxu0  ;;  %v15585_v28 = vadd.f32 %v13140_v37, %v1103_v51  ;;  %3935 = vst.msk [vmem:[#allocation3 + $0x78] sm:$0xff] %vm3918_vm3, %v19449_v18 }
 0x14c   : > { %19446 = vst [vmem:[#allocation21_spill] sm:$0xff] %v15583_v50  ;;  %v13093_v9 = vpop.f32.mrf.mxu1  ;;  %13392 = vmatmul.mubr.msk.f32.gmra.mxu1 %vm311_vm1, %v3098_v29  ;;  %3936 = vst.msk [vmem:[#allocation3 + $0x80] sm:$0xff] %vm3918_vm3, %v19449_v18 }
 0x14d   : > { %v13198_v59 = vpop.f32.mrf.mxu0  ;;  %v1113_v30 = vadd.f32 %v13093_v9, %v19447_v36  ;;  %3938 = vst.msk [vmem:[#allocation3 + $0x90] sm:$0xff] %vm3918_vm3, %v19449_v18  ;;  %3939 = vst.msk [vmem:[#allocation3 + $0x98] sm:$0xff] %vm3918_vm3, %v19449_v18  ;;  %v4040_v9 = vld [vmem:[#allocation3 + $0x1] sm:$0xff] }
 0x14e   : > { %v15589_v4 = vpop.f32.mrf.mxu1  ;;  %3941 = vst.msk [vmem:[#allocation3 + $0xa8] sm:$0xff] %vm3918_vm3, %v19449_v18  ;;  %3942 = vst.msk [vmem:[#allocation3 + $0xb0] sm:$0xff] %vm3918_vm3, %v19449_v18  ;;  %13446 = vmatprep.mubr.msk.f32.mxu1 %vm3918_vm3, %v4040_v9 }
 0x14f   : > { %19448 = vst [vmem:[#allocation22_spill] sm:$0xff] %v15589_v4  ;;  %v15591_v58 = vpop.f32.mrf.mxu0  ;;  %v15593_v31 = vadd.f32 %v13143_v33, %v1113_v30  ;;  %3944 = vst.msk [vmem:[#allocation3 + $0xc0] sm:$0xff] %vm3918_vm3, %v19449_v18  ;;  %v4039_v33 = vld [vmem:[%s19245_s3] sm:$0xff]  ;;  %v4008_v30 = vld [vmem:[#allocation3 + $0x8] sm:$0xff] }
 0x150   : > { %v13148_v14 = vpop.f32.mrf.mxu1  ;;  %3945 = vst.msk [vmem:[#allocation3 + $0xc8] sm:$0xff] %vm3918_vm3, %v19449_v18  ;;  %3947 = vst.msk [vmem:[#allocation3 + $0xd8] sm:$0xff] %vm3918_vm3, %v19449_v18  ;;  %13494 = vmatprep.subr.mxu0 %v4039_v33 }
 0x151   : > { %v15595_v47 = vpop.f32.mrf.mxu0  ;;  %v1865_v19 = vadd.f32 %v13148_v14, %v15408_v20  ;;  %3948 = vst.msk [vmem:[#allocation3 + $0xe0] sm:$0xff] %vm3918_vm3, %v19449_v18  ;;  %3950 = vst.msk [vmem:[#allocation3 + $0xf0] sm:$0xff] %vm3918_vm3, %v19449_v18  ;;  %13495 = vmatpush3.msra.mxu0 %v4039_v33 }
 0x152   : > { %v15598_v26 = vpop.f32.mrf.mxu1  ;;  %3951 = vst.msk [vmem:[#allocation3 + $0xf8] sm:$0xff] %vm3918_vm3, %v19449_v18  ;;  %3953 = vst.msk [vmem:[#allocation3 + $0x108] sm:$0xff] %vm3918_vm3, %v19449_v18 }
 0x153   : > { %v15600_v60 = vpop.f32.mrf.mxu0  ;;  %v15602_v2 = vadd.f32 %v13198_v59, %v1865_v19  ;;  %3954 = vst.msk [vmem:[#allocation3 + $0x110] sm:$0xff] %vm3918_vm3, %v19449_v18  ;;  %3956 = vst.msk [vmem:[#allocation3 + $0x120] sm:$0xff] %vm3918_vm3, %v19449_v18  ;;  %v4007_v59 = vld [vmem:[#allocation3] sm:$0xff] }
 0x154   : > { %v13151_v55 = vpop.f32.mrf.mxu1  ;;  %3957 = vst.msk [vmem:[#allocation3 + $0x128] sm:$0xff] %vm3918_vm3, %v19449_v18  ;;  %3959 = vst.msk [vmem:[#allocation3 + $0x138] sm:$0xff] %vm3918_vm3, %v19449_v18  ;;  %13496 = vmatprep.mubr.msk.f32.mxu0 %vm3918_vm3, %v4007_v59 }
 0x155   : > { %v15604_v10 = vpop.f32.mrf.mxu0  ;;  %v1867_v27 = vadd.f32 %v13151_v55, %v15420_v35  ;;  %3960 = vst.msk [vmem:[#allocation3 + $0x140] sm:$0xff] %vm3918_vm3, %v19449_v18  ;;  %3962 = vst.msk [vmem:[#allocation3 + $0x150] sm:$0xff] %vm3918_vm3, %v19449_v18  ;;  %13497 = vmatmul.mubr.msk.f32.vlgmr.msra.gmra.mxu0 %vm3918_vm3, %v4008_v30 }
 0x156   : > { %3963 = vst.msk [vmem:[#allocation3 + $0x158] sm:$0xff] %vm3918_vm3, %v19449_v18  ;;  %3965 = vst.msk [vmem:[#allocation3 + $0x168] sm:$0xff] %vm3918_vm3, %v19449_v18  ;;  %v15679_v20 = vpop.f32.mrf.mxu1 }
 0x157   : > { %3966 = vst.msk [vmem:[#allocation3 + $0x170] sm:$0xff] %vm3918_vm3, %v19449_v18  ;;  %3968 = vst.msk [vmem:[#allocation3 + $0x180] sm:$0xff] %vm3918_vm3, %v19449_v18  ;;  %v15681_v35 = vpop.f32.mrf.mxu0  ;;  %v15720_v44 = vadd.f32 %v15595_v47, %v1867_v27 }
 0x158   : > { %3969 = vst.msk [vmem:[#allocation3 + $0x188] sm:$0xff] %vm3918_vm3, %v19449_v18  ;;  %3971 = vst.msk [vmem:[#allocation3 + $0x198] sm:$0xff] %vm3918_vm3, %v19449_v18  ;;  %v13154_v56 = vpop.f32.mrf.mxu1 }
 0x159   : > { %3972 = vst.msk [vmem:[#allocation3 + $0x1a0] sm:$0xff] %vm3918_vm3, %v19449_v18  ;;  %v13207_v37 = vpop.f32.mrf.mxu0  ;;  %v1869_v46 = vadd.f32 %v13154_v56, %v15432_v7 }
 0x15a   : > { %3925 = vst.msk [vmem:[#allocation3 + $0x28] sm:$0x3] %vm3921_vm4, %v19449_v18  ;;  %3922 = vst.msk [vmem:[#allocation3 + $0x10] sm:$0x3] %vm3921_vm4, %v19449_v18  ;;  %v15723_v16 = vpop.f32.mrf.mxu1 }
 0x15b   : > { %3928 = vst.msk [vmem:[#allocation3 + $0x40] sm:$0x3] %vm3921_vm4, %v19449_v18  ;;  %3931 = vst.msk [vmem:[#allocation3 + $0x58] sm:$0x3] %vm3921_vm4, %v19449_v18  ;;  %v15725_v21 = vpop.f32.mrf.mxu0  ;;  %v15728_v24 = vadd.f32 %v15604_v10, %v1869_v46 }
 0x15c   : > { %3934 = vst.msk [vmem:[#allocation3 + $0x70] sm:$0x3] %vm3921_vm4, %v19449_v18  ;;  %3937 = vst.msk [vmem:[#allocation3 + $0x88] sm:$0x3] %vm3921_vm4, %v19449_v18  ;;  %v13157_v51 = vpop.f32.mrf.mxu1 }
 0x15d   : > { %3940 = vst.msk [vmem:[#allocation3 + $0xa0] sm:$0x3] %vm3921_vm4, %v19449_v18  ;;  %3943 = vst.msk [vmem:[#allocation3 + $0xb8] sm:$0x3] %vm3921_vm4, %v19449_v18  ;;  %v13210_v29 = vpop.f32.mrf.mxu0  ;;  %v1871_v36 = vadd.f32 %v13157_v51, %v15444_v43 }
 0x15e   : > { %3946 = vst.msk [vmem:[#allocation3 + $0xd0] sm:$0x3] %vm3921_vm4, %v19449_v18  ;;  %3949 = vst.msk [vmem:[#allocation3 + $0xe8] sm:$0x3] %vm3921_vm4, %v19449_v18  ;;  %v15735_v14 = vpop.f32.mrf.mxu1 }
 0x15f   : > { %3952 = vst.msk [vmem:[#allocation3 + $0x100] sm:$0x3] %vm3921_vm4, %v19449_v18  ;;  %3955 = vst.msk [vmem:[#allocation3 + $0x118] sm:$0x3] %vm3921_vm4, %v19449_v18  ;;  %v15737_v47 = vpop.f32.mrf.mxu0  ;;  %v15741_v19 = vadd.f32 %v13207_v37, %v1871_v36 }
 0x160   : > { %3958 = vst.msk [vmem:[#allocation3 + $0x130] sm:$0x3] %vm3921_vm4, %v19449_v18  ;;  %3961 = vst.msk [vmem:[#allocation3 + $0x148] sm:$0x3] %vm3921_vm4, %v19449_v18  ;;  %v13160_v55 = vpop.f32.mrf.mxu1 }
 0x161   : > { %3964 = vst.msk [vmem:[#allocation3 + $0x160] sm:$0x3] %vm3921_vm4, %v19449_v18  ;;  %3967 = vst.msk [vmem:[#allocation3 + $0x178] sm:$0x3] %vm3921_vm4, %v19449_v18  ;;  %v4041_v7 = vld [vmem:[#allocation3 + $0x9] sm:$0xff]  ;;  %v13213_v10 = vpop.f32.mrf.mxu0  ;;  %v1873_v43 = vadd.f32 %v13160_v55, %v15459_v15  ;;  %v11553_v15 = vld [vmem:[%s19245_s3 + $0x10] sm:$0xff] }
 0x162   : > { %3970 = vst.msk [vmem:[#allocation3 + $0x190] sm:$0x3] %vm3921_vm4, %v19449_v18  ;;  %3973 = vst.msk [vmem:[#allocation3 + $0x1a8] sm:$0x3] %vm3921_vm4, %v19449_v18  ;;  %13447 = vmatmul.mubr.msk.f32.vlgmr.msra.gmra.mxu1 %vm3918_vm3, %v4041_v7  ;;  %v15745_v27 = vpop.f32.mrf.mxu1  ;;  %13544 = vmatprep.subr.mxu1 %v11553_v15 }
 0x163   : > { %v15747_v56 = vpop.f32.mrf.mxu0  ;;  %v15749_v46 = vadd.f32 %v13210_v29, %v1873_v43  ;;  %13545 = vmatpush3.msra.mxu1 %v11553_v15 }
 0x164   : > { %v13163_v33 = vpop.f32.mrf.mxu1 }
 0x165   : > { %v13216_v51 = vpop.f32.mrf.mxu0  ;;  %v1875_v9 = vadd.f32 %v13163_v33, %v15471_v22 }
 0x166   : > { %v15752_v59 = vpop.f32.mrf.mxu1 }
 0x167   : > { %v15754_v37 = vpop.f32.mrf.mxu0  ;;  %v15756_v36 = vadd.f32 %v13213_v10, %v1875_v9 }
 0x168   : > { %19450 = vst [vmem:[#allocation23_spill] sm:$0xff] %v15754_v37  ;;  %v13166_v7 = vpop.f32.mrf.mxu1 }
 0x169   : > { %v13219_v30 = vpop.f32.mrf.mxu0  ;;  %v1877_v29 = vadd.f32 %v13166_v7, %v15483_v17 }
 0x16a   : > { %v15762_v55 = vpop.f32.mrf.mxu1 }
 0x16b   : > { %v15764_v43 = vpop.f32.mrf.mxu0  ;;  %v15766_v22 = vadd.f32 %v13216_v51, %v1877_v29 }
 0x16c   : > { %19451 = vst [vmem:[#allocation24_spill] sm:$0xff] %v15764_v43  ;;  %v13169_v33 = vpop.f32.mrf.mxu1 }
 0x16d   : > { %19452 = vst [vmem:[#allocation25_spill] sm:$0xff] %v15766_v22  ;;  %v13222_v18 = vpop.f32.mrf.mxu0  ;;  %v1879_v10 = vadd.f32 %v13169_v33, %v15495_v25 }
 0x16e   : > { %v15769_v9 = vpop.f32.mrf.mxu1 }
 0x16f   : > { %19453 = vst [vmem:[#allocation26_spill] sm:$0xff] %v15769_v9  ;;  %v15771_v50 = vpop.f32.mrf.mxu0  ;;  %v15773_v4 = vadd.f32 %v13219_v30, %v1879_v10 }
 0x170   : > { %19454 = vst [vmem:[#allocation27_spill] sm:$0xff] %v15771_v50  ;;  %v13172_v38 = vpop.f32.mrf.mxu1 }
 0x171   : > { %19455 = vst [vmem:[#allocation28_spill] sm:$0xff] %v15773_v4  ;;  %v13225_v41 = vpop.f32.mrf.mxu0  ;;  %v1881_v17 = vadd.f32 %v13172_v38, %v15509_v45 }
 0x172   : > { %v15776_v15 = vpop.f32.mrf.mxu1 }
 0x173   : > { %19456 = vst [vmem:[#allocation29_spill] sm:$0xff] %v15776_v15  ;;  %v15778_v7 = vpop.f32.mrf.mxu0  ;;  %v15780_v51 = vadd.f32 %v13222_v18, %v1881_v17 }
 0x174   : > { %19457 = vst [vmem:[#allocation30_spill] sm:$0xff] %v15778_v7  ;;  %v13175_v29 = vpop.f32.mrf.mxu1 }
 0x175   : > { %19458 = vst [vmem:[#allocation31_spill] sm:$0xff] %v15780_v51  ;;  %v13228_v12 = vpop.f32.mrf.mxu0  ;;  %v1883_v25 = vadd.f32 %v13175_v29, %v15525_v52 }
 0x176   : > { %v15783_v33 = vpop.f32.mrf.mxu1 }
 0x177   : > { %19459 = vst [vmem:[#allocation32_spill] sm:$0xff] %v15783_v33  ;;  %v15785_v8 = vpop.f32.mrf.mxu0  ;;  %v15787_v30 = vadd.f32 %v13225_v41, %v1883_v25 }
 0x178   : > { %19460 = vst [vmem:[#allocation33_spill] sm:$0xff] %v15785_v8  ;;  %v13178_v10 = vpop.f32.mrf.mxu1 }
 0x179   : > { %19461 = vst [vmem:[#allocation11_spill] sm:$0xff] %v15787_v30  ;;  %v13231_v50 = vpop.f32.mrf.mxu0  ;;  %v1885_v45 = vadd.f32 %v13178_v10, %v15538_v49 }
 0x17a   : > { %v15790_v38 = vpop.f32.mrf.mxu1 }
 0x17b   : > { %19462 = vst [vmem:[#allocation34_spill] sm:$0xff] %v15790_v38  ;;  %v15792_v54 = vpop.f32.mrf.mxu0  ;;  %v15794_v18 = vadd.f32 %v13228_v12, %v1885_v45 }
 0x17c   : > { %19463 = vst [vmem:[#allocation35_spill] sm:$0xff] %v15792_v54  ;;  %v13181_v17 = vpop.f32.mrf.mxu1 }
 0x17d   : > { %19464 = vst [vmem:[#allocation36_spill] sm:$0xff] %v15794_v18  ;;  %v13234_v7 = vpop.f32.mrf.mxu0  ;;  %v1887_v52 = vadd.f32 %v13181_v17, %v15549_v11 }
 0x17e   : > { %v15797_v29 = vpop.f32.mrf.mxu1 }
 0x17f   : > { %19465 = vst [vmem:[#allocation37_spill] sm:$0xff] %v15797_v29  ;;  %v15799_v51 = vpop.f32.mrf.mxu0  ;;  %v15801_v41 = vadd.f32 %v13231_v50, %v1887_v52 }
 0x180   : > { %19466 = vst [vmem:[#allocation38_spill] sm:$0xff] %v15799_v51  ;;  %v13184_v25 = vpop.f32.mrf.mxu1 }
 0x181   : > { %19467 = vst [vmem:[#allocation39_spill] sm:$0xff] %v15801_v41  ;;  %v13237_v8 = vpop.f32.mrf.mxu0  ;;  %v1889_v49 = vadd.f32 %v13184_v25, %v15561_v1 }
 0x182   : > { %v15804_v10 = vpop.f32.mrf.mxu1 }
 0x183   : > { %19468 = vst [vmem:[#allocation40_spill] sm:$0xff] %v15804_v10  ;;  %v15806_v30 = vpop.f32.mrf.mxu0  ;;  %v15808_v12 = vadd.f32 %v13234_v7, %v1889_v49 }
 0x184   : > { %19469 = vst [vmem:[#allocation41_spill] sm:$0xff] %v15806_v30  ;;  %v13187_v45 = vpop.f32.mrf.mxu1 }
 0x185   : > { %19470 = vst [vmem:[#allocation42_spill] sm:$0xff] %v15808_v12  ;;  %v13240_v54 = vpop.f32.mrf.mxu0  ;;  %v1891_v11 = vadd.f32 %v13187_v45, %v15574_v5  ;;  %v11619_v12 = vld [vmem:[%s19245_s3 + $0x20] sm:$0xff] }
 0x186   : > { %v15811_v17 = vpop.f32.mrf.mxu1  ;;  %13644 = vmatprep.subr.mxu1 %v11619_v12 }
 0x187   : > { %19471 = vst [vmem:[#allocation43_spill] sm:$0xff] %v15811_v17  ;;  %v15813_v18 = vpop.f32.mrf.mxu0  ;;  %v15815_v50 = vadd.f32 %v13237_v8, %v1891_v11 }
 0x188   : > { %19472 = vst [vmem:[#allocation44_spill] sm:$0xff] %v15813_v18  ;;  %v13190_v52 = vpop.f32.mrf.mxu1 }
 0x189   : > { %19473 = vst [vmem:[#allocation45_spill] sm:$0xff] %v15815_v50  ;;  %v13243_v51 = vpop.f32.mrf.mxu0  ;;  %v1893_v1 = vadd.f32 %v13190_v52, %v15585_v28 }
 0x18a   : > { %v15818_v25 = vpop.f32.mrf.mxu1 }
 0x18b   : > { %19474 = vst [vmem:[#allocation46_spill] sm:$0xff] %v15818_v25  ;;  %v15820_v41 = vpop.f32.mrf.mxu0  ;;  %v15822_v7 = vadd.f32 %v13240_v54, %v1893_v1  ;;  %v11586_v25 = vld [vmem:[%s19245_s3 + $0x18] sm:$0xff] }
 0x18c   : > { %19475 = vst [vmem:[#allocation47_spill] sm:$0xff] %v15820_v41  ;;  %v13193_v49 = vpop.f32.mrf.mxu1  ;;  %13594 = vmatprep.subr.mxu0 %v11586_v25 }
 0x18d   : > { %19476 = vst [vmem:[#allocation48_spill] sm:$0xff] %v15822_v7  ;;  %v15824_v30 = vpop.f32.mrf.mxu0  ;;  %v1895_v5 = vadd.f32 %v13193_v49, %v15593_v31  ;;  %13595 = vmatpush3.msra.mxu0 %v11586_v25 }
 0x18e   : > { %v15827_v45 = vpop.f32.mrf.mxu1 }
 0x18f   : > { %19477 = vst [vmem:[#allocation49_spill] sm:$0xff] %v15827_v45  ;;  %v15829_v18 = vpop.f32.mrf.mxu0  ;;  %v15831_v8 = vadd.f32 %v13243_v51, %v1895_v5 }
 0x190   : > { %v15833_v11 = vpop.f32.mrf.mxu1 }
 0x191   : > { %19478 = vst [vmem:[#allocation50_spill] sm:$0xff] %v15831_v8  ;;  %v15835_v28 = vpop.f32.mrf.mxu0 }
 0x192   : > { %v15837_v52 = vpop.f32.mrf.mxu1 }
 0x193   : > { %v15839_v41 = vpop.f32.mrf.mxu0 }
 0x194   : > { %v15841_v54 = vpop.f32.mrf.mxu1 }
 0x195   : > { %v15843_v1 = vpop.f32.mrf.mxu0 }
 0x196   : > { %v15845_v7 = vpop.f32.mrf.mxu1 }
 0x197   : > { %v15847_v31 = vpop.f32.mrf.mxu0 }
 0x198   : > { %v15849_v49 = vpop.f32.mrf.mxu1 }
 0x199   : > { %v15851_v51 = vpop.f32.mrf.mxu0 }
 0x19a   : > { %v15853_v5 = vpop.f32.mrf.mxu1 }
 0x19b   : > { %v15855_v8 = vpop.f32.mrf.mxu0 }
 0x19c   : > { %v15857_v45 = vpop.f32.mrf.mxu1 }
 0x19d   : > { %v15859_v50 = vpop.f32.mrf.mxu0 }
 0x19e   : > { %v15867_v17 = vpop.f32.mrf.mxu1 }
 0x19f   : > { %v15869_v10 = vpop.f32.mrf.mxu0 }
 0x1a0   : > { %v15871_v29 = vpop.f32.mrf.mxu1 }
 0x1a1   : > { %v15873_v38 = vpop.f32.mrf.mxu0 }
 0x1a2   : > { %19479 = vst [vmem:[#allocation51_spill] sm:$0xff] %v15873_v38  ;;  %v15875_v33 = vpop.f32.mrf.mxu1 }
 0x1a3   : > { %v15877_v4 = vpop.f32.mrf.mxu0 }
 0x1a4   : > { %19480 = vst [vmem:[#allocation52_spill] sm:$0xff] %v15877_v4  ;;  %v15879_v15 = vpop.f32.mrf.mxu1 }
 0x1a5   : > { %v15881_v62 = vpop.f32.mrf.mxu0 }
 0x1a6   : > { %19481 = vst [vmem:[#allocation53_spill] sm:$0xff] %v15881_v62  ;;  %v15883_v43 = vpop.f32.mrf.mxu1 }
 0x1a7   : > { %19482 = vst [vmem:[#allocation54_spill] sm:$0xff] %v15883_v43  ;;  %v15885_v40 = vpop.f32.mrf.mxu0 }
 0x1a8   : > { %19483 = vst [vmem:[#allocation55_spill] sm:$0xff] %v15885_v40  ;;  %v15887_v22 = vpop.f32.mrf.mxu1 }
 0x1a9   : > { %19484 = vst [vmem:[#allocation56_spill] sm:$0xff] %v15887_v22  ;;  %v15889_v25 = vpop.f32.mrf.mxu0 }
 0x1aa   : > { %19485 = vst [vmem:[#allocation57_spill] sm:$0xff] %v15889_v25  ;;  %v15891_v12 = vpop.f32.mrf.mxu1 }
 0x1ab   : > { %19486 = vst [vmem:[#allocation58_spill] sm:$0xff] %v15891_v12  ;;  %v15893_v9 = vpop.f32.mrf.mxu0 }
 0x1ac   : > { %19487 = vst [vmem:[#allocation59_spill] sm:$0xff] %v15893_v9  ;;  %v15895_v38 = vpop.f32.mrf.mxu1 }
 0x1ad   : > { %19488 = vst [vmem:[#allocation60_spill] sm:$0xff] %v15895_v38  ;;  %v15897_v32 = vpop.f32.mrf.mxu0 }
 0x1ae   : > { %19489 = vst [vmem:[#allocation61_spill] sm:$0xff] %v15897_v32  ;;  %v15899_v4 = vpop.f32.mrf.mxu1 }
 0x1af   : > { %19490 = vst [vmem:[#allocation62_spill] sm:$0xff] %v15899_v4  ;;  %v15901_v37 = vpop.f32.mrf.mxu0 }
 0x1b0   : > { %19491 = vst [vmem:[#allocation63_spill] sm:$0xff] %v15901_v37  ;;  %v15903_v62 = vpop.f32.mrf.mxu1 }
 0x1b1   : > { %19492 = vst [vmem:[#allocation64_spill] sm:$0xff] %v15903_v62  ;;  %v15905_v43 = vpop.f32.mrf.mxu0 }
 0x1b2   : > { %19493 = vst [vmem:[#allocation65_spill] sm:$0xff] %v15905_v43  ;;  %v15907_v40 = vpop.f32.mrf.mxu1 }
 0x1b3   : > { %19494 = vst [vmem:[#allocation66_spill] sm:$0xff] %v15907_v40  ;;  %v15909_v22 = vpop.f32.mrf.mxu0 }
 0x1b4   : > { %19495 = vst [vmem:[#allocation67_spill] sm:$0xff] %v15909_v22  ;;  %v15911_v25 = vpop.f32.mrf.mxu1 }
 0x1b5   : > { %19496 = vst [vmem:[#allocation68_spill] sm:$0xff] %v15911_v25  ;;  %v15913_v12 = vpop.f32.mrf.mxu0 }
 0x1b6   : > { %19497 = vst [vmem:[#allocation69_spill] sm:$0xff] %v15913_v12  ;;  %v15915_v9 = vpop.f32.mrf.mxu1 }
 0x1b7   : > { %19498 = vst [vmem:[#allocation70_spill] sm:$0xff] %v15915_v9  ;;  %v15917_v38 = vpop.f32.mrf.mxu0 }
 0x1b8   : > { %19499 = vst [vmem:[#allocation71_spill] sm:$0xff] %v15917_v38  ;;  %v15919_v32 = vpop.f32.mrf.mxu1 }
 0x1b9   : > { %19500 = vst [vmem:[#allocation72_spill] sm:$0xff] %v15919_v32  ;;  %v15921_v4 = vpop.f32.mrf.mxu0 }
 0x1ba   : > { %19501 = vst [vmem:[#allocation73_spill] sm:$0xff] %v15921_v4  ;;  %v15923_v37 = vpop.f32.mrf.mxu1 }
 0x1bb   : > { %19502 = vst [vmem:[#allocation74_spill] sm:$0xff] %v15923_v37  ;;  %v15925_v62 = vpop.f32.mrf.mxu0 }
 0x1bc   : > { %19503 = vst [vmem:[#allocation75_spill] sm:$0xff] %v15925_v62  ;;  %v15927_v43 = vpop.f32.mrf.mxu1 }
 0x1bd   : > { %19504 = vst [vmem:[#allocation76_spill] sm:$0xff] %v15927_v43  ;;  %v15929_v40 = vpop.f32.mrf.mxu0 }
 0x1be   : > { %19505 = vst [vmem:[#allocation77_spill] sm:$0xff] %v15929_v40  ;;  %v15931_v22 = vpop.f32.mrf.mxu1  ;;  %v1864_v40 = vadd.f32 %v15598_v26, %v15414_v42  ;;  %v1868_v26 = vadd.f32 %v15723_v16, %v15438_v13  ;;  %v1870_v13 = vadd.f32 %v15735_v14, %v15450_v23 }
 0x1bf   : > { %v15933_v25 = vpop.f32.mrf.mxu0 }
 0x1c0   : > { %19506 = vst [vmem:[#allocation78_spill] sm:$0xff] %v15933_v25  ;;  %v15935_v12 = vpop.f32.mrf.mxu1 }
 0x1c1   : > { %19507 = vst [vmem:[#allocation79_spill] sm:$0xff] %v15935_v12  ;;  %v15937_v9 = vpop.f32.mrf.mxu0 }
 0x1c2   : > { %19508 = vst [vmem:[#allocation80_spill] sm:$0xff] %v15937_v9  ;;  %v15939_v38 = vpop.f32.mrf.mxu1 }
 0x1c3   : > { %19509 = vst [vmem:[#allocation81_spill] sm:$0xff] %v15939_v38  ;;  %v15941_v32 = vpop.f32.mrf.mxu0 }
 0x1c4   : > { %19510 = vst [vmem:[#allocation82_spill] sm:$0xff] %v15941_v32  ;;  %v15943_v4 = vpop.f32.mrf.mxu1  ;;  %v2254_v32 = vadd.f32 %v15591_v58, %v1864_v40 }
 0x1c5   : > { %19511 = vst [vmem:[#allocation83_spill] sm:$0xff] %v15943_v4  ;;  %v15945_v37 = vpop.f32.mrf.mxu0 }
 0x1c6   : > { %19512 = vst [vmem:[#allocation84_spill] sm:$0xff] %v15945_v37  ;;  %v15947_v62 = vpop.f32.mrf.mxu1  ;;  %v1866_v37 = vadd.f32 %v15679_v20, %v15426_v0  ;;  %v2644_v42 = vadd.f32 %v15837_v52, %v2254_v32  ;;  %v2647_v0 = vadd.f32 %v15841_v54, %v15720_v44  ;;  %v2258_v52 = vadd.f32 %v15681_v35, %v1868_v26 }
 0x1c7   : > { %19513 = vst [vmem:[#allocation85_spill] sm:$0xff] %v15947_v62  ;;  %v15949_v43 = vpop.f32.mrf.mxu0  ;;  %v2645_v62 = vadd.f32 %v15833_v11, %v15602_v2  ;;  %v2260_v26 = vadd.f32 %v15725_v21, %v1870_v13 }
 0x1c8   : > { %19514 = vst [vmem:[#allocation86_spill] sm:$0xff] %v15949_v43  ;;  %v15953_v25 = vpop.f32.mrf.mxu1  ;;  %v3035_v20 = vadd.f32 %v15829_v18, %v2644_v42  ;;  %v19518_v18 = vld [vmem:[#allocation5_spill] sm:$0xff] }
 0x1c9   : > { %v15955_v12 = vpop.f32.mrf.mxu0  ;;  %v3036_v40 = vadd.f32 %v15824_v30, %v2645_v62  ;;  %v15987_v62 = vld [vmem:[%s19244_s2] ss:$0 sm:$0xff]  ;;  %v1048_v35 = vadd.f32 %v15521_v39, %v19518_v18  ;;  %v2651_v39 = vadd.f32 %v15857_v45, %v15741_v19 }
 0x1ca   : > { %19515 = vst [vmem:[#allocation87_spill] sm:$0xff] %v15955_v12  ;;  %v15957_v9 = vpop.f32.mrf.mxu1 }
 0x1cb   : > { %19516 = vst [vmem:[#allocation88_spill] sm:$0xff] %v15957_v9  ;;  %v15959_v38 = vpop.f32.mrf.mxu0 }
 0x1cc   : > { %19517 = vst [vmem:[#allocation89_spill] sm:$0xff] %v15959_v38  ;;  %v15966_v43 = vpop.f32.mrf.mxu1  ;;  %v2256_v38 = vadd.f32 %v15600_v60, %v1866_v37  ;;  %v2649_v60 = vadd.f32 %v15849_v49, %v15728_v24  ;;  %v3038_v37 = vadd.f32 %v15835_v28, %v2647_v0  ;;  %v1872_v28 = vadd.f32 %v15745_v27, %v15465_v57 }
 0x1cd   : > { %v13398_v4 = vpop.f32.mrf.mxu0 }
 0x1ce   : > { %v15971_v12 = vpop.f32.mrf.mxu1  ;;  %v2646_v11 = vadd.f32 %v15845_v7, %v2256_v38  ;;  %v2648_v7 = vadd.f32 %v15853_v5, %v2258_v52  ;;  %v2262_v52 = vadd.f32 %v15737_v47, %v1872_v28 }
 0x1cf   : > { %v3656_v9 = vpop.f32.mrf.mxu0 }
 0x1d0   : > { %v13348_v58 = vpop.f32.mrf.mxu1  ;;  %v3037_v24 = vadd.f32 %v15839_v41, %v2646_v11  ;;  %v3039_v21 = vadd.f32 %v15847_v31, %v2648_v7  ;;  %v2650_v11 = vadd.f32 %v15867_v17, %v2260_v26  ;;  %v2653_v31 = vadd.f32 %v15871_v29, %v15749_v46 }
 0x1d1   : > { %v13401_v2 = vpop.f32.mrf.mxu0  ;;  %v3426_v32 = vadd.f32 %v13348_v58, %v3036_v40 }
 0x1d2   : > { %v3266_v44 = vpop.f32.mrf.mxu1 }
 0x1d3   : > { %v3666_v16 = vpop.f32.mrf.mxu0  ;;  %v3816_v30 = vadd.f32 %v13398_v4, %v3426_v32  ;;  %v3425_v38 = vadd.f32 %v3266_v44, %v3035_v20  ;;  %v3040_v4 = vadd.f32 %v15843_v1, %v2649_v60 }
 0x1d4   : > { %v13351_v23 = vpop.f32.mrf.mxu1 }
 0x1d5   : > { %v13404_v14 = vpop.f32.mrf.mxu0  ;;  %v3855_v54 = vadd.f32 %v15987_v62, %v3816_v30  ;;  %v3815_v49 = vadd.f32 %v3656_v9, %v3425_v38  ;;  %v3428_v42 = vadd.f32 %v13351_v23, %v3038_v37  ;;  %v16003_v9 = vadd.f32 %v15507_v34, %v1048_v35  ;;  %v19519_v30 = vld [vmem:[#allocation6_spill] sm:$0xff]  ;;  %v19520_v38 = vld [vmem:[#allocation7_spill] sm:$0xff] }
 0x1d6   : > { %v3276_v40 = vpop.f32.mrf.mxu1  ;;  %v3042_v34 = vadd.f32 %v15851_v51, %v2651_v39  ;;  %v1058_v47 = vadd.f32 %v15534_v53, %v19519_v30  ;;  %v2652_v51 = vadd.f32 %v15875_v33, %v2262_v52  ;;  %v16028_v53 = vld [vmem:[%s19245_s3 + $0x28] sm:$0xff]  ;;  %v3044_v33 = vadd.f32 %v15859_v50, %v2653_v31 }
 0x1d7   : > { %v3676_v5 = vpop.f32.mrf.mxu0  ;;  %v3887_v0 = vmax.f32 %v3855_v54, 0.0  ;;  %v3854_v58 = vadd.f32 %v15987_v62, %v3815_v49  ;;  %v3818_v41 = vadd.f32 %v13401_v2, %v3428_v42  ;;  %v3427_v20 = vadd.f32 %v3276_v40, %v3037_v24  ;;  %13694 = vmatprep.subr.mxu0 %v16028_v53 }
 0x1d8   : > { %v13354_v57 = vpop.f32.mrf.mxu1  ;;  %v1874_v2 = vadd.f32 %v15752_v59, %v15477_v48  ;;  %v1068_v48 = vadd.f32 %v15545_v63, %v19520_v38  ;;  %v3041_v59 = vadd.f32 %v15855_v8, %v2650_v11  ;;  %v1876_v8 = vadd.f32 %v15762_v55, %v15489_v6 }
 0x1d9   : > { %v13407_v27 = vpop.f32.mrf.mxu0  ;;  %3976 = vst.msk [vmem:[#allocation3 + $0x21] sm:$0xff] %vm3918_vm3, %v3887_v0  ;;  %v3886_v1 = vmax.f32 %v3854_v58, 0.0  ;;  %v3857_v19 = vadd.f32 %v15987_v62, %v3818_v41  ;;  %v3817_v45 = vadd.f32 %v3666_v16, %v3427_v20  ;;  %v3430_v32 = vadd.f32 %v13354_v57, %v3040_v4  ;;  %v19522_v58 = vld [vmem:[#allocation23_spill] sm:$0xff]  ;;  %v19524_v20 = vld [vmem:[#allocation26_spill] sm:$0xff]  ;;  %v19526_v57 = vld [vmem:[#allocation25_spill] sm:$0xff] }
 0x1da   : > { %v3286_v17 = vpop.f32.mrf.mxu1  ;;  %v2264_v63 = vadd.f32 %v15747_v56, %v1874_v2  ;;  %v16040_v56 = vadd.f32 %v15523_v3, %v1058_v47  ;;  %v16043_v6 = vadd.f32 %v15536_v61, %v1068_v48  ;;  %v3043_v55 = vadd.f32 %v15869_v10, %v2652_v51  ;;  %v19523_v3 = vld [vmem:[#allocation13_spill] sm:$0xff]  ;;  %v19525_v61 = vld [vmem:[#allocation51_spill] sm:$0xff]  ;;  %v19527_v10 = vld [vmem:[#allocation56_spill] sm:$0xff] }
 0x1db   : > { %v3686_v13 = vpop.f32.mrf.mxu0  ;;  %3975 = vst.msk [vmem:[#allocation3 + $0x19] sm:$0xff] %vm3918_vm3, %v3886_v1  ;;  %v3889_v60 = vmax.f32 %v3857_v19, 0.0  ;;  %v3856_v44 = vadd.f32 %v15987_v62, %v3817_v45  ;;  %v3820_v37 = vadd.f32 %v13404_v14, %v3430_v32  ;;  %v3429_v16 = vadd.f32 %v3286_v17, %v3039_v21  ;;  %v19531_v47 = vld [vmem:[#allocation58_spill] sm:$0xff] }
 0x1dc   : > { %v13357_v46 = vpop.f32.mrf.mxu1  ;;  %v2655_v14 = vadd.f32 %v15879_v15, %v15756_v36  ;;  %v19521_v36 = vld [vmem:[#allocation54_spill] sm:$0xff]  ;;  %v2266_v41 = vadd.f32 %v19522_v58, %v1876_v8  ;;  %v1878_v21 = vadd.f32 %v19524_v20, %v19523_v3 }
 0x1dd   : > { %v13410_v29 = vpop.f32.mrf.mxu0  ;;  %3978 = vst.msk [vmem:[#allocation3 + $0x39] sm:$0xff] %vm3918_vm3, %v3889_v60  ;;  %v3888_v18 = vmax.f32 %v3856_v44, 0.0  ;;  %v3859_v35 = vadd.f32 %v15987_v62, %v3820_v37  ;;  %v3819_v7 = vadd.f32 %v3676_v5, %v3429_v16  ;;  %v3432_v23 = vadd.f32 %v13357_v46, %v3042_v34  ;;  %v19528_v60 = vld [vmem:[#allocation8_spill] sm:$0xff]  ;;  %v19540_v20 = vld [vmem:[#allocation62_spill] sm:$0xff] }
 0x1de   : > { %v3296_v24 = vpop.f32.mrf.mxu1  ;;  %v2654_v15 = vadd.f32 %v19521_v36, %v2264_v63  ;;  %v3046_v11 = vadd.f32 %v19525_v61, %v2655_v14  ;;  %v19529_v44 = vld [vmem:[#allocation16_spill] sm:$0xff]  ;;  %v2656_v38 = vadd.f32 %v19531_v47, %v2266_v41  ;;  %v19534_v63 = vld [vmem:[#allocation29_spill] sm:$0xff]  ;;  %v19539_v41 = vld [vmem:[#allocation55_spill] sm:$0xff] }
 0x1df   : > { %v3696_v54 = vpop.f32.mrf.mxu0  ;;  %3977 = vst.msk [vmem:[#allocation3 + $0x31] sm:$0xff] %vm3918_vm3, %v3888_v18  ;;  %v3891_v49 = vmax.f32 %v3859_v35, 0.0  ;;  %v3858_v42 = vadd.f32 %v15987_v62, %v3819_v7  ;;  %v3822_v26 = vadd.f32 %v13407_v27, %v3432_v23  ;;  %v3431_v28 = vadd.f32 %v3296_v24, %v3041_v59  ;;  %v19530_v16 = vld [vmem:[#allocation52_spill] sm:$0xff]  ;;  %v19533_v23 = vld [vmem:[#allocation14_spill] sm:$0xff] }
 0x1e0   : > { %v13360_v50 = vpop.f32.mrf.mxu1  ;;  %v2657_v27 = vadd.f32 %v19527_v10, %v19526_v57  ;;  %v1078_v37 = vadd.f32 %v19529_v44, %v19528_v60  ;;  %v3045_v30 = vadd.f32 %v19530_v16, %v2654_v15  ;;  %v19532_v35 = vld [vmem:[#allocation24_spill] sm:$0xff]  ;;  %v1880_v8 = vadd.f32 %v19534_v63, %v19533_v23  ;;  %v19544_v44 = vld [vmem:[#allocation31_spill] sm:$0xff] }
 0x1e1   : > { %v13413_v4 = vpop.f32.mrf.mxu0  ;;  %3980 = vst.msk [vmem:[#allocation3 + $0x51] sm:$0xff] %vm3918_vm3, %v3891_v49  ;;  %v3890_v39 = vmax.f32 %v3858_v42, 0.0  ;;  %v3861_v40 = vadd.f32 %v15987_v62, %v3822_v26  ;;  %v3821_v5 = vadd.f32 %v3686_v13, %v3431_v28  ;;  %v3434_v0 = vadd.f32 %v13360_v50, %v3044_v33  ;;  %v16067_v13 = vld [vmem:[#allocation3 + $0x21] sm:$0xff]  ;;  %v19536_v24 = vld [vmem:[#allocation28_spill] sm:$0xff]  ;;  %v19548_v63 = vld [vmem:[#allocation59_spill] sm:$0xff] }
 0x1e2   : > { %v3306_v1 = vpop.f32.mrf.mxu1  ;;  %v16055_v19 = vld [vmem:[#allocation3 + $0x19] sm:$0xff]  ;;  %v2268_v7 = vadd.f32 %v19532_v35, %v1878_v21  ;;  %v3047_v3 = vadd.f32 %v19539_v41, %v2656_v38 }
 0x1e3   : > { %v16057_v45 = vld [vmem:[#allocation3 + $0x18] sm:$0xff]  ;;  %v16059_v32 = vld [vmem:[#allocation3 + $0x20] sm:$0xff]  ;;  %v3706_v52 = vpop.f32.mrf.mxu0  ;;  %3979 = vst.msk [vmem:[#allocation3 + $0x49] sm:$0xff] %vm3918_vm3, %v3890_v39  ;;  %v3893_v2 = vmax.f32 %v3861_v40, 0.0  ;;  %v3860_v34 = vadd.f32 %v15987_v62, %v3821_v5  ;;  %v3824_v31 = vadd.f32 %v13410_v29, %v3434_v0  ;;  %v3433_v17 = vadd.f32 %v3306_v1, %v3043_v55  ;;  %13449 = vmatprep.mubr.msk.f32.mxu1 %vm3918_vm3, %v16055_v19  ;;  %v19538_v0 = vld [vmem:[#allocation15_spill] sm:$0xff] }
 0x1e4   : > { %13499 = vmatprep.mubr.msk.f32.mxu0 %vm3918_vm3, %v16057_v45  ;;  %v13363_v48 = vpop.f32.mrf.mxu1  ;;  %13450 = vmatmul.mubr.msk.f32.gmra.mxu1 %vm3918_vm3, %v16067_v13  ;;  %v19535_v33 = vld [vmem:[#allocation53_spill] sm:$0xff]  ;;  %v19537_v49 = vld [vmem:[#allocation60_spill] sm:$0xff]  ;;  %v16100_v58 = vadd.f32 %v19538_v0, %v1078_v37  ;;  %v2658_v21 = vadd.f32 %v19540_v20, %v2268_v7  ;;  %v19541_v1 = vld [vmem:[#allocation27_spill] sm:$0xff] }
 0x1e5   : > { %13500 = vmatmul.mubr.msk.f32.gmra.mxu0 %vm3918_vm3, %v16059_v32  ;;  %v13416_v59 = vpop.f32.mrf.mxu0  ;;  %3982 = vst.msk [vmem:[#allocation3 + $0x69] sm:$0xff] %vm3918_vm3, %v3893_v2  ;;  %v3892_v51 = vmax.f32 %v3860_v34, 0.0  ;;  %v3863_v46 = vadd.f32 %v15987_v62, %v3824_v31  ;;  %v3823_v29 = vadd.f32 %v3696_v54, %v3433_v17  ;;  %v3436_v18 = vadd.f32 %v13363_v48, %v3046_v11  ;;  %v16097_v5 = vld [vmem:[#allocation3 + $0x39] sm:$0xff]  ;;  %v19547_v7 = vld [vmem:[#allocation18_spill] sm:$0xff]  ;;  %v19553_v20 = vld [vmem:[#allocation11_spill] sm:$0xff] }
 0x1e6   : > { %v3048_v14 = vadd.f32 %v19535_v33, %v2657_v27  ;;  %v2659_v42 = vadd.f32 %v19537_v49, %v19536_v24  ;;  %v3316_v26 = vpop.f32.mrf.mxu1  ;;  %v16085_v28 = vld [vmem:[#allocation3 + $0x31] sm:$0xff]  ;;  %v2270_v2 = vadd.f32 %v19541_v1, %v1880_v8  ;;  %v19543_v17 = vld [vmem:[#allocation57_spill] sm:$0xff]  ;;  %v3049_v8 = vadd.f32 %v19548_v63, %v2658_v21  ;;  %v19549_v33 = vld [vmem:[#allocation66_spill] sm:$0xff] }
 0x1e7   : > { %v16087_v55 = vld [vmem:[#allocation3 + $0x30] sm:$0xff]  ;;  %v16089_v36 = vld [vmem:[#allocation3 + $0x38] sm:$0xff]  ;;  %v3716_v15 = vpop.f32.mrf.mxu0  ;;  %3981 = vst.msk [vmem:[#allocation3 + $0x61] sm:$0xff] %vm3918_vm3, %v3892_v51  ;;  %v3895_v54 = vmax.f32 %v3863_v46, 0.0  ;;  %v3862_v50 = vadd.f32 %v15987_v62, %v3823_v29  ;;  %v3826_v39 = vadd.f32 %v13413_v4, %v3436_v18  ;;  %v3435_v40 = vadd.f32 %v3316_v26, %v3045_v30  ;;  %13452 = vmatprep.mubr.msk.f32.mxu1 %vm3918_vm3, %v16085_v28  ;;  %v19546_v35 = vld [vmem:[#allocation9_spill] sm:$0xff] }
 0x1e8   : > { %13502 = vmatprep.mubr.msk.f32.mxu0 %vm3918_vm3, %v16087_v55  ;;  %v13366_v61 = vpop.f32.mrf.mxu1  ;;  %13453 = vmatmul.mubr.msk.f32.gmra.mxu1 %vm3918_vm3, %v16097_v5  ;;  %v19542_v34 = vld [vmem:[#allocation32_spill] sm:$0xff]  ;;  %v3050_v60 = vadd.f32 %v19543_v17, %v2659_v42  ;;  %v1088_v23 = vadd.f32 %v19547_v7, %v19546_v35  ;;  %v19552_v41 = vld [vmem:[#allocation61_spill] sm:$0xff] }
 0x1e9   : > { %13503 = vmatmul.mubr.msk.f32.gmra.mxu0 %vm3918_vm3, %v16089_v36  ;;  %v13419_v4 = vpop.f32.mrf.mxu0  ;;  %3984 = vst.msk [vmem:[#allocation3 + $0x81] sm:$0xff] %vm3918_vm3, %v3895_v54  ;;  %v3894_v11 = vmax.f32 %v3862_v50, 0.0  ;;  %v3865_v57 = vadd.f32 %v15987_v62, %v3826_v39  ;;  %v3825_v10 = vadd.f32 %v3706_v52, %v3435_v40  ;;  %v3438_v27 = vadd.f32 %v13366_v61, %v3048_v14  ;;  %v19545_v37 = vld [vmem:[#allocation64_spill] sm:$0xff]  ;;  %v19550_v50 = vld [vmem:[#allocation30_spill] sm:$0xff]  ;;  %v19555_v17 = vld [vmem:[#allocation17_spill] sm:$0xff] }
 0x1ea   : > { %v1882_v31 = vadd.f32 %v19542_v34, %v16003_v9  ;;  %v2661_v16 = vadd.f32 %v19545_v37, %v19544_v44  ;;  %v3326_v30 = vpop.f32.mrf.mxu1  ;;  %v16116_v47 = vld [vmem:[#allocation3 + $0x49] sm:$0xff]  ;;  %v16128_v18 = vld [vmem:[#allocation3 + $0x51] sm:$0xff]  ;;  %v2660_v14 = vadd.f32 %v19549_v33, %v2270_v2  ;;  %v19558_v7 = vld [vmem:[#allocation33_spill] sm:$0xff] }
 0x1eb   : > { %v16118_v38 = vld [vmem:[#allocation3 + $0x48] sm:$0xff]  ;;  %v16120_v48 = vld [vmem:[#allocation3 + $0x50] sm:$0xff]  ;;  %v3726_v51 = vpop.f32.mrf.mxu0  ;;  %3983 = vst.msk [vmem:[#allocation3 + $0x79] sm:$0xff] %vm3918_vm3, %v3894_v11  ;;  %v3897_v52 = vmax.f32 %v3865_v57, 0.0  ;;  %v3864_v46 = vadd.f32 %v15987_v62, %v3825_v10  ;;  %v3828_v29 = vadd.f32 %v13416_v59, %v3438_v27  ;;  %v3437_v9 = vadd.f32 %v3326_v30, %v3047_v3  ;;  %13455 = vmatprep.mubr.msk.f32.mxu1 %vm3918_vm3, %v16116_v47  ;;  %v19554_v21 = vld [vmem:[#allocation68_spill] sm:$0xff] }
 0x1ec   : > { %13505 = vmatprep.mubr.msk.f32.mxu0 %vm3918_vm3, %v16118_v38  ;;  %v13369_v24 = vpop.f32.mrf.mxu1  ;;  %13456 = vmatmul.mubr.msk.f32.gmra.mxu1 %vm3918_vm3, %v16128_v18  ;;  %v2272_v39 = vadd.f32 %v19550_v50, %v1882_v31  ;;  %v19551_v40 = vld [vmem:[#allocation34_spill] sm:$0xff]  ;;  %v3052_v3 = vadd.f32 %v19552_v41, %v2661_v16  ;;  %v2663_v61 = vadd.f32 %v19554_v21, %v19553_v20  ;;  %v19556_v44 = vld [vmem:[#allocation63_spill] sm:$0xff]  ;;  %v19559_v63 = vld [vmem:[#allocation37_spill] sm:$0xff] }
 0x1ed   : > { %13506 = vmatmul.mubr.msk.f32.gmra.mxu0 %vm3918_vm3, %v16120_v48  ;;  %v13422_v59 = vpop.f32.mrf.mxu0  ;;  %3986 = vst.msk [vmem:[#allocation3 + $0x99] sm:$0xff] %vm3918_vm3, %v3897_v52  ;;  %v3896_v49 = vmax.f32 %v3864_v46, 0.0  ;;  %v3867_v42 = vadd.f32 %v15987_v62, %v3828_v29  ;;  %v3827_v26 = vadd.f32 %v3716_v15, %v3437_v9  ;;  %v3440_v54 = vadd.f32 %v13369_v24, %v3050_v60  ;;  %v16158_v31 = vld [vmem:[#allocation3 + $0x69] sm:$0xff]  ;;  %v19560_v33 = vld [vmem:[#allocation65_spill] sm:$0xff]  ;;  %v19561_v24 = vld [vmem:[#allocation36_spill] sm:$0xff] }
 0x1ee   : > { %v1884_v0 = vadd.f32 %v19551_v40, %v16040_v56  ;;  %v3336_v11 = vpop.f32.mrf.mxu1  ;;  %v16146_v57 = vld [vmem:[#allocation3 + $0x61] sm:$0xff]  ;;  %v16161_v60 = vadd.f32 %v19555_v17, %v1088_v23  ;;  %v3051_v37 = vadd.f32 %v19556_v44, %v2660_v14  ;;  %v3054_v14 = vadd.f32 %v19560_v33, %v2663_v61  ;;  %v19566_v21 = vld [vmem:[#allocation20_spill] sm:$0xff] }
 0x1ef   : > { %v16148_v10 = vld [vmem:[#allocation3 + $0x60] sm:$0xff]  ;;  %v16150_v27 = vld [vmem:[#allocation3 + $0x68] sm:$0xff]  ;;  %v3736_v1 = vpop.f32.mrf.mxu0  ;;  %3985 = vst.msk [vmem:[#allocation3 + $0x91] sm:$0xff] %vm3918_vm3, %v3896_v49  ;;  %v3899_v15 = vmax.f32 %v3867_v42, 0.0  ;;  %v3866_v2 = vadd.f32 %v15987_v62, %v3827_v26  ;;  %v3830_v34 = vadd.f32 %v13419_v4, %v3440_v54  ;;  %v3439_v56 = vadd.f32 %v3336_v11, %v3049_v8  ;;  %13458 = vmatprep.mubr.msk.f32.mxu1 %vm3918_vm3, %v16146_v57  ;;  %v19562_v49 = vld [vmem:[#allocation72_spill] sm:$0xff] }
 0x1f0   : > { %13508 = vmatprep.mubr.msk.f32.mxu0 %vm3918_vm3, %v16148_v10  ;;  %v19557_v16 = vld [vmem:[#allocation70_spill] sm:$0xff]  ;;  %v13372_v52 = vpop.f32.mrf.mxu1  ;;  %13459 = vmatmul.mubr.msk.f32.gmra.mxu1 %vm3918_vm3, %v16158_v31  ;;  %v2274_v23 = vadd.f32 %v19558_v7, %v1884_v0  ;;  %v1886_v8 = vadd.f32 %v19559_v63, %v16043_v6  ;;  %v2665_v42 = vadd.f32 %v19562_v49, %v19561_v24  ;;  %v19567_v11 = vld [vmem:[#allocation67_spill] sm:$0xff] }
 0x1f1   : > { %v2662_v30 = vadd.f32 %v19557_v16, %v2272_v39  ;;  %13509 = vmatmul.mubr.msk.f32.gmra.mxu0 %vm3918_vm3, %v16150_v27  ;;  %v13425_v4 = vpop.f32.mrf.mxu0  ;;  %3988 = vst.msk [vmem:[#allocation3 + $0xb1] sm:$0xff] %vm3918_vm3, %v3899_v15  ;;  %v3898_v46 = vmax.f32 %v3866_v2, 0.0  ;;  %v3869_v29 = vadd.f32 %v15987_v62, %v3830_v34  ;;  %v3829_v9 = vadd.f32 %v3726_v51, %v3439_v56  ;;  %v19565_v20 = vld [vmem:[#allocation10_spill] sm:$0xff]  ;;  %v19572_v7 = vld [vmem:[#allocation39_spill] sm:$0xff] }
 0x1f2   : > { %v3442_v35 = vadd.f32 %v13372_v52, %v3052_v3  ;;  %v3346_v26 = vpop.f32.mrf.mxu1  ;;  %v16177_v54 = vld [vmem:[#allocation3 + $0x79] sm:$0xff]  ;;  %v16189_v3 = vld [vmem:[#allocation3 + $0x81] sm:$0xff]  ;;  %v1098_v61 = vadd.f32 %v19566_v21, %v19565_v20  ;;  %v19569_v52 = vld [vmem:[#allocation35_spill] sm:$0xff] }
 0x1f3   : > { %v16179_v50 = vld [vmem:[#allocation3 + $0x78] sm:$0xff]  ;;  %v16181_v39 = vld [vmem:[#allocation3 + $0x80] sm:$0xff]  ;;  %v3746_v40 = vpop.f32.mrf.mxu0  ;;  %3987 = vst.msk [vmem:[#allocation3 + $0xa9] sm:$0xff] %vm3918_vm3, %v3898_v46  ;;  %v3901_v51 = vmax.f32 %v3869_v29, 0.0  ;;  %v3868_v0 = vadd.f32 %v15987_v62, %v3829_v9  ;;  %v3441_v6 = vadd.f32 %v3346_v26, %v3051_v37  ;;  %13461 = vmatprep.mubr.msk.f32.mxu1 %vm3918_vm3, %v16177_v54  ;;  %v3053_v15 = vadd.f32 %v19567_v11, %v2662_v30  ;;  %v19568_v2 = vld [vmem:[#allocation74_spill] sm:$0xff] }
 0x1f4   : > { %19563 = vst [vmem:[#allocation5_spill] sm:$0xff] %v16179_v50  ;;  %19564 = vst [vmem:[#allocation6_spill] sm:$0xff] %v16181_v39  ;;  %v3832_v41 = vadd.f32 %v13422_v59, %v3442_v35  ;;  %13511 = vmatprep.mubr.msk.f32.mxu0 %vm3918_vm3, %v16179_v50  ;;  %v2664_v34 = vadd.f32 %v19568_v2, %v2274_v23  ;;  %v13375_v56 = vpop.f32.mrf.mxu1  ;;  %13462 = vmatmul.mubr.msk.f32.gmra.mxu1 %vm3918_vm3, %v16189_v3  ;;  %v19570_v30 = vld [vmem:[#allocation40_spill] sm:$0xff]  ;;  %v19571_v9 = vld [vmem:[#allocation69_spill] sm:$0xff] }
 0x1f5   : > { %13512 = vmatmul.mubr.msk.f32.gmra.mxu0 %vm3918_vm3, %v16181_v39  ;;  %v13428_v59 = vpop.f32.mrf.mxu0  ;;  %3990 = vst.msk [vmem:[#allocation3 + $0xc9] sm:$0xff] %vm3918_vm3, %v3901_v51  ;;  %v3900_v17 = vmax.f32 %v3868_v0, 0.0  ;;  %v3831_v37 = vadd.f32 %v3736_v1, %v3441_v6  ;;  %v3444_v16 = vadd.f32 %v13375_v56, %v3054_v14  ;;  %v2276_v46 = vadd.f32 %v19569_v52, %v1886_v8  ;;  %v19573_v23 = vld [vmem:[#allocation76_spill] sm:$0xff]  ;;  %v19576_v0 = vld [vmem:[#allocation19_spill] sm:$0xff]  ;;  %v19581_v52 = vld [vmem:[#allocation42_spill] sm:$0xff] }
 0x1f6   : > { %v3871_v44 = vadd.f32 %v15987_v62, %v3832_v41  ;;  %v1888_v29 = vadd.f32 %v19570_v30, %v16100_v58  ;;  %v3056_v35 = vadd.f32 %v19571_v9, %v2665_v42  ;;  %v2667_v63 = vadd.f32 %v19573_v23, %v19572_v7  ;;  %v3356_v33 = vpop.f32.mrf.mxu1  ;;  %v16207_v24 = vld [vmem:[#allocation3 + $0x91] sm:$0xff]  ;;  %v16219_v42 = vld [vmem:[#allocation3 + $0x99] sm:$0xff] }
 0x1f7   : > { %v16209_v49 = vld [vmem:[#allocation3 + $0x90] sm:$0xff]  ;;  %v16211_v26 = vld [vmem:[#allocation3 + $0x98] sm:$0xff]  ;;  %v3756_v51 = vpop.f32.mrf.mxu0  ;;  %3989 = vst.msk [vmem:[#allocation3 + $0xc1] sm:$0xff] %vm3918_vm3, %v3900_v17  ;;  %v3870_v8 = vadd.f32 %v15987_v62, %v3831_v37  ;;  %v3834_v14 = vadd.f32 %v13425_v4, %v3444_v16  ;;  %v3443_v58 = vadd.f32 %v3356_v33, %v3053_v15  ;;  %13464 = vmatprep.mubr.msk.f32.mxu1 %vm3918_vm3, %v16207_v24  ;;  %v19580_v37 = vld [vmem:[#allocation73_spill] sm:$0xff] }
 0x1f8   : > { %19574 = vst [vmem:[#allocation7_spill] sm:$0xff] %v16209_v49  ;;  %19575 = vst [vmem:[#allocation54_spill] sm:$0xff] %v16211_v26  ;;  %v3903_v1 = vmax.f32 %v3871_v44, 0.0  ;;  %13514 = vmatprep.mubr.msk.f32.mxu0 %vm3918_vm3, %v16209_v49  ;;  %v1502_v41 = vadd.f32 %v19576_v0, %v1098_v61  ;;  %v19577_v6 = vld [vmem:[#allocation71_spill] sm:$0xff]  ;;  %v2666_v21 = vadd.f32 %v15931_v22, %v2276_v46  ;;  %v13378_v11 = vpop.f32.mrf.mxu1  ;;  %13465 = vmatmul.mubr.msk.f32.gmra.mxu1 %vm3918_vm3, %v16219_v42  ;;  %v19578_v61 = vld [vmem:[#allocation38_spill] sm:$0xff] }
 0x1f9   : > { %v3055_v20 = vadd.f32 %v19577_v6, %v2664_v34  ;;  %13515 = vmatmul.mubr.msk.f32.gmra.mxu0 %vm3918_vm3, %v16211_v26  ;;  %v13431_v4 = vpop.f32.mrf.mxu0  ;;  %v3902_v15 = vmax.f32 %v3870_v8, 0.0  ;;  %v3873_v2 = vadd.f32 %v15987_v62, %v3834_v14  ;;  %v3833_v56 = vadd.f32 %v3746_v40, %v3443_v58  ;;  %v19579_v34 = vld [vmem:[#allocation43_spill] sm:$0xff]  ;;  %v19586_v8 = vld [vmem:[#allocation12_spill] sm:$0xff]  ;;  %v19587_v14 = vld [vmem:[#allocation22_spill] sm:$0xff] }
 0x1fa   : > { %3992 = vst.msk [vmem:[#allocation3 + $0xe1] sm:$0xff] %vm3918_vm3, %v3903_v1  ;;  %v3446_v17 = vadd.f32 %v13378_v11, %v3056_v35  ;;  %v2278_v44 = vadd.f32 %v19578_v61, %v1888_v29  ;;  %v1890_v22 = vadd.f32 %v19579_v34, %v16161_v60  ;;  %v3058_v16 = vadd.f32 %v19580_v37, %v2667_v63  ;;  %v19582_v46 = vld [vmem:[#allocation79_spill] sm:$0xff]  ;;  %v3366_v9 = vpop.f32.mrf.mxu1  ;;  %v16238_v23 = vld [vmem:[#allocation3 + $0xa8] sm:$0xff]  ;;  %v19589_v11 = vld [vmem:[#allocation81_spill] sm:$0xff] }
 0x1fb   : > { %v2669_v30 = vadd.f32 %v19582_v46, %v19581_v52  ;;  %v16236_v7 = vld [vmem:[#allocation3 + $0xa9] sm:$0xff]  ;;  %19583 = vst [vmem:[#allocation23_spill] sm:$0xff] %v16238_v23  ;;  %v3766_v1 = vpop.f32.mrf.mxu0  ;;  %3991 = vst.msk [vmem:[#allocation3 + $0xd9] sm:$0xff] %vm3918_vm3, %v3902_v15  ;;  %v3905_v40 = vmax.f32 %v3873_v2, 0.0  ;;  %v3872_v29 = vadd.f32 %v15987_v62, %v3833_v56  ;;  %v3445_v60 = vadd.f32 %v3366_v9, %v3055_v20  ;;  %v16248_v63 = vld [vmem:[#allocation3 + $0xb1] sm:$0xff] }
 0x1fc   : > { %v16240_v33 = vld [vmem:[#allocation3 + $0xb0] sm:$0xff]  ;;  %v3836_v35 = vadd.f32 %v13428_v59, %v3446_v17  ;;  %13467 = vmatprep.mubr.msk.f32.mxu1 %vm3918_vm3, %v16236_v7  ;;  %13517 = vmatprep.mubr.msk.f32.mxu0 %vm3918_vm3, %v16238_v23  ;;  %19585 = vst [vmem:[#allocation26_spill] sm:$0xff] %v16248_v63  ;;  %v1108_v58 = vadd.f32 %v19587_v14, %v19586_v8  ;;  %v13381_v2 = vpop.f32.mrf.mxu1  ;;  %v19590_v34 = vld [vmem:[#allocation41_spill] sm:$0xff] }
 0x1fd   : > { %19584 = vst [vmem:[#allocation13_spill] sm:$0xff] %v16240_v33  ;;  %v19588_v0 = vld [vmem:[#allocation75_spill] sm:$0xff]  ;;  %v2668_v15 = vadd.f32 %v19589_v11, %v2278_v44  ;;  %13468 = vmatmul.mubr.msk.f32.gmra.mxu1 %vm3918_vm3, %v16248_v63  ;;  %13518 = vmatmul.mubr.msk.f32.gmra.mxu0 %vm3918_vm3, %v16240_v33  ;;  %v13434_v59 = vpop.f32.mrf.mxu0  ;;  %3994 = vst.msk [vmem:[#allocation3 + $0xf9] sm:$0xff] %vm3918_vm3, %v3905_v40  ;;  %v3904_v20 = vmax.f32 %v3872_v29, 0.0  ;;  %v3835_v17 = vadd.f32 %v3756_v51, %v3445_v60  ;;  %v19592_v44 = vld [vmem:[#allocation77_spill] sm:$0xff] }
 0x1fe   : > { %v3057_v6 = vadd.f32 %v19588_v0, %v2666_v21  ;;  %v3875_v56 = vadd.f32 %v15987_v62, %v3836_v35  ;;  %v3448_v61 = vadd.f32 %v13381_v2, %v3058_v16  ;;  %v2280_v37 = vadd.f32 %v19590_v34, %v1890_v22  ;;  %v19591_v21 = vld [vmem:[#allocation46_spill] sm:$0xff]  ;;  %v19593_v9 = vld [vmem:[#allocation45_spill] sm:$0xff]  ;;  %v19594_v8 = vld [vmem:[#allocation83_spill] sm:$0xff]  ;;  %v3376_v0 = vpop.f32.mrf.mxu1 }
 0x1ff   : > { %v1892_v52 = vadd.f32 %v19591_v21, %v1502_v41  ;;  %v3060_v46 = vadd.f32 %v19592_v44, %v2669_v30  ;;  %v2671_v14 = vadd.f32 %v19594_v8, %v19593_v9  ;;  %v16265_v11 = vld [vmem:[#allocation3 + $0xc1] sm:$0xff]  ;;  %v3776_v29 = vpop.f32.mrf.mxu0  ;;  %3993 = vst.msk [vmem:[#allocation3 + $0xf1] sm:$0xff] %vm3918_vm3, %v3904_v20  ;;  %v3874_v22 = vadd.f32 %v15987_v62, %v3835_v17  ;;  %v16277_v30 = vld [vmem:[#allocation3 + $0xc9] sm:$0xff] }
 0x200   : > { %19595 = vst [vmem:[#allocation51_spill] sm:$0xff] %v16265_v11  ;;  %v16267_v63 = vld [vmem:[#allocation3 + $0xc0] sm:$0xff]  ;;  %v16269_v40 = vld [vmem:[#allocation3 + $0xc8] sm:$0xff]  ;;  %v3907_v51 = vmax.f32 %v3875_v56, 0.0  ;;  %v3838_v16 = vadd.f32 %v13431_v4, %v3448_v61  ;;  %v3447_v41 = vadd.f32 %v3376_v0, %v3057_v6  ;;  %13470 = vmatprep.mubr.msk.f32.mxu1 %vm3918_vm3, %v16265_v11  ;;  %19598 = vst [vmem:[#allocation8_spill] sm:$0xff] %v16277_v30  ;;  %v13384_v20 = vpop.f32.mrf.mxu1 }
 0x201   : > { %19596 = vst [vmem:[#allocation25_spill] sm:$0xff] %v16267_v63  ;;  %19597 = vst [vmem:[#allocation56_spill] sm:$0xff] %v16269_v40  ;;  %13520 = vmatprep.mubr.msk.f32.mxu0 %vm3918_vm3, %v16267_v63  ;;  %v19599_v35 = vld [vmem:[#allocation21_spill] sm:$0xff]  ;;  %v19600_v2 = vld [vmem:[#allocation78_spill] sm:$0xff]  ;;  %13471 = vmatmul.mubr.msk.f32.gmra.mxu1 %vm3918_vm3, %v16277_v30  ;;  %v13437_v4 = vpop.f32.mrf.mxu0  ;;  %v3906_v6 = vmax.f32 %v3874_v22, 0.0  ;;  %v3450_v61 = vadd.f32 %v13384_v20, %v3060_v46 }
 0x202   : > { %v1504_v60 = vadd.f32 %v19599_v35, %v1108_v58  ;;  %v3059_v34 = vadd.f32 %v19600_v2, %v2668_v15  ;;  %v19601_v21 = vld [vmem:[#allocation85_spill] sm:$0xff]  ;;  %13521 = vmatmul.mubr.msk.f32.gmra.mxu0 %vm3918_vm3, %v16269_v40  ;;  %3996 = vst.msk [vmem:[#allocation3 + $0x111] sm:$0xff] %vm3918_vm3, %v3907_v51  ;;  %v3877_v56 = vadd.f32 %v15987_v62, %v3838_v16  ;;  %v19602_v58 = vld [vmem:[#allocation44_spill] sm:$0xff] }
 0x203   : > { %v2670_v44 = vadd.f32 %v19601_v21, %v2280_v37  ;;  %v3837_v17 = vadd.f32 %v3766_v1, %v3447_v41  ;;  %v2282_v9 = vadd.f32 %v19602_v58, %v1892_v52  ;;  %v19603_v15 = vld [vmem:[#allocation49_spill] sm:$0xff]  ;;  %v19604_v37 = vld [vmem:[#allocation80_spill] sm:$0xff]  ;;  %v3386_v21 = vpop.f32.mrf.mxu1  ;;  %v3786_v22 = vpop.f32.mrf.mxu0  ;;  %3995 = vst.msk [vmem:[#allocation3 + $0x109] sm:$0xff] %vm3918_vm3, %v3906_v6  ;;  %v3840_v46 = vadd.f32 %v13434_v59, %v3450_v61  ;;  %v19611_v61 = vld [vmem:[#allocation47_spill] sm:$0xff] }
 0x204   : > { %v1894_v8 = vadd.f32 %v19603_v15, %v1504_v60  ;;  %v3062_v0 = vadd.f32 %v19604_v37, %v2671_v14  ;;  %v19605_v35 = vld [vmem:[#allocation48_spill] sm:$0xff]  ;;  %v16297_v51 = vld [vmem:[#allocation3 + $0xe0] sm:$0xff]  ;;  %v3909_v1 = vmax.f32 %v3877_v56, 0.0  ;;  %v3449_v16 = vadd.f32 %v3386_v21, %v3059_v34  ;;  %v19609_v14 = vld [vmem:[#allocation82_spill] sm:$0xff] }
 0x205   : > { %v2673_v2 = vadd.f32 %v15953_v25, %v19605_v35  ;;  %v16293_v30 = vld [vmem:[#allocation3 + $0xd9] sm:$0xff]  ;;  %19607 = vst [vmem:[#allocation52_spill] sm:$0xff] %v16297_v51  ;;  %v3876_v52 = vadd.f32 %v15987_v62, %v3837_v17  ;;  %v16305_v25 = vld [vmem:[#allocation3 + $0xe1] sm:$0xff]  ;;  %v3061_v41 = vadd.f32 %v19609_v14, %v2670_v44  ;;  %v13387_v58 = vpop.f32.mrf.mxu1  ;;  %v13440_v59 = vpop.f32.mrf.mxu0  ;;  %v3879_v6 = vadd.f32 %v15987_v62, %v3840_v46 }
 0x206   : > { %v16295_v11 = vld [vmem:[#allocation3 + $0xd8] sm:$0xff]  ;;  %13473 = vmatprep.mubr.msk.f32.mxu1 %vm3918_vm3, %v16293_v30  ;;  %19608 = vst [vmem:[#allocation58_spill] sm:$0xff] %v16305_v25  ;;  %3998 = vst.msk [vmem:[#allocation3 + $0x129] sm:$0xff] %vm3918_vm3, %v3909_v1  ;;  %v3839_v56 = vadd.f32 %v3776_v29, %v3449_v16  ;;  %v3452_v17 = vadd.f32 %v13387_v58, %v3062_v0  ;;  %v2284_v15 = vadd.f32 %v19611_v61, %v1894_v8  ;;  %v19616_v8 = vld [vmem:[#allocation86_spill] sm:$0xff] }
 0x207   : > { %19606 = vst [vmem:[#allocation16_spill] sm:$0xff] %v16295_v11  ;;  %13523 = vmatprep.mubr.msk.f32.mxu0 %vm3918_vm3, %v16295_v11  ;;  %v19610_v60 = vld [vmem:[#allocation88_spill] sm:$0xff]  ;;  %13474 = vmatmul.mubr.msk.f32.gmra.mxu1 %vm3918_vm3, %v16305_v25  ;;  %v3908_v34 = vmax.f32 %v3876_v52, 0.0  ;;  %v3396_v21 = vpop.f32.mrf.mxu1  ;;  %v3911_v1 = vmax.f32 %v3879_v6, 0.0 }
 0x208   : > { %v2672_v20 = vadd.f32 %v19610_v60, %v2282_v9  ;;  %13524 = vmatmul.mubr.msk.f32.gmra.mxu0 %vm3918_vm3, %v16297_v51  ;;  %v19612_v44 = vld [vmem:[#allocation84_spill] sm:$0xff]  ;;  %v19613_v9 = vld [vmem:[#allocation50_spill] sm:$0xff]  ;;  %v16321_v60 = vld [vmem:[#allocation3 + $0xf0] sm:$0xff]  ;;  %v3878_v29 = vadd.f32 %v15987_v62, %v3839_v56  ;;  %v3842_v0 = vadd.f32 %v13437_v4, %v3452_v17  ;;  %v3451_v52 = vadd.f32 %v3396_v21, %v3061_v41  ;;  %v3796_v4 = vpop.f32.mrf.mxu0 }
 0x209   : > { %v3064_v37 = vadd.f32 %v19612_v44, %v2673_v2  ;;  %v2675_v35 = vadd.f32 %v15966_v43, %v19613_v9  ;;  %v16319_v14 = vld [vmem:[#allocation3 + $0xf1] sm:$0xff]  ;;  %19614 = vst [vmem:[#allocation24_spill] sm:$0xff] %v16321_v60  ;;  %3997 = vst.msk [vmem:[#allocation3 + $0x121] sm:$0xff] %vm3918_vm3, %v3908_v34  ;;  %13526 = vmatprep.mubr.msk.f32.mxu0 %vm3918_vm3, %v16321_v60  ;;  %v16331_v43 = vld [vmem:[#allocation3 + $0xf9] sm:$0xff]  ;;  %v2674_v46 = vadd.f32 %v15971_v12, %v2284_v15  ;;  %v13390_v16 = vpop.f32.mrf.mxu1 }
 0x20a   : > { %v16323_v25 = vld [vmem:[#allocation3 + $0xf8] sm:$0xff]  ;;  %13476 = vmatprep.mubr.msk.f32.mxu1 %vm3918_vm3, %v16319_v14  ;;  %v3063_v2 = vadd.f32 %v19616_v8, %v2672_v20  ;;  %4000 = vst.msk [vmem:[#allocation3 + $0x141] sm:$0xff] %vm3918_vm3, %v3911_v1  ;;  %v3910_v41 = vmax.f32 %v3878_v29, 0.0  ;;  %v3881_v58 = vadd.f32 %v15987_v62, %v3842_v0  ;;  %v3841_v34 = vadd.f32 %v3786_v22, %v3451_v52  ;;  %v19617_v56 = vld [vmem:[#allocation87_spill] sm:$0xff]  ;;  %v16344_v12 = vld [vmem:[#allocation3 + $0x108] sm:$0xff]  ;;  %v13443_v44 = vpop.f32.mrf.mxu0 }
 0x20b   : > { %19615 = vst [vmem:[#allocation14_spill] sm:$0xff] %v16323_v25  ;;  %13477 = vmatmul.mubr.msk.f32.gmra.mxu1 %vm3918_vm3, %v16331_v43  ;;  %v3454_v6 = vadd.f32 %v13390_v16, %v3064_v37  ;;  %v3066_v17 = vadd.f32 %v19617_v56, %v2675_v35  ;;  %v3406_v20 = vpop.f32.mrf.mxu1  ;;  %v16342_v61 = vld [vmem:[#allocation3 + $0x109] sm:$0xff]  ;;  %19618 = vst [vmem:[#allocation29_spill] sm:$0xff] %v16344_v12  ;;  %v16354_v22 = vld [vmem:[#allocation3 + $0x111] sm:$0xff] }
 0x20c   : > { %13527 = vmatmul.mubr.msk.f32.gmra.mxu0 %vm3918_vm3, %v16323_v25  ;;  %v16346_v15 = vld [vmem:[#allocation3 + $0x110] sm:$0xff]  ;;  %3999 = vst.msk [vmem:[#allocation3 + $0x139] sm:$0xff] %vm3918_vm3, %v3910_v41  ;;  %v3913_v9 = vmax.f32 %v3881_v58, 0.0  ;;  %v3880_v21 = vadd.f32 %v15987_v62, %v3841_v34  ;;  %v3453_v29 = vadd.f32 %v3406_v20, %v3063_v2  ;;  %13479 = vmatprep.mubr.msk.f32.mxu1 %vm3918_vm3, %v16342_v61  ;;  %v19620_v37 = vld [vmem:[#allocation89_spill] sm:$0xff] }
 0x20d   : > { %19619 = vst [vmem:[#allocation53_spill] sm:$0xff] %v16346_v15  ;;  %v3844_v1 = vadd.f32 %v13440_v59, %v3454_v6  ;;  %13529 = vmatprep.mubr.msk.f32.mxu0 %vm3918_vm3, %v16344_v12  ;;  %v3065_v35 = vadd.f32 %v19620_v37, %v2674_v46  ;;  %v13393_v0 = vpop.f32.mrf.mxu1  ;;  %v3806_v46 = vpop.f32.mrf.mxu0 }
 0x20e   : > { %4002 = vst.msk [vmem:[#allocation3 + $0x159] sm:$0xff] %vm3918_vm3, %v3913_v9  ;;  %v3912_v59 = vmax.f32 %v3880_v21, 0.0  ;;  %v3843_v8 = vadd.f32 %v3796_v4, %v3453_v29  ;;  %v3456_v2 = vadd.f32 %v13393_v0, %v3066_v17  ;;  %v16375_v4 = vld [vmem:[#allocation3 + $0x129] sm:$0xff] }
 0x20f   : > { %13480 = vmatmul.mubr.msk.f32.gmra.mxu1 %vm3918_vm3, %v16354_v22  ;;  %v3883_v52 = vadd.f32 %v15987_v62, %v3844_v1  ;;  %v3416_v16 = vpop.f32.mrf.mxu1 }
 0x210   : > { %13530 = vmatmul.mubr.msk.f32.gmra.mxu0 %vm3918_vm3, %v16346_v15  ;;  %v16363_v41 = vld [vmem:[#allocation3 + $0x121] sm:$0xff]  ;;  %4001 = vst.msk [vmem:[#allocation3 + $0x151] sm:$0xff] %vm3918_vm3, %v3912_v59  ;;  %v3882_v56 = vadd.f32 %v15987_v62, %v3843_v8  ;;  %v3455_v20 = vadd.f32 %v3416_v16, %v3065_v35  ;;  %v3846_v9 = vadd.f32 %v13443_v44, %v3456_v2 }
 0x211   : > { %v16365_v58 = vld [vmem:[#allocation3 + $0x120] sm:$0xff]  ;;  %v16367_v34 = vld [vmem:[#allocation3 + $0x128] sm:$0xff]  ;;  %v3915_v6 = vmax.f32 %v3883_v52, 0.0  ;;  %13482 = vmatprep.mubr.msk.f32.mxu1 %vm3918_vm3, %v16363_v41 }
 0x212   : > { %19621 = vst [vmem:[#allocation28_spill] sm:$0xff] %v16365_v58  ;;  %19622 = vst [vmem:[#allocation60_spill] sm:$0xff] %v16367_v34  ;;  %13532 = vmatprep.mubr.msk.f32.mxu0 %vm3918_vm3, %v16365_v58  ;;  %v3914_v17 = vmax.f32 %v3882_v56, 0.0  ;;  %v3885_v21 = vadd.f32 %v15987_v62, %v3846_v9  ;;  %v3845_v44 = vadd.f32 %v3806_v46, %v3455_v20  ;;  %v16395_v59 = vld [vmem:[#allocation3 + $0x141] sm:$0xff] }
 0x213   : > { %13483 = vmatmul.mubr.msk.f32.gmra.mxu1 %vm3918_vm3, %v16375_v4  ;;  %4004 = vst.msk [vmem:[#allocation3 + $0x171] sm:$0xff] %vm3918_vm3, %v3915_v6  ;;  %v16383_v1 = vld [vmem:[#allocation3 + $0x139] sm:$0xff]  ;;  %v4716_v46 = vld [vmem:[#allocation3 + $0x2] sm:$0xff] }
 0x214   : > { %13533 = vmatmul.mubr.msk.f32.gmra.mxu0 %vm3918_vm3, %v16367_v34  ;;  %v16385_v29 = vld [vmem:[#allocation3 + $0x138] sm:$0xff]  ;;  %v16387_v37 = vld [vmem:[#allocation3 + $0x140] sm:$0xff]  ;;  %4003 = vst.msk [vmem:[#allocation3 + $0x169] sm:$0xff] %vm3918_vm3, %v3914_v17  ;;  %v3917_v35 = vmax.f32 %v3885_v21, 0.0  ;;  %v3884_v0 = vadd.f32 %v15987_v62, %v3845_v44  ;;  %13485 = vmatprep.mubr.msk.f32.mxu1 %vm3918_vm3, %v16383_v1  ;;  %v4717_v17 = vld [vmem:[#allocation3 + $0xa] sm:$0xff] }
 0x215   : > { %19623 = vst [vmem:[#allocation15_spill] sm:$0xff] %v16385_v29  ;;  %19624 = vst [vmem:[#allocation55_spill] sm:$0xff] %v16387_v37  ;;  %13535 = vmatprep.mubr.msk.f32.mxu0 %vm3918_vm3, %v16385_v29  ;;  %v16413_v16 = vld [vmem:[#allocation3 + $0x159] sm:$0xff]  ;;  %v13498_v44 = vpop.f32.mrf.mxu0 }
 0x216   : > { %4006 = vst.msk [vmem:[#allocation3 + $0x189] sm:$0xff] %vm3918_vm3, %v3917_v35  ;;  %v3916_v52 = vmax.f32 %v3884_v0, 0.0  ;;  %v16441_v35 = vld [vmem:[#allocation3 + $0x1a] sm:$0xff] }
 0x217   : > { %13486 = vmatmul.mubr.msk.f32.gmra.mxu1 %vm3918_vm3, %v16395_v59  ;;  %v16402_v8 = vld [vmem:[#allocation3 + $0x151] sm:$0xff]  ;;  %v16446_v0 = vld [vmem:[%s19245_s3 + $0x30] sm:$0xff] }
 0x218   : > { %13536 = vmatmul.mubr.msk.f32.gmra.mxu0 %vm3918_vm3, %v16387_v37  ;;  %v16404_v62 = vld [vmem:[#allocation3 + $0x150] sm:$0xff]  ;;  %v16406_v2 = vld [vmem:[#allocation3 + $0x158] sm:$0xff]  ;;  %4005 = vst.msk [vmem:[#allocation3 + $0x181] sm:$0xff] %vm3918_vm3, %v3916_v52  ;;  %13488 = vmatprep.mubr.msk.f32.mxu1 %vm3918_vm3, %v16402_v8 }
 0x219   : > { %19625 = vst [vmem:[#allocation62_spill] sm:$0xff] %v16404_v62  ;;  %19626 = vst [vmem:[#allocation27_spill] sm:$0xff] %v16406_v2  ;;  %13538 = vmatprep.mubr.msk.f32.mxu0 %vm3918_vm3, %v16404_v62 }
 0x21a   : > { %v16429_v9 = vld [vmem:[#allocation3 + $0x171] sm:$0xff] }
 0x21b   : > { %13489 = vmatmul.mubr.msk.f32.gmra.mxu1 %vm3918_vm3, %v16413_v16  ;;  %v16419_v6 = vld [vmem:[#allocation3 + $0x169] sm:$0xff] }
 0x21c   : > { %13539 = vmatmul.mubr.msk.f32.gmra.mxu0 %vm3918_vm3, %v16406_v2  ;;  %v16421_v56 = vld [vmem:[#allocation3 + $0x168] sm:$0xff]  ;;  %v16423_v20 = vld [vmem:[#allocation3 + $0x170] sm:$0xff]  ;;  %13491 = vmatprep.mubr.msk.f32.mxu1 %vm3918_vm3, %v16419_v6 }
 0x21d   : > { %19627 = vst [vmem:[#allocation32_spill] sm:$0xff] %v16421_v56  ;;  %13541 = vmatprep.mubr.msk.f32.mxu0 %vm3918_vm3, %v16421_v56 }
 0x21f   : > { %13492 = vmatmul.mubr.msk.f32.gmra.mxu1 %vm3918_vm3, %v16429_v9 }
 0x220   : > { %13542 = vmatmul.mubr.msk.f32.gmra.mxu0 %vm3918_vm3, %v16423_v20  ;;  %13546 = vmatprep.mubr.msk.f32.mxu1 %vm3918_vm3, %v4716_v46  ;;  %v14373_v46 = vld [vmem:[%s19245_s3 + $0x20] sm:$0xff] }
 0x221   : > { %13596 = vmatprep.mubr.msk.f32.mxu0 %vm3918_vm3, %v16057_v45  ;;  %v16451_v45 = vld [vmem:[%s19245_s3 + $0x38] sm:$0xff] }
 0x222   : > { %v13448_v21 = vpop.f32.mrf.mxu1 }
 0x223   : > { %13547 = vmatmul.mubr.msk.f32.vlgmr.msra.gmra.mxu1 %vm3918_vm3, %v4717_v17  ;;  %v16453_v52 = vadd.f32 %v13498_v44, %v13448_v21  ;;  %v16471_v17 = vld [vmem:[#allocation3 + $0x32] sm:$0xff]  ;;  %v16501_v21 = vld [vmem:[#allocation3 + $0x6a] sm:$0xff]  ;;  %v16507_v44 = vld [vmem:[#allocation3 + $0x7a] sm:$0xff] }
 0x224   : > { %13597 = vmatmul.mubr.msk.f32.vlgmr.msra.gmra.mxu0 %vm3918_vm3, %v16059_v32  ;;  %13645 = vmatpush3.msra.mxu1 %v14373_v46  ;;  %v16463_v32 = vld [vmem:[#allocation3 + $0x22] sm:$0xff] }
 0x225   : > { %19628 = vst [vmem:[#allocation57_spill] sm:$0xff] %v16453_v52  ;;  %13549 = vmatprep.mubr.msk.f32.mxu1 %vm3918_vm3, %v16441_v35  ;;  %13599 = vmatprep.mubr.msk.f32.mxu0 %vm3918_vm3, %v16087_v55  ;;  %v16483_v55 = vld [vmem:[#allocation3 + $0x4a] sm:$0xff]  ;;  %v16513_v46 = vld [vmem:[#allocation3 + $0x82] sm:$0xff]  ;;  %v16519_v52 = vld [vmem:[#allocation3 + $0x92] sm:$0xff] }
 0x226   : > { %13695 = vmatpush3.msra.mxu0 %v16028_v53  ;;  %13744 = vmatprep.subr.mxu1 %v16446_v0  ;;  %v16477_v53 = vld [vmem:[#allocation3 + $0x3a] sm:$0xff] }
 0x227   : > { %13794 = vmatprep.subr.mxu0 %v16451_v45  ;;  %13550 = vmatmul.mubr.msk.f32.gmra.mxu1 %vm3918_vm3, %v16463_v32 }
 0x228   : > { %13600 = vmatmul.mubr.msk.f32.gmra.mxu0 %vm3918_vm3, %v16089_v36  ;;  %13552 = vmatprep.mubr.msk.f32.mxu1 %vm3918_vm3, %v16471_v17  ;;  %v16489_v36 = vld [vmem:[#allocation3 + $0x52] sm:$0xff] }
 0x229   : > { %13602 = vmatprep.mubr.msk.f32.mxu0 %vm3918_vm3, %v16118_v38  ;;  %v16495_v38 = vld [vmem:[#allocation3 + $0x62] sm:$0xff] }
 0x22b   : > { %13553 = vmatmul.mubr.msk.f32.gmra.mxu1 %vm3918_vm3, %v16477_v53 }
 0x22c   : > { %13603 = vmatmul.mubr.msk.f32.gmra.mxu0 %vm3918_vm3, %v16120_v48  ;;  %13555 = vmatprep.mubr.msk.f32.mxu1 %vm3918_vm3, %v16483_v55 }
 0x22d   : > { %13605 = vmatprep.mubr.msk.f32.mxu0 %vm3918_vm3, %v16148_v10 }
 0x22f   : > { %13556 = vmatmul.mubr.msk.f32.gmra.mxu1 %vm3918_vm3, %v16489_v36 }
 0x230   : > { %13606 = vmatmul.mubr.msk.f32.gmra.mxu0 %vm3918_vm3, %v16150_v27  ;;  %13558 = vmatprep.mubr.msk.f32.mxu1 %vm3918_vm3, %v16495_v38 }
 0x231   : > { %13608 = vmatprep.mubr.msk.f32.mxu0 %vm3918_vm3, %v16179_v50  ;;  %v16629_v50 = vld [vmem:[#allocation3 + $0x180] sm:$0xff] }
 0x232   : > { %19629 = vst [vmem:[#allocation31_spill] sm:$0xff] %v16629_v50 }
 0x233   : > { %13559 = vmatmul.mubr.msk.f32.gmra.mxu1 %vm3918_vm3, %v16501_v21 }
 0x234   : > { %13609 = vmatmul.mubr.msk.f32.gmra.mxu0 %vm3918_vm3, %v16181_v39  ;;  %13561 = vmatprep.mubr.msk.f32.mxu1 %vm3918_vm3, %v16507_v44  ;;  %v16525_v39 = vld [vmem:[#allocation3 + $0x9a] sm:$0xff] }
 0x235   : > { %13611 = vmatprep.mubr.msk.f32.mxu0 %vm3918_vm3, %v16209_v49  ;;  %v16531_v49 = vld [vmem:[#allocation3 + $0xaa] sm:$0xff] }
 0x237   : > { %13562 = vmatmul.mubr.msk.f32.gmra.mxu1 %vm3918_vm3, %v16513_v46 }
 0x238   : > { %13612 = vmatmul.mubr.msk.f32.gmra.mxu0 %vm3918_vm3, %v16211_v26  ;;  %13564 = vmatprep.mubr.msk.f32.mxu1 %vm3918_vm3, %v16519_v52  ;;  %v16537_v26 = vld [vmem:[#allocation3 + $0xb2] sm:$0xff] }
 0x239   : > { %13614 = vmatprep.mubr.msk.f32.mxu0 %vm3918_vm3, %v16238_v23  ;;  %v16543_v23 = vld [vmem:[#allocation3 + $0xc2] sm:$0xff] }
 0x23b   : > { %13565 = vmatmul.mubr.msk.f32.gmra.mxu1 %vm3918_vm3, %v16525_v39 }
 0x23c   : > { %13615 = vmatmul.mubr.msk.f32.gmra.mxu0 %vm3918_vm3, %v16240_v33  ;;  %13567 = vmatprep.mubr.msk.f32.mxu1 %vm3918_vm3, %v16531_v49  ;;  %v16549_v33 = vld [vmem:[#allocation3 + $0xca] sm:$0xff] }
 0x23d   : > { %13617 = vmatprep.mubr.msk.f32.mxu0 %vm3918_vm3, %v16267_v63  ;;  %v16555_v63 = vld [vmem:[#allocation3 + $0xda] sm:$0xff] }
 0x23f   : > { %13568 = vmatmul.mubr.msk.f32.gmra.mxu1 %vm3918_vm3, %v16537_v26 }
 0x240   : > { %13618 = vmatmul.mubr.msk.f32.gmra.mxu0 %vm3918_vm3, %v16269_v40  ;;  %13570 = vmatprep.mubr.msk.f32.mxu1 %vm3918_vm3, %v16543_v23  ;;  %v16561_v40 = vld [vmem:[#allocation3 + $0xe2] sm:$0xff] }
 0x241   : > { %13620 = vmatprep.mubr.msk.f32.mxu0 %vm3918_vm3, %v16295_v11  ;;  %v16567_v11 = vld [vmem:[#allocation3 + $0xf2] sm:$0xff] }
 0x243   : > { %13571 = vmatmul.mubr.msk.f32.gmra.mxu1 %vm3918_vm3, %v16549_v33 }
 0x244   : > { %13621 = vmatmul.mubr.msk.f32.gmra.mxu0 %vm3918_vm3, %v16297_v51  ;;  %13573 = vmatprep.mubr.msk.f32.mxu1 %vm3918_vm3, %v16555_v63  ;;  %v16573_v51 = vld [vmem:[#allocation3 + $0xfa] sm:$0xff] }
 0x245   : > { %13623 = vmatprep.mubr.msk.f32.mxu0 %vm3918_vm3, %v16321_v60  ;;  %v16579_v60 = vld [vmem:[#allocation3 + $0x10a] sm:$0xff] }
 0x247   : > { %13574 = vmatmul.mubr.msk.f32.gmra.mxu1 %vm3918_vm3, %v16561_v40 }
 0x248   : > { %13624 = vmatmul.mubr.msk.f32.gmra.mxu0 %vm3918_vm3, %v16323_v25  ;;  %13576 = vmatprep.mubr.msk.f32.mxu1 %vm3918_vm3, %v16567_v11  ;;  %v16585_v25 = vld [vmem:[#allocation3 + $0x112] sm:$0xff] }
 0x249   : > { %13626 = vmatprep.mubr.msk.f32.mxu0 %vm3918_vm3, %v16344_v12  ;;  %v16591_v12 = vld [vmem:[#allocation3 + $0x122] sm:$0xff] }
 0x24b   : > { %13577 = vmatmul.mubr.msk.f32.gmra.mxu1 %vm3918_vm3, %v16573_v51 }
 0x24c   : > { %13627 = vmatmul.mubr.msk.f32.gmra.mxu0 %vm3918_vm3, %v16346_v15  ;;  %13579 = vmatprep.mubr.msk.f32.mxu1 %vm3918_vm3, %v16579_v60  ;;  %v16597_v15 = vld [vmem:[#allocation3 + $0x12a] sm:$0xff] }
 0x24d   : > { %13629 = vmatprep.mubr.msk.f32.mxu0 %vm3918_vm3, %v16365_v58  ;;  %v16603_v58 = vld [vmem:[#allocation3 + $0x13a] sm:$0xff] }
 0x24f   : > { %13580 = vmatmul.mubr.msk.f32.gmra.mxu1 %vm3918_vm3, %v16585_v25 }
 0x250   : > { %13630 = vmatmul.mubr.msk.f32.gmra.mxu0 %vm3918_vm3, %v16367_v34  ;;  %13582 = vmatprep.mubr.msk.f32.mxu1 %vm3918_vm3, %v16591_v12  ;;  %v16609_v34 = vld [vmem:[#allocation3 + $0x142] sm:$0xff] }
 0x251   : > { %13632 = vmatprep.mubr.msk.f32.mxu0 %vm3918_vm3, %v16385_v29  ;;  %v16615_v29 = vld [vmem:[#allocation3 + $0x152] sm:$0xff] }
 0x253   : > { %13583 = vmatmul.mubr.msk.f32.gmra.mxu1 %vm3918_vm3, %v16597_v15 }
 0x254   : > { %13633 = vmatmul.mubr.msk.f32.gmra.mxu0 %vm3918_vm3, %v16387_v37  ;;  %13585 = vmatprep.mubr.msk.f32.mxu1 %vm3918_vm3, %v16603_v58  ;;  %v16621_v37 = vld [vmem:[#allocation3 + $0x15a] sm:$0xff] }
 0x255   : > { %13635 = vmatprep.mubr.msk.f32.mxu0 %vm3918_vm3, %v16404_v62  ;;  %v16627_v62 = vld [vmem:[#allocation3 + $0x16a] sm:$0xff] }
 0x257   : > { %13586 = vmatmul.mubr.msk.f32.gmra.mxu1 %vm3918_vm3, %v16609_v34 }
 0x258   : > { %13636 = vmatmul.mubr.msk.f32.gmra.mxu0 %vm3918_vm3, %v16406_v2  ;;  %13588 = vmatprep.mubr.msk.f32.mxu1 %vm3918_vm3, %v16615_v29  ;;  %v16635_v2 = vld [vmem:[#allocation3 + $0x172] sm:$0xff] }
 0x259   : > { %13638 = vmatprep.mubr.msk.f32.mxu0 %vm3918_vm3, %v16421_v56  ;;  %v16637_v56 = vld [vmem:[#allocation3 + $0x188] sm:$0xff] }
 0x25b   : > { %13589 = vmatmul.mubr.msk.f32.gmra.mxu1 %vm3918_vm3, %v16621_v37 }
 0x25c   : > { %13639 = vmatmul.mubr.msk.f32.gmra.mxu0 %vm3918_vm3, %v16423_v20  ;;  %13591 = vmatprep.mubr.msk.f32.mxu1 %vm3918_vm3, %v16627_v62 }
 0x25d   : > { %13641 = vmatprep.mubr.msk.f32.mxu0 %vm3918_vm3, %v16629_v50  ;;  %v16654_v50 = vld [vmem:[%s19245_s3 + $0x40] sm:$0xff] }
 0x25f   : > { %13592 = vmatmul.mubr.msk.f32.gmra.mxu1 %vm3918_vm3, %v16635_v2 }
 0x260   : > { %13642 = vmatmul.mubr.msk.f32.gmra.mxu0 %vm3918_vm3, %v16637_v56  ;;  %13646 = vmatprep.mubr.msk.f32.mxu1 %vm3918_vm3, %v16055_v19  ;;  %v19630_v19 = vld [vmem:[#allocation26_spill] sm:$0xff] }
 0x261   : > { %13696 = vmatprep.mubr.msk.f32.mxu0 %vm3918_vm3, %v16441_v35  ;;  %v16793_v35 = vpop.f32.mrf.mxu1 }
 0x263   : > { %13647 = vmatmul.mubr.msk.f32.vlgmr.msra.gmra.mxu1 %vm3918_vm3, %v16067_v13  ;;  %v19631_v13 = vld [vmem:[#allocation51_spill] sm:$0xff] }
 0x264   : > { %13697 = vmatmul.mubr.msk.f32.vlgmr.msra.gmra.mxu0 %vm3918_vm3, %v16463_v32  ;;  %13745 = vmatpush3.msra.mxu1 %v16446_v0  ;;  %v16795_v0 = vpop.f32.mrf.mxu0 }
 0x265   : > { %13649 = vmatprep.mubr.msk.f32.mxu1 %vm3918_vm3, %v16085_v28  ;;  %13699 = vmatprep.mubr.msk.f32.mxu0 %vm3918_vm3, %v16471_v17  ;;  %v19632_v28 = vld [vmem:[#allocation8_spill] sm:$0xff] }
 0x266   : > { %13795 = vmatpush3.msra.mxu0 %v16451_v45  ;;  %13844 = vmatprep.subr.mxu1 %v16654_v50  ;;  %v6655_v45 = vld [vmem:[#allocation3 + $0x51] sm:$0xff] }
 0x267   : > { %13650 = vmatmul.mubr.msk.f32.gmra.mxu1 %vm3918_vm3, %v16097_v5  ;;  %v19633_v5 = vld [vmem:[#allocation58_spill] sm:$0xff] }
 0x268   : > { %13700 = vmatmul.mubr.msk.f32.gmra.mxu0 %vm3918_vm3, %v16477_v53  ;;  %13652 = vmatprep.mubr.msk.f32.mxu1 %vm3918_vm3, %v16116_v47  ;;  %v16771_v47 = vld [vmem:[#allocation3 + $0x181] sm:$0xff] }
 0x269   : > { %13702 = vmatprep.mubr.msk.f32.mxu0 %vm3918_vm3, %v16483_v55 }
 0x26b   : > { %13653 = vmatmul.mubr.msk.f32.gmra.mxu1 %vm3918_vm3, %v16128_v18  ;;  %v16773_v18 = vld [vmem:[#allocation3 + $0x182] sm:$0xff] }
 0x26c   : > { %13703 = vmatmul.mubr.msk.f32.gmra.mxu0 %vm3918_vm3, %v16489_v36  ;;  %13655 = vmatprep.mubr.msk.f32.mxu1 %vm3918_vm3, %v16146_v57 }
 0x26d   : > { %13705 = vmatprep.mubr.msk.f32.mxu0 %vm3918_vm3, %v16495_v38 }
 0x26f   : > { %13656 = vmatmul.mubr.msk.f32.gmra.mxu1 %vm3918_vm3, %v16158_v31 }
 0x270   : > { %13706 = vmatmul.mubr.msk.f32.gmra.mxu0 %vm3918_vm3, %v16501_v21  ;;  %13658 = vmatprep.mubr.msk.f32.mxu1 %vm3918_vm3, %v16177_v54 }
 0x271   : > { %13708 = vmatprep.mubr.msk.f32.mxu0 %vm3918_vm3, %v16507_v44 }
 0x273   : > { %13659 = vmatmul.mubr.msk.f32.gmra.mxu1 %vm3918_vm3, %v16189_v3 }
 0x274   : > { %13709 = vmatmul.mubr.msk.f32.gmra.mxu0 %vm3918_vm3, %v16513_v46  ;;  %13661 = vmatprep.mubr.msk.f32.mxu1 %vm3918_vm3, %v16207_v24 }
 0x275   : > { %13711 = vmatprep.mubr.msk.f32.mxu0 %vm3918_vm3, %v16519_v52 }
 0x277   : > { %13662 = vmatmul.mubr.msk.f32.gmra.mxu1 %vm3918_vm3, %v16219_v42 }
 0x278   : > { %13712 = vmatmul.mubr.msk.f32.gmra.mxu0 %vm3918_vm3, %v16525_v39  ;;  %13664 = vmatprep.mubr.msk.f32.mxu1 %vm3918_vm3, %v16236_v7 }
 0x279   : > { %13714 = vmatprep.mubr.msk.f32.mxu0 %vm3918_vm3, %v16531_v49 }
 0x27b   : > { %13665 = vmatmul.mubr.msk.f32.gmra.mxu1 %vm3918_vm3, %v19630_v19 }
 0x27c   : > { %13715 = vmatmul.mubr.msk.f32.gmra.mxu0 %vm3918_vm3, %v16537_v26  ;;  %13667 = vmatprep.mubr.msk.f32.mxu1 %vm3918_vm3, %v19631_v13 }
 0x27d   : > { %13717 = vmatprep.mubr.msk.f32.mxu0 %vm3918_vm3, %v16543_v23 }
 0x27f   : > { %13668 = vmatmul.mubr.msk.f32.gmra.mxu1 %vm3918_vm3, %v19632_v28 }
 0x280   : > { %13718 = vmatmul.mubr.msk.f32.gmra.mxu0 %vm3918_vm3, %v16549_v33  ;;  %13670 = vmatprep.mubr.msk.f32.mxu1 %vm3918_vm3, %v16293_v30 }
 0x281   : > { %13720 = vmatprep.mubr.msk.f32.mxu0 %vm3918_vm3, %v16555_v63 }
 0x283   : > { %13671 = vmatmul.mubr.msk.f32.gmra.mxu1 %vm3918_vm3, %v19633_v5 }
 0x284   : > { %13721 = vmatmul.mubr.msk.f32.gmra.mxu0 %vm3918_vm3, %v16561_v40  ;;  %13673 = vmatprep.mubr.msk.f32.mxu1 %vm3918_vm3, %v16319_v14 }
 0x285   : > { %13723 = vmatprep.mubr.msk.f32.mxu0 %vm3918_vm3, %v16567_v11 }
 0x287   : > { %13674 = vmatmul.mubr.msk.f32.gmra.mxu1 %vm3918_vm3, %v16331_v43 }
 0x288   : > { %13724 = vmatmul.mubr.msk.f32.gmra.mxu0 %vm3918_vm3, %v16573_v51  ;;  %13676 = vmatprep.mubr.msk.f32.mxu1 %vm3918_vm3, %v16342_v61 }
 0x289   : > { %13726 = vmatprep.mubr.msk.f32.mxu0 %vm3918_vm3, %v16579_v60 }
 0x28b   : > { %13677 = vmatmul.mubr.msk.f32.gmra.mxu1 %vm3918_vm3, %v16354_v22 }
 0x28c   : > { %13727 = vmatmul.mubr.msk.f32.gmra.mxu0 %vm3918_vm3, %v16585_v25  ;;  %13679 = vmatprep.mubr.msk.f32.mxu1 %vm3918_vm3, %v16363_v41  ;;  %v16779_v25 = vld [vmem:[#allocation3 + $0x189] sm:$0xff] }
 0x28d   : > { %13729 = vmatprep.mubr.msk.f32.mxu0 %vm3918_vm3, %v16591_v12 }
 0x28f   : > { %13680 = vmatmul.mubr.msk.f32.gmra.mxu1 %vm3918_vm3, %v16375_v4 }
 0x290   : > { %13730 = vmatmul.mubr.msk.f32.gmra.mxu0 %vm3918_vm3, %v16597_v15  ;;  %13682 = vmatprep.mubr.msk.f32.mxu1 %vm3918_vm3, %v16383_v1  ;;  %v16781_v15 = vld [vmem:[#allocation3 + $0x18a] sm:$0xff] }
 0x291   : > { %13732 = vmatprep.mubr.msk.f32.mxu0 %vm3918_vm3, %v16603_v58  ;;  %v6265_v58 = vld [vmem:[#allocation3 + $0x30] sm:$0xff] }
 0x293   : > { %13683 = vmatmul.mubr.msk.f32.gmra.mxu1 %vm3918_vm3, %v16395_v59 }
 0x294   : > { %13733 = vmatmul.mubr.msk.f32.gmra.mxu0 %vm3918_vm3, %v16609_v34  ;;  %13685 = vmatprep.mubr.msk.f32.mxu1 %vm3918_vm3, %v16402_v8  ;;  %v6652_v34 = vld [vmem:[#allocation3 + $0x31] sm:$0xff] }
 0x295   : > { %13735 = vmatprep.mubr.msk.f32.mxu0 %vm3918_vm3, %v16615_v29  ;;  %v6266_v29 = vld [vmem:[#allocation3 + $0x38] sm:$0xff] }
 0x297   : > { %13686 = vmatmul.mubr.msk.f32.gmra.mxu1 %vm3918_vm3, %v16413_v16 }
 0x298   : > { %13736 = vmatmul.mubr.msk.f32.gmra.mxu0 %vm3918_vm3, %v16621_v37  ;;  %13688 = vmatprep.mubr.msk.f32.mxu1 %vm3918_vm3, %v16419_v6  ;;  %v6653_v37 = vld [vmem:[#allocation3 + $0x39] sm:$0xff] }
 0x299   : > { %13738 = vmatprep.mubr.msk.f32.mxu0 %vm3918_vm3, %v16627_v62  ;;  %v6267_v62 = vld [vmem:[#allocation3 + $0x48] sm:$0xff] }
 0x29b   : > { %13689 = vmatmul.mubr.msk.f32.gmra.mxu1 %vm3918_vm3, %v16429_v9 }
 0x29c   : > { %13739 = vmatmul.mubr.msk.f32.gmra.mxu0 %vm3918_vm3, %v16635_v2  ;;  %13691 = vmatprep.mubr.msk.f32.mxu1 %vm3918_vm3, %v16771_v47  ;;  %v6654_v2 = vld [vmem:[#allocation3 + $0x49] sm:$0xff] }
 0x29d   : > { %13741 = vmatprep.mubr.msk.f32.mxu0 %vm3918_vm3, %v16773_v18 }
 0x29f   : > { %13692 = vmatmul.mubr.msk.f32.gmra.mxu1 %vm3918_vm3, %v16779_v25 }
 0x2a0   : > { %13742 = vmatmul.mubr.msk.f32.gmra.mxu0 %vm3918_vm3, %v16781_v15  ;;  %13746 = vmatprep.mubr.msk.f32.mxu1 %vm3918_vm3, %v6265_v58 }
 0x2a1   : > { %13796 = vmatprep.mubr.msk.f32.mxu0 %vm3918_vm3, %v6652_v34 }
 0x2a3   : > { %13747 = vmatmul.mubr.msk.f32.vlgmr.msra.gmra.mxu1 %vm3918_vm3, %v6266_v29 }
 0x2a4   : > { %13797 = vmatmul.mubr.msk.f32.vlgmr.msra.gmra.mxu0 %vm3918_vm3, %v6653_v37  ;;  %13845 = vmatpush3.msra.mxu1 %v16654_v50  ;;  %v13451_v32 = vpop.f32.mrf.mxu1 }
 0x2a5   : > { %13749 = vmatprep.mubr.msk.f32.mxu1 %vm3918_vm3, %v6267_v62  ;;  %13799 = vmatprep.mubr.msk.f32.mxu0 %vm3918_vm3, %v6654_v2  ;;  %v13501_v58 = vpop.f32.mrf.mxu0 }
 0x2a6   : > { %v16801_v34 = vadd.f32 %v13501_v58, %v13451_v32  ;;  %v4246_v50 = vpop.f32.mrf.mxu1 }
 0x2a7   : > { %13750 = vmatmul.mubr.msk.f32.gmra.mxu1 %vm3918_vm3, %v16120_v48  ;;  %v4567_v29 = vpop.f32.mrf.mxu0 }
 0x2a8   : > { %13800 = vmatmul.mubr.msk.f32.gmra.mxu0 %vm3918_vm3, %v6655_v45  ;;  %13752 = vmatprep.mubr.msk.f32.mxu1 %vm3918_vm3, %v16148_v10  ;;  %v16807_v37 = vadd.f32 %v4567_v29, %v4246_v50  ;;  %v13454_v62 = vpop.f32.mrf.mxu1  ;;  %v19634_v45 = vld [vmem:[#allocation5_spill] sm:$0xff]  ;;  %v19635_v29 = vld [vmem:[#allocation6_spill] sm:$0xff] }
 0x2a9   : > { %13802 = vmatprep.mubr.msk.f32.mxu0 %vm3918_vm3, %v16146_v57  ;;  %v13504_v2 = vpop.f32.mrf.mxu0 }
 0x2aa   : > { %v16813_v48 = vadd.f32 %v13504_v2, %v13454_v62  ;;  %v4256_v57 = vpop.f32.mrf.mxu1 }
 0x2ab   : > { %13753 = vmatmul.mubr.msk.f32.gmra.mxu1 %vm3918_vm3, %v16150_v27  ;;  %v4577_v10 = vpop.f32.mrf.mxu0 }
 0x2ac   : > { %13803 = vmatmul.mubr.msk.f32.gmra.mxu0 %vm3918_vm3, %v16158_v31  ;;  %13755 = vmatprep.mubr.msk.f32.mxu1 %vm3918_vm3, %v19634_v45  ;;  %v16819_v32 = vadd.f32 %v4577_v10, %v4256_v57  ;;  %v13457_v58 = vpop.f32.mrf.mxu1  ;;  %v19636_v31 = vld [vmem:[#allocation7_spill] sm:$0xff]  ;;  %v19637_v10 = vld [vmem:[#allocation54_spill] sm:$0xff] }
 0x2ad   : > { %13805 = vmatprep.mubr.msk.f32.mxu0 %vm3918_vm3, %v16177_v54  ;;  %v13507_v50 = vpop.f32.mrf.mxu0 }
 0x2ae   : > { %v16825_v27 = vadd.f32 %v13507_v50, %v13457_v58  ;;  %v4266_v54 = vpop.f32.mrf.mxu1  ;;  %v19638_v58 = vld [vmem:[#allocation23_spill] sm:$0xff] }
 0x2af   : > { %13756 = vmatmul.mubr.msk.f32.gmra.mxu1 %vm3918_vm3, %v19635_v29  ;;  %v4587_v62 = vpop.f32.mrf.mxu0 }
 0x2b0   : > { %13806 = vmatmul.mubr.msk.f32.gmra.mxu0 %vm3918_vm3, %v16189_v3  ;;  %13758 = vmatprep.mubr.msk.f32.mxu1 %vm3918_vm3, %v19636_v31  ;;  %v16831_v2 = vadd.f32 %v4587_v62, %v4266_v54  ;;  %v13460_v45 = vpop.f32.mrf.mxu1  ;;  %v19639_v62 = vld [vmem:[#allocation13_spill] sm:$0xff] }
 0x2b1   : > { %13808 = vmatprep.mubr.msk.f32.mxu0 %vm3918_vm3, %v16207_v24  ;;  %v13510_v57 = vpop.f32.mrf.mxu0 }
 0x2b2   : > { %v16837_v3 = vadd.f32 %v13510_v57, %v13460_v45  ;;  %v4276_v24 = vpop.f32.mrf.mxu1  ;;  %v19640_v45 = vld [vmem:[#allocation25_spill] sm:$0xff] }
 0x2b3   : > { %13759 = vmatmul.mubr.msk.f32.gmra.mxu1 %vm3918_vm3, %v19637_v10  ;;  %v4597_v50 = vpop.f32.mrf.mxu0 }
 0x2b4   : > { %13809 = vmatmul.mubr.msk.f32.gmra.mxu0 %vm3918_vm3, %v16219_v42  ;;  %13761 = vmatprep.mubr.msk.f32.mxu1 %vm3918_vm3, %v19638_v58  ;;  %v16843_v29 = vadd.f32 %v4597_v50, %v4276_v24  ;;  %v13463_v31 = vpop.f32.mrf.mxu1  ;;  %v19641_v50 = vld [vmem:[#allocation56_spill] sm:$0xff] }
 0x2b5   : > { %13811 = vmatprep.mubr.msk.f32.mxu0 %vm3918_vm3, %v16236_v7  ;;  %v13513_v54 = vpop.f32.mrf.mxu0 }
 0x2b6   : > { %v16849_v42 = vadd.f32 %v13513_v54, %v13463_v31  ;;  %v4286_v7 = vpop.f32.mrf.mxu1  ;;  %v19642_v31 = vld [vmem:[#allocation16_spill] sm:$0xff] }
 0x2b7   : > { %13762 = vmatmul.mubr.msk.f32.gmra.mxu1 %vm3918_vm3, %v19639_v62  ;;  %v4607_v57 = vpop.f32.mrf.mxu0 }
 0x2b8   : > { %13812 = vmatmul.mubr.msk.f32.gmra.mxu0 %vm3918_vm3, %v19630_v19  ;;  %13764 = vmatprep.mubr.msk.f32.mxu1 %vm3918_vm3, %v19640_v45  ;;  %v16855_v10 = vadd.f32 %v4607_v57, %v4286_v7  ;;  %v13466_v58 = vpop.f32.mrf.mxu1  ;;  %v19643_v57 = vld [vmem:[#allocation52_spill] sm:$0xff] }
 0x2b9   : > { %13814 = vmatprep.mubr.msk.f32.mxu0 %vm3918_vm3, %v19631_v13  ;;  %v13516_v24 = vpop.f32.mrf.mxu0 }
 0x2ba   : > { %v16861_v19 = vadd.f32 %v13516_v24, %v13466_v58  ;;  %v4296_v13 = vpop.f32.mrf.mxu1  ;;  %v19644_v58 = vld [vmem:[#allocation24_spill] sm:$0xff] }
 0x2bb   : > { %13765 = vmatmul.mubr.msk.f32.gmra.mxu1 %vm3918_vm3, %v19641_v50  ;;  %v4617_v54 = vpop.f32.mrf.mxu0 }
 0x2bc   : > { %13815 = vmatmul.mubr.msk.f32.gmra.mxu0 %vm3918_vm3, %v19632_v28  ;;  %13767 = vmatprep.mubr.msk.f32.mxu1 %vm3918_vm3, %v19642_v31  ;;  %v16867_v62 = vadd.f32 %v4617_v54, %v4296_v13  ;;  %v19645_v54 = vld [vmem:[#allocation14_spill] sm:$0xff] }
 0x2bd   : > { %13817 = vmatprep.mubr.msk.f32.mxu0 %vm3918_vm3, %v16293_v30  ;;  %v13469_v45 = vpop.f32.mrf.mxu1  ;;  %v13519_v7 = vpop.f32.mrf.mxu0 }
 0x2be   : > { %v16873_v28 = vadd.f32 %v13519_v7, %v13469_v45  ;;  %v19646_v45 = vld [vmem:[#allocation29_spill] sm:$0xff] }
 0x2bf   : > { %13768 = vmatmul.mubr.msk.f32.gmra.mxu1 %vm3918_vm3, %v19643_v57  ;;  %v4306_v30 = vpop.f32.mrf.mxu1  ;;  %v4627_v24 = vpop.f32.mrf.mxu0 }
 0x2c0   : > { %13818 = vmatmul.mubr.msk.f32.gmra.mxu0 %vm3918_vm3, %v19633_v5  ;;  %13770 = vmatprep.mubr.msk.f32.mxu1 %vm3918_vm3, %v19644_v58  ;;  %v16879_v50 = vadd.f32 %v4627_v24, %v4306_v30  ;;  %v19647_v30 = vld [vmem:[#allocation53_spill] sm:$0xff]  ;;  %v19648_v24 = vld [vmem:[#allocation28_spill] sm:$0xff] }
 0x2c1   : > { %13820 = vmatprep.mubr.msk.f32.mxu0 %vm3918_vm3, %v16319_v14  ;;  %v13472_v31 = vpop.f32.mrf.mxu1 }
 0x2c2   : > { %v13522_v13 = vpop.f32.mrf.mxu0 }
 0x2c3   : > { %13771 = vmatmul.mubr.msk.f32.gmra.mxu1 %vm3918_vm3, %v19645_v54  ;;  %v16885_v5 = vadd.f32 %v13522_v13, %v13472_v31  ;;  %v16891_v14 = vpop.f32.mrf.mxu1 }
 0x2c4   : > { %13821 = vmatmul.mubr.msk.f32.gmra.mxu0 %vm3918_vm3, %v16331_v43  ;;  %13773 = vmatprep.mubr.msk.f32.mxu1 %vm3918_vm3, %v19646_v45  ;;  %v16893_v7 = vpop.f32.mrf.mxu0  ;;  %v19650_v45 = vld [vmem:[#allocation60_spill] sm:$0xff] }
 0x2c5   : > { %13823 = vmatprep.mubr.msk.f32.mxu0 %vm3918_vm3, %v16342_v61 }
 0x2c7   : > { %v13475_v57 = vpop.f32.mrf.mxu1  ;;  %13774 = vmatmul.mubr.msk.f32.gmra.mxu1 %vm3918_vm3, %v19647_v30 }
 0x2c8   : > { %v13525_v58 = vpop.f32.mrf.mxu0  ;;  %13824 = vmatmul.mubr.msk.f32.gmra.mxu0 %vm3918_vm3, %v16354_v22  ;;  %13776 = vmatprep.mubr.msk.f32.mxu1 %vm3918_vm3, %v19648_v24 }
 0x2c9   : > { %v16899_v43 = vadd.f32 %v13525_v58, %v13475_v57  ;;  %13826 = vmatprep.mubr.msk.f32.mxu0 %vm3918_vm3, %v16363_v41  ;;  %v16905_v61 = vpop.f32.mrf.mxu1  ;;  %v19651_v57 = vld [vmem:[#allocation15_spill] sm:$0xff] }
 0x2ca   : > { %v16907_v31 = vpop.f32.mrf.mxu0 }
 0x2cb   : > { %19649 = vst [vmem:[#allocation64_spill] sm:$0xff] %v16907_v31  ;;  %v13478_v13 = vpop.f32.mrf.mxu1  ;;  %13777 = vmatmul.mubr.msk.f32.gmra.mxu1 %vm3918_vm3, %v19650_v45  ;;  %v19653_v31 = vld [vmem:[#allocation55_spill] sm:$0xff] }
 0x2cc   : > { %v13528_v54 = vpop.f32.mrf.mxu0  ;;  %13827 = vmatmul.mubr.msk.f32.gmra.mxu0 %vm3918_vm3, %v16375_v4  ;;  %13779 = vmatprep.mubr.msk.f32.mxu1 %vm3918_vm3, %v19651_v57 }
 0x2cd   : > { %v16913_v22 = vadd.f32 %v13528_v54, %v13478_v13  ;;  %13829 = vmatprep.mubr.msk.f32.mxu0 %vm3918_vm3, %v16383_v1  ;;  %v16919_v41 = vpop.f32.mrf.mxu1  ;;  %v19654_v13 = vld [vmem:[#allocation62_spill] sm:$0xff] }
 0x2ce   : > { %v16921_v58 = vpop.f32.mrf.mxu0 }
 0x2cf   : > { %19652 = vst [vmem:[#allocation9_spill] sm:$0xff] %v16921_v58  ;;  %v13481_v30 = vpop.f32.mrf.mxu1  ;;  %13780 = vmatmul.mubr.msk.f32.gmra.mxu1 %vm3918_vm3, %v19653_v31  ;;  %v19655_v58 = vld [vmem:[#allocation27_spill] sm:$0xff]  ;;  %v19656_v31 = vld [vmem:[#allocation32_spill] sm:$0xff] }
 0x2d0   : > { %v13531_v24 = vpop.f32.mrf.mxu0  ;;  %13830 = vmatmul.mubr.msk.f32.gmra.mxu0 %vm3918_vm3, %v16395_v59  ;;  %13782 = vmatprep.mubr.msk.f32.mxu1 %vm3918_vm3, %v19654_v13 }
 0x2d1   : > { %v16927_v4 = vadd.f32 %v13531_v24, %v13481_v30  ;;  %13832 = vmatprep.mubr.msk.f32.mxu0 %vm3918_vm3, %v16402_v8  ;;  %v16933_v1 = vpop.f32.mrf.mxu1 }
 0x2d2   : > { %v16935_v54 = vpop.f32.mrf.mxu0 }
 0x2d3   : > { %v13484_v45 = vpop.f32.mrf.mxu1  ;;  %13783 = vmatmul.mubr.msk.f32.gmra.mxu1 %vm3918_vm3, %v19655_v58  ;;  %v19659_v58 = vld [vmem:[#allocation31_spill] sm:$0xff] }
 0x2d4   : > { %v13534_v57 = vpop.f32.mrf.mxu0  ;;  %13833 = vmatmul.mubr.msk.f32.gmra.mxu0 %vm3918_vm3, %v16413_v16  ;;  %13785 = vmatprep.mubr.msk.f32.mxu1 %vm3918_vm3, %v19656_v31  ;;  %v6682_v31 = vld [vmem:[#allocation3 + $0x199] sm:$0xff] }
 0x2d5   : > { %v16941_v59 = vadd.f32 %v13534_v57, %v13484_v45  ;;  %13835 = vmatprep.mubr.msk.f32.mxu0 %vm3918_vm3, %v16419_v6  ;;  %v16947_v8 = vpop.f32.mrf.mxu1  ;;  %v6295_v57 = vld [vmem:[#allocation3 + $0x198] sm:$0xff] }
 0x2d6   : > { %19657 = vst [vmem:[#allocation18_spill] sm:$0xff] %v16947_v8  ;;  %v16949_v30 = vpop.f32.mrf.mxu0 }
 0x2d7   : > { %19658 = vst [vmem:[#allocation59_spill] sm:$0xff] %v16949_v30  ;;  %v13487_v24 = vpop.f32.mrf.mxu1  ;;  %13786 = vmatmul.mubr.msk.f32.gmra.mxu1 %vm3918_vm3, %v16423_v20 }
 0x2d8   : > { %v13537_v13 = vpop.f32.mrf.mxu0  ;;  %13836 = vmatmul.mubr.msk.f32.gmra.mxu0 %vm3918_vm3, %v16429_v9  ;;  %13788 = vmatprep.mubr.msk.f32.mxu1 %vm3918_vm3, %v19659_v58  ;;  %v6296_v9 = vld [vmem:[#allocation3 + $0x1a0] sm:$0xff] }
 0x2d9   : > { %v16955_v16 = vadd.f32 %v13537_v13, %v13487_v24  ;;  %13838 = vmatprep.mubr.msk.f32.mxu0 %vm3918_vm3, %v16771_v47  ;;  %v16961_v6 = vpop.f32.mrf.mxu1  ;;  %v6683_v47 = vld [vmem:[#allocation3 + $0x1a1] sm:$0xff] }
 0x2da   : > { %19660 = vst [vmem:[#allocation66_spill] sm:$0xff] %v16961_v6  ;;  %v16963_v45 = vpop.f32.mrf.mxu0 }
 0x2db   : > { %19661 = vst [vmem:[#allocation30_spill] sm:$0xff] %v16963_v45  ;;  %v13490_v30 = vpop.f32.mrf.mxu1  ;;  %13789 = vmatmul.mubr.msk.f32.gmra.mxu1 %vm3918_vm3, %v16637_v56 }
 0x2dc   : > { %v13540_v8 = vpop.f32.mrf.mxu0  ;;  %13839 = vmatmul.mubr.msk.f32.gmra.mxu0 %vm3918_vm3, %v16779_v25  ;;  %13791 = vmatprep.mubr.msk.f32.mxu1 %vm3918_vm3, %v6295_v57 }
 0x2dd   : > { %v16969_v20 = vadd.f32 %v13540_v8, %v13490_v30  ;;  %13841 = vmatprep.mubr.msk.f32.mxu0 %vm3918_vm3, %v6682_v31  ;;  %v16973_v24 = vpop.f32.mrf.mxu1  ;;  %v19666_v31 = vld [vmem:[#allocation57_spill] sm:$0xff] }
 0x2de   : > { %19662 = vst [vmem:[#allocation34_spill] sm:$0xff] %v16973_v24  ;;  %v16975_v13 = vpop.f32.mrf.mxu0 }
 0x2df   : > { %19663 = vst [vmem:[#allocation61_spill] sm:$0xff] %v16975_v13  ;;  %v13493_v58 = vpop.f32.mrf.mxu1  ;;  %13792 = vmatmul.mubr.msk.f32.gmra.mxu1 %vm3918_vm3, %v6296_v9 }
 0x2e0   : > { %v13543_v45 = vpop.f32.mrf.mxu0  ;;  %13842 = vmatmul.mubr.msk.f32.gmra.mxu0 %vm3918_vm3, %v6683_v47  ;;  %13846 = vmatprep.mubr.msk.f32.mxu1 %vm3918_vm3, %v16471_v17 }
 0x2e1   : > { %v16979_v56 = vadd.f32 %v13543_v45, %v13493_v58  ;;  %v16983_v25 = vpop.f32.mrf.mxu1 }
 0x2e2   : > { %19664 = vst [vmem:[#allocation11_spill] sm:$0xff] %v16983_v25  ;;  %v16985_v8 = vpop.f32.mrf.mxu0 }
 0x2e3   : > { %19665 = vst [vmem:[#allocation68_spill] sm:$0xff] %v16985_v8  ;;  %v13548_v30 = vpop.f32.mrf.mxu1  ;;  %13847 = vmatmul.mubr.msk.f32.vlgmr.msra.gmra.mxu1 %vm3918_vm3, %v16477_v53 }
 0x2e4   : > { %v13598_v57 = vpop.f32.mrf.mxu0  ;;  %v5072_v13 = vadd.f32 %v13548_v30, %v19666_v31  ;;  %13849 = vmatprep.mubr.msk.f32.mxu1 %vm3918_vm3, %v16483_v55 }
 0x2e5   : > { %v16992_v9 = vpop.f32.mrf.mxu1 }
 0x2e6   : > { %v16994_v45 = vpop.f32.mrf.mxu0  ;;  %v16996_v47 = vadd.f32 %v13598_v57, %v5072_v13 }
 0x2e7   : > { %v13551_v17 = vpop.f32.mrf.mxu1  ;;  %13850 = vmatmul.mubr.msk.f32.gmra.mxu1 %vm3918_vm3, %v16489_v36 }
 0x2e8   : > { %v13601_v58 = vpop.f32.mrf.mxu0  ;;  %v5074_v8 = vadd.f32 %v13551_v17, %v16801_v34  ;;  %13852 = vmatprep.mubr.msk.f32.mxu1 %vm3918_vm3, %v16495_v38 }
 0x2e9   : > { %v4922_v53 = vpop.f32.mrf.mxu1 }
 0x2ea   : > { %v17003_v30 = vpop.f32.mrf.mxu0  ;;  %v17005_v55 = vadd.f32 %v13601_v58, %v5074_v8  ;;  %v17008_v31 = vadd.f32 %v4922_v53, %v16807_v37 }
 0x2eb   : > { %v13554_v13 = vpop.f32.mrf.mxu1  ;;  %13853 = vmatmul.mubr.msk.f32.gmra.mxu1 %vm3918_vm3, %v16501_v21 }
 0x2ec   : > { %v13604_v57 = vpop.f32.mrf.mxu0  ;;  %v5076_v36 = vadd.f32 %v13554_v13, %v16813_v48  ;;  %13855 = vmatprep.mubr.msk.f32.mxu1 %vm3918_vm3, %v16507_v44 }
 0x2ed   : > { %v4932_v34 = vpop.f32.mrf.mxu1 }
 0x2ee   : > { %v17015_v38 = vpop.f32.mrf.mxu0  ;;  %v17017_v17 = vadd.f32 %v13604_v57, %v5076_v36  ;;  %v17020_v8 = vadd.f32 %v4932_v34, %v16819_v32  ;;  %v11786_v32 = vld [vmem:[%s19247_s5 + $0x18] sm:$0xff] }
 0x2ef   : > { %v13557_v37 = vpop.f32.mrf.mxu1  ;;  %13856 = vmatmul.mubr.msk.f32.gmra.mxu1 %vm3918_vm3, %v16513_v46  ;;  %13894 = vmatprep.subr.mxu0 %v11786_v32 }
 0x2f0   : > { %v13607_v58 = vpop.f32.mrf.mxu0  ;;  %v5078_v21 = vadd.f32 %v13557_v37, %v16825_v27  ;;  %13858 = vmatprep.mubr.msk.f32.mxu1 %vm3918_vm3, %v16519_v52  ;;  %13895 = vmatpush3.msra.mxu0 %v11786_v32 }
 0x2f1   : > { %v4942_v48 = vpop.f32.mrf.mxu1 }
 0x2f2   : > { %v17027_v44 = vpop.f32.mrf.mxu0  ;;  %v17029_v53 = vadd.f32 %v13607_v58, %v5078_v21  ;;  %v17032_v13 = vadd.f32 %v4942_v48, %v16831_v2 }
 0x2f3   : > { %v13560_v57 = vpop.f32.mrf.mxu1  ;;  %13859 = vmatmul.mubr.msk.f32.gmra.mxu1 %vm3918_vm3, %v16525_v39 }
 0x2f4   : > { %v13610_v36 = vpop.f32.mrf.mxu0  ;;  %v5080_v52 = vadd.f32 %v13560_v57, %v16837_v3  ;;  %13861 = vmatprep.mubr.msk.f32.mxu1 %vm3918_vm3, %v16531_v49 }
 0x2f5   : > { %v4952_v46 = vpop.f32.mrf.mxu1 }
 0x2f6   : > { %v17042_v27 = vpop.f32.mrf.mxu0  ;;  %v17044_v2 = vadd.f32 %v13610_v36, %v5080_v52  ;;  %v17047_v34 = vadd.f32 %v4952_v46, %v16843_v29 }
 0x2f7   : > { %v13563_v37 = vpop.f32.mrf.mxu1  ;;  %13862 = vmatmul.mubr.msk.f32.gmra.mxu1 %vm3918_vm3, %v16537_v26 }
 0x2f8   : > { %v13613_v58 = vpop.f32.mrf.mxu0  ;;  %v5082_v39 = vadd.f32 %v13563_v37, %v16849_v42  ;;  %13864 = vmatprep.mubr.msk.f32.mxu1 %vm3918_vm3, %v16543_v23 }
 0x2f9   : > { %v4962_v49 = vpop.f32.mrf.mxu1 }
 0x2fa   : > { %v17054_v3 = vpop.f32.mrf.mxu0  ;;  %v17056_v21 = vadd.f32 %v13613_v58, %v5082_v39  ;;  %v17059_v48 = vadd.f32 %v4962_v49, %v16855_v10 }
 0x2fb   : > { %v13566_v29 = vpop.f32.mrf.mxu1  ;;  %13865 = vmatmul.mubr.msk.f32.gmra.mxu1 %vm3918_vm3, %v16549_v33 }
 0x2fc   : > { %v13616_v32 = vpop.f32.mrf.mxu0  ;;  %v5084_v26 = vadd.f32 %v13566_v29, %v16861_v19  ;;  %13867 = vmatprep.mubr.msk.f32.mxu1 %vm3918_vm3, %v16555_v63  ;;  %v7058_v29 = vld [vmem:[#allocation3 + $0x112] sm:$0xff] }
 0x2fd   : > { %v4972_v42 = vpop.f32.mrf.mxu1 }
 0x2fe   : > { %v17066_v23 = vpop.f32.mrf.mxu0  ;;  %v17068_v57 = vadd.f32 %v13616_v32, %v5084_v26  ;;  %v17071_v36 = vadd.f32 %v4972_v42, %v16867_v62 }
 0x2ff   : > { %19667 = vst [vmem:[#allocation17_spill] sm:$0xff] %v17066_v23  ;;  %v13569_v10 = vpop.f32.mrf.mxu1  ;;  %13868 = vmatmul.mubr.msk.f32.gmra.mxu1 %vm3918_vm3, %v16561_v40  ;;  %v4638_v40 = vadd.f32 %v16893_v7, %v16891_v14  ;;  %v7060_v7 = vld [vmem:[#allocation3 + $0x12a] sm:$0xff] }
 0x300   : > { %19668 = vst [vmem:[#allocation63_spill] sm:$0xff] %v17071_v36  ;;  %v13619_v52 = vpop.f32.mrf.mxu0  ;;  %v5086_v33 = vadd.f32 %v13569_v10, %v16873_v28  ;;  %13870 = vmatprep.mubr.msk.f32.mxu1 %vm3918_vm3, %v16567_v11 }
 0x301   : > { %v4982_v19 = vpop.f32.mrf.mxu1 }
 0x302   : > { %v17078_v63 = vpop.f32.mrf.mxu0  ;;  %v17080_v46 = vadd.f32 %v13619_v52, %v5086_v33  ;;  %v17083_v37 = vadd.f32 %v4982_v19, %v16879_v50  ;;  %v7061_v52 = vld [vmem:[#allocation3 + $0x13a] sm:$0xff] }
 0x303   : > { %19669 = vst [vmem:[#allocation70_spill] sm:$0xff] %v17078_v63  ;;  %v13572_v62 = vpop.f32.mrf.mxu1  ;;  %13871 = vmatmul.mubr.msk.f32.gmra.mxu1 %vm3918_vm3, %v16573_v51 }
 0x304   : > { %19670 = vst [vmem:[#allocation33_spill] sm:$0xff] %v17083_v37  ;;  %v13622_v58 = vpop.f32.mrf.mxu0  ;;  %v5088_v28 = vadd.f32 %v13572_v62, %v16885_v5  ;;  %13873 = vmatprep.mubr.msk.f32.mxu1 %vm3918_vm3, %v16579_v60  ;;  %v7062_v62 = vld [vmem:[#allocation3 + $0x142] sm:$0xff] }
 0x305   : > { %v4992_v11 = vpop.f32.mrf.mxu1 }
 0x306   : > { %v17092_v39 = vpop.f32.mrf.mxu0  ;;  %v17094_v49 = vadd.f32 %v13622_v58, %v5088_v28  ;;  %v17096_v50 = vadd.f32 %v4992_v11, %v4638_v40  ;;  %v7063_v28 = vld [vmem:[#allocation3 + $0x152] sm:$0xff] }
 0x307   : > { %19671 = vst [vmem:[#allocation37_spill] sm:$0xff] %v17092_v39  ;;  %v13575_v32 = vpop.f32.mrf.mxu1  ;;  %13874 = vmatmul.mubr.msk.f32.gmra.mxu1 %vm3918_vm3, %v7058_v29 }
 0x308   : > { %19672 = vst [vmem:[#allocation65_spill] sm:$0xff] %v17096_v50  ;;  %v13625_v26 = vpop.f32.mrf.mxu0  ;;  %v5090_v51 = vadd.f32 %v13575_v32, %v16899_v43  ;;  %13876 = vmatprep.mubr.msk.f32.mxu1 %vm3918_vm3, %v16591_v12 }
 0x309   : > { %v17102_v5 = vpop.f32.mrf.mxu1 }
 0x30a   : > { %19673 = vst [vmem:[#allocation36_spill] sm:$0xff] %v17102_v5  ;;  %v17104_v60 = vpop.f32.mrf.mxu0  ;;  %v17106_v14 = vadd.f32 %v13625_v26, %v5090_v51  ;;  %v7064_v26 = vld [vmem:[#allocation3 + $0x15a] sm:$0xff] }
 0x30b   : > { %19674 = vst [vmem:[#allocation72_spill] sm:$0xff] %v17104_v60  ;;  %v13578_v42 = vpop.f32.mrf.mxu1  ;;  %13877 = vmatmul.mubr.msk.f32.gmra.mxu1 %vm3918_vm3, %v7060_v7  ;;  %v11785_v51 = vld [vmem:[%s19247_s5 + $0x10] sm:$0xff] }
 0x30c   : > { %v13628_v10 = vpop.f32.mrf.mxu0  ;;  %v5092_v33 = vadd.f32 %v13578_v42, %v16913_v22  ;;  %13879 = vmatprep.mubr.msk.f32.mxu1 %vm3918_vm3, %v7061_v52  ;;  %13896 = vmatprep.subr.mxu0 %v11785_v51 }
 0x30d   : > { %v17111_v43 = vpop.f32.mrf.mxu1  ;;  %13897 = vmatpush3.msra.mxu0 %v11785_v51  ;;  %v7069_v51 = vld [vmem:[#allocation3 + $0x19a] sm:$0xff] }
 0x30e   : > { %19675 = vst [vmem:[#allocation10_spill] sm:$0xff] %v17111_v43  ;;  %v17113_v19 = vpop.f32.mrf.mxu0  ;;  %v17115_v12 = vadd.f32 %v13628_v10, %v5092_v33  ;;  %v7065_v10 = vld [vmem:[#allocation3 + $0x16a] sm:$0xff] }
 0x30f   : > { %19676 = vst [vmem:[#allocation20_spill] sm:$0xff] %v17113_v19  ;;  %v13581_v58 = vpop.f32.mrf.mxu1  ;;  %13880 = vmatmul.mubr.msk.f32.gmra.mxu1 %vm3918_vm3, %v7062_v62 }
 0x310   : > { %v13631_v40 = vpop.f32.mrf.mxu0  ;;  %v5094_v11 = vadd.f32 %v13581_v58, %v16927_v4  ;;  %13882 = vmatprep.mubr.msk.f32.mxu1 %vm3918_vm3, %v7063_v28  ;;  %v7066_v58 = vld [vmem:[#allocation3 + $0x172] sm:$0xff] }
 0x311   : > { %v17120_v29 = vpop.f32.mrf.mxu1 }
 0x312   : > { %19677 = vst [vmem:[#allocation67_spill] sm:$0xff] %v17120_v29  ;;  %v17122_v22 = vpop.f32.mrf.mxu0  ;;  %v17124_v32 = vadd.f32 %v13631_v40, %v5094_v11 }
 0x313   : > { %19678 = vst [vmem:[#allocation74_spill] sm:$0xff] %v17122_v22  ;;  %v13584_v7 = vpop.f32.mrf.mxu1  ;;  %13883 = vmatmul.mubr.msk.f32.gmra.mxu1 %vm3918_vm3, %v7064_v26 }
 0x314   : > { %v13634_v42 = vpop.f32.mrf.mxu0  ;;  %v5096_v4 = vadd.f32 %v13584_v7, %v16941_v59  ;;  %13885 = vmatprep.mubr.msk.f32.mxu1 %vm3918_vm3, %v7065_v10 }
 0x315   : > { %v17132_v52 = vpop.f32.mrf.mxu1 }
 0x316   : > { %19679 = vst [vmem:[#allocation35_spill] sm:$0xff] %v17132_v52  ;;  %v17134_v33 = vpop.f32.mrf.mxu0  ;;  %v17136_v62 = vadd.f32 %v13634_v42, %v5096_v4 }
 0x317   : > { %19680 = vst [vmem:[#allocation40_spill] sm:$0xff] %v17134_v33  ;;  %v13587_v40 = vpop.f32.mrf.mxu1  ;;  %13886 = vmatmul.mubr.msk.f32.gmra.mxu1 %vm3918_vm3, %v7066_v58 }
 0x318   : > { %v13637_v28 = vpop.f32.mrf.mxu0  ;;  %v5098_v11 = vadd.f32 %v13587_v40, %v16955_v16  ;;  %13888 = vmatprep.mubr.msk.f32.mxu1 %vm3918_vm3, %v16773_v18  ;;  %v7070_v16 = vld [vmem:[#allocation3 + $0x1a2] sm:$0xff] }
 0x319   : > { %v17142_v59 = vpop.f32.mrf.mxu1 }
 0x31a   : > { %19681 = vst [vmem:[#allocation69_spill] sm:$0xff] %v17142_v59  ;;  %v17144_v26 = vpop.f32.mrf.mxu0  ;;  %v17146_v7 = vadd.f32 %v13637_v28, %v5098_v11 }
 0x31b   : > { %19682 = vst [vmem:[#allocation39_spill] sm:$0xff] %v17144_v26  ;;  %v13590_v10 = vpop.f32.mrf.mxu1  ;;  %13889 = vmatmul.mubr.msk.f32.gmra.mxu1 %vm3918_vm3, %v16781_v15 }
 0x31c   : > { %v13640_v42 = vpop.f32.mrf.mxu0  ;;  %v5100_v4 = vadd.f32 %v13590_v10, %v16969_v20  ;;  %13891 = vmatprep.mubr.msk.f32.mxu1 %vm3918_vm3, %v7069_v51 }
 0x31d   : > { %v17152_v58 = vpop.f32.mrf.mxu1 }
 0x31e   : > { %19683 = vst [vmem:[#allocation76_spill] sm:$0xff] %v17152_v58  ;;  %v17154_v18 = vpop.f32.mrf.mxu0  ;;  %v17156_v40 = vadd.f32 %v13640_v42, %v5100_v4 }
 0x31f   : > { %19684 = vst [vmem:[#allocation19_spill] sm:$0xff] %v17154_v18  ;;  %v13593_v26 = vpop.f32.mrf.mxu1  ;;  %13892 = vmatmul.mubr.msk.f32.gmra.mxu1 %vm3918_vm3, %v7070_v16 }
 0x320   : > { %v13643_v59 = vpop.f32.mrf.mxu0  ;;  %v5102_v28 = vadd.f32 %v13593_v26, %v16979_v56 }
 0x321   : > { %v17160_v11 = vpop.f32.mrf.mxu1 }
 0x322   : > { %19685 = vst [vmem:[#allocation71_spill] sm:$0xff] %v17160_v11  ;;  %v17162_v15 = vpop.f32.mrf.mxu0  ;;  %v17164_v20 = vadd.f32 %v13643_v59, %v5102_v28  ;;  %v19687_v59 = vmov 0.0  }
 0x323   : > { %19686 = vst [vmem:[#allocation38_spill] sm:$0xff] %v17162_v15  ;;  %v13648_v51 = vpop.f32.mrf.mxu1  ;;  %7503 = vst.msk [vmem:[#allocation4 + $0x20] sm:$0xff] %vm7497_vm5, %v19687_v59 }
 0x324   : > { %v17166_v10 = vpop.f32.mrf.mxu0  ;;  %v17169_v58 = vadd.f32 %v13648_v51, %v16996_v47  ;;  %7498 = vst.msk [vmem:[#allocation4] sm:$0xff] %vm7497_vm5, %v19687_v59  ;;  %7499 = vst.msk [vmem:[#allocation4 + $0x8] sm:$0xff] %vm7497_vm5, %v19687_v59  ;;  %v7619_v51 = vld [vmem:[%s19247_s5 + $0x8] sm:$0xff] }
 0x325   : > { %v17171_v42 = vpop.f32.mrf.mxu1  ;;  %7502 = vst.msk [vmem:[#allocation4 + $0x18] sm:$0xff] %vm7497_vm5, %v19687_v59  ;;  %7505 = vst.msk [vmem:[#allocation4 + $0x30] sm:$0xff] %vm7497_vm5, %v19687_v59  ;;  %13946 = vmatprep.subr.mxu1 %v7619_v51 }
 0x326   : > { %v17173_v4 = vpop.f32.mrf.mxu0  ;;  %7506 = vst.msk [vmem:[#allocation4 + $0x38] sm:$0xff] %vm7497_vm5, %v19687_v59  ;;  %7508 = vst.msk [vmem:[#allocation4 + $0x48] sm:$0xff] %vm7497_vm5, %v19687_v59  ;;  %13947 = vmatpush3.msra.mxu1 %v7619_v51 }
 0x327   : > { %v13651_v18 = vpop.f32.mrf.mxu1  ;;  %7509 = vst.msk [vmem:[#allocation4 + $0x50] sm:$0xff] %vm7497_vm5, %v19687_v59  ;;  %7511 = vst.msk [vmem:[#allocation4 + $0x60] sm:$0xff] %vm7497_vm5, %v19687_v59 }
 0x328   : > { %v17175_v16 = vpop.f32.mrf.mxu0  ;;  %v17178_v56 = vadd.f32 %v13651_v18, %v17005_v55  ;;  %7512 = vst.msk [vmem:[#allocation4 + $0x68] sm:$0xff] %vm7497_vm5, %v19687_v59  ;;  %7514 = vst.msk [vmem:[#allocation4 + $0x78] sm:$0xff] %vm7497_vm5, %v19687_v59 }
 0x329   : > { %7515 = vst.msk [vmem:[#allocation4 + $0x80] sm:$0xff] %vm7497_vm5, %v19687_v59  ;;  %7517 = vst.msk [vmem:[#allocation4 + $0x90] sm:$0xff] %vm7497_vm5, %v19687_v59  ;;  %v17252_v47 = vpop.f32.mrf.mxu1 }
 0x32a   : > { %7518 = vst.msk [vmem:[#allocation4 + $0x98] sm:$0xff] %vm7497_vm5, %v19687_v59  ;;  %7520 = vst.msk [vmem:[#allocation4 + $0xa8] sm:$0xff] %vm7497_vm5, %v19687_v59  ;;  %v17254_v55 = vpop.f32.mrf.mxu0 }
 0x32b   : > { %7521 = vst.msk [vmem:[#allocation4 + $0xb0] sm:$0xff] %vm7497_vm5, %v19687_v59  ;;  %7523 = vst.msk [vmem:[#allocation4 + $0xc0] sm:$0xff] %vm7497_vm5, %v19687_v59  ;;  %v13654_v26 = vpop.f32.mrf.mxu1  ;;  %v7587_v19 = vld [vmem:[#allocation4 + $0x8] sm:$0xff] }
 0x32c   : > { %7524 = vst.msk [vmem:[#allocation4 + $0xc8] sm:$0xff] %vm7497_vm5, %v19687_v59  ;;  %7526 = vst.msk [vmem:[#allocation4 + $0xd8] sm:$0xff] %vm7497_vm5, %v19687_v59  ;;  %v17292_v18 = vpop.f32.mrf.mxu0  ;;  %v17295_v28 = vadd.f32 %v13654_v26, %v17017_v17  ;;  %v7620_v17 = vld [vmem:[#allocation4 + $0x1] sm:$0xff] }
 0x32d   : > { %7527 = vst.msk [vmem:[#allocation4 + $0xe0] sm:$0xff] %vm7497_vm5, %v19687_v59  ;;  %7529 = vst.msk [vmem:[#allocation4 + $0xf0] sm:$0xff] %vm7497_vm5, %v19687_v59  ;;  %v17300_v15 = vpop.f32.mrf.mxu1  ;;  %v7586_v26 = vld [vmem:[#allocation4] sm:$0xff]  ;;  %13898 = vmatprep.mubr.msk.f32.mxu0 %vm7497_vm5, %v7620_v17  ;;  %v11852_v17 = vld [vmem:[%s19247_s5 + $0x28] sm:$0xff] }
 0x32e   : > { %7530 = vst.msk [vmem:[#allocation4 + $0xf8] sm:$0xff] %vm7497_vm5, %v19687_v59  ;;  %7532 = vst.msk [vmem:[#allocation4 + $0x108] sm:$0xff] %vm7497_vm5, %v19687_v59  ;;  %v17302_v11 = vpop.f32.mrf.mxu0  ;;  %13950 = vmatprep.mubr.msk.f32.mxu1 %vm7497_vm5, %v7586_v26  ;;  %13998 = vmatprep.subr.mxu0 %v11852_v17 }
 0x32f   : > { %7533 = vst.msk [vmem:[#allocation4 + $0x110] sm:$0xff] %vm7497_vm5, %v19687_v59  ;;  %7535 = vst.msk [vmem:[#allocation4 + $0x120] sm:$0xff] %vm7497_vm5, %v19687_v59  ;;  %v13657_v33 = vpop.f32.mrf.mxu1 }
 0x330   : > { %7536 = vst.msk [vmem:[#allocation4 + $0x128] sm:$0xff] %vm7497_vm5, %v19687_v59  ;;  %7538 = vst.msk [vmem:[#allocation4 + $0x138] sm:$0xff] %vm7497_vm5, %v19687_v59  ;;  %v17307_v52 = vpop.f32.mrf.mxu0  ;;  %v17310_v22 = vadd.f32 %v13657_v33, %v17029_v53 }
 0x331   : > { %7539 = vst.msk [vmem:[#allocation4 + $0x140] sm:$0xff] %vm7497_vm5, %v19687_v59  ;;  %7541 = vst.msk [vmem:[#allocation4 + $0x150] sm:$0xff] %vm7497_vm5, %v19687_v59  ;;  %v17313_v43 = vpop.f32.mrf.mxu1 }
 0x332   : > { %7542 = vst.msk [vmem:[#allocation4 + $0x158] sm:$0xff] %vm7497_vm5, %v19687_v59  ;;  %7544 = vst.msk [vmem:[#allocation4 + $0x168] sm:$0xff] %vm7497_vm5, %v19687_v59  ;;  %v17315_v51 = vpop.f32.mrf.mxu0 }
 0x333   : > { %7545 = vst.msk [vmem:[#allocation4 + $0x170] sm:$0xff] %vm7497_vm5, %v19687_v59  ;;  %7547 = vst.msk [vmem:[#allocation4 + $0x180] sm:$0xff] %vm7497_vm5, %v19687_v59  ;;  %v13660_v60 = vpop.f32.mrf.mxu1 }
 0x334   : > { %7548 = vst.msk [vmem:[#allocation4 + $0x188] sm:$0xff] %vm7497_vm5, %v19687_v59  ;;  %7550 = vst.msk [vmem:[#allocation4 + $0x198] sm:$0xff] %vm7497_vm5, %v19687_v59  ;;  %v17320_v5 = vpop.f32.mrf.mxu0  ;;  %v17323_v53 = vadd.f32 %v13660_v60, %v17044_v2 }
 0x335   : > { %7551 = vst.msk [vmem:[#allocation4 + $0x1a0] sm:$0xff] %vm7497_vm5, %v19687_v59  ;;  %v17325_v33 = vpop.f32.mrf.mxu1 }
 0x336   : > { %7504 = vst.msk [vmem:[#allocation4 + $0x28] sm:$0x3] %vm7500_vm6, %v19687_v59  ;;  %7501 = vst.msk [vmem:[#allocation4 + $0x10] sm:$0x3] %vm7500_vm6, %v19687_v59 }
 0x337   : > { %7507 = vst.msk [vmem:[#allocation4 + $0x40] sm:$0x3] %vm7500_vm6, %v19687_v59  ;;  %7510 = vst.msk [vmem:[#allocation4 + $0x58] sm:$0x3] %vm7500_vm6, %v19687_v59  ;;  %v13663_v39 = vpop.f32.mrf.mxu1 }
 0x338   : > { %7513 = vst.msk [vmem:[#allocation4 + $0x70] sm:$0x3] %vm7500_vm6, %v19687_v59  ;;  %7516 = vst.msk [vmem:[#allocation4 + $0x88] sm:$0x3] %vm7500_vm6, %v19687_v59 }
 0x339   : > { %7519 = vst.msk [vmem:[#allocation4 + $0xa0] sm:$0x3] %vm7500_vm6, %v19687_v59  ;;  %7522 = vst.msk [vmem:[#allocation4 + $0xb8] sm:$0x3] %vm7500_vm6, %v19687_v59 }
 0x33a   : > { %7525 = vst.msk [vmem:[#allocation4 + $0xd0] sm:$0x3] %vm7500_vm6, %v19687_v59  ;;  %7528 = vst.msk [vmem:[#allocation4 + $0xe8] sm:$0x3] %vm7500_vm6, %v19687_v59 }
 0x33b   : > { %7531 = vst.msk [vmem:[#allocation4 + $0x100] sm:$0x3] %vm7500_vm6, %v19687_v59  ;;  %7534 = vst.msk [vmem:[#allocation4 + $0x118] sm:$0x3] %vm7500_vm6, %v19687_v59 }
 0x33c   : > { %7537 = vst.msk [vmem:[#allocation4 + $0x130] sm:$0x3] %vm7500_vm6, %v19687_v59  ;;  %7540 = vst.msk [vmem:[#allocation4 + $0x148] sm:$0x3] %vm7500_vm6, %v19687_v59 }
 0x33d   : > { %7543 = vst.msk [vmem:[#allocation4 + $0x160] sm:$0x3] %vm7500_vm6, %v19687_v59  ;;  %7546 = vst.msk [vmem:[#allocation4 + $0x178] sm:$0x3] %vm7500_vm6, %v19687_v59  ;;  %v7621_v29 = vld [vmem:[#allocation4 + $0x9] sm:$0xff] }
 0x33e   : > { %7549 = vst.msk [vmem:[#allocation4 + $0x190] sm:$0x3] %vm7500_vm6, %v19687_v59  ;;  %7552 = vst.msk [vmem:[#allocation4 + $0x1a8] sm:$0x3] %vm7500_vm6, %v19687_v59  ;;  %v7618_v59 = vld [vmem:[%s19247_s5] sm:$0xff]  ;;  %13899 = vmatmul.mubr.msk.f32.vlgmr.msra.gmra.mxu0 %vm7497_vm5, %v7621_v29  ;;  %v17337_v29 = vpop.f32.mrf.mxu1 }
 0x33f   : > { %13948 = vmatprep.subr.mxu1 %v7618_v59  ;;  %13999 = vmatpush3.msra.mxu0 %v11852_v17 }
 0x340   : > { %13949 = vmatpush3.msra.mxu1 %v7618_v59  ;;  %v17327_v59 = vpop.f32.mrf.mxu0  ;;  %v13666_v60 = vpop.f32.mrf.mxu1 }
 0x341   : > { %13951 = vmatmul.mubr.msk.f32.vlgmr.msra.gmra.mxu1 %vm7497_vm5, %v7587_v19  ;;  %v17335_v19 = vadd.f32 %v13663_v39, %v17056_v21  ;;  %v17344_v63 = vadd.f32 %v13666_v60, %v17068_v57 }
 0x342   : > { %v17332_v26 = vpop.f32.mrf.mxu0  ;;  %v17346_v37 = vpop.f32.mrf.mxu1 }
 0x343   : > { %19688 = vst [vmem:[#allocation43_spill] sm:$0xff] %v17332_v26  ;;  %19689 = vst [vmem:[#allocation73_spill] sm:$0xff] %v17335_v19 }
 0x344   : > { %v17339_v2 = vpop.f32.mrf.mxu0  ;;  %19692 = vst [vmem:[#allocation12_spill] sm:$0xff] %v17344_v63  ;;  %19693 = vst [vmem:[#allocation22_spill] sm:$0xff] %v17346_v37  ;;  %v13669_v24 = vpop.f32.mrf.mxu1 }
 0x345   : > { %19690 = vst [vmem:[#allocation42_spill] sm:$0xff] %v17339_v2  ;;  %v17353_v21 = vadd.f32 %v13669_v24, %v17080_v46 }
 0x346   : > { %v17341_v50 = vpop.f32.mrf.mxu0  ;;  %v17355_v39 = vpop.f32.mrf.mxu1 }
 0x347   : > { %19691 = vst [vmem:[#allocation79_spill] sm:$0xff] %v17341_v50  ;;  %19696 = vst [vmem:[#allocation41_spill] sm:$0xff] %v17353_v21 }
 0x348   : > { %v17348_v25 = vpop.f32.mrf.mxu0  ;;  %19697 = vst [vmem:[#allocation46_spill] sm:$0xff] %v17355_v39  ;;  %v13672_v2 = vpop.f32.mrf.mxu1 }
 0x349   : > { %19694 = vst [vmem:[#allocation75_spill] sm:$0xff] %v17348_v25  ;;  %v17362_v57 = vadd.f32 %v13672_v2, %v17094_v49 }
 0x34a   : > { %v17350_v26 = vpop.f32.mrf.mxu0  ;;  %v17364_v60 = vpop.f32.mrf.mxu1 }
 0x34b   : > { %19695 = vst [vmem:[#allocation81_spill] sm:$0xff] %v17350_v26  ;;  %19700 = vst [vmem:[#allocation83_spill] sm:$0xff] %v17362_v57 }
 0x34c   : > { %v17357_v17 = vpop.f32.mrf.mxu0  ;;  %19701 = vst [vmem:[#allocation21_spill] sm:$0xff] %v17364_v60  ;;  %v13675_v25 = vpop.f32.mrf.mxu1 }
 0x34d   : > { %19698 = vst [vmem:[#allocation77_spill] sm:$0xff] %v17357_v17  ;;  %v17371_v24 = vadd.f32 %v13675_v25, %v17106_v14 }
 0x34e   : > { %v17359_v19 = vpop.f32.mrf.mxu0  ;;  %v17373_v46 = vpop.f32.mrf.mxu1 }
 0x34f   : > { %19699 = vst [vmem:[#allocation45_spill] sm:$0xff] %v17359_v19  ;;  %19704 = vst [vmem:[#allocation44_spill] sm:$0xff] %v17371_v24 }
 0x350   : > { %v17366_v50 = vpop.f32.mrf.mxu0  ;;  %19705 = vst [vmem:[#allocation49_spill] sm:$0xff] %v17373_v46  ;;  %v13678_v17 = vpop.f32.mrf.mxu1 }
 0x351   : > { %19702 = vst [vmem:[#allocation78_spill] sm:$0xff] %v17366_v50  ;;  %v17380_v49 = vadd.f32 %v13678_v17, %v17115_v12 }
 0x352   : > { %v17368_v63 = vpop.f32.mrf.mxu0  ;;  %v17382_v2 = vpop.f32.mrf.mxu1 }
 0x353   : > { %19703 = vst [vmem:[#allocation85_spill] sm:$0xff] %v17368_v63  ;;  %19708 = vst [vmem:[#allocation82_spill] sm:$0xff] %v17380_v49 }
 0x354   : > { %v17375_v26 = vpop.f32.mrf.mxu0  ;;  %19709 = vst [vmem:[#allocation88_spill] sm:$0xff] %v17382_v2  ;;  %v13681_v50 = vpop.f32.mrf.mxu1 }
 0x355   : > { %19706 = vst [vmem:[#allocation80_spill] sm:$0xff] %v17375_v26  ;;  %v17389_v25 = vadd.f32 %v13681_v50, %v17124_v32 }
 0x356   : > { %v17377_v21 = vpop.f32.mrf.mxu0  ;;  %v17391_v14 = vpop.f32.mrf.mxu1 }
 0x357   : > { %19707 = vst [vmem:[#allocation48_spill] sm:$0xff] %v17377_v21  ;;  %19712 = vst [vmem:[#allocation50_spill] sm:$0xff] %v17389_v25 }
 0x358   : > { %v17384_v19 = vpop.f32.mrf.mxu0  ;;  %19713 = vst [vmem:[#allocation86_spill] sm:$0xff] %v17391_v14  ;;  %v13684_v26 = vpop.f32.mrf.mxu1 }
 0x359   : > { %19710 = vst [vmem:[#allocation47_spill] sm:$0xff] %v17384_v19  ;;  %v17398_v12 = vadd.f32 %v13684_v26, %v17136_v62 }
 0x35a   : > { %v17386_v57 = vpop.f32.mrf.mxu0  ;;  %v17400_v17 = vpop.f32.mrf.mxu1 }
 0x35b   : > { %19711 = vst [vmem:[#allocation84_spill] sm:$0xff] %v17386_v57  ;;  %19716 = vst [vmem:[#allocation26_spill] sm:$0xff] %v17398_v12  ;;  %v11851_v57 = vld [vmem:[%s19247_s5 + $0x20] sm:$0xff] }
 0x35c   : > { %v17393_v63 = vpop.f32.mrf.mxu0  ;;  %19717 = vst [vmem:[#allocation51_spill] sm:$0xff] %v17400_v17  ;;  %v13687_v50 = vpop.f32.mrf.mxu1  ;;  %14000 = vmatprep.subr.mxu0 %v11851_v57 }
 0x35d   : > { %19714 = vst [vmem:[#allocation87_spill] sm:$0xff] %v17393_v63  ;;  %v17410_v63 = vadd.f32 %v13687_v50, %v17146_v7  ;;  %14001 = vmatpush3.msra.mxu0 %v11851_v57 }
 0x35e   : > { %v17395_v24 = vpop.f32.mrf.mxu0 }
 0x35f   : > { %19715 = vst [vmem:[#allocation89_spill] sm:$0xff] %v17395_v24  ;;  %19720 = vst [vmem:[#allocation5_spill] sm:$0xff] %v17410_v63  ;;  %v17412_v24 = vpop.f32.mrf.mxu1 }
 0x360   : > { %v17402_v21 = vpop.f32.mrf.mxu0  ;;  %19721 = vst [vmem:[#allocation6_spill] sm:$0xff] %v17412_v24 }
 0x361   : > { %19718 = vst [vmem:[#allocation8_spill] sm:$0xff] %v17402_v21  ;;  %v13690_v26 = vpop.f32.mrf.mxu1 }
 0x362   : > { %v17407_v32 = vpop.f32.mrf.mxu0  ;;  %v17419_v21 = vadd.f32 %v13690_v26, %v17156_v40 }
 0x363   : > { %19719 = vst [vmem:[#allocation58_spill] sm:$0xff] %v17407_v32  ;;  %v17421_v17 = vpop.f32.mrf.mxu1 }
 0x364   : > { %v17414_v62 = vpop.f32.mrf.mxu0  ;;  %19724 = vst [vmem:[#allocation23_spill] sm:$0xff] %v17419_v21  ;;  %19725 = vst [vmem:[#allocation13_spill] sm:$0xff] %v17421_v17 }
 0x365   : > { %19722 = vst [vmem:[#allocation7_spill] sm:$0xff] %v17414_v62  ;;  %v13693_v32 = vpop.f32.mrf.mxu1 }
 0x366   : > { %v17416_v12 = vpop.f32.mrf.mxu0  ;;  %v17428_v7 = vadd.f32 %v13693_v32, %v17164_v20  ;;  %v11886_v32 = vld [vmem:[%s19247_s5 + $0x38] sm:$0xff] }
 0x367   : > { %19723 = vst [vmem:[#allocation54_spill] sm:$0xff] %v17416_v12  ;;  %v17430_v57 = vpop.f32.mrf.mxu1  ;;  %14050 = vmatprep.subr.mxu1 %v11886_v32 }
 0x368   : > { %v17423_v25 = vpop.f32.mrf.mxu0  ;;  %19728 = vst [vmem:[#allocation16_spill] sm:$0xff] %v17428_v7  ;;  %19729 = vst [vmem:[#allocation52_spill] sm:$0xff] %v17430_v57  ;;  %v17459_v7 = vld [vmem:[%s19247_s5 + $0x48] sm:$0xff]  ;;  %14051 = vmatpush3.msra.mxu1 %v11886_v32 }
 0x369   : > { %19726 = vst [vmem:[#allocation25_spill] sm:$0xff] %v17423_v25  ;;  %v13748_v62 = vpop.f32.mrf.mxu1  ;;  %19731 = vst [vmem:[#allocation14_spill] sm:$0xff] %v17459_v7  ;;  %14102 = vmatprep.subr.mxu0 %v17459_v7 }
 0x36a   : > { %v17425_v14 = vpop.f32.mrf.mxu0 }
 0x36b   : > { %19727 = vst [vmem:[#allocation56_spill] sm:$0xff] %v17425_v14  ;;  %v17436_v12 = vpop.f32.mrf.mxu1 }
 0x36c   : > { %v17432_v50 = vpop.f32.mrf.mxu0 }
 0x36d   : > { %19730 = vst [vmem:[#allocation24_spill] sm:$0xff] %v17432_v50  ;;  %v17440_v26 = vpop.f32.mrf.mxu1  ;;  %v11885_v50 = vld [vmem:[%s19247_s5 + $0x30] sm:$0xff] }
 0x36e   : > { %v17434_v63 = vpop.f32.mrf.mxu0  ;;  %14052 = vmatprep.subr.mxu1 %v11885_v50 }
 0x36f   : > { %v17442_v25 = vpop.f32.mrf.mxu1  ;;  %14053 = vmatpush3.msra.mxu1 %v11885_v50 }
 0x370   : > { %v17438_v40 = vpop.f32.mrf.mxu0 }
 0x371   : > { %v17446_v14 = vpop.f32.mrf.mxu1 }
 0x372   : > { %v17444_v21 = vpop.f32.mrf.mxu0 }
 0x373   : > { %v17448_v20 = vpop.f32.mrf.mxu1 }
 0x374   : > { %v17461_v57 = vpop.f32.mrf.mxu0 }
 0x375   : > { %v17463_v17 = vpop.f32.mrf.mxu1 }
 0x376   : > { %v17468_v19 = vpop.f32.mrf.mxu0 }
 0x377   : > { %v17466_v24 = vpop.f32.mrf.mxu1 }
 0x378   : > { %v17474_v46 = vpop.f32.mrf.mxu0 }
 0x379   : > { %v17470_v49 = vpop.f32.mrf.mxu1 }
 0x37a   : > { %19732 = vst [vmem:[#allocation29_spill] sm:$0xff] %v17470_v49  ;;  %v17480_v37 = vpop.f32.mrf.mxu0 }
 0x37b   : > { %v17472_v2 = vpop.f32.mrf.mxu1  ;;  %19736 = vst [vmem:[#allocation15_spill] sm:$0xff] %v17480_v37 }
 0x37c   : > { %19733 = vst [vmem:[#allocation53_spill] sm:$0xff] %v17472_v2  ;;  %v17486_v23 = vpop.f32.mrf.mxu0 }
 0x37d   : > { %v17476_v60 = vpop.f32.mrf.mxu1  ;;  %19739 = vst [vmem:[#allocation27_spill] sm:$0xff] %v17486_v23 }
 0x37e   : > { %19734 = vst [vmem:[#allocation28_spill] sm:$0xff] %v17476_v60  ;;  %v17492_v6 = vpop.f32.mrf.mxu0 }
 0x37f   : > { %v17478_v39 = vpop.f32.mrf.mxu1  ;;  %19742 = vst [vmem:[#allocation57_spill] sm:$0xff] %v17492_v6 }
 0x380   : > { %19735 = vst [vmem:[#allocation60_spill] sm:$0xff] %v17478_v39  ;;  %v17498_v60 = vpop.f32.mrf.mxu0 }
 0x381   : > { %v17482_v32 = vpop.f32.mrf.mxu1  ;;  %19745 = vst [vmem:[#allocation92_spill] sm:$0xff] %v17498_v60 }
 0x382   : > { %19737 = vst [vmem:[#allocation55_spill] sm:$0xff] %v17482_v32  ;;  %v17504_v32 = vpop.f32.mrf.mxu0 }
 0x383   : > { %v17484_v7 = vpop.f32.mrf.mxu1  ;;  %19748 = vst [vmem:[#allocation95_spill] sm:$0xff] %v17504_v32 }
 0x384   : > { %19738 = vst [vmem:[#allocation62_spill] sm:$0xff] %v17484_v7 }
 0x385   : > { %v17488_v50 = vpop.f32.mrf.mxu1 }
 0x386   : > { %19740 = vst [vmem:[#allocation32_spill] sm:$0xff] %v17488_v50  ;;  %v17510_v50 = vpop.f32.mrf.mxu0 }
 0x387   : > { %v17490_v36 = vpop.f32.mrf.mxu1  ;;  %19751 = vst [vmem:[#allocation98_spill] sm:$0xff] %v17510_v50 }
 0x388   : > { %19741 = vst [vmem:[#allocation31_spill] sm:$0xff] %v17490_v36 }
 0x389   : > { %v17494_v2 = vpop.f32.mrf.mxu1 }
 0x38a   : > { %19743 = vst [vmem:[#allocation90_spill] sm:$0xff] %v17494_v2  ;;  %v17518_v2 = vpop.f32.mrf.mxu0 }
 0x38b   : > { %v17496_v49 = vpop.f32.mrf.mxu1 }
 0x38c   : > { %19744 = vst [vmem:[#allocation91_spill] sm:$0xff] %v17496_v49  ;;  %v4558_v49 = vadd.f32 %v16795_v0, %v16793_v35  ;;  %v5460_v0 = vadd.f32 %v17003_v30, %v17008_v31  ;;  %v6235_v30 = vadd.f32 %v17175_v16, %v17178_v56 }
 0x38d   : > { %v17500_v39 = vpop.f32.mrf.mxu1 }
 0x38e   : > { %19746 = vst [vmem:[#allocation93_spill] sm:$0xff] %v17500_v39 }
 0x38f   : > { %v17502_v37 = vpop.f32.mrf.mxu1 }
 0x390   : > { %19747 = vst [vmem:[#allocation94_spill] sm:$0xff] %v17502_v37  ;;  %v5071_v37 = vadd.f32 %v16992_v9, %v4558_v49  ;;  %v6233_v9 = vadd.f32 %v17166_v10, %v17169_v58 }
 0x391   : > { %v17506_v7 = vpop.f32.mrf.mxu1 }
 0x392   : > { %19749 = vst [vmem:[#allocation96_spill] sm:$0xff] %v17506_v7  ;;  %v17525_v7 = vpop.f32.mrf.mxu0  ;;  %v5458_v50 = vadd.f32 %v16994_v45, %v5071_v37  ;;  %v5847_v45 = vadd.f32 %v17252_v47, %v5460_v0  ;;  %v6621_v37 = vadd.f32 %v13748_v62, %v6233_v9  ;;  %v6623_v47 = vadd.f32 %v17440_v26, %v6235_v30  ;;  %v19756_v0 = vld [vmem:[#allocation64_spill] sm:$0xff] }
 0x393   : > { %v17508_v23 = vpop.f32.mrf.mxu1  ;;  %v17580_v9 = vadd.f32 %v19756_v0, %v16905_v61  ;;  %v19757_v61 = vld [vmem:[#allocation9_spill] sm:$0xff]  ;;  %v19767_v0 = vld [vmem:[#allocation43_spill] sm:$0xff] }
 0x394   : > { %19750 = vst [vmem:[#allocation97_spill] sm:$0xff] %v17508_v23  ;;  %v17533_v60 = vpop.f32.mrf.mxu0  ;;  %v17593_v30 = vadd.f32 %v19757_v61, %v16919_v41  ;;  %v5468_v41 = vadd.f32 %v17054_v3, %v17059_v48 }
 0x395   : > { %v17512_v36 = vpop.f32.mrf.mxu1 }
 0x396   : > { %19752 = vst [vmem:[#allocation99_spill] sm:$0xff] %v17512_v36  ;;  %v5855_v48 = vadd.f32 %v17337_v29, %v5468_v41  ;;  %v19763_v29 = vld [vmem:[#allocation30_spill] sm:$0xff]  ;;  %v19774_v41 = vld [vmem:[#allocation57_spill] sm:$0xff] }
 0x397   : > { %v17514_v6 = vpop.f32.mrf.mxu1 }
 0x398   : > { %19753 = vst [vmem:[#allocation100_spill] sm:$0xff] %v17514_v6  ;;  %v5845_v6 = vadd.f32 %v17171_v42, %v5458_v50  ;;  %v5462_v42 = vadd.f32 %v17015_v38, %v17020_v8  ;;  %v17547_v50 = vpop.f32.mrf.mxu0  ;;  %v5464_v38 = vadd.f32 %v17027_v44, %v17032_v13  ;;  %v6237_v8 = vadd.f32 %v17292_v18, %v17295_v28 }
 0x399   : > { %v17520_v39 = vpop.f32.mrf.mxu1  ;;  %v7010_v28 = vadd.f32 %v17444_v21, %v6623_v47 }
 0x39a   : > { %v5849_v58 = vadd.f32 %v17300_v15, %v5462_v42  ;;  %v17564_v62 = vpop.f32.mrf.mxu0  ;;  %v5851_v44 = vadd.f32 %v17313_v43, %v5464_v38  ;;  %v6625_v13 = vadd.f32 %v17446_v14, %v6237_v8  ;;  %v19759_v8 = vld [vmem:[#allocation59_spill] sm:$0xff] }
 0x39b   : > { %v17523_v32 = vpop.f32.mrf.mxu1 }
 0x39d   : > { %v17527_v23 = vpop.f32.mrf.mxu1 }
 0x39e   : > { %19754 = vst [vmem:[#allocation101_spill] sm:$0xff] %v17527_v23  ;;  %v6232_v23 = vadd.f32 %v17173_v4, %v5845_v6  ;;  %v6234_v6 = vadd.f32 %v17254_v55, %v5847_v45  ;;  %v7008_v4 = vadd.f32 %v17434_v63, %v6621_v37  ;;  %v6236_v55 = vadd.f32 %v17302_v11, %v5849_v58 }
 0x39f   : > { %v17530_v36 = vpop.f32.mrf.mxu1  ;;  %v6239_v11 = vadd.f32 %v17307_v52, %v17310_v22  ;;  %v7012_v22 = vadd.f32 %v17468_v19, %v6625_v13 }
 0x3a0   : > { %19755 = vst [vmem:[#allocation102_spill] sm:$0xff] %v17530_v36  ;;  %v6620_v31 = vadd.f32 %v17436_v12, %v6232_v23  ;;  %v17569_v23 = vld [vmem:[%s19246_s4] ss:$0 sm:$0xff]  ;;  %v6622_v63 = vadd.f32 %v17442_v25, %v6234_v6  ;;  %v5466_v25 = vadd.f32 %v17042_v27, %v17047_v34  ;;  %v6624_v43 = vadd.f32 %v17448_v20, %v6236_v55 }
 0x3a1   : > { %v17535_v35 = vpop.f32.mrf.mxu1  ;;  %v6238_v27 = vadd.f32 %v17315_v51, %v5851_v44  ;;  %v6627_v20 = vadd.f32 %v17463_v17, %v6239_v11  ;;  %v17603_v6 = vadd.f32 %v16935_v54, %v16933_v1  ;;  %v6241_v51 = vadd.f32 %v17320_v5, %v17323_v53  ;;  %v19758_v54 = vld [vmem:[#allocation18_spill] sm:$0xff]  ;;  %v19760_v5 = vld [vmem:[#allocation29_spill] sm:$0xff] }
 0x3a2   : > { %v7007_v15 = vadd.f32 %v17438_v40, %v6620_v31  ;;  %v17587_v40 = vpop.f32.mrf.mxu0  ;;  %v7009_v21 = vadd.f32 %v17461_v57, %v6622_v63  ;;  %v5853_v34 = vadd.f32 %v17325_v33, %v5466_v25  ;;  %v7011_v33 = vadd.f32 %v17474_v46, %v6624_v43  ;;  %v19768_v11 = vld [vmem:[#allocation53_spill] sm:$0xff] }
 0x3a3   : > { %v17541_v49 = vpop.f32.mrf.mxu1  ;;  %v6629_v53 = vadd.f32 %v19760_v5, %v6241_v51  ;;  %v19778_v5 = vld [vmem:[#allocation33_spill] sm:$0xff] }
 0x3a4   : > { %v17610_v19 = vpop.f32.mrf.mxu0  ;;  %v6240_v3 = vadd.f32 %v17327_v59, %v5853_v34  ;;  %v19762_v59 = vld [vmem:[#allocation66_spill] sm:$0xff] }
 0x3a5   : > { %v17549_v36 = vpop.f32.mrf.mxu1  ;;  %v17633_v13 = vadd.f32 %v19763_v29, %v19762_v59  ;;  %v19770_v34 = vld [vmem:[#allocation34_spill] sm:$0xff]  ;;  %v7016_v51 = vadd.f32 %v19774_v41, %v6629_v53  ;;  %v19782_v53 = vld [vmem:[#allocation92_spill] sm:$0xff] }
 0x3a6   : > { %v6628_v43 = vadd.f32 %v19768_v11, %v6240_v3 }
 0x3a7   : > { %v17555_v10 = vpop.f32.mrf.mxu1 }
 0x3a9   : > { %v13848_v16 = vpop.f32.mrf.mxu1 }
 0x3aa   : > { %v7395_v56 = vadd.f32 %v13848_v16, %v7008_v4  ;;  %v6626_v4 = vadd.f32 %v17466_v24, %v6238_v27  ;;  %v17617_v16 = vadd.f32 %v19759_v8, %v19758_v54  ;;  %v17625_v24 = vld [vmem:[%s19247_s5 + $0x58] sm:$0xff]  ;;  %v19776_v54 = vld [vmem:[#allocation11_spill] sm:$0xff]  ;;  %v19777_v8 = vld [vmem:[#allocation68_spill] sm:$0xff] }
 0x3ab   : > { %v7235_v18 = vpop.f32.mrf.mxu1  ;;  %14154 = vmatprep.subr.mxu1 %v17625_v24  ;;  %v17657_v3 = vadd.f32 %v19777_v8, %v19776_v54  ;;  %v19793_v8 = vld [vmem:[#allocation62_spill] sm:$0xff] }
 0x3ac   : > { %v7434_v12 = vadd.f32 %v17569_v23, %v7395_v56  ;;  %v7394_v26 = vadd.f32 %v7235_v18, %v7007_v15  ;;  %v19761_v15 = vld [vmem:[#allocation15_spill] sm:$0xff] }
 0x3ad   : > { %v13851_v14 = vpop.f32.mrf.mxu1  ;;  %v7014_v63 = vadd.f32 %v19761_v15, %v6627_v20  ;;  %v19764_v18 = vld [vmem:[#allocation63_spill] sm:$0xff]  ;;  %v19772_v20 = vld [vmem:[#allocation42_spill] sm:$0xff]  ;;  %v19780_v15 = vld [vmem:[#allocation12_spill] sm:$0xff] }
 0x3ae   : > { %v7466_v45 = vmax.f32 %v7434_v12, 0.0  ;;  %v7433_v37 = vadd.f32 %v17569_v23, %v7394_v26  ;;  %v7397_v42 = vadd.f32 %v13851_v14, %v7010_v28  ;;  %v19765_v28 = vld [vmem:[#allocation17_spill] sm:$0xff]  ;;  %v17640_v14 = vpop.f32.mrf.mxu0 }
 0x3af   : > { %v7245_v52 = vpop.f32.mrf.mxu1  ;;  %v5470_v12 = vadd.f32 %v19765_v28, %v19764_v18  ;;  %v19766_v26 = vld [vmem:[#allocation73_spill] sm:$0xff] }
 0x3b0   : > { %7555 = vst.msk [vmem:[#allocation4 + $0x21] sm:$0xff] %vm7497_vm5, %v7466_v45  ;;  %v7465_v57 = vmax.f32 %v7433_v37, 0.0  ;;  %v7436_v31 = vadd.f32 %v17569_v23, %v7397_v42  ;;  %v7396_v58 = vadd.f32 %v7245_v52, %v7009_v21  ;;  %v6243_v25 = vadd.f32 %v19767_v0, %v19766_v26  ;;  %v19769_v45 = vld [vmem:[#allocation27_spill] sm:$0xff] }
 0x3b1   : > { %v13854_v17 = vpop.f32.mrf.mxu1  ;;  %v7013_v37 = vadd.f32 %v19769_v45, %v6626_v4 }
 0x3b2   : > { %7554 = vst.msk [vmem:[#allocation4 + $0x19] sm:$0xff] %vm7497_vm5, %v7465_v57  ;;  %v7468_v47 = vmax.f32 %v7436_v31, 0.0  ;;  %v7435_v38 = vadd.f32 %v17569_v23, %v7396_v58  ;;  %v7399_v1 = vadd.f32 %v13854_v17, %v7012_v22  ;;  %v19771_v22 = vld [vmem:[#allocation61_spill] sm:$0xff]  ;;  %v6242_v57 = vadd.f32 %v19772_v20, %v5855_v48  ;;  %v19773_v31 = vld [vmem:[#allocation22_spill] sm:$0xff]  ;;  %v19775_v17 = vld [vmem:[#allocation28_spill] sm:$0xff] }
 0x3b3   : > { %v7255_v46 = vpop.f32.mrf.mxu1  ;;  %v17647_v52 = vadd.f32 %v19771_v22, %v19770_v34  ;;  %v5857_v58 = vadd.f32 %v19773_v31, %v5470_v12  ;;  %v19783_v12 = vld [vmem:[#allocation60_spill] sm:$0xff]  ;;  %v19787_v22 = vld [vmem:[#allocation95_spill] sm:$0xff] }
 0x3b4   : > { %7557 = vst.msk [vmem:[#allocation4 + $0x39] sm:$0xff] %vm7497_vm5, %v7468_v47  ;;  %v7467_v56 = vmax.f32 %v7435_v38, 0.0  ;;  %v7438_v55 = vadd.f32 %v17569_v23, %v7399_v1  ;;  %v7398_v44 = vadd.f32 %v7255_v46, %v7011_v33  ;;  %v6631_v47 = vadd.f32 %v19775_v17, %v6243_v25  ;;  %v19779_v46 = vld [vmem:[#allocation70_spill] sm:$0xff]  ;;  %v19790_v17 = vld [vmem:[#allocation36_spill] sm:$0xff] }
 0x3b5   : > { %v13857_v21 = vpop.f32.mrf.mxu1  ;;  %v5472_v48 = vadd.f32 %v19779_v46, %v19778_v5  ;;  %v6630_v26 = vadd.f32 %v19783_v12, %v6242_v57 }
 0x3b6   : > { %7556 = vst.msk [vmem:[#allocation4 + $0x31] sm:$0xff] %vm7497_vm5, %v7467_v56  ;;  %v7470_v42 = vmax.f32 %v7438_v55, 0.0  ;;  %v7437_v61 = vadd.f32 %v17569_v23, %v7398_v44  ;;  %v7401_v27 = vadd.f32 %v13857_v21, %v7014_v63  ;;  %v19781_v63 = vld [vmem:[#allocation79_spill] sm:$0xff]  ;;  %v7015_v55 = vadd.f32 %v19782_v53, %v6628_v43  ;;  %v17664_v44 = vpop.f32.mrf.mxu0 }
 0x3b7   : > { %v7265_v33 = vpop.f32.mrf.mxu1  ;;  %v6245_v56 = vadd.f32 %v19781_v63, %v19780_v15  ;;  %v17679_v43 = vld [vmem:[#allocation4 + $0x21] sm:$0xff]  ;;  %v7018_v20 = vadd.f32 %v19787_v22, %v6631_v47 }
 0x3b8   : > { %7559 = vst.msk [vmem:[#allocation4 + $0x51] sm:$0xff] %vm7497_vm5, %v7470_v42  ;;  %v7469_v4 = vmax.f32 %v7437_v61, 0.0  ;;  %v7440_v38 = vadd.f32 %v17569_v23, %v7401_v27  ;;  %v7400_v1 = vadd.f32 %v7265_v33, %v7013_v37  ;;  %v19784_v21 = vld [vmem:[#allocation75_spill] sm:$0xff]  ;;  %v19785_v37 = vld [vmem:[#allocation46_spill] sm:$0xff]  ;;  %v17698_v46 = vpop.f32.mrf.mxu0 }
 0x3b9   : > { %v13860_v59 = vpop.f32.mrf.mxu1  ;;  %v17666_v29 = vld [vmem:[#allocation4 + $0x19] sm:$0xff]  ;;  %v6244_v45 = vadd.f32 %v19784_v21, %v5857_v58  ;;  %v5859_v42 = vadd.f32 %v19785_v37, %v5472_v48  ;;  %v19788_v58 = vld [vmem:[#allocation65_spill] sm:$0xff]  ;;  %v19797_v37 = vld [vmem:[#allocation32_spill] sm:$0xff] }
 0x3ba   : > { %v17668_v18 = vld [vmem:[#allocation4 + $0x18] sm:$0xff]  ;;  %v17670_v28 = vld [vmem:[#allocation4 + $0x20] sm:$0xff]  ;;  %7558 = vst.msk [vmem:[#allocation4 + $0x49] sm:$0xff] %vm7497_vm5, %v7469_v4  ;;  %v7472_v0 = vmax.f32 %v7440_v38, 0.0  ;;  %v7439_v25 = vadd.f32 %v17569_v23, %v7400_v1  ;;  %v7403_v11 = vadd.f32 %v13860_v59, %v7016_v51  ;;  %13901 = vmatprep.mubr.msk.f32.mxu0 %vm7497_vm5, %v17666_v29  ;;  %v19789_v51 = vld [vmem:[#allocation37_spill] sm:$0xff]  ;;  %v5089_v4 = vadd.f32 %v19790_v17, %v17580_v9 }
 0x3bb   : > { %13953 = vmatprep.mubr.msk.f32.mxu1 %vm7497_vm5, %v17668_v18  ;;  %v19786_v61 = vld [vmem:[#allocation55_spill] sm:$0xff]  ;;  %v7275_v34 = vpop.f32.mrf.mxu1  ;;  %13902 = vmatmul.mubr.msk.f32.gmra.mxu0 %vm7497_vm5, %v17679_v43  ;;  %v5474_v33 = vadd.f32 %v19789_v51, %v19788_v58  ;;  %v19791_v38 = vld [vmem:[#allocation41_spill] sm:$0xff]  ;;  %v6632_v5 = vadd.f32 %v19793_v8, %v6244_v45 }
 0x3bc   : > { %v6633_v27 = vadd.f32 %v19786_v61, %v6245_v56  ;;  %13954 = vmatmul.mubr.msk.f32.gmra.mxu1 %vm7497_vm5, %v17670_v28  ;;  %7561 = vst.msk [vmem:[#allocation4 + $0x69] sm:$0xff] %vm7497_vm5, %v7472_v0  ;;  %v7471_v57 = vmax.f32 %v7439_v25, 0.0  ;;  %v7442_v31 = vadd.f32 %v17569_v23, %v7403_v11  ;;  %v7402_v41 = vadd.f32 %v7275_v34, %v7015_v55  ;;  %v19792_v1 = vld [vmem:[#allocation81_spill] sm:$0xff]  ;;  %v19794_v56 = vld [vmem:[#allocation98_spill] sm:$0xff]  ;;  %v19803_v8 = vld [vmem:[#allocation31_spill] sm:$0xff] }
 0x3bd   : > { %v6247_v54 = vadd.f32 %v19792_v1, %v19791_v38  ;;  %v13863_v47 = vpop.f32.mrf.mxu1  ;;  %v17700_v48 = vld [vmem:[#allocation4 + $0x31] sm:$0xff]  ;;  %v7017_v53 = vadd.f32 %v19794_v56, %v6630_v26  ;;  %v17713_v12 = vld [vmem:[#allocation4 + $0x39] sm:$0xff]  ;;  %v7019_v51 = vadd.f32 %v17525_v7, %v6632_v5 }
 0x3be   : > { %v17702_v15 = vld [vmem:[#allocation4 + $0x30] sm:$0xff]  ;;  %v17704_v63 = vld [vmem:[#allocation4 + $0x38] sm:$0xff]  ;;  %7560 = vst.msk [vmem:[#allocation4 + $0x61] sm:$0xff] %vm7497_vm5, %v7471_v57  ;;  %v7474_v55 = vmax.f32 %v7442_v31, 0.0  ;;  %v7441_v9 = vadd.f32 %v17569_v23, %v7402_v41  ;;  %v7405_v59 = vadd.f32 %v13863_v47, %v7018_v20  ;;  %13904 = vmatprep.mubr.msk.f32.mxu0 %vm7497_vm5, %v17700_v48  ;;  %v7020_v26 = vadd.f32 %v17518_v2, %v6633_v27  ;;  %v19800_v27 = vld [vmem:[#allocation83_spill] sm:$0xff] }
 0x3bf   : > { %13956 = vmatprep.mubr.msk.f32.mxu1 %vm7497_vm5, %v17702_v15  ;;  %v19795_v0 = vld [vmem:[#allocation77_spill] sm:$0xff]  ;;  %v7285_v45 = vpop.f32.mrf.mxu1  ;;  %13905 = vmatmul.mubr.msk.f32.gmra.mxu0 %vm7497_vm5, %v17713_v12  ;;  %v6635_v61 = vadd.f32 %v19797_v37, %v6247_v54  ;;  %v19799_v31 = vld [vmem:[#allocation10_spill] sm:$0xff] }
 0x3c0   : > { %v6246_v25 = vadd.f32 %v19795_v0, %v5859_v42  ;;  %v19796_v11 = vld [vmem:[#allocation21_spill] sm:$0xff]  ;;  %13957 = vmatmul.mubr.msk.f32.gmra.mxu1 %vm7497_vm5, %v17704_v63  ;;  %7563 = vst.msk [vmem:[#allocation4 + $0x81] sm:$0xff] %vm7497_vm5, %v7474_v55  ;;  %v7473_v34 = vmax.f32 %v7441_v9, 0.0  ;;  %v7444_v22 = vadd.f32 %v17569_v23, %v7405_v59  ;;  %v7404_v20 = vadd.f32 %v7285_v45, %v7017_v53  ;;  %v19798_v42 = vld [vmem:[#allocation72_spill] sm:$0xff]  ;;  %v19804_v5 = vld [vmem:[#allocation78_spill] sm:$0xff] }
 0x3c1   : > { %v5861_v21 = vadd.f32 %v19796_v11, %v5474_v33  ;;  %v5476_v57 = vadd.f32 %v19798_v42, %v5089_v4  ;;  %v5091_v2 = vadd.f32 %v19799_v31, %v17593_v30  ;;  %v19801_v41 = vld [vmem:[#allocation45_spill] sm:$0xff]  ;;  %v17731_v33 = vpop.f32.mrf.mxu0  ;;  %v13866_v17 = vpop.f32.mrf.mxu1  ;;  %v17735_v1 = vld [vmem:[#allocation4 + $0x48] sm:$0xff]  ;;  %v19806_v59 = vld [vmem:[#allocation90_spill] sm:$0xff]  ;;  %v7022_v11 = vadd.f32 %v17533_v60, %v6635_v61 }
 0x3c2   : > { %v6249_v58 = vadd.f32 %v19801_v41, %v19800_v27  ;;  %v17733_v38 = vld [vmem:[#allocation4 + $0x49] sm:$0xff]  ;;  %v6634_v47 = vadd.f32 %v19803_v8, %v6246_v25  ;;  %7562 = vst.msk [vmem:[#allocation4 + $0x79] sm:$0xff] %vm7497_vm5, %v7473_v34  ;;  %v7476_v4 = vmax.f32 %v7444_v22, 0.0  ;;  %v7443_v30 = vadd.f32 %v17569_v23, %v7404_v20  ;;  %13959 = vmatprep.mubr.msk.f32.mxu1 %vm7497_vm5, %v17735_v1  ;;  %v17746_v7 = vld [vmem:[#allocation4 + $0x51] sm:$0xff]  ;;  %v19808_v22 = vld [vmem:[#allocation67_spill] sm:$0xff] }
 0x3c3   : > { %v17737_v54 = vld [vmem:[#allocation4 + $0x50] sm:$0xff]  ;;  %v7407_v56 = vadd.f32 %v13866_v17, %v7020_v26  ;;  %13907 = vmatprep.mubr.msk.f32.mxu0 %vm7497_vm5, %v17733_v38  ;;  %v6248_v53 = vadd.f32 %v19804_v5, %v5861_v21  ;;  %v7295_v25 = vpop.f32.mrf.mxu1  ;;  %v19807_v21 = vld [vmem:[#allocation20_spill] sm:$0xff]  ;;  %v5093_v20 = vadd.f32 %v19808_v22, %v17603_v6  ;;  %v19811_v27 = vld [vmem:[#allocation91_spill] sm:$0xff] }
 0x3c4   : > { %19802 = vst [vmem:[#allocation64_spill] sm:$0xff] %v17737_v54  ;;  %v19805_v55 = vld [vmem:[#allocation49_spill] sm:$0xff]  ;;  %v6637_v0 = vadd.f32 %v19806_v59, %v6249_v58  ;;  %13908 = vmatmul.mubr.msk.f32.gmra.mxu0 %vm7497_vm5, %v17746_v7  ;;  %13960 = vmatmul.mubr.msk.f32.gmra.mxu1 %vm7497_vm5, %v17737_v54  ;;  %7565 = vst.msk [vmem:[#allocation4 + $0x99] sm:$0xff] %vm7497_vm5, %v7476_v4  ;;  %v7475_v26 = vmax.f32 %v7443_v30, 0.0  ;;  %v7406_v37 = vadd.f32 %v7295_v25, %v7019_v51  ;;  %v19809_v42 = vld [vmem:[#allocation44_spill] sm:$0xff]  ;;  %v17764_v58 = vpop.f32.mrf.mxu0 }
 0x3c5   : > { %v5863_v9 = vadd.f32 %v19805_v55, %v5476_v57  ;;  %v7446_v45 = vadd.f32 %v17569_v23, %v7407_v56  ;;  %v5478_v34 = vadd.f32 %v19807_v21, %v5091_v2  ;;  %v19810_v57 = vld [vmem:[#allocation85_spill] sm:$0xff]  ;;  %v6636_v41 = vadd.f32 %v19811_v27, %v6248_v53  ;;  %v13869_v17 = vpop.f32.mrf.mxu1  ;;  %v17766_v60 = vld [vmem:[#allocation4 + $0x61] sm:$0xff] }
 0x3c6   : > { %v6251_v31 = vadd.f32 %v19810_v57, %v19809_v42  ;;  %v17768_v61 = vld [vmem:[#allocation4 + $0x60] sm:$0xff]  ;;  %v17770_v8 = vld [vmem:[#allocation4 + $0x68] sm:$0xff]  ;;  %v7021_v51 = vadd.f32 %v17547_v50, %v6634_v47  ;;  %7564 = vst.msk [vmem:[#allocation4 + $0x91] sm:$0xff] %vm7497_vm5, %v7475_v26  ;;  %v7445_v6 = vadd.f32 %v17569_v23, %v7406_v37  ;;  %v7409_v4 = vadd.f32 %v13869_v17, %v7022_v11  ;;  %v19816_v59 = vld [vmem:[#allocation93_spill] sm:$0xff]  ;;  %v17797_v57 = vpop.f32.mrf.mxu0 }
 0x3c7   : > { %19812 = vst [vmem:[#allocation9_spill] sm:$0xff] %v17768_v61  ;;  %19813 = vst [vmem:[#allocation18_spill] sm:$0xff] %v17770_v8  ;;  %v7478_v2 = vmax.f32 %v7446_v45, 0.0  ;;  %13910 = vmatprep.mubr.msk.f32.mxu0 %vm7497_vm5, %v17766_v60  ;;  %13962 = vmatprep.mubr.msk.f32.mxu1 %vm7497_vm5, %v17768_v61  ;;  %v17779_v30 = vld [vmem:[#allocation4 + $0x69] sm:$0xff]  ;;  %v7024_v50 = vadd.f32 %v17564_v62, %v6637_v0  ;;  %v7305_v47 = vpop.f32.mrf.mxu1  ;;  %v19818_v21 = vld [vmem:[#allocation35_spill] sm:$0xff]  ;;  %v7023_v42 = vadd.f32 %v17587_v40, %v6636_v41 }
 0x3c8   : > { %v19814_v56 = vld [vmem:[#allocation80_spill] sm:$0xff]  ;;  %13911 = vmatmul.mubr.msk.f32.gmra.mxu0 %vm7497_vm5, %v17779_v30  ;;  %13963 = vmatmul.mubr.msk.f32.gmra.mxu1 %vm7497_vm5, %v17770_v8  ;;  %v6639_v25 = vadd.f32 %v19816_v59, %v6251_v31  ;;  %v7477_v11 = vmax.f32 %v7445_v6, 0.0  ;;  %v7448_v26 = vadd.f32 %v17569_v23, %v7409_v4  ;;  %v7408_v45 = vadd.f32 %v7305_v47, %v7021_v51  ;;  %v19819_v0 = vld [vmem:[#allocation82_spill] sm:$0xff]  ;;  %v19824_v41 = vld [vmem:[#allocation47_spill] sm:$0xff] }
 0x3c9   : > { %v6250_v5 = vadd.f32 %v19814_v56, %v5863_v9  ;;  %v19815_v53 = vld [vmem:[#allocation88_spill] sm:$0xff]  ;;  %7567 = vst.msk [vmem:[#allocation4 + $0xb1] sm:$0xff] %vm7497_vm5, %v7478_v2  ;;  %v19817_v9 = vld [vmem:[#allocation74_spill] sm:$0xff]  ;;  %v5095_v62 = vadd.f32 %v19818_v21, %v17617_v16  ;;  %v13872_v27 = vpop.f32.mrf.mxu1  ;;  %v17803_v2 = vld [vmem:[#allocation4 + $0x80] sm:$0xff] }
 0x3ca   : > { %v5865_v55 = vadd.f32 %v19815_v53, %v5478_v34  ;;  %v5480_v37 = vadd.f32 %v19817_v9, %v5093_v20  ;;  %v19820_v34 = vld [vmem:[#allocation48_spill] sm:$0xff]  ;;  %v17799_v31 = vld [vmem:[#allocation4 + $0x79] sm:$0xff]  ;;  %19822 = vst [vmem:[#allocation29_spill] sm:$0xff] %v17803_v2  ;;  %7566 = vst.msk [vmem:[#allocation4 + $0xa9] sm:$0xff] %vm7497_vm5, %v7477_v11  ;;  %v7480_v20 = vmax.f32 %v7448_v26, 0.0  ;;  %v7447_v16 = vadd.f32 %v17569_v23, %v7408_v45 }
 0x3cb   : > { %v6253_v22 = vadd.f32 %v19820_v34, %v19819_v0  ;;  %v17801_v17 = vld [vmem:[#allocation4 + $0x78] sm:$0xff]  ;;  %v7411_v4 = vadd.f32 %v13872_v27, %v7024_v50  ;;  %13913 = vmatprep.mubr.msk.f32.mxu0 %vm7497_vm5, %v17799_v31  ;;  %v17812_v40 = vld [vmem:[#allocation4 + $0x81] sm:$0xff]  ;;  %v7315_v9 = vpop.f32.mrf.mxu1  ;;  %v7026_v50 = vadd.f32 %v17610_v19, %v6639_v25 }
 0x3cc   : > { %19821 = vst [vmem:[#allocation59_spill] sm:$0xff] %v17801_v17  ;;  %v19823_v51 = vld [vmem:[#allocation94_spill] sm:$0xff]  ;;  %13965 = vmatprep.mubr.msk.f32.mxu1 %vm7497_vm5, %v17801_v17  ;;  %v6252_v56 = vadd.f32 %v19824_v41, %v5865_v55  ;;  %v19826_v59 = vld [vmem:[#allocation96_spill] sm:$0xff]  ;;  %13914 = vmatmul.mubr.msk.f32.gmra.mxu0 %vm7497_vm5, %v17812_v40  ;;  %7569 = vst.msk [vmem:[#allocation4 + $0xc9] sm:$0xff] %vm7497_vm5, %v7480_v20  ;;  %v7479_v11 = vmax.f32 %v7447_v16, 0.0  ;;  %v7410_v45 = vadd.f32 %v7315_v9, %v7023_v42 }
 0x3cd   : > { %v6638_v6 = vadd.f32 %v19823_v51, %v6250_v5  ;;  %v19825_v53 = vld [vmem:[#allocation86_spill] sm:$0xff]  ;;  %v6641_v5 = vadd.f32 %v19826_v59, %v6253_v22  ;;  %13966 = vmatmul.mubr.msk.f32.gmra.mxu1 %vm7497_vm5, %v17803_v2  ;;  %v7450_v26 = vadd.f32 %v17569_v23, %v7411_v4  ;;  %v19827_v55 = vld [vmem:[#allocation40_spill] sm:$0xff]  ;;  %v19831_v51 = vld [vmem:[#allocation97_spill] sm:$0xff]  ;;  %v13875_v59 = vpop.f32.mrf.mxu1 }
 0x3ce   : > { %v5867_v47 = vadd.f32 %v19825_v53, %v5480_v37  ;;  %v5482_v21 = vadd.f32 %v19827_v55, %v5095_v62  ;;  %v19828_v37 = vld [vmem:[#allocation69_spill] sm:$0xff]  ;;  %v19829_v34 = vld [vmem:[#allocation50_spill] sm:$0xff]  ;;  %v19830_v22 = vld [vmem:[#allocation84_spill] sm:$0xff]  ;;  %v6640_v41 = vadd.f32 %v19831_v51, %v6252_v56  ;;  %v17830_v53 = vpop.f32.mrf.mxu0  ;;  %7568 = vst.msk [vmem:[#allocation4 + $0xc1] sm:$0xff] %vm7497_vm5, %v7479_v11  ;;  %v7413_v16 = vadd.f32 %v13875_v59, %v7026_v50 }
 0x3cf   : > { %v5097_v0 = vadd.f32 %v19828_v37, %v17633_v13  ;;  %v6255_v27 = vadd.f32 %v19830_v22, %v19829_v34  ;;  %v17832_v19 = vld [vmem:[#allocation4 + $0x91] sm:$0xff]  ;;  %v7025_v42 = vadd.f32 %v17640_v14, %v6638_v6  ;;  %v7482_v62 = vmax.f32 %v7450_v26, 0.0  ;;  %v17845_v4 = vld [vmem:[#allocation4 + $0x99] sm:$0xff]  ;;  %v7325_v6 = vpop.f32.mrf.mxu1 }
 0x3d0   : > { %v17834_v25 = vld [vmem:[#allocation4 + $0x90] sm:$0xff]  ;;  %v17836_v20 = vld [vmem:[#allocation4 + $0x98] sm:$0xff]  ;;  %v7449_v13 = vadd.f32 %v17569_v23, %v7410_v45  ;;  %13916 = vmatprep.mubr.msk.f32.mxu0 %vm7497_vm5, %v17832_v19  ;;  %19834 = vst [vmem:[#allocation30_spill] sm:$0xff] %v17845_v4  ;;  %v19835_v56 = vld [vmem:[#allocation87_spill] sm:$0xff]  ;;  %v7028_v14 = vadd.f32 %v17664_v44, %v6641_v5  ;;  %v7452_v45 = vadd.f32 %v17569_v23, %v7413_v16 }
 0x3d1   : > { %19832 = vst [vmem:[#allocation15_spill] sm:$0xff] %v17834_v25  ;;  %19833 = vst [vmem:[#allocation66_spill] sm:$0xff] %v17836_v20  ;;  %13968 = vmatprep.mubr.msk.f32.mxu1 %vm7497_vm5, %v17834_v25  ;;  %v6254_v9 = vadd.f32 %v19835_v56, %v5867_v47  ;;  %v19836_v55 = vld [vmem:[#allocation51_spill] sm:$0xff]  ;;  %13917 = vmatmul.mubr.msk.f32.gmra.mxu0 %vm7497_vm5, %v17845_v4  ;;  %v7412_v34 = vadd.f32 %v7325_v6, %v7025_v42  ;;  %v19840_v5 = vld [vmem:[#allocation26_spill] sm:$0xff]  ;;  %v13878_v4 = vpop.f32.mrf.mxu1 }
 0x3d2   : > { %v5869_v37 = vadd.f32 %v19836_v55, %v5482_v21  ;;  %13969 = vmatmul.mubr.msk.f32.gmra.mxu1 %vm7497_vm5, %v17836_v20  ;;  %v19837_v50 = vld [vmem:[#allocation99_spill] sm:$0xff]  ;;  %7571 = vst.msk [vmem:[#allocation4 + $0xe1] sm:$0xff] %vm7497_vm5, %v7482_v62  ;;  %v7481_v26 = vmax.f32 %v7449_v13, 0.0  ;;  %v19839_v21 = vld [vmem:[#allocation76_spill] sm:$0xff]  ;;  %v19841_v51 = vld [vmem:[#allocation89_spill] sm:$0xff]  ;;  %v7027_v56 = vadd.f32 %v17698_v46, %v6640_v41  ;;  %v17863_v55 = vpop.f32.mrf.mxu0  ;;  %v7415_v6 = vadd.f32 %v13878_v4, %v7028_v14 }
 0x3d3   : > { %v6643_v11 = vadd.f32 %v19837_v50, %v6255_v27  ;;  %v19838_v47 = vld [vmem:[#allocation39_spill] sm:$0xff]  ;;  %v5099_v44 = vadd.f32 %v19839_v21, %v17647_v52  ;;  %v6257_v59 = vadd.f32 %v19841_v51, %v19840_v5  ;;  %v17865_v27 = vld [vmem:[#allocation4 + $0xa9] sm:$0xff]  ;;  %v7451_v52 = vadd.f32 %v17569_v23, %v7412_v34  ;;  %v17878_v46 = vld [vmem:[#allocation4 + $0xb1] sm:$0xff]  ;;  %v7335_v5 = vpop.f32.mrf.mxu1 }
 0x3d4   : > { %v5484_v22 = vadd.f32 %v19838_v47, %v5097_v0  ;;  %19842 = vst [vmem:[#allocation63_spill] sm:$0xff] %v17865_v27  ;;  %v17867_v62 = vld [vmem:[#allocation4 + $0xa8] sm:$0xff]  ;;  %v17869_v13 = vld [vmem:[#allocation4 + $0xb0] sm:$0xff]  ;;  %7570 = vst.msk [vmem:[#allocation4 + $0xd9] sm:$0xff] %vm7497_vm5, %v7481_v26  ;;  %v7484_v0 = vmax.f32 %v7452_v45, 0.0  ;;  %13919 = vmatprep.mubr.msk.f32.mxu0 %vm7497_vm5, %v17865_v27  ;;  %v7454_v26 = vadd.f32 %v17569_v23, %v7415_v6 }
 0x3d5   : > { %19843 = vst [vmem:[#allocation17_spill] sm:$0xff] %v17867_v62  ;;  %19844 = vst [vmem:[#allocation73_spill] sm:$0xff] %v17869_v13  ;;  %v19845_v42 = vld [vmem:[#allocation100_spill] sm:$0xff]  ;;  %13971 = vmatprep.mubr.msk.f32.mxu1 %vm7497_vm5, %v17867_v62  ;;  %v19848_v47 = vld [vmem:[#allocation6_spill] sm:$0xff]  ;;  %13920 = vmatmul.mubr.msk.f32.gmra.mxu0 %vm7497_vm5, %v17878_v46  ;;  %v7030_v4 = vadd.f32 %v17731_v33, %v6643_v11  ;;  %v7483_v14 = vmax.f32 %v7451_v52, 0.0  ;;  %v7414_v45 = vadd.f32 %v7335_v5, %v7027_v56 }
 0x3d6   : > { %v6642_v16 = vadd.f32 %v19845_v42, %v6254_v9  ;;  %19846 = vst [vmem:[#allocation43_spill] sm:$0xff] %v17878_v46  ;;  %v19847_v41 = vld [vmem:[#allocation8_spill] sm:$0xff]  ;;  %v5871_v21 = vadd.f32 %v19848_v47, %v5484_v22  ;;  %v6645_v9 = vadd.f32 %v17520_v39, %v6257_v59  ;;  %13972 = vmatmul.mubr.msk.f32.gmra.mxu1 %vm7497_vm5, %v17869_v13  ;;  %7573 = vst.msk [vmem:[#allocation4 + $0xf9] sm:$0xff] %vm7497_vm5, %v7484_v0  ;;  %v19850_v22 = vld [vmem:[#allocation71_spill] sm:$0xff]  ;;  %v6978_v47 = vpop.f32.mrf.mxu0  ;;  %v13881_v46 = vpop.f32.mrf.mxu1 }
 0x3d7   : > { %v6256_v50 = vadd.f32 %v19847_v41, %v5869_v37  ;;  %v19849_v37 = vld [vmem:[#allocation19_spill] sm:$0xff]  ;;  %v5101_v39 = vadd.f32 %v19850_v22, %v17657_v3  ;;  %v19851_v51 = vld [vmem:[#allocation5_spill] sm:$0xff]  ;;  %v19852_v59 = vld [vmem:[#allocation58_spill] sm:$0xff]  ;;  %7572 = vst.msk [vmem:[#allocation4 + $0xf1] sm:$0xff] %vm7497_vm5, %v7483_v14  ;;  %v7453_v3 = vadd.f32 %v17569_v23, %v7414_v45  ;;  %v7417_v0 = vadd.f32 %v13881_v46, %v7030_v4 }
 0x3d8   : > { %v5486_v34 = vadd.f32 %v19849_v37, %v5099_v44  ;;  %v6259_v42 = vadd.f32 %v19852_v59, %v19851_v51  ;;  %v17896_v27 = vld [vmem:[#allocation4 + $0xc1] sm:$0xff]  ;;  %v7029_v56 = vadd.f32 %v17764_v58, %v6642_v16  ;;  %v7486_v44 = vmax.f32 %v7454_v26, 0.0  ;;  %v7345_v16 = vpop.f32.mrf.mxu1  ;;  %v19857_v46 = vld [vmem:[#allocation101_spill] sm:$0xff]  ;;  %v19860_v22 = vld [vmem:[#allocation54_spill] sm:$0xff]  ;;  %v13840_v51 = vpop.f32.mrf.mxu0 }
 0x3d9   : > { %v6644_v41 = vadd.f32 %v17523_v32, %v6256_v50  ;;  %v17898_v33 = vld [vmem:[#allocation4 + $0xc0] sm:$0xff]  ;;  %v17900_v11 = vld [vmem:[#allocation4 + $0xc8] sm:$0xff]  ;;  %13922 = vmatprep.mubr.msk.f32.mxu0 %vm7497_vm5, %v17896_v27  ;;  %v19856_v50 = vld [vmem:[#allocation13_spill] sm:$0xff]  ;;  %v7032_v58 = vadd.f32 %v17797_v57, %v6645_v9  ;;  %v7485_v14 = vmax.f32 %v7453_v3, 0.0  ;;  %v7456_v26 = vadd.f32 %v17569_v23, %v7417_v0 }
 0x3da   : > { %19853 = vst [vmem:[#allocation53_spill] sm:$0xff] %v17898_v33  ;;  %19854 = vst [vmem:[#allocation27_spill] sm:$0xff] %v17900_v11  ;;  %13974 = vmatprep.mubr.msk.f32.mxu1 %vm7497_vm5, %v17898_v33  ;;  %v17909_v32 = vld [vmem:[#allocation4 + $0xc9] sm:$0xff]  ;;  %v19855_v52 = vld [vmem:[#allocation7_spill] sm:$0xff]  ;;  %v5873_v5 = vadd.f32 %v19856_v50, %v5486_v34  ;;  %v6647_v4 = vadd.f32 %v19857_v46, %v6259_v42  ;;  %v7416_v45 = vadd.f32 %v7345_v16, %v7029_v56  ;;  %v13884_v59 = vpop.f32.mrf.mxu1 }
 0x3db   : > { %v6258_v6 = vadd.f32 %v19855_v52, %v5871_v21  ;;  %13923 = vmatmul.mubr.msk.f32.gmra.mxu0 %vm7497_vm5, %v17909_v32  ;;  %13975 = vmatmul.mubr.msk.f32.gmra.mxu1 %vm7497_vm5, %v17900_v11  ;;  %7575 = vst.msk [vmem:[#allocation4 + $0x111] sm:$0xff] %vm7497_vm5, %v7486_v44  ;;  %v19858_v21 = vld [vmem:[#allocation38_spill] sm:$0xff]  ;;  %v19859_v34 = vld [vmem:[#allocation23_spill] sm:$0xff]  ;;  %v7031_v9 = vadd.f32 %v17830_v53, %v6644_v41  ;;  %7574 = vst.msk [vmem:[#allocation4 + $0x109] sm:$0xff] %vm7497_vm5, %v7485_v14  ;;  %v7488_v56 = vmax.f32 %v7456_v26, 0.0 }
 0x3dc   : > { %v5488_v37 = vadd.f32 %v19858_v21, %v5101_v39  ;;  %v6261_v57 = vadd.f32 %v19860_v22, %v19859_v34  ;;  %v17925_v52 = vld [vmem:[#allocation4 + $0xd9] sm:$0xff]  ;;  %v7455_v39 = vadd.f32 %v17569_v23, %v7416_v45  ;;  %v7419_v0 = vadd.f32 %v13884_v59, %v7032_v58  ;;  %v17938_v53 = vld [vmem:[#allocation4 + $0xe1] sm:$0xff]  ;;  %v19864_v41 = vld [vmem:[#allocation25_spill] sm:$0xff]  ;;  %v7355_v34 = vpop.f32.mrf.mxu1 }
 0x3dd   : > { %v17927_v50 = vld [vmem:[#allocation4 + $0xd8] sm:$0xff]  ;;  %v17929_v42 = vld [vmem:[#allocation4 + $0xe0] sm:$0xff]  ;;  %13925 = vmatprep.mubr.msk.f32.mxu0 %vm7497_vm5, %v17925_v52  ;;  %v6260_v16 = vadd.f32 %v19864_v41, %v5873_v5  ;;  %v19865_v46 = vld [vmem:[#allocation52_spill] sm:$0xff]  ;;  %v7034_v58 = vadd.f32 %v17863_v55, %v6647_v4  ;;  %7577 = vst.msk [vmem:[#allocation4 + $0x129] sm:$0xff] %vm7497_vm5, %v7488_v56  ;;  %v7418_v45 = vadd.f32 %v7355_v34, %v7031_v9 }
 0x3de   : > { %19861 = vst [vmem:[#allocation34_spill] sm:$0xff] %v17927_v50  ;;  %19862 = vst [vmem:[#allocation61_spill] sm:$0xff] %v17929_v42  ;;  %v19863_v44 = vld [vmem:[#allocation102_spill] sm:$0xff]  ;;  %13977 = vmatprep.mubr.msk.f32.mxu1 %vm7497_vm5, %v17927_v50  ;;  %v5875_v21 = vadd.f32 %v19865_v46, %v5488_v37  ;;  %v7487_v14 = vmax.f32 %v7455_v39, 0.0  ;;  %v7458_v26 = vadd.f32 %v17569_v23, %v7419_v0  ;;  %v19866_v5 = vld [vmem:[#allocation16_spill] sm:$0xff]  ;;  %v13887_v59 = vpop.f32.mrf.mxu1 }
 0x3df   : > { %v6646_v3 = vadd.f32 %v19863_v44, %v6258_v6  ;;  %v6649_v6 = vadd.f32 %v17535_v35, %v6261_v57  ;;  %13926 = vmatmul.mubr.msk.f32.gmra.mxu0 %vm7497_vm5, %v17938_v53  ;;  %13978 = vmatmul.mubr.msk.f32.gmra.mxu1 %vm7497_vm5, %v17929_v42  ;;  %v19867_v22 = vld [vmem:[#allocation56_spill] sm:$0xff]  ;;  %v6648_v35 = vadd.f32 %v17541_v49, %v6260_v16  ;;  %v6988_v57 = vpop.f32.mrf.mxu0  ;;  %v17953_v44 = vld [vmem:[#allocation4 + $0xf1] sm:$0xff]  ;;  %v17965_v49 = vld [vmem:[#allocation4 + $0xf9] sm:$0xff] }
 0x3e0   : > { %v6263_v37 = vadd.f32 %v19867_v22, %v19866_v5  ;;  %v17955_v41 = vld [vmem:[#allocation4 + $0xf0] sm:$0xff]  ;;  %v17957_v46 = vld [vmem:[#allocation4 + $0xf8] sm:$0xff]  ;;  %7576 = vst.msk [vmem:[#allocation4 + $0x121] sm:$0xff] %vm7497_vm5, %v7487_v14  ;;  %v7490_v4 = vmax.f32 %v7458_v26, 0.0  ;;  %v7457_v56 = vadd.f32 %v17569_v23, %v7418_v45  ;;  %v7421_v9 = vadd.f32 %v13887_v59, %v7034_v58  ;;  %13928 = vmatprep.mubr.msk.f32.mxu0 %vm7497_vm5, %v17953_v44  ;;  %v19870_v39 = vld [vmem:[#allocation24_spill] sm:$0xff]  ;;  %v7365_v5 = vpop.f32.mrf.mxu1 }
 0x3e1   : > { %19868 = vst [vmem:[#allocation42_spill] sm:$0xff] %v17955_v41  ;;  %19869 = vst [vmem:[#allocation22_spill] sm:$0xff] %v17957_v46  ;;  %v7033_v55 = vadd.f32 %v6978_v47, %v6646_v3  ;;  %13980 = vmatprep.mubr.msk.f32.mxu1 %vm7497_vm5, %v17955_v41  ;;  %v6262_v0 = vadd.f32 %v19870_v39, %v5875_v21  ;;  %v7036_v16 = vadd.f32 %v13840_v51, %v6649_v6  ;;  %v13843_v34 = vpop.f32.mrf.mxu0 }
 0x3e2   : > { %v6651_v47 = vadd.f32 %v17549_v36, %v6263_v37  ;;  %7579 = vst.msk [vmem:[#allocation4 + $0x141] sm:$0xff] %vm7497_vm5, %v7490_v4  ;;  %v7489_v3 = vmax.f32 %v7457_v56, 0.0  ;;  %v7460_v58 = vadd.f32 %v17569_v23, %v7421_v9  ;;  %v7035_v26 = vadd.f32 %v6988_v57, %v6648_v35  ;;  %v13890_v45 = vpop.f32.mrf.mxu1  ;;  %v17975_v21 = vld [vmem:[#allocation4 + $0x109] sm:$0xff]  ;;  %v17988_v35 = vld [vmem:[#allocation4 + $0x111] sm:$0xff] }
 0x3e3   : > { %13929 = vmatmul.mubr.msk.f32.gmra.mxu0 %vm7497_vm5, %v17965_v49  ;;  %13981 = vmatmul.mubr.msk.f32.gmra.mxu1 %vm7497_vm5, %v17957_v46  ;;  %v7420_v14 = vadd.f32 %v7365_v5, %v7033_v55  ;;  %v17977_v51 = vld [vmem:[#allocation4 + $0x108] sm:$0xff]  ;;  %v17979_v6 = vld [vmem:[#allocation4 + $0x110] sm:$0xff]  ;;  %v6650_v22 = vadd.f32 %v17555_v10, %v6262_v0  ;;  %v7423_v37 = vadd.f32 %v13890_v45, %v7036_v16  ;;  %v6998_v57 = vpop.f32.mrf.mxu0 }
 0x3e4   : > { %19871 = vst [vmem:[#allocation57_spill] sm:$0xff] %v17977_v51  ;;  %19872 = vst [vmem:[#allocation28_spill] sm:$0xff] %v17979_v6  ;;  %v7492_v59 = vmax.f32 %v7460_v58, 0.0  ;;  %13931 = vmatprep.mubr.msk.f32.mxu0 %vm7497_vm5, %v17975_v21  ;;  %13983 = vmatprep.mubr.msk.f32.mxu1 %vm7497_vm5, %v17977_v51  ;;  %v7375_v55 = vpop.f32.mrf.mxu1  ;;  %v7038_v10 = vadd.f32 %v13843_v34, %v6651_v47  ;;  %v18008_v47 = vld [vmem:[#allocation4 + $0x129] sm:$0xff] }
 0x3e5   : > { %7578 = vst.msk [vmem:[#allocation4 + $0x139] sm:$0xff] %vm7497_vm5, %v7489_v3  ;;  %v7459_v36 = vadd.f32 %v17569_v23, %v7420_v14  ;;  %v7462_v56 = vadd.f32 %v17569_v23, %v7423_v37  ;;  %v7422_v9 = vadd.f32 %v7375_v55, %v7035_v26  ;;  %v7037_v3 = vadd.f32 %v6998_v57, %v6650_v22 }
 0x3e6   : > { %7581 = vst.msk [vmem:[#allocation4 + $0x159] sm:$0xff] %vm7497_vm5, %v7492_v59  ;;  %v13893_v39 = vpop.f32.mrf.mxu1 }
 0x3e7   : > { %13932 = vmatmul.mubr.msk.f32.gmra.mxu0 %vm7497_vm5, %v17988_v35  ;;  %13984 = vmatmul.mubr.msk.f32.gmra.mxu1 %vm7497_vm5, %v17979_v6  ;;  %v7491_v4 = vmax.f32 %v7459_v36, 0.0  ;;  %v17996_v0 = vld [vmem:[#allocation4 + $0x121] sm:$0xff]  ;;  %v7494_v58 = vmax.f32 %v7462_v56, 0.0  ;;  %v7461_v14 = vadd.f32 %v17569_v23, %v7422_v9  ;;  %v7425_v34 = vadd.f32 %v13893_v39, %v7038_v10 }
 0x3e8   : > { %v17998_v16 = vld [vmem:[#allocation4 + $0x120] sm:$0xff]  ;;  %v18000_v5 = vld [vmem:[#allocation4 + $0x128] sm:$0xff]  ;;  %13934 = vmatprep.mubr.msk.f32.mxu0 %vm7497_vm5, %v17996_v0  ;;  %v7385_v26 = vpop.f32.mrf.mxu1 }
 0x3e9   : > { %19873 = vst [vmem:[#allocation11_spill] sm:$0xff] %v17998_v16  ;;  %19874 = vst [vmem:[#allocation68_spill] sm:$0xff] %v18000_v5  ;;  %13986 = vmatprep.mubr.msk.f32.mxu1 %vm7497_vm5, %v17998_v16  ;;  %v7493_v45 = vmax.f32 %v7461_v14, 0.0  ;;  %v7464_v22 = vadd.f32 %v17569_v23, %v7425_v34  ;;  %v7424_v59 = vadd.f32 %v7385_v26, %v7037_v3 }
 0x3ea   : > { %7580 = vst.msk [vmem:[#allocation4 + $0x151] sm:$0xff] %vm7497_vm5, %v7491_v4  ;;  %7583 = vst.msk [vmem:[#allocation4 + $0x171] sm:$0xff] %vm7497_vm5, %v7494_v58  ;;  %v18028_v4 = vld [vmem:[#allocation4 + $0x141] sm:$0xff] }
 0x3eb   : > { %13935 = vmatmul.mubr.msk.f32.gmra.mxu0 %vm7497_vm5, %v18008_v47  ;;  %13987 = vmatmul.mubr.msk.f32.gmra.mxu1 %vm7497_vm5, %v18000_v5  ;;  %7582 = vst.msk [vmem:[#allocation4 + $0x169] sm:$0xff] %vm7497_vm5, %v7493_v45  ;;  %v7496_v55 = vmax.f32 %v7464_v22, 0.0  ;;  %v7463_v10 = vadd.f32 %v17569_v23, %v7424_v59  ;;  %v8297_v58 = vld [vmem:[#allocation4 + $0x2] sm:$0xff]  ;;  %v8298_v22 = vld [vmem:[#allocation4 + $0xa] sm:$0xff] }
 0x3ec   : > { %v18016_v36 = vld [vmem:[#allocation4 + $0x139] sm:$0xff] }
 0x3ed   : > { %v18018_v37 = vld [vmem:[#allocation4 + $0x138] sm:$0xff]  ;;  %v18020_v57 = vld [vmem:[#allocation4 + $0x140] sm:$0xff]  ;;  %13937 = vmatprep.mubr.msk.f32.mxu0 %vm7497_vm5, %v18016_v36  ;;  %7585 = vst.msk [vmem:[#allocation4 + $0x189] sm:$0xff] %vm7497_vm5, %v7496_v55  ;;  %v7495_v56 = vmax.f32 %v7463_v10, 0.0 }
 0x3ee   : > { %19875 = vst [vmem:[#allocation33_spill] sm:$0xff] %v18018_v37  ;;  %19876 = vst [vmem:[#allocation70_spill] sm:$0xff] %v18020_v57  ;;  %13989 = vmatprep.mubr.msk.f32.mxu1 %vm7497_vm5, %v18018_v37  ;;  %v18046_v3 = vld [vmem:[#allocation4 + $0x159] sm:$0xff] }
 0x3ef   : > { %13938 = vmatmul.mubr.msk.f32.gmra.mxu0 %vm7497_vm5, %v18028_v4  ;;  %13990 = vmatmul.mubr.msk.f32.gmra.mxu1 %vm7497_vm5, %v18020_v57  ;;  %7584 = vst.msk [vmem:[#allocation4 + $0x181] sm:$0xff] %vm7497_vm5, %v7495_v56  ;;  %v11919_v59 = vld [vmem:[%s19247_s5 + $0x40] sm:$0xff]  ;;  %v19881_v10 = vld [vmem:[#allocation14_spill] sm:$0xff] }
 0x3f0   : > { %v18077_v55 = vld [vmem:[#allocation4 + $0x1a] sm:$0xff] }
 0x3f1   : > { %v18035_v9 = vld [vmem:[#allocation4 + $0x151] sm:$0xff] }
 0x3f2   : > { %v18037_v23 = vld [vmem:[#allocation4 + $0x150] sm:$0xff]  ;;  %v18039_v39 = vld [vmem:[#allocation4 + $0x158] sm:$0xff]  ;;  %13940 = vmatprep.mubr.msk.f32.mxu0 %vm7497_vm5, %v18035_v9  ;;  %v18054_v34 = vld [vmem:[#allocation4 + $0x168] sm:$0xff] }
 0x3f3   : > { %19877 = vst [vmem:[#allocation12_spill] sm:$0xff] %v18037_v23  ;;  %19878 = vst [vmem:[#allocation79_spill] sm:$0xff] %v18039_v39  ;;  %13992 = vmatprep.mubr.msk.f32.mxu1 %vm7497_vm5, %v18037_v23  ;;  %13941 = vmatmul.mubr.msk.f32.gmra.mxu0 %vm7497_vm5, %v18046_v3  ;;  %v18052_v14 = vld [vmem:[#allocation4 + $0x169] sm:$0xff]  ;;  %v18062_v45 = vld [vmem:[#allocation4 + $0x171] sm:$0xff] }
 0x3f4   : > { %13993 = vmatmul.mubr.msk.f32.gmra.mxu1 %vm7497_vm5, %v18039_v39  ;;  %19879 = vst [vmem:[#allocation92_spill] sm:$0xff] %v18054_v34  ;;  %v18056_v26 = vld [vmem:[#allocation4 + $0x170] sm:$0xff]  ;;  %13943 = vmatprep.mubr.msk.f32.mxu0 %vm7497_vm5, %v18052_v14  ;;  %19880 = vst [vmem:[#allocation60_spill] sm:$0xff] %v18062_v45 }
 0x3f5   : > { %13995 = vmatprep.mubr.msk.f32.mxu1 %vm7497_vm5, %v18054_v34 }
 0x3f7   : > { %13944 = vmatmul.mubr.msk.f32.gmra.mxu0 %vm7497_vm5, %v18062_v45  ;;  %v18086_v45 = vld [vmem:[#allocation4 + $0x22] sm:$0xff] }
 0x3f8   : > { %13996 = vmatmul.mubr.msk.f32.gmra.mxu1 %vm7497_vm5, %v18056_v26  ;;  %14002 = vmatprep.mubr.msk.f32.mxu0 %vm7497_vm5, %v8297_v58 }
 0x3f9   : > { %14054 = vmatprep.mubr.msk.f32.mxu1 %vm7497_vm5, %v17668_v18 }
 0x3fb   : > { %14003 = vmatmul.mubr.msk.f32.vlgmr.msra.gmra.mxu0 %vm7497_vm5, %v8298_v22  ;;  %v18095_v22 = vld [vmem:[%s19247_s5 + $0x68] sm:$0xff] }
 0x3fc   : > { %14055 = vmatmul.mubr.msk.f32.vlgmr.msra.gmra.mxu1 %vm7497_vm5, %v17670_v28  ;;  %14103 = vmatpush3.msra.mxu0 %v19881_v10  ;;  %v11953_v28 = vld [vmem:[%s19247_s5 + $0x50] sm:$0xff] }
 0x3fd   : > { %14005 = vmatprep.mubr.msk.f32.mxu0 %vm7497_vm5, %v18077_v55  ;;  %14057 = vmatprep.mubr.msk.f32.mxu1 %vm7497_vm5, %v17702_v15  ;;  %v18101_v10 = vld [vmem:[#allocation4 + $0x32] sm:$0xff] }
 0x3fe   : > { %v13900_v18 = vpop.f32.mrf.mxu0  ;;  %14104 = vmatprep.subr.mxu0 %v11919_v59  ;;  %14155 = vmatpush3.msra.mxu1 %v17625_v24  ;;  %v18108_v24 = vld [vmem:[#allocation4 + $0x3a] sm:$0xff] }
 0x3ff   : > { %14105 = vmatpush3.msra.mxu0 %v11919_v59  ;;  %14156 = vmatprep.subr.mxu1 %v11953_v28  ;;  %v18113_v59 = vld [vmem:[%s19247_s5 + $0x78] sm:$0xff] }
 0x400   : > { %14006 = vmatmul.mubr.msk.f32.gmra.mxu0 %vm7497_vm5, %v18086_v45  ;;  %14058 = vmatmul.mubr.msk.f32.gmra.mxu1 %vm7497_vm5, %v17704_v63 }
 0x401   : > { %v13952_v56 = vpop.f32.mrf.mxu1  ;;  %14008 = vmatprep.mubr.msk.f32.mxu0 %vm7497_vm5, %v18101_v10  ;;  %14060 = vmatprep.mubr.msk.f32.mxu1 %vm7497_vm5, %v17735_v1 }
 0x402   : > { %v18084_v58 = vadd.f32 %v13952_v56, %v13900_v18  ;;  %14206 = vmatprep.subr.mxu0 %v18095_v22  ;;  %14157 = vmatpush3.msra.mxu1 %v11953_v28  ;;  %v18119_v18 = vld [vmem:[#allocation4 + $0x4a] sm:$0xff]  ;;  %v18126_v56 = vld [vmem:[#allocation4 + $0x52] sm:$0xff]  ;;  %v18132_v28 = vld [vmem:[#allocation4 + $0x62] sm:$0xff] }
 0x403   : > { %14258 = vmatprep.subr.mxu1 %v18113_v59 }
 0x404   : > { %19882 = vst [vmem:[#allocation75_spill] sm:$0xff] %v18084_v58  ;;  %14009 = vmatmul.mubr.msk.f32.gmra.mxu0 %vm7497_vm5, %v18108_v24  ;;  %14061 = vmatmul.mubr.msk.f32.gmra.mxu1 %vm7497_vm5, %v17737_v54  ;;  %v18138_v58 = vld [vmem:[#allocation4 + $0x6a] sm:$0xff]  ;;  %v18266_v54 = vld [vmem:[#allocation4 + $0x180] sm:$0xff] }
 0x405   : > { %14011 = vmatprep.mubr.msk.f32.mxu0 %vm7497_vm5, %v18119_v18  ;;  %14063 = vmatprep.mubr.msk.f32.mxu1 %vm7497_vm5, %v17768_v61  ;;  %v18144_v61 = vld [vmem:[#allocation4 + $0x7a] sm:$0xff]  ;;  %19883 = vst [vmem:[#allocation46_spill] sm:$0xff] %v18266_v54 }
 0x408   : > { %14012 = vmatmul.mubr.msk.f32.gmra.mxu0 %vm7497_vm5, %v18126_v56  ;;  %14064 = vmatmul.mubr.msk.f32.gmra.mxu1 %vm7497_vm5, %v17770_v8  ;;  %v18150_v8 = vld [vmem:[#allocation4 + $0x82] sm:$0xff] }
 0x409   : > { %14014 = vmatprep.mubr.msk.f32.mxu0 %vm7497_vm5, %v18132_v28  ;;  %14066 = vmatprep.mubr.msk.f32.mxu1 %vm7497_vm5, %v17801_v17  ;;  %v18156_v17 = vld [vmem:[#allocation4 + $0x92] sm:$0xff] }
 0x40c   : > { %14015 = vmatmul.mubr.msk.f32.gmra.mxu0 %vm7497_vm5, %v18138_v58  ;;  %14067 = vmatmul.mubr.msk.f32.gmra.mxu1 %vm7497_vm5, %v17803_v2  ;;  %v18162_v2 = vld [vmem:[#allocation4 + $0x9a] sm:$0xff] }
 0x40d   : > { %14017 = vmatprep.mubr.msk.f32.mxu0 %vm7497_vm5, %v18144_v61  ;;  %14069 = vmatprep.mubr.msk.f32.mxu1 %vm7497_vm5, %v17834_v25  ;;  %v18168_v25 = vld [vmem:[#allocation4 + $0xaa] sm:$0xff] }
 0x410   : > { %14018 = vmatmul.mubr.msk.f32.gmra.mxu0 %vm7497_vm5, %v18150_v8  ;;  %14070 = vmatmul.mubr.msk.f32.gmra.mxu1 %vm7497_vm5, %v17836_v20  ;;  %v18174_v20 = vld [vmem:[#allocation4 + $0xb2] sm:$0xff] }
 0x411   : > { %14020 = vmatprep.mubr.msk.f32.mxu0 %vm7497_vm5, %v18156_v17  ;;  %14072 = vmatprep.mubr.msk.f32.mxu1 %vm7497_vm5, %v17867_v62  ;;  %v18180_v62 = vld [vmem:[#allocation4 + $0xc2] sm:$0xff] }
 0x414   : > { %14021 = vmatmul.mubr.msk.f32.gmra.mxu0 %vm7497_vm5, %v18162_v2  ;;  %14073 = vmatmul.mubr.msk.f32.gmra.mxu1 %vm7497_vm5, %v17869_v13  ;;  %v18186_v13 = vld [vmem:[#allocation4 + $0xca] sm:$0xff] }
 0x415   : > { %14023 = vmatprep.mubr.msk.f32.mxu0 %vm7497_vm5, %v18168_v25  ;;  %14075 = vmatprep.mubr.msk.f32.mxu1 %vm7497_vm5, %v17898_v33  ;;  %v18192_v33 = vld [vmem:[#allocation4 + $0xda] sm:$0xff] }
 0x418   : > { %14024 = vmatmul.mubr.msk.f32.gmra.mxu0 %vm7497_vm5, %v18174_v20  ;;  %14076 = vmatmul.mubr.msk.f32.gmra.mxu1 %vm7497_vm5, %v17900_v11  ;;  %v18198_v11 = vld [vmem:[#allocation4 + $0xe2] sm:$0xff] }
 0x419   : > { %14026 = vmatprep.mubr.msk.f32.mxu0 %vm7497_vm5, %v18180_v62  ;;  %14078 = vmatprep.mubr.msk.f32.mxu1 %vm7497_vm5, %v17927_v50  ;;  %v18204_v50 = vld [vmem:[#allocation4 + $0xf2] sm:$0xff] }
 0x41c   : > { %14027 = vmatmul.mubr.msk.f32.gmra.mxu0 %vm7497_vm5, %v18186_v13  ;;  %14079 = vmatmul.mubr.msk.f32.gmra.mxu1 %vm7497_vm5, %v17929_v42  ;;  %v18210_v42 = vld [vmem:[#allocation4 + $0xfa] sm:$0xff] }
 0x41d   : > { %14029 = vmatprep.mubr.msk.f32.mxu0 %vm7497_vm5, %v18192_v33  ;;  %14081 = vmatprep.mubr.msk.f32.mxu1 %vm7497_vm5, %v17955_v41  ;;  %v18216_v41 = vld [vmem:[#allocation4 + $0x10a] sm:$0xff] }
 0x420   : > { %14030 = vmatmul.mubr.msk.f32.gmra.mxu0 %vm7497_vm5, %v18198_v11  ;;  %14082 = vmatmul.mubr.msk.f32.gmra.mxu1 %vm7497_vm5, %v17957_v46  ;;  %v18222_v46 = vld [vmem:[#allocation4 + $0x112] sm:$0xff] }
 0x421   : > { %14032 = vmatprep.mubr.msk.f32.mxu0 %vm7497_vm5, %v18204_v50  ;;  %14084 = vmatprep.mubr.msk.f32.mxu1 %vm7497_vm5, %v17977_v51  ;;  %v18228_v51 = vld [vmem:[#allocation4 + $0x122] sm:$0xff] }
 0x424   : > { %14033 = vmatmul.mubr.msk.f32.gmra.mxu0 %vm7497_vm5, %v18210_v42  ;;  %14085 = vmatmul.mubr.msk.f32.gmra.mxu1 %vm7497_vm5, %v17979_v6  ;;  %v18234_v6 = vld [vmem:[#allocation4 + $0x12a] sm:$0xff] }
 0x425   : > { %14035 = vmatprep.mubr.msk.f32.mxu0 %vm7497_vm5, %v18216_v41  ;;  %14087 = vmatprep.mubr.msk.f32.mxu1 %vm7497_vm5, %v17998_v16  ;;  %v18240_v16 = vld [vmem:[#allocation4 + $0x13a] sm:$0xff] }
 0x428   : > { %14036 = vmatmul.mubr.msk.f32.gmra.mxu0 %vm7497_vm5, %v18222_v46  ;;  %14088 = vmatmul.mubr.msk.f32.gmra.mxu1 %vm7497_vm5, %v18000_v5  ;;  %v18246_v5 = vld [vmem:[#allocation4 + $0x142] sm:$0xff] }
 0x429   : > { %14038 = vmatprep.mubr.msk.f32.mxu0 %vm7497_vm5, %v18228_v51  ;;  %14090 = vmatprep.mubr.msk.f32.mxu1 %vm7497_vm5, %v18018_v37  ;;  %v18252_v37 = vld [vmem:[#allocation4 + $0x152] sm:$0xff] }
 0x42c   : > { %14039 = vmatmul.mubr.msk.f32.gmra.mxu0 %vm7497_vm5, %v18234_v6  ;;  %14091 = vmatmul.mubr.msk.f32.gmra.mxu1 %vm7497_vm5, %v18020_v57  ;;  %v18258_v57 = vld [vmem:[#allocation4 + $0x15a] sm:$0xff] }
 0x42d   : > { %14041 = vmatprep.mubr.msk.f32.mxu0 %vm7497_vm5, %v18240_v16  ;;  %14093 = vmatprep.mubr.msk.f32.mxu1 %vm7497_vm5, %v18037_v23  ;;  %v18264_v23 = vld [vmem:[#allocation4 + $0x16a] sm:$0xff] }
 0x430   : > { %14042 = vmatmul.mubr.msk.f32.gmra.mxu0 %vm7497_vm5, %v18246_v5  ;;  %14094 = vmatmul.mubr.msk.f32.gmra.mxu1 %vm7497_vm5, %v18039_v39  ;;  %v18272_v39 = vld [vmem:[#allocation4 + $0x172] sm:$0xff] }
 0x431   : > { %14044 = vmatprep.mubr.msk.f32.mxu0 %vm7497_vm5, %v18252_v37  ;;  %14096 = vmatprep.mubr.msk.f32.mxu1 %vm7497_vm5, %v18054_v34  ;;  %v18274_v34 = vld [vmem:[#allocation4 + $0x188] sm:$0xff] }
 0x434   : > { %14045 = vmatmul.mubr.msk.f32.gmra.mxu0 %vm7497_vm5, %v18258_v57  ;;  %14097 = vmatmul.mubr.msk.f32.gmra.mxu1 %vm7497_vm5, %v18056_v26 }
 0x435   : > { %14047 = vmatprep.mubr.msk.f32.mxu0 %vm7497_vm5, %v18264_v23  ;;  %14099 = vmatprep.mubr.msk.f32.mxu1 %vm7497_vm5, %v18266_v54  ;;  %v11987_v54 = vld [vmem:[%s19247_s5 + $0x60] sm:$0xff] }
 0x438   : > { %14048 = vmatmul.mubr.msk.f32.gmra.mxu0 %vm7497_vm5, %v18272_v39  ;;  %14100 = vmatmul.mubr.msk.f32.gmra.mxu1 %vm7497_vm5, %v18274_v34 }
 0x439   : > { %14106 = vmatprep.mubr.msk.f32.mxu0 %vm7497_vm5, %v17666_v29  ;;  %14158 = vmatprep.mubr.msk.f32.mxu1 %vm7497_vm5, %v18077_v55  ;;  %v12021_v29 = vld [vmem:[%s19247_s5 + $0x70] sm:$0xff]  ;;  %v19886_v55 = vld [vmem:[#allocation43_spill] sm:$0xff] }
 0x43c   : > { %14107 = vmatmul.mubr.msk.f32.vlgmr.msra.gmra.mxu0 %vm7497_vm5, %v17679_v43  ;;  %14159 = vmatmul.mubr.msk.f32.vlgmr.msra.gmra.mxu1 %vm7497_vm5, %v18086_v45  ;;  %v18303_v43 = vld [vmem:[%s19247_s5 + $0x88] sm:$0xff]  ;;  %v19885_v45 = vld [vmem:[#allocation63_spill] sm:$0xff] }
 0x43d   : > { %14207 = vmatpush3.msra.mxu0 %v18095_v22  ;;  %14109 = vmatprep.mubr.msk.f32.mxu0 %vm7497_vm5, %v17700_v48 }
 0x43e   : > { %14161 = vmatprep.mubr.msk.f32.mxu1 %vm7497_vm5, %v18101_v10  ;;  %14208 = vmatprep.subr.mxu0 %v11987_v54 }
 0x43f   : > { %14209 = vmatpush3.msra.mxu0 %v11987_v54  ;;  %14259 = vmatpush3.msra.mxu1 %v18113_v59  ;;  %v19884_v54 = vld [vmem:[#allocation30_spill] sm:$0xff] }
 0x440   : > { %14110 = vmatmul.mubr.msk.f32.gmra.mxu0 %vm7497_vm5, %v17713_v12  ;;  %14162 = vmatmul.mubr.msk.f32.gmra.mxu1 %vm7497_vm5, %v18108_v24 }
 0x441   : > { %14112 = vmatprep.mubr.msk.f32.mxu0 %vm7497_vm5, %v17733_v38  ;;  %14164 = vmatprep.mubr.msk.f32.mxu1 %vm7497_vm5, %v18119_v18 }
 0x442   : > { %14260 = vmatprep.subr.mxu1 %v12021_v29  ;;  %14310 = vmatprep.subr.mxu0 %v18303_v43 }
 0x443   : > { %14261 = vmatpush3.msra.mxu1 %v12021_v29 }
 0x444   : > { %14113 = vmatmul.mubr.msk.f32.gmra.mxu0 %vm7497_vm5, %v17746_v7  ;;  %14165 = vmatmul.mubr.msk.f32.gmra.mxu1 %vm7497_vm5, %v18126_v56 }
 0x445   : > { %14115 = vmatprep.mubr.msk.f32.mxu0 %vm7497_vm5, %v17766_v60  ;;  %14167 = vmatprep.mubr.msk.f32.mxu1 %vm7497_vm5, %v18132_v28 }
 0x448   : > { %14116 = vmatmul.mubr.msk.f32.gmra.mxu0 %vm7497_vm5, %v17779_v30  ;;  %14168 = vmatmul.mubr.msk.f32.gmra.mxu1 %vm7497_vm5, %v18138_v58 }
 0x449   : > { %14118 = vmatprep.mubr.msk.f32.mxu0 %vm7497_vm5, %v17799_v31  ;;  %14170 = vmatprep.mubr.msk.f32.mxu1 %vm7497_vm5, %v18144_v61 }
 0x44c   : > { %14119 = vmatmul.mubr.msk.f32.gmra.mxu0 %vm7497_vm5, %v17812_v40  ;;  %14171 = vmatmul.mubr.msk.f32.gmra.mxu1 %vm7497_vm5, %v18150_v8 }
 0x44d   : > { %14121 = vmatprep.mubr.msk.f32.mxu0 %vm7497_vm5, %v17832_v19  ;;  %14173 = vmatprep.mubr.msk.f32.mxu1 %vm7497_vm5, %v18156_v17 }
 0x450   : > { %14122 = vmatmul.mubr.msk.f32.gmra.mxu0 %vm7497_vm5, %v19884_v54  ;;  %14174 = vmatmul.mubr.msk.f32.gmra.mxu1 %vm7497_vm5, %v18162_v2 }
 0x451   : > { %14124 = vmatprep.mubr.msk.f32.mxu0 %vm7497_vm5, %v19885_v45  ;;  %14176 = vmatprep.mubr.msk.f32.mxu1 %vm7497_vm5, %v18168_v25 }
 0x454   : > { %14125 = vmatmul.mubr.msk.f32.gmra.mxu0 %vm7497_vm5, %v19886_v55  ;;  %14177 = vmatmul.mubr.msk.f32.gmra.mxu1 %vm7497_vm5, %v18174_v20  ;;  %v19887_v20 = vld [vmem:[#allocation60_spill] sm:$0xff] }
 0x455   : > { %14127 = vmatprep.mubr.msk.f32.mxu0 %vm7497_vm5, %v17896_v27  ;;  %14179 = vmatprep.mubr.msk.f32.mxu1 %vm7497_vm5, %v18180_v62 }
 0x458   : > { %14128 = vmatmul.mubr.msk.f32.gmra.mxu0 %vm7497_vm5, %v17909_v32  ;;  %14180 = vmatmul.mubr.msk.f32.gmra.mxu1 %vm7497_vm5, %v18186_v13  ;;  %v18414_v13 = vld [vmem:[#allocation4 + $0x181] sm:$0xff] }
 0x459   : > { %14130 = vmatprep.mubr.msk.f32.mxu0 %vm7497_vm5, %v17925_v52  ;;  %14182 = vmatprep.mubr.msk.f32.mxu1 %vm7497_vm5, %v18192_v33 }
 0x45c   : > { %14131 = vmatmul.mubr.msk.f32.gmra.mxu0 %vm7497_vm5, %v17938_v53  ;;  %14183 = vmatmul.mubr.msk.f32.gmra.mxu1 %vm7497_vm5, %v18198_v11  ;;  %v18416_v11 = vld [vmem:[#allocation4 + $0x182] sm:$0xff] }
 0x45d   : > { %14133 = vmatprep.mubr.msk.f32.mxu0 %vm7497_vm5, %v17953_v44  ;;  %14185 = vmatprep.mubr.msk.f32.mxu1 %vm7497_vm5, %v18204_v50  ;;  %v18422_v50 = vld [vmem:[#allocation4 + $0x189] sm:$0xff] }
 0x460   : > { %14134 = vmatmul.mubr.msk.f32.gmra.mxu0 %vm7497_vm5, %v17965_v49  ;;  %14186 = vmatmul.mubr.msk.f32.gmra.mxu1 %vm7497_vm5, %v18210_v42  ;;  %v18424_v42 = vld [vmem:[#allocation4 + $0x18a] sm:$0xff] }
 0x461   : > { %14136 = vmatprep.mubr.msk.f32.mxu0 %vm7497_vm5, %v17975_v21  ;;  %14188 = vmatprep.mubr.msk.f32.mxu1 %vm7497_vm5, %v18216_v41  ;;  %v12055_v41 = vld [vmem:[%s19247_s5 + $0x80] sm:$0xff] }
 0x464   : > { %14137 = vmatmul.mubr.msk.f32.gmra.mxu0 %vm7497_vm5, %v17988_v35  ;;  %14189 = vmatmul.mubr.msk.f32.gmra.mxu1 %vm7497_vm5, %v18222_v46  ;;  %v18444_v46 = vpop.f32.mrf.mxu0 }
 0x465   : > { %14139 = vmatprep.mubr.msk.f32.mxu0 %vm7497_vm5, %v17996_v0  ;;  %14191 = vmatprep.mubr.msk.f32.mxu1 %vm7497_vm5, %v18228_v51 }
 0x468   : > { %14140 = vmatmul.mubr.msk.f32.gmra.mxu0 %vm7497_vm5, %v18008_v47  ;;  %14192 = vmatmul.mubr.msk.f32.gmra.mxu1 %vm7497_vm5, %v18234_v6 }
 0x469   : > { %14142 = vmatprep.mubr.msk.f32.mxu0 %vm7497_vm5, %v18016_v36  ;;  %14194 = vmatprep.mubr.msk.f32.mxu1 %vm7497_vm5, %v18240_v16 }
 0x46c   : > { %14143 = vmatmul.mubr.msk.f32.gmra.mxu0 %vm7497_vm5, %v18028_v4  ;;  %14195 = vmatmul.mubr.msk.f32.gmra.mxu1 %vm7497_vm5, %v18246_v5 }
 0x46d   : > { %14145 = vmatprep.mubr.msk.f32.mxu0 %vm7497_vm5, %v18035_v9  ;;  %14197 = vmatprep.mubr.msk.f32.mxu1 %vm7497_vm5, %v18252_v37 }
 0x470   : > { %14146 = vmatmul.mubr.msk.f32.gmra.mxu0 %vm7497_vm5, %v18046_v3  ;;  %14198 = vmatmul.mubr.msk.f32.gmra.mxu1 %vm7497_vm5, %v18258_v57  ;;  %v19890_v57 = vld [vmem:[#allocation18_spill] sm:$0xff] }
 0x471   : > { %14148 = vmatprep.mubr.msk.f32.mxu0 %vm7497_vm5, %v18052_v14  ;;  %14200 = vmatprep.mubr.msk.f32.mxu1 %vm7497_vm5, %v18264_v23  ;;  %v19891_v23 = vld [vmem:[#allocation59_spill] sm:$0xff] }
 0x474   : > { %14149 = vmatmul.mubr.msk.f32.gmra.mxu0 %vm7497_vm5, %v19887_v20  ;;  %14201 = vmatmul.mubr.msk.f32.gmra.mxu1 %vm7497_vm5, %v18272_v39 }
 0x475   : > { %14151 = vmatprep.mubr.msk.f32.mxu0 %vm7497_vm5, %v18414_v13  ;;  %14203 = vmatprep.mubr.msk.f32.mxu1 %vm7497_vm5, %v18416_v11 }
 0x478   : > { %14152 = vmatmul.mubr.msk.f32.gmra.mxu0 %vm7497_vm5, %v18422_v50  ;;  %14204 = vmatmul.mubr.msk.f32.gmra.mxu1 %vm7497_vm5, %v18424_v42 }
 0x479   : > { %14210 = vmatprep.mubr.msk.f32.mxu0 %vm7497_vm5, %v17702_v15  ;;  %14262 = vmatprep.mubr.msk.f32.mxu1 %vm7497_vm5, %v17700_v48  ;;  %v18446_v15 = vpop.f32.mrf.mxu1 }
 0x47b   : > { %v13903_v48 = vpop.f32.mrf.mxu0 }
 0x47c   : > { %14211 = vmatmul.mubr.msk.f32.vlgmr.msra.gmra.mxu0 %vm7497_vm5, %v17704_v63  ;;  %14263 = vmatmul.mubr.msk.f32.vlgmr.msra.gmra.mxu1 %vm7497_vm5, %v17713_v12  ;;  %v13955_v51 = vpop.f32.mrf.mxu1  ;;  %v19888_v63 = vld [vmem:[#allocation64_spill] sm:$0xff] }
 0x47d   : > { %14311 = vmatpush3.msra.mxu0 %v18303_v43  ;;  %14213 = vmatprep.mubr.msk.f32.mxu0 %vm7497_vm5, %v17735_v1  ;;  %v18454_v12 = vadd.f32 %v13955_v51, %v13903_v48  ;;  %v19889_v1 = vld [vmem:[#allocation9_spill] sm:$0xff]  ;;  %v7827_v6 = vpop.f32.mrf.mxu0 }
 0x47e   : > { %14265 = vmatprep.mubr.msk.f32.mxu1 %vm7497_vm5, %v17733_v38  ;;  %14312 = vmatprep.subr.mxu0 %v12055_v41  ;;  %v8148_v38 = vpop.f32.mrf.mxu1  ;;  %v19892_v43 = vld [vmem:[#allocation29_spill] sm:$0xff] }
 0x47f   : > { %14313 = vmatpush3.msra.mxu0 %v12055_v41  ;;  %v18460_v16 = vadd.f32 %v8148_v38, %v7827_v6  ;;  %v13906_v5 = vpop.f32.mrf.mxu0  ;;  %v19893_v41 = vld [vmem:[#allocation15_spill] sm:$0xff]  ;;  %v19894_v6 = vld [vmem:[#allocation66_spill] sm:$0xff]  ;;  %v19895_v38 = vld [vmem:[#allocation17_spill] sm:$0xff] }
 0x480   : > { %14214 = vmatmul.mubr.msk.f32.gmra.mxu0 %vm7497_vm5, %v19888_v63  ;;  %14266 = vmatmul.mubr.msk.f32.gmra.mxu1 %vm7497_vm5, %v17746_v7  ;;  %v13958_v37 = vpop.f32.mrf.mxu1 }
 0x481   : > { %14216 = vmatprep.mubr.msk.f32.mxu0 %vm7497_vm5, %v19889_v1  ;;  %14268 = vmatprep.mubr.msk.f32.mxu1 %vm7497_vm5, %v17766_v60  ;;  %v18466_v7 = vadd.f32 %v13958_v37, %v13906_v5  ;;  %v7837_v60 = vpop.f32.mrf.mxu0 }
 0x482   : > { %v8158_v39 = vpop.f32.mrf.mxu1 }
 0x483   : > { %v18472_v22 = vadd.f32 %v8158_v39, %v7837_v60  ;;  %v19896_v60 = vld [vmem:[#allocation73_spill] sm:$0xff] }
 0x484   : > { %14217 = vmatmul.mubr.msk.f32.gmra.mxu0 %vm7497_vm5, %v19890_v57  ;;  %14269 = vmatmul.mubr.msk.f32.gmra.mxu1 %vm7497_vm5, %v17779_v30  ;;  %v13909_v59 = vpop.f32.mrf.mxu0  ;;  %v13961_v29 = vpop.f32.mrf.mxu1  ;;  %v19897_v39 = vld [vmem:[#allocation53_spill] sm:$0xff] }
 0x485   : > { %14219 = vmatprep.mubr.msk.f32.mxu0 %vm7497_vm5, %v19891_v23  ;;  %14271 = vmatprep.mubr.msk.f32.mxu1 %vm7497_vm5, %v17799_v31  ;;  %v18478_v30 = vadd.f32 %v13961_v29, %v13909_v59 }
 0x486   : > { %v7847_v31 = vpop.f32.mrf.mxu0  ;;  %v8168_v48 = vpop.f32.mrf.mxu1 }
 0x487   : > { %v18484_v51 = vadd.f32 %v8168_v48, %v7847_v31  ;;  %v19898_v31 = vld [vmem:[#allocation27_spill] sm:$0xff]  ;;  %v19899_v48 = vld [vmem:[#allocation34_spill] sm:$0xff] }
 0x488   : > { %14220 = vmatmul.mubr.msk.f32.gmra.mxu0 %vm7497_vm5, %v19892_v43  ;;  %14272 = vmatmul.mubr.msk.f32.gmra.mxu1 %vm7497_vm5, %v17812_v40  ;;  %v13912_v63 = vpop.f32.mrf.mxu0  ;;  %v13964_v1 = vpop.f32.mrf.mxu1 }
 0x489   : > { %14222 = vmatprep.mubr.msk.f32.mxu0 %vm7497_vm5, %v19893_v41  ;;  %14274 = vmatprep.mubr.msk.f32.mxu1 %vm7497_vm5, %v17832_v19  ;;  %v18490_v40 = vadd.f32 %v13964_v1, %v13912_v63 }
 0x48a   : > { %v7857_v19 = vpop.f32.mrf.mxu0  ;;  %v8178_v5 = vpop.f32.mrf.mxu1 }
 0x48b   : > { %v18496_v37 = vadd.f32 %v8178_v5, %v7857_v19  ;;  %v19900_v19 = vld [vmem:[#allocation61_spill] sm:$0xff]  ;;  %v19901_v5 = vld [vmem:[#allocation42_spill] sm:$0xff] }
 0x48c   : > { %14223 = vmatmul.mubr.msk.f32.gmra.mxu0 %vm7497_vm5, %v19894_v6  ;;  %14275 = vmatmul.mubr.msk.f32.gmra.mxu1 %vm7497_vm5, %v19884_v54  ;;  %v13915_v57 = vpop.f32.mrf.mxu0 }
 0x48d   : > { %14225 = vmatprep.mubr.msk.f32.mxu0 %vm7497_vm5, %v19895_v38  ;;  %14277 = vmatprep.mubr.msk.f32.mxu1 %vm7497_vm5, %v19885_v45  ;;  %v13967_v23 = vpop.f32.mrf.mxu1 }
 0x48e   : > { %v18502_v54 = vadd.f32 %v13967_v23, %v13915_v57  ;;  %v7867_v45 = vpop.f32.mrf.mxu0 }
 0x48f   : > { %v8188_v59 = vpop.f32.mrf.mxu1 }
 0x490   : > { %14226 = vmatmul.mubr.msk.f32.gmra.mxu0 %vm7497_vm5, %v19896_v60  ;;  %14278 = vmatmul.mubr.msk.f32.gmra.mxu1 %vm7497_vm5, %v19886_v55  ;;  %v18508_v29 = vadd.f32 %v8188_v59, %v7867_v45  ;;  %v19902_v45 = vld [vmem:[#allocation22_spill] sm:$0xff]  ;;  %v19903_v59 = vld [vmem:[#allocation57_spill] sm:$0xff] }
 0x491   : > { %14228 = vmatprep.mubr.msk.f32.mxu0 %vm7497_vm5, %v19897_v39  ;;  %14280 = vmatprep.mubr.msk.f32.mxu1 %vm7497_vm5, %v17896_v27  ;;  %v13918_v43 = vpop.f32.mrf.mxu0 }
 0x492   : > { %v13970_v41 = vpop.f32.mrf.mxu1 }
 0x493   : > { %v18514_v55 = vadd.f32 %v13970_v41, %v13918_v43  ;;  %v7877_v27 = vpop.f32.mrf.mxu0 }
 0x494   : > { %14229 = vmatmul.mubr.msk.f32.gmra.mxu0 %vm7497_vm5, %v19898_v31  ;;  %14281 = vmatmul.mubr.msk.f32.gmra.mxu1 %vm7497_vm5, %v17909_v32  ;;  %v8198_v63 = vpop.f32.mrf.mxu1 }
 0x495   : > { %14231 = vmatprep.mubr.msk.f32.mxu0 %vm7497_vm5, %v19899_v48  ;;  %14283 = vmatprep.mubr.msk.f32.mxu1 %vm7497_vm5, %v17925_v52  ;;  %v18520_v1 = vadd.f32 %v8198_v63, %v7877_v27  ;;  %v13921_v6 = vpop.f32.mrf.mxu0  ;;  %v19904_v27 = vld [vmem:[#allocation28_spill] sm:$0xff]  ;;  %v19905_v63 = vld [vmem:[#allocation11_spill] sm:$0xff] }
 0x496   : > { %v13973_v38 = vpop.f32.mrf.mxu1 }
 0x497   : > { %v18526_v32 = vadd.f32 %v13973_v38, %v13921_v6  ;;  %v7887_v52 = vpop.f32.mrf.mxu0 }
 0x498   : > { %14232 = vmatmul.mubr.msk.f32.gmra.mxu0 %vm7497_vm5, %v19900_v19  ;;  %14284 = vmatmul.mubr.msk.f32.gmra.mxu1 %vm7497_vm5, %v17938_v53  ;;  %v8208_v57 = vpop.f32.mrf.mxu1 }
 0x499   : > { %14234 = vmatprep.mubr.msk.f32.mxu0 %vm7497_vm5, %v19901_v5  ;;  %14286 = vmatprep.mubr.msk.f32.mxu1 %vm7497_vm5, %v17953_v44  ;;  %v18532_v23 = vadd.f32 %v8208_v57, %v7887_v52  ;;  %v19906_v52 = vld [vmem:[#allocation68_spill] sm:$0xff]  ;;  %v19907_v57 = vld [vmem:[#allocation33_spill] sm:$0xff] }
 0x49b   : > { %v13924_v60 = vpop.f32.mrf.mxu0  ;;  %v13976_v39 = vpop.f32.mrf.mxu1 }
 0x49c   : > { %14235 = vmatmul.mubr.msk.f32.gmra.mxu0 %vm7497_vm5, %v19902_v45  ;;  %14287 = vmatmul.mubr.msk.f32.gmra.mxu1 %vm7497_vm5, %v17965_v49  ;;  %v18538_v53 = vadd.f32 %v13976_v39, %v13924_v60 }
 0x49d   : > { %14237 = vmatprep.mubr.msk.f32.mxu0 %vm7497_vm5, %v19903_v59  ;;  %14289 = vmatprep.mubr.msk.f32.mxu1 %vm7497_vm5, %v17975_v21  ;;  %v7897_v44 = vpop.f32.mrf.mxu0  ;;  %v8218_v43 = vpop.f32.mrf.mxu1 }
 0x49e   : > { %v18544_v41 = vadd.f32 %v8218_v43, %v7897_v44  ;;  %v19908_v44 = vld [vmem:[#allocation70_spill] sm:$0xff]  ;;  %v19909_v43 = vld [vmem:[#allocation12_spill] sm:$0xff] }
 0x49f   : > { %v13927_v31 = vpop.f32.mrf.mxu0  ;;  %v13979_v48 = vpop.f32.mrf.mxu1 }
 0x4a0   : > { %14238 = vmatmul.mubr.msk.f32.gmra.mxu0 %vm7497_vm5, %v19904_v27  ;;  %14290 = vmatmul.mubr.msk.f32.gmra.mxu1 %vm7497_vm5, %v17988_v35  ;;  %v18550_v49 = vadd.f32 %v13979_v48, %v13927_v31 }
 0x4a1   : > { %14240 = vmatprep.mubr.msk.f32.mxu0 %vm7497_vm5, %v19905_v63  ;;  %14292 = vmatprep.mubr.msk.f32.mxu1 %vm7497_vm5, %v17996_v0  ;;  %v7907_v21 = vpop.f32.mrf.mxu0  ;;  %v8228_v6 = vpop.f32.mrf.mxu1 }
 0x4a2   : > { %v18556_v38 = vadd.f32 %v8228_v6, %v7907_v21  ;;  %v19910_v21 = vld [vmem:[#allocation79_spill] sm:$0xff]  ;;  %v19911_v6 = vld [vmem:[#allocation92_spill] sm:$0xff] }
 0x4a3   : > { %v13930_v19 = vpop.f32.mrf.mxu0  ;;  %v13982_v5 = vpop.f32.mrf.mxu1 }
 0x4a4   : > { %14241 = vmatmul.mubr.msk.f32.gmra.mxu0 %vm7497_vm5, %v19906_v52  ;;  %14293 = vmatmul.mubr.msk.f32.gmra.mxu1 %vm7497_vm5, %v18008_v47  ;;  %v18562_v35 = vadd.f32 %v13982_v5, %v13930_v19 }
 0x4a5   : > { %14243 = vmatprep.mubr.msk.f32.mxu0 %vm7497_vm5, %v19907_v57  ;;  %14295 = vmatprep.mubr.msk.f32.mxu1 %vm7497_vm5, %v18016_v36  ;;  %v7917_v0 = vpop.f32.mrf.mxu0  ;;  %v8238_v60 = vpop.f32.mrf.mxu1 }
 0x4a6   : > { %v18568_v39 = vadd.f32 %v8238_v60, %v7917_v0  ;;  %v19912_v0 = vld [vmem:[#allocation46_spill] sm:$0xff] }
 0x4a7   : > { %v13933_v45 = vpop.f32.mrf.mxu0  ;;  %v13985_v59 = vpop.f32.mrf.mxu1 }
 0x4a8   : > { %14244 = vmatmul.mubr.msk.f32.gmra.mxu0 %vm7497_vm5, %v19908_v44  ;;  %14296 = vmatmul.mubr.msk.f32.gmra.mxu1 %vm7497_vm5, %v18028_v4  ;;  %v18574_v47 = vadd.f32 %v13985_v59, %v13933_v45  ;;  %v9880_v45 = vld [vmem:[#allocation4 + $0x198] sm:$0xff] }
 0x4a9   : > { %14246 = vmatprep.mubr.msk.f32.mxu0 %vm7497_vm5, %v19909_v43  ;;  %14298 = vmatprep.mubr.msk.f32.mxu1 %vm7497_vm5, %v18035_v9  ;;  %v7927_v36 = vpop.f32.mrf.mxu0  ;;  %v8248_v31 = vpop.f32.mrf.mxu1  ;;  %v10268_v59 = vld [vmem:[#allocation4 + $0x199] sm:$0xff] }
 0x4aa   : > { %v18580_v48 = vadd.f32 %v8248_v31, %v7927_v36 }
 0x4ab   : > { %v13936_v27 = vpop.f32.mrf.mxu0  ;;  %v13988_v63 = vpop.f32.mrf.mxu1 }
 0x4ac   : > { %14247 = vmatmul.mubr.msk.f32.gmra.mxu0 %vm7497_vm5, %v19910_v21  ;;  %14299 = vmatmul.mubr.msk.f32.gmra.mxu1 %vm7497_vm5, %v18046_v3  ;;  %v18586_v4 = vadd.f32 %v13988_v63, %v13936_v27 }
 0x4ad   : > { %14249 = vmatprep.mubr.msk.f32.mxu0 %vm7497_vm5, %v19911_v6  ;;  %14301 = vmatprep.mubr.msk.f32.mxu1 %vm7497_vm5, %v18052_v14  ;;  %v7937_v9 = vpop.f32.mrf.mxu0  ;;  %v8258_v19 = vpop.f32.mrf.mxu1 }
 0x4ae   : > { %v18592_v5 = vadd.f32 %v8258_v19, %v7937_v9 }
 0x4af   : > { %v13939_v52 = vpop.f32.mrf.mxu0  ;;  %v13991_v57 = vpop.f32.mrf.mxu1 }
 0x4b0   : > { %14250 = vmatmul.mubr.msk.f32.gmra.mxu0 %vm7497_vm5, %v18056_v26  ;;  %14302 = vmatmul.mubr.msk.f32.gmra.mxu1 %vm7497_vm5, %v19887_v20  ;;  %v18598_v3 = vadd.f32 %v13991_v57, %v13939_v52  ;;  %v9881_v20 = vld [vmem:[#allocation4 + $0x1a0] sm:$0xff] }
 0x4b1   : > { %14252 = vmatprep.mubr.msk.f32.mxu0 %vm7497_vm5, %v19912_v0  ;;  %14304 = vmatprep.mubr.msk.f32.mxu1 %vm7497_vm5, %v18414_v13  ;;  %v7947_v14 = vpop.f32.mrf.mxu0  ;;  %v8268_v60 = vpop.f32.mrf.mxu1  ;;  %v10269_v13 = vld [vmem:[#allocation4 + $0x1a1] sm:$0xff]  ;;  %v8139_v0 = vadd.f32 %v18446_v15, %v18444_v46 }
 0x4b2   : > { %v18604_v44 = vadd.f32 %v8268_v60, %v7947_v14  ;;  %v19913_v14 = vld [vmem:[#allocation75_spill] sm:$0xff] }
 0x4b3   : > { %v13942_v43 = vpop.f32.mrf.mxu0 }
 0x4b4   : > { %v13994_v36 = vpop.f32.mrf.mxu1  ;;  %14253 = vmatmul.mubr.msk.f32.gmra.mxu0 %vm7497_vm5, %v18274_v34  ;;  %14305 = vmatmul.mubr.msk.f32.gmra.mxu1 %vm7497_vm5, %v18422_v50 }
 0x4b5   : > { %v18610_v26 = vadd.f32 %v13994_v36, %v13942_v43  ;;  %14255 = vmatprep.mubr.msk.f32.mxu0 %vm7497_vm5, %v9880_v45  ;;  %14307 = vmatprep.mubr.msk.f32.mxu1 %vm7497_vm5, %v10268_v59  ;;  %v7957_v31 = vpop.f32.mrf.mxu0 }
 0x4b6   : > { %v8278_v27 = vpop.f32.mrf.mxu1 }
 0x4b7   : > { %v18614_v63 = vadd.f32 %v8278_v27, %v7957_v31  ;;  %v13945_v21 = vpop.f32.mrf.mxu0 }
 0x4b8   : > { %v13997_v6 = vpop.f32.mrf.mxu1  ;;  %14256 = vmatmul.mubr.msk.f32.gmra.mxu0 %vm7497_vm5, %v9881_v20  ;;  %14308 = vmatmul.mubr.msk.f32.gmra.mxu1 %vm7497_vm5, %v10269_v13 }
 0x4b9   : > { %v18618_v34 = vadd.f32 %v13997_v6, %v13945_v21  ;;  %14314 = vmatprep.mubr.msk.f32.mxu0 %vm7497_vm5, %v18101_v10  ;;  %v7967_v50 = vpop.f32.mrf.mxu0 }
 0x4ba   : > { %v8288_v9 = vpop.f32.mrf.mxu1 }
 0x4bb   : > { %v18622_v19 = vadd.f32 %v8288_v9, %v7967_v50  ;;  %v14004_v52 = vpop.f32.mrf.mxu0 }
 0x4bc   : > { %v14056_v57 = vpop.f32.mrf.mxu1  ;;  %14315 = vmatmul.mubr.msk.f32.vlgmr.msra.gmra.mxu0 %vm7497_vm5, %v18108_v24  ;;  %v8654_v60 = vadd.f32 %v14004_v52, %v19913_v14 }
 0x4bd   : > { %14317 = vmatprep.mubr.msk.f32.mxu0 %vm7497_vm5, %v18119_v18  ;;  %v8494_v45 = vpop.f32.mrf.mxu0 }
 0x4be   : > { %v8882_v59 = vpop.f32.mrf.mxu1  ;;  %v18631_v10 = vadd.f32 %v14056_v57, %v8654_v60  ;;  %v8653_v43 = vadd.f32 %v8494_v45, %v8139_v0 }
 0x4c0   : > { %v14007_v36 = vpop.f32.mrf.mxu0  ;;  %v14059_v20 = vpop.f32.mrf.mxu1  ;;  %14318 = vmatmul.mubr.msk.f32.gmra.mxu0 %vm7497_vm5, %v18126_v56  ;;  %v18635_v13 = vadd.f32 %v8882_v59, %v8653_v43 }
 0x4c1   : > { %v8656_v24 = vadd.f32 %v14007_v36, %v18454_v12  ;;  %14320 = vmatprep.mubr.msk.f32.mxu0 %vm7497_vm5, %v18132_v28  ;;  %v10637_v36 = vld [vmem:[#allocation4 + $0xb2] sm:$0xff] }
 0x4c2   : > { %v8504_v46 = vpop.f32.mrf.mxu0  ;;  %v8892_v15 = vpop.f32.mrf.mxu1 }
 0x4c3   : > { %v18640_v18 = vadd.f32 %v14059_v20, %v8656_v24  ;;  %v8655_v31 = vadd.f32 %v8504_v46, %v18460_v16 }
 0x4c4   : > { %v14010_v27 = vpop.f32.mrf.mxu0  ;;  %v14062_v21 = vpop.f32.mrf.mxu1  ;;  %14321 = vmatmul.mubr.msk.f32.gmra.mxu0 %vm7497_vm5, %v18138_v58 }
 0x4c5   : > { %v18645_v6 = vadd.f32 %v8892_v15, %v8655_v31  ;;  %v8658_v56 = vadd.f32 %v14010_v27, %v18466_v7  ;;  %14323 = vmatprep.mubr.msk.f32.mxu0 %vm7497_vm5, %v18144_v61  ;;  %v10639_v31 = vld [vmem:[#allocation4 + $0xca] sm:$0xff] }
 0x4c6   : > { %v8514_v12 = vpop.f32.mrf.mxu0  ;;  %v8902_v28 = vpop.f32.mrf.mxu1 }
 0x4c7   : > { %v18650_v50 = vadd.f32 %v14062_v21, %v8658_v56  ;;  %v8657_v9 = vadd.f32 %v8514_v12, %v18472_v22 }
 0x4c8   : > { %v14013_v52 = vpop.f32.mrf.mxu0  ;;  %v14065_v16 = vpop.f32.mrf.mxu1  ;;  %14324 = vmatmul.mubr.msk.f32.gmra.mxu0 %vm7497_vm5, %v18150_v8 }
 0x4c9   : > { %v18655_v57 = vadd.f32 %v8902_v28, %v8657_v9  ;;  %v8660_v58 = vadd.f32 %v14013_v52, %v18478_v30  ;;  %14326 = vmatprep.mubr.msk.f32.mxu0 %vm7497_vm5, %v18156_v17  ;;  %v10641_v9 = vld [vmem:[#allocation4 + $0xe2] sm:$0xff] }
 0x4ca   : > { %v8524_v7 = vpop.f32.mrf.mxu0  ;;  %v8912_v61 = vpop.f32.mrf.mxu1 }
 0x4cb   : > { %v18660_v0 = vadd.f32 %v14065_v16, %v8660_v58  ;;  %v8659_v14 = vadd.f32 %v8524_v7, %v18484_v51  ;;  %v10642_v16 = vld [vmem:[#allocation4 + $0xf2] sm:$0xff] }
 0x4cc   : > { %v14016_v60 = vpop.f32.mrf.mxu0  ;;  %v14068_v22 = vpop.f32.mrf.mxu1  ;;  %14327 = vmatmul.mubr.msk.f32.gmra.mxu0 %vm7497_vm5, %v18162_v2 }
 0x4cd   : > { %v18665_v45 = vadd.f32 %v8912_v61, %v8659_v14  ;;  %v8662_v8 = vadd.f32 %v14016_v60, %v18490_v40  ;;  %14329 = vmatprep.mubr.msk.f32.mxu0 %vm7497_vm5, %v18168_v25  ;;  %v10643_v60 = vld [vmem:[#allocation4 + $0xfa] sm:$0xff] }
 0x4ce   : > { %v8534_v30 = vpop.f32.mrf.mxu0  ;;  %v8922_v17 = vpop.f32.mrf.mxu1 }
 0x4cf   : > { %v18670_v59 = vadd.f32 %v14068_v22, %v8662_v8  ;;  %v8661_v43 = vadd.f32 %v8534_v30, %v18496_v37  ;;  %v10644_v8 = vld [vmem:[#allocation4 + $0x10a] sm:$0xff] }
 0x4d0   : > { %v14019_v51 = vpop.f32.mrf.mxu0  ;;  %v14071_v20 = vpop.f32.mrf.mxu1  ;;  %14330 = vmatmul.mubr.msk.f32.gmra.mxu0 %vm7497_vm5, %v10637_v36 }
 0x4d1   : > { %v18674_v24 = vadd.f32 %v8922_v17, %v8661_v43  ;;  %v8664_v2 = vadd.f32 %v14019_v51, %v18502_v54  ;;  %14332 = vmatprep.mubr.msk.f32.mxu0 %vm7497_vm5, %v18180_v62 }
 0x4d2   : > { %v8544_v40 = vpop.f32.mrf.mxu0  ;;  %v8932_v25 = vpop.f32.mrf.mxu1 }
 0x4d3   : > { %v18679_v46 = vadd.f32 %v14071_v20, %v8664_v2  ;;  %v8663_v15 = vadd.f32 %v8544_v40, %v18508_v29  ;;  %v10645_v20 = vld [vmem:[#allocation4 + $0x112] sm:$0xff]  ;;  %v10646_v40 = vld [vmem:[#allocation4 + $0x122] sm:$0xff] }
 0x4d4   : > { %v14022_v37 = vpop.f32.mrf.mxu0  ;;  %v14074_v27 = vpop.f32.mrf.mxu1  ;;  %14333 = vmatmul.mubr.msk.f32.gmra.mxu0 %vm7497_vm5, %v10639_v31 }
 0x4d5   : > { %v18683_v21 = vadd.f32 %v8932_v25, %v8663_v15  ;;  %v8666_v56 = vadd.f32 %v14022_v37, %v18514_v55  ;;  %14335 = vmatprep.mubr.msk.f32.mxu0 %vm7497_vm5, %v18192_v33 }
 0x4d6   : > { %v8554_v54 = vpop.f32.mrf.mxu0  ;;  %v8942_v62 = vpop.f32.mrf.mxu1 }
 0x4d7   : > { %v18688_v12 = vadd.f32 %v14074_v27, %v8666_v56  ;;  %v8665_v28 = vadd.f32 %v8554_v54, %v18520_v1  ;;  %v10647_v56 = vld [vmem:[#allocation4 + $0x12a] sm:$0xff] }
 0x4d8   : > { %v14025_v29 = vpop.f32.mrf.mxu0  ;;  %v14077_v52 = vpop.f32.mrf.mxu1  ;;  %14336 = vmatmul.mubr.msk.f32.gmra.mxu0 %vm7497_vm5, %v10641_v9 }
 0x4d9   : > { %v18692_v58 = vadd.f32 %v8942_v62, %v8665_v28  ;;  %v8668_v7 = vadd.f32 %v14025_v29, %v18526_v32  ;;  %14338 = vmatprep.mubr.msk.f32.mxu0 %vm7497_vm5, %v10642_v16  ;;  %v10648_v62 = vld [vmem:[#allocation4 + $0x13a] sm:$0xff] }
 0x4da   : > { %v8564_v55 = vpop.f32.mrf.mxu0  ;;  %v8952_v33 = vpop.f32.mrf.mxu1 }
 0x4db   : > { %v18696_v61 = vadd.f32 %v14077_v52, %v8668_v7  ;;  %v8667_v14 = vadd.f32 %v8564_v55, %v18532_v23  ;;  %v10649_v7 = vld [vmem:[#allocation4 + $0x142] sm:$0xff] }
 0x4dc   : > { %v14028_v1 = vpop.f32.mrf.mxu0  ;;  %v14080_v22 = vpop.f32.mrf.mxu1  ;;  %14339 = vmatmul.mubr.msk.f32.gmra.mxu0 %vm7497_vm5, %v10643_v60 }
 0x4dd   : > { %v18700_v30 = vadd.f32 %v8952_v33, %v8667_v14  ;;  %v8670_v17 = vadd.f32 %v14028_v1, %v18538_v53  ;;  %14341 = vmatprep.mubr.msk.f32.mxu0 %vm7497_vm5, %v10644_v8  ;;  %v10650_v33 = vld [vmem:[#allocation4 + $0x152] sm:$0xff] }
 0x4de   : > { %v8574_v32 = vpop.f32.mrf.mxu0  ;;  %v8962_v43 = vpop.f32.mrf.mxu1 }
 0x4df   : > { %v18704_v36 = vadd.f32 %v14080_v22, %v8670_v17  ;;  %v8669_v51 = vadd.f32 %v8574_v32, %v18544_v41  ;;  %v10651_v17 = vld [vmem:[#allocation4 + $0x15a] sm:$0xff] }
 0x4e0   : > { %v14031_v23 = vpop.f32.mrf.mxu0  ;;  %v14083_v2 = vpop.f32.mrf.mxu1  ;;  %14342 = vmatmul.mubr.msk.f32.gmra.mxu0 %vm7497_vm5, %v10645_v20 }
 0x4e1   : > { %v18708_v25 = vadd.f32 %v8962_v43, %v8669_v51  ;;  %v8672_v15 = vadd.f32 %v14031_v23, %v18550_v49  ;;  %14344 = vmatprep.mubr.msk.f32.mxu0 %vm7497_vm5, %v10646_v40  ;;  %v10652_v43 = vld [vmem:[#allocation4 + $0x16a] sm:$0xff] }
 0x4e2   : > { %v8584_v53 = vpop.f32.mrf.mxu0  ;;  %v8972_v31 = vpop.f32.mrf.mxu1 }
 0x4e3   : > { %v18712_v37 = vadd.f32 %v14083_v2, %v8672_v15  ;;  %v8671_v27 = vadd.f32 %v8584_v53, %v18556_v38  ;;  %v10653_v15 = vld [vmem:[#allocation4 + $0x172] sm:$0xff] }
 0x4e4   : > { %v14034_v41 = vpop.f32.mrf.mxu0  ;;  %v14086_v54 = vpop.f32.mrf.mxu1  ;;  %14345 = vmatmul.mubr.msk.f32.gmra.mxu0 %vm7497_vm5, %v10647_v56 }
 0x4e5   : > { %v18716_v28 = vadd.f32 %v8972_v31, %v8671_v27  ;;  %v8674_v9 = vadd.f32 %v14034_v41, %v18562_v35  ;;  %14347 = vmatprep.mubr.msk.f32.mxu0 %vm7497_vm5, %v10648_v62  ;;  %v10656_v41 = vld [vmem:[#allocation4 + $0x19a] sm:$0xff] }
 0x4e6   : > { %v8594_v49 = vpop.f32.mrf.mxu0  ;;  %v8982_v29 = vpop.f32.mrf.mxu1 }
 0x4e7   : > { %v18720_v52 = vadd.f32 %v14086_v54, %v8674_v9  ;;  %v8673_v16 = vadd.f32 %v8594_v49, %v18568_v39 }
 0x4e8   : > { %v14037_v38 = vpop.f32.mrf.mxu0  ;;  %v14089_v55 = vpop.f32.mrf.mxu1  ;;  %14348 = vmatmul.mubr.msk.f32.gmra.mxu0 %vm7497_vm5, %v10649_v7 }
 0x4e9   : > { %v18724_v14 = vadd.f32 %v8982_v29, %v8673_v16  ;;  %v8676_v60 = vadd.f32 %v14037_v38, %v18574_v47  ;;  %14350 = vmatprep.mubr.msk.f32.mxu0 %vm7497_vm5, %v10650_v33 }
 0x4ea   : > { %v8604_v35 = vpop.f32.mrf.mxu0  ;;  %v8992_v1 = vpop.f32.mrf.mxu1 }
 0x4eb   : > { %v18728_v22 = vadd.f32 %v14089_v55, %v8676_v60  ;;  %v8675_v8 = vadd.f32 %v8604_v35, %v18580_v48 }
 0x4ec   : > { %v14040_v39 = vpop.f32.mrf.mxu0  ;;  %v14092_v32 = vpop.f32.mrf.mxu1  ;;  %14351 = vmatmul.mubr.msk.f32.gmra.mxu0 %vm7497_vm5, %v10651_v17 }
 0x4ed   : > { %v18732_v51 = vadd.f32 %v8992_v1, %v8675_v8  ;;  %v8678_v20 = vadd.f32 %v14040_v39, %v18586_v4  ;;  %14353 = vmatprep.mubr.msk.f32.mxu0 %vm7497_vm5, %v10652_v43 }
 0x4ee   : > { %v8614_v47 = vpop.f32.mrf.mxu0  ;;  %v9002_v23 = vpop.f32.mrf.mxu1 }
 0x4ef   : > { %v18736_v2 = vadd.f32 %v14092_v32, %v8678_v20  ;;  %v8677_v40 = vadd.f32 %v8614_v47, %v18592_v5 }
 0x4f0   : > { %v14043_v48 = vpop.f32.mrf.mxu0  ;;  %v14095_v53 = vpop.f32.mrf.mxu1  ;;  %14354 = vmatmul.mubr.msk.f32.gmra.mxu0 %vm7497_vm5, %v10653_v15 }
 0x4f1   : > { %v18740_v31 = vadd.f32 %v9002_v23, %v8677_v40  ;;  %v8680_v27 = vadd.f32 %v14043_v48, %v18598_v3  ;;  %14356 = vmatprep.mubr.msk.f32.mxu0 %vm7497_vm5, %v18416_v11  ;;  %v10657_v3 = vld [vmem:[#allocation4 + $0x1a2] sm:$0xff] }
 0x4f2   : > { %v8624_v4 = vpop.f32.mrf.mxu0  ;;  %v9012_v56 = vpop.f32.mrf.mxu1 }
 0x4f3   : > { %v18745_v54 = vadd.f32 %v14095_v53, %v8680_v27  ;;  %v8679_v62 = vadd.f32 %v8624_v4, %v18604_v44 }
 0x4f4   : > { %v14046_v5 = vpop.f32.mrf.mxu0  ;;  %v14098_v9 = vpop.f32.mrf.mxu1  ;;  %14357 = vmatmul.mubr.msk.f32.gmra.mxu0 %vm7497_vm5, %v18424_v42 }
 0x4f5   : > { %v18750_v49 = vadd.f32 %v9012_v56, %v8679_v62  ;;  %v8682_v29 = vadd.f32 %v14046_v5, %v18610_v26  ;;  %14359 = vmatprep.mubr.msk.f32.mxu0 %vm7497_vm5, %v10656_v41 }
 0x4f6   : > { %v8634_v11 = vpop.f32.mrf.mxu0  ;;  %v9022_v16 = vpop.f32.mrf.mxu1 }
 0x4f7   : > { %v18754_v7 = vadd.f32 %v14098_v9, %v8682_v29  ;;  %v8681_v38 = vadd.f32 %v8634_v11, %v18614_v63 }
 0x4f8   : > { %v14049_v55 = vpop.f32.mrf.mxu0  ;;  %v14101_v44 = vpop.f32.mrf.mxu1  ;;  %14360 = vmatmul.mubr.msk.f32.gmra.mxu0 %vm7497_vm5, %v10657_v3 }
 0x4f9   : > { %v18758_v33 = vadd.f32 %v9022_v16, %v8681_v38  ;;  %v8684_v42 = vadd.f32 %v14049_v55, %v18618_v34 }
 0x4fa   : > { %v8644_v60 = vpop.f32.mrf.mxu0  ;;  %v9032_v35 = vpop.f32.mrf.mxu1 }
 0x4fb   : > { %v18761_v26 = vadd.f32 %v14101_v44, %v8684_v42  ;;  %v8683_v1 = vadd.f32 %v8644_v60, %v18622_v19 }
 0x4fc   : > { %v14108_v8 = vpop.f32.mrf.mxu0  ;;  %v18764_v17 = vpop.f32.mrf.mxu1 }
 0x4fd   : > { %v18766_v39 = vadd.f32 %v9032_v35, %v8683_v1  ;;  %v18769_v63 = vadd.f32 %v14108_v8, %v18631_v10 }
 0x4fe   : > { %v9270_v32 = vpop.f32.mrf.mxu0  ;;  %v18771_v43 = vpop.f32.mrf.mxu1 }
 0x4ff   : > { %v18774_v20 = vadd.f32 %v9270_v32, %v18635_v13 }
 0x500   : > { %v14111_v34 = vpop.f32.mrf.mxu0  ;;  %v18776_v47 = vpop.f32.mrf.mxu1 }
 0x501   : > { %v18779_v23 = vadd.f32 %v14111_v34, %v18640_v18 }
 0x502   : > { %v9280_v19 = vpop.f32.mrf.mxu0  ;;  %v18781_v40 = vpop.f32.mrf.mxu1 }
 0x503   : > { %v18784_v15 = vadd.f32 %v9280_v19, %v18645_v6 }
 0x504   : > { %v14114_v10 = vpop.f32.mrf.mxu0  ;;  %v18786_v48 = vpop.f32.mrf.mxu1 }
 0x505   : > { %v18789_v53 = vadd.f32 %v14114_v10, %v18650_v50 }
 0x506   : > { %v9290_v13 = vpop.f32.mrf.mxu0  ;;  %v18791_v27 = vpop.f32.mrf.mxu1 }
 0x507   : > { %v18794_v4 = vadd.f32 %v9290_v13, %v18655_v57 }
 0x508   : > { %v14117_v18 = vpop.f32.mrf.mxu0  ;;  %v18796_v56 = vpop.f32.mrf.mxu1 }
 0x509   : > { %v18799_v41 = vadd.f32 %v14117_v18, %v18660_v0 }
 0x50a   : > { %v9300_v6 = vpop.f32.mrf.mxu0  ;;  %v18801_v62 = vpop.f32.mrf.mxu1 }
 0x50b   : > { %v18804_v5 = vadd.f32 %v9300_v6, %v18665_v45 }
 0x50c   : > { %v14120_v50 = vpop.f32.mrf.mxu0  ;;  %v18806_v9 = vpop.f32.mrf.mxu1 }
 0x50d   : > { %v18809_v29 = vadd.f32 %v14120_v50, %v18670_v59 }
 0x50e   : > { %v9310_v57 = vpop.f32.mrf.mxu0  ;;  %v18811_v3 = vpop.f32.mrf.mxu1 }
 0x50f   : > { %v18814_v11 = vadd.f32 %v9310_v57, %v18674_v24 }
 0x510   : > { %v14123_v0 = vpop.f32.mrf.mxu0  ;;  %v18816_v16 = vpop.f32.mrf.mxu1 }
 0x511   : > { %v18819_v38 = vadd.f32 %v14123_v0, %v18679_v46 }
 0x512   : > { %v9320_v45 = vpop.f32.mrf.mxu0  ;;  %v18821_v55 = vpop.f32.mrf.mxu1 }
 0x513   : > { %v18824_v44 = vadd.f32 %v9320_v45, %v18683_v21 }
 0x514   : > { %v14126_v59 = vpop.f32.mrf.mxu0  ;;  %v18826_v42 = vpop.f32.mrf.mxu1 }
 0x515   : > { %v18829_v60 = vadd.f32 %v14126_v59, %v18688_v12 }
 0x516   : > { %v9330_v24 = vpop.f32.mrf.mxu0  ;;  %v18831_v35 = vpop.f32.mrf.mxu1 }
 0x517   : > { %v18834_v1 = vadd.f32 %v9330_v24, %v18692_v58 }
 0x518   : > { %v14129_v46 = vpop.f32.mrf.mxu0  ;;  %v18836_v8 = vpop.f32.mrf.mxu1 }
 0x519   : > { %19914 = vst [vmem:[#allocation55_spill] sm:$0xff] %v18836_v8  ;;  %v18839_v32 = vadd.f32 %v14129_v46, %v18696_v61 }
 0x51a   : > { %v9340_v21 = vpop.f32.mrf.mxu0  ;;  %v18841_v34 = vpop.f32.mrf.mxu1 }
 0x51b   : > { %19915 = vst [vmem:[#allocation95_spill] sm:$0xff] %v18841_v34  ;;  %v18844_v19 = vadd.f32 %v9340_v21, %v18700_v30 }
 0x51c   : > { %v14132_v12 = vpop.f32.mrf.mxu0  ;;  %v18846_v10 = vpop.f32.mrf.mxu1 }
 0x51d   : > { %19916 = vst [vmem:[#allocation65_spill] sm:$0xff] %v18844_v19  ;;  %19917 = vst [vmem:[#allocation37_spill] sm:$0xff] %v18846_v10  ;;  %v18849_v13 = vadd.f32 %v14132_v12, %v18704_v36 }
 0x51e   : > { %v9350_v58 = vpop.f32.mrf.mxu0  ;;  %v18851_v18 = vpop.f32.mrf.mxu1 }
 0x51f   : > { %19918 = vst [vmem:[#allocation36_spill] sm:$0xff] %v18849_v13  ;;  %19919 = vst [vmem:[#allocation41_spill] sm:$0xff] %v18851_v18  ;;  %v18854_v6 = vadd.f32 %v9350_v58, %v18708_v25 }
 0x520   : > { %v14135_v61 = vpop.f32.mrf.mxu0  ;;  %v18856_v50 = vpop.f32.mrf.mxu1 }
 0x521   : > { %19920 = vst [vmem:[#allocation81_spill] sm:$0xff] %v18854_v6  ;;  %19921 = vst [vmem:[#allocation62_spill] sm:$0xff] %v18856_v50  ;;  %v18859_v57 = vadd.f32 %v14135_v61, %v18712_v37 }
 0x522   : > { %v9360_v30 = vpop.f32.mrf.mxu0  ;;  %v18861_v0 = vpop.f32.mrf.mxu1 }
 0x523   : > { %19922 = vst [vmem:[#allocation98_spill] sm:$0xff] %v18859_v57  ;;  %19923 = vst [vmem:[#allocation77_spill] sm:$0xff] %v18861_v0  ;;  %v18864_v45 = vadd.f32 %v9360_v30, %v18716_v28 }
 0x524   : > { %v14138_v36 = vpop.f32.mrf.mxu0  ;;  %v18866_v59 = vpop.f32.mrf.mxu1 }
 0x525   : > { %19924 = vst [vmem:[#allocation21_spill] sm:$0xff] %v18864_v45  ;;  %19925 = vst [vmem:[#allocation32_spill] sm:$0xff] %v18866_v59  ;;  %v18869_v24 = vadd.f32 %v14138_v36, %v18720_v52 }
 0x526   : > { %v9370_v25 = vpop.f32.mrf.mxu0  ;;  %v18871_v46 = vpop.f32.mrf.mxu1 }
 0x527   : > { %19926 = vst [vmem:[#allocation72_spill] sm:$0xff] %v18869_v24  ;;  %19927 = vst [vmem:[#allocation10_spill] sm:$0xff] %v18871_v46  ;;  %v18874_v21 = vadd.f32 %v9370_v25, %v18724_v14 }
 0x528   : > { %v14141_v37 = vpop.f32.mrf.mxu0  ;;  %v18876_v12 = vpop.f32.mrf.mxu1 }
 0x529   : > { %19928 = vst [vmem:[#allocation83_spill] sm:$0xff] %v18874_v21  ;;  %19929 = vst [vmem:[#allocation45_spill] sm:$0xff] %v18876_v12  ;;  %v18879_v58 = vadd.f32 %v14141_v37, %v18728_v22 }
 0x52a   : > { %v9380_v28 = vpop.f32.mrf.mxu0  ;;  %v18881_v61 = vpop.f32.mrf.mxu1 }
 0x52b   : > { %19930 = vst [vmem:[#allocation31_spill] sm:$0xff] %v18879_v58  ;;  %19931 = vst [vmem:[#allocation78_spill] sm:$0xff] %v18881_v61  ;;  %v18884_v30 = vadd.f32 %v9380_v28, %v18732_v51 }
 0x52c   : > { %v14144_v52 = vpop.f32.mrf.mxu0  ;;  %v18886_v36 = vpop.f32.mrf.mxu1 }
 0x52d   : > { %19932 = vst [vmem:[#allocation49_spill] sm:$0xff] %v18884_v30  ;;  %19933 = vst [vmem:[#allocation90_spill] sm:$0xff] %v18886_v36  ;;  %v18889_v46 = vadd.f32 %v14144_v52, %v18736_v2 }
 0x52e   : > { %v9390_v14 = vpop.f32.mrf.mxu0  ;;  %v18891_v25 = vpop.f32.mrf.mxu1 }
 0x52f   : > { %19934 = vst [vmem:[#allocation20_spill] sm:$0xff] %v18889_v46  ;;  %19935 = vst [vmem:[#allocation67_spill] sm:$0xff] %v18891_v25  ;;  %v18894_v12 = vadd.f32 %v9390_v14, %v18740_v31 }
 0x530   : > { %v14147_v22 = vpop.f32.mrf.mxu0  ;;  %v18896_v37 = vpop.f32.mrf.mxu1 }
 0x531   : > { %19936 = vst [vmem:[#allocation44_spill] sm:$0xff] %v18894_v12  ;;  %19937 = vst [vmem:[#allocation85_spill] sm:$0xff] %v18896_v37  ;;  %v18899_v61 = vadd.f32 %v14147_v22, %v18745_v54 }
 0x532   : > { %v9400_v51 = vpop.f32.mrf.mxu0  ;;  %v18901_v28 = vpop.f32.mrf.mxu1 }
 0x533   : > { %19938 = vst [vmem:[#allocation91_spill] sm:$0xff] %v18899_v61  ;;  %19939 = vst [vmem:[#allocation80_spill] sm:$0xff] %v18901_v28  ;;  %v18904_v36 = vadd.f32 %v9400_v51, %v18750_v49 }
 0x534   : > { %v14150_v2 = vpop.f32.mrf.mxu0  ;;  %v18906_v52 = vpop.f32.mrf.mxu1 }
 0x535   : > { %19940 = vst [vmem:[#allocation88_spill] sm:$0xff] %v18904_v36  ;;  %19941 = vst [vmem:[#allocation93_spill] sm:$0xff] %v18906_v52  ;;  %v18909_v25 = vadd.f32 %v14150_v2, %v18754_v7 }
 0x536   : > { %v9410_v31 = vpop.f32.mrf.mxu0  ;;  %v18911_v14 = vpop.f32.mrf.mxu1 }
 0x537   : > { %19942 = vst [vmem:[#allocation74_spill] sm:$0xff] %v18909_v25  ;;  %19943 = vst [vmem:[#allocation35_spill] sm:$0xff] %v18911_v14  ;;  %v18914_v37 = vadd.f32 %v9410_v31, %v18758_v33 }
 0x538   : > { %v14153_v54 = vpop.f32.mrf.mxu0  ;;  %v18916_v22 = vpop.f32.mrf.mxu1 }
 0x539   : > { %19944 = vst [vmem:[#allocation82_spill] sm:$0xff] %v18914_v37  ;;  %19945 = vst [vmem:[#allocation48_spill] sm:$0xff] %v18916_v22  ;;  %v18919_v28 = vadd.f32 %v14153_v54, %v18761_v26 }
 0x53a   : > { %v9420_v49 = vpop.f32.mrf.mxu0  ;;  %v18921_v51 = vpop.f32.mrf.mxu1 }
 0x53b   : > { %19946 = vst [vmem:[#allocation94_spill] sm:$0xff] %v18919_v28  ;;  %19947 = vst [vmem:[#allocation47_spill] sm:$0xff] %v18921_v51  ;;  %v18924_v52 = vadd.f32 %v9420_v49, %v18766_v39 }
 0x53c   : > { %v14212_v7 = vpop.f32.mrf.mxu0  ;;  %v14264_v2 = vpop.f32.mrf.mxu1 }
 0x53d   : > { %19948 = vst [vmem:[#allocation86_spill] sm:$0xff] %v18924_v52 }
 0x53e   : > { %v10047_v25 = vpop.f32.mrf.mxu0  ;;  %v10435_v36 = vpop.f32.mrf.mxu1 }
 0x540   : > { %v14215_v14 = vpop.f32.mrf.mxu0  ;;  %v14267_v33 = vpop.f32.mrf.mxu1 }
 0x542   : > { %v10057_v61 = vpop.f32.mrf.mxu0  ;;  %v18926_v12 = vpop.f32.mrf.mxu1 }
 0x544   : > { %v14218_v31 = vpop.f32.mrf.mxu0  ;;  %v18932_v54 = vpop.f32.mrf.mxu1 }
 0x546   : > { %v10067_v37 = vpop.f32.mrf.mxu0  ;;  %v18938_v49 = vpop.f32.mrf.mxu1 }
 0x548   : > { %v18928_v22 = vpop.f32.mrf.mxu0  ;;  %v18944_v46 = vpop.f32.mrf.mxu1 }
 0x54a   : > { %v18930_v26 = vpop.f32.mrf.mxu0  ;;  %v18950_v21 = vpop.f32.mrf.mxu1 }
 0x54c   : > { %v18934_v51 = vpop.f32.mrf.mxu0  ;;  %v18956_v0 = vpop.f32.mrf.mxu1 }
 0x54e   : > { %v18936_v39 = vpop.f32.mrf.mxu0  ;;  %v18962_v57 = vpop.f32.mrf.mxu1 }
 0x550   : > { %v18940_v52 = vpop.f32.mrf.mxu0  ;;  %v18968_v10 = vpop.f32.mrf.mxu1 }
 0x552   : > { %v18942_v28 = vpop.f32.mrf.mxu0 }
 0x554   : > { %v18946_v30 = vpop.f32.mrf.mxu0 }
 0x556   : > { %v18948_v58 = vpop.f32.mrf.mxu0 }
 0x557   : > { %19949 = vst [vmem:[#allocation96_spill] sm:$0xff] %v18948_v58 }
 0x558   : > { %v18952_v59 = vpop.f32.mrf.mxu0 }
 0x559   : > { %19950 = vst [vmem:[#allocation40_spill] sm:$0xff] %v18952_v59  ;;  %v18974_v59 = vpop.f32.mrf.mxu1 }
 0x55a   : > { %v18954_v24 = vpop.f32.mrf.mxu0 }
 0x55b   : > { %19951 = vst [vmem:[#allocation69_spill] sm:$0xff] %v18954_v24 }
 0x55c   : > { %v18958_v45 = vpop.f32.mrf.mxu0 }
 0x55d   : > { %19952 = vst [vmem:[#allocation50_spill] sm:$0xff] %v18958_v45  ;;  %v18980_v45 = vpop.f32.mrf.mxu1 }
 0x55e   : > { %v18960_v50 = vpop.f32.mrf.mxu0  ;;  %19960 = vst [vmem:[#allocation26_spill] sm:$0xff] %v18980_v45 }
 0x55f   : > { %19953 = vst [vmem:[#allocation84_spill] sm:$0xff] %v18960_v50 }
 0x560   : > { %v18964_v18 = vpop.f32.mrf.mxu0 }
 0x561   : > { %19954 = vst [vmem:[#allocation97_spill] sm:$0xff] %v18964_v18  ;;  %v18986_v18 = vpop.f32.mrf.mxu1 }
 0x562   : > { %v18966_v6 = vpop.f32.mrf.mxu0  ;;  %19963 = vst [vmem:[#allocation8_spill] sm:$0xff] %v18986_v18 }
 0x563   : > { %19955 = vst [vmem:[#allocation87_spill] sm:$0xff] %v18966_v6 }
 0x564   : > { %v18970_v13 = vpop.f32.mrf.mxu0 }
 0x565   : > { %19956 = vst [vmem:[#allocation51_spill] sm:$0xff] %v18970_v13  ;;  %v18992_v13 = vpop.f32.mrf.mxu1 }
 0x566   : > { %v18972_v34 = vpop.f32.mrf.mxu0  ;;  %19966 = vst [vmem:[#allocation71_spill] sm:$0xff] %v18992_v13 }
 0x567   : > { %19957 = vst [vmem:[#allocation99_spill] sm:$0xff] %v18972_v34 }
 0x568   : > { %v18976_v24 = vpop.f32.mrf.mxu0 }
 0x569   : > { %19958 = vst [vmem:[#allocation39_spill] sm:$0xff] %v18976_v24  ;;  %v9818_v24 = vadd.f32 %v18764_v17, %v18769_v63 }
 0x56a   : > { %v18978_v19 = vpop.f32.mrf.mxu0 }
 0x56b   : > { %19959 = vst [vmem:[#allocation76_spill] sm:$0xff] %v18978_v19  ;;  %v10207_v45 = vadd.f32 %v14212_v7, %v9818_v24  ;;  %v19019_v24 = vld [vmem:[%s19248_s6] ss:$0 sm:$0xff] }
 0x56c   : > { %v18982_v50 = vpop.f32.mrf.mxu0 }
 0x56d   : > { %19961 = vst [vmem:[#allocation89_spill] sm:$0xff] %v18982_v50  ;;  %v9817_v50 = vadd.f32 %v18771_v43, %v18774_v20  ;;  %v10595_v17 = vadd.f32 %v14264_v2, %v10207_v45 }
 0x56e   : > { %v18984_v58 = vpop.f32.mrf.mxu0 }
 0x56f   : > { %19962 = vst [vmem:[#allocation100_spill] sm:$0xff] %v18984_v58  ;;  %v19002_v58 = vpop.f32.mrf.mxu1 }
 0x570   : > { %v18988_v6 = vpop.f32.mrf.mxu0 }
 0x571   : > { %19964 = vst [vmem:[#allocation6_spill] sm:$0xff] %v18988_v6  ;;  %v10206_v6 = vadd.f32 %v10047_v25, %v9817_v50  ;;  %v19014_v43 = vpop.f32.mrf.mxu1  ;;  %v9824_v25 = vadd.f32 %v18796_v56, %v18799_v41  ;;  %v9823_v56 = vadd.f32 %v18801_v62, %v18804_v5 }
 0x572   : > { %v18990_v8 = vpop.f32.mrf.mxu0 }
 0x573   : > { %19965 = vst [vmem:[#allocation19_spill] sm:$0xff] %v18990_v8  ;;  %v9820_v8 = vadd.f32 %v18776_v47, %v18779_v23  ;;  %v10594_v47 = vadd.f32 %v10435_v36, %v10206_v6  ;;  %v19026_v7 = vpop.f32.mrf.mxu1  ;;  %v10213_v36 = vadd.f32 %v18928_v22, %v9824_v25  ;;  %v10212_v5 = vadd.f32 %v18930_v26, %v9823_v56  ;;  %v19969_v56 = vld [vmem:[#allocation55_spill] sm:$0xff] }
 0x574   : > { %v18994_v34 = vpop.f32.mrf.mxu0  ;;  %v9830_v25 = vadd.f32 %v18826_v42, %v18829_v60 }
 0x575   : > { %19967 = vst [vmem:[#allocation5_spill] sm:$0xff] %v18994_v34  ;;  %v9819_v34 = vadd.f32 %v18781_v40, %v18784_v15  ;;  %v10209_v63 = vadd.f32 %v14215_v14, %v9820_v8  ;;  %v9821_v40 = vadd.f32 %v18791_v27, %v18794_v4 }
 0x576   : > { %v18998_v19 = vpop.f32.mrf.mxu0 }
 0x577   : > { %19968 = vst [vmem:[#allocation58_spill] sm:$0xff] %v18998_v19  ;;  %v9822_v19 = vadd.f32 %v18786_v48, %v18789_v53  ;;  %v10208_v23 = vadd.f32 %v10057_v61, %v9819_v34  ;;  %v10597_v45 = vadd.f32 %v14267_v33, %v10209_v63  ;;  %v10210_v14 = vadd.f32 %v10067_v37, %v9821_v40 }
 0x578   : > { %v19004_v18 = vpop.f32.mrf.mxu0  ;;  %v9826_v33 = vadd.f32 %v18806_v9, %v18809_v29  ;;  %v10601_v29 = vadd.f32 %v18944_v46, %v10213_v36 }
 0x579   : > { %v10211_v15 = vadd.f32 %v14218_v31, %v9822_v19  ;;  %v10596_v4 = vadd.f32 %v18926_v12, %v10208_v23  ;;  %v10598_v31 = vadd.f32 %v18938_v49, %v10210_v14 }
 0x57a   : > { %v19008_v13 = vpop.f32.mrf.mxu0 }
 0x57b   : > { %v10599_v41 = vadd.f32 %v18932_v54, %v10211_v15 }
 0x57c   : > { %v14316_v20 = vpop.f32.mrf.mxu0 }
 0x57d   : > { %v10983_v50 = vadd.f32 %v14316_v20, %v10595_v17  ;;  %v19047_v17 = vpop.f32.mrf.mxu1  ;;  %v9825_v20 = vadd.f32 %v18811_v3, %v18814_v11  ;;  %v10600_v11 = vadd.f32 %v18950_v21, %v10212_v5 }
 0x57e   : > { %v10823_v8 = vpop.f32.mrf.mxu0 }
 0x57f   : > { %v11022_v48 = vadd.f32 %v19019_v24, %v10983_v50  ;;  %v10982_v53 = vadd.f32 %v10823_v8, %v10594_v47  ;;  %v10215_v47 = vadd.f32 %v18934_v51, %v9826_v33  ;;  %v9828_v50 = vadd.f32 %v18816_v16, %v18819_v38  ;;  %v19063_v15 = vpop.f32.mrf.mxu1  ;;  %v19972_v33 = vld [vmem:[#allocation95_spill] sm:$0xff] }
 0x580   : > { %v14319_v27 = vpop.f32.mrf.mxu0  ;;  %v10214_v40 = vadd.f32 %v18936_v39, %v9825_v20 }
 0x581   : > { %v11054_v34 = vmax.f32 %v11022_v48, 0.0  ;;  %v11021_v19 = vadd.f32 %v19019_v24, %v10982_v53  ;;  %v10985_v6 = vadd.f32 %v14319_v27, %v10597_v45  ;;  %v9827_v45 = vadd.f32 %v18821_v55, %v18824_v44  ;;  %v19079_v27 = vpop.f32.mrf.mxu1 }
 0x582   : > { %v10833_v61 = vpop.f32.mrf.mxu0  ;;  %v10603_v48 = vadd.f32 %v18956_v0, %v10215_v47  ;;  %v10217_v38 = vadd.f32 %v18940_v52, %v9828_v50  ;;  %v10602_v14 = vadd.f32 %v18962_v57, %v10214_v40  ;;  %v19975_v47 = vld [vmem:[#allocation36_spill] sm:$0xff]  ;;  %v19978_v40 = vld [vmem:[#allocation69_spill] sm:$0xff] }
 0x583   : > { %11087 = vst.msk [vmem:[%s19033_s9 + $0x8] sm:$0xff] %vm11085_vm7, %v11054_v34  ;;  %v11053_v37 = vmax.f32 %v11021_v19, 0.0  ;;  %v11024_v2 = vadd.f32 %v19019_v24, %v10985_v6  ;;  %v10984_v12 = vadd.f32 %v10833_v61, %v10596_v4  ;;  %v10216_v44 = vadd.f32 %v18942_v28, %v9827_v45  ;;  %v19970_v61 = vld [vmem:[#allocation96_spill] sm:$0xff]  ;;  %v19980_v45 = vld [vmem:[#allocation41_spill] sm:$0xff] }
 0x584   : > { %v14322_v62 = vpop.f32.mrf.mxu0  ;;  %v9829_v34 = vadd.f32 %v18831_v35, %v18834_v1  ;;  %v10219_v19 = vadd.f32 %v18946_v30, %v9830_v25  ;;  %v10605_v60 = vadd.f32 %v18968_v10, %v10217_v38 }
 0x585   : > { %11086 = vst.msk [vmem:[%s19033_s9] sm:$0xff] %vm11085_vm7, %v11053_v37  ;;  %v11056_v22 = vmax.f32 %v11024_v2, 0.0  ;;  %v11023_v54 = vadd.f32 %v19019_v24, %v10984_v12  ;;  %v10987_v63 = vadd.f32 %v14322_v62, %v10599_v41  ;;  %v9832_v41 = vadd.f32 %v19969_v56, %v18839_v32  ;;  %v19095_v37 = vpop.f32.mrf.mxu1  ;;  %v19971_v12 = vld [vmem:[#allocation65_spill] sm:$0xff]  ;;  %v19973_v62 = vld [vmem:[#allocation26_spill] sm:$0xff] }
 0x586   : > { %v10843_v9 = vpop.f32.mrf.mxu0  ;;  %v10218_v36 = vadd.f32 %v19970_v61, %v9829_v34  ;;  %v10604_v1 = vadd.f32 %v18974_v59, %v10216_v44  ;;  %v10607_v5 = vadd.f32 %v19973_v62, %v10219_v19  ;;  %v19983_v44 = vld [vmem:[#allocation98_spill] sm:$0xff]  ;;  %v19986_v56 = vld [vmem:[#allocation21_spill] sm:$0xff] }
 0x587   : > { %11089 = vst.msk [vmem:[%s19033_s9 + $0x18] sm:$0xff] %vm11085_vm7, %v11056_v22  ;;  %v11055_v49 = vmax.f32 %v11023_v54, 0.0  ;;  %v11026_v26 = vadd.f32 %v19019_v24, %v10987_v63  ;;  %v10986_v23 = vadd.f32 %v10843_v9, %v10598_v31  ;;  %v9831_v31 = vadd.f32 %v19972_v33, %v19971_v12  ;;  %v19974_v22 = vld [vmem:[#allocation40_spill] sm:$0xff]  ;;  %v19976_v9 = vld [vmem:[#allocation37_spill] sm:$0xff] }
 0x588   : > { %v14325_v3 = vpop.f32.mrf.mxu0  ;;  %v10221_v54 = vadd.f32 %v19974_v22, %v9832_v41  ;;  %v19987_v41 = vld [vmem:[#allocation77_spill] sm:$0xff]  ;;  %v19989_v12 = vld [vmem:[#allocation72_spill] sm:$0xff]  ;;  %v19991_v22 = vld [vmem:[#allocation87_spill] sm:$0xff] }
 0x589   : > { %11088 = vst.msk [vmem:[%s19033_s9 + $0x10] sm:$0xff] %vm11085_vm7, %v11055_v49  ;;  %v11058_v46 = vmax.f32 %v11026_v26, 0.0  ;;  %v11025_v51 = vadd.f32 %v19019_v24, %v10986_v23  ;;  %v10989_v8 = vadd.f32 %v14325_v3, %v10601_v29  ;;  %v9834_v29 = vadd.f32 %v19976_v9, %v19975_v47  ;;  %v19977_v49 = vld [vmem:[#allocation8_spill] sm:$0xff]  ;;  %v19111_v23 = vpop.f32.mrf.mxu1  ;;  %v19993_v47 = vld [vmem:[#allocation10_spill] sm:$0xff] }
 0x58a   : > { %v10853_v16 = vpop.f32.mrf.mxu0  ;;  %v10606_v26 = vadd.f32 %v19977_v49, %v10218_v36  ;;  %v10220_v3 = vadd.f32 %v19978_v40, %v9831_v31  ;;  %v9835_v61 = vadd.f32 %v19987_v41, %v19986_v56  ;;  %v19990_v33 = vld [vmem:[#allocation32_spill] sm:$0xff] }
 0x58b   : > { %11091 = vst.msk [vmem:[%s19033_s9 + $0x28] sm:$0xff] %vm11085_vm7, %v11058_v46  ;;  %v11057_v39 = vmax.f32 %v11025_v51, 0.0  ;;  %v11028_v21 = vadd.f32 %v19019_v24, %v10989_v8  ;;  %v10988_v53 = vadd.f32 %v10853_v16, %v10600_v11  ;;  %v19979_v8 = vld [vmem:[#allocation81_spill] sm:$0xff]  ;;  %v19981_v16 = vld [vmem:[#allocation50_spill] sm:$0xff]  ;;  %v19127_v19 = vpop.f32.mrf.mxu1  ;;  %v9838_v31 = vadd.f32 %v19990_v33, %v19989_v12  ;;  %v20003_v41 = vld [vmem:[#allocation76_spill] sm:$0xff] }
 0x58c   : > { %v14328_v55 = vpop.f32.mrf.mxu0  ;;  %v10223_v38 = vadd.f32 %v19981_v16, %v9834_v29  ;;  %v19994_v29 = vld [vmem:[#allocation51_spill] sm:$0xff] }
 0x58d   : > { %11090 = vst.msk [vmem:[%s19033_s9 + $0x20] sm:$0xff] %vm11085_vm7, %v11057_v39  ;;  %v11060_v0 = vmax.f32 %v11028_v21, 0.0  ;;  %v11027_v52 = vadd.f32 %v19019_v24, %v10988_v53  ;;  %v10991_v4 = vadd.f32 %v14328_v55, %v10603_v48  ;;  %v9833_v48 = vadd.f32 %v19980_v45, %v19979_v8  ;;  %v19982_v21 = vld [vmem:[#allocation71_spill] sm:$0xff] }
 0x58e   : > { %v10863_v42 = vpop.f32.mrf.mxu0  ;;  %v10609_v53 = vadd.f32 %v19982_v21, %v10221_v54  ;;  %v10611_v36 = vadd.f32 %v19014_v43, %v10223_v38  ;;  %v10224_v54 = vadd.f32 %v19991_v22, %v9835_v61  ;;  %v10227_v49 = vadd.f32 %v19994_v29, %v9838_v31  ;;  %v19997_v8 = vld [vmem:[#allocation99_spill] sm:$0xff]  ;;  %v20008_v22 = vld [vmem:[#allocation85_spill] sm:$0xff] }
 0x58f   : > { %11093 = vst.msk [vmem:[%s19033_s9 + $0x38] sm:$0xff] %vm11085_vm7, %v11060_v0  ;;  %v11059_v57 = vmax.f32 %v11027_v52, 0.0  ;;  %v11030_v28 = vadd.f32 %v19019_v24, %v10991_v4  ;;  %v10990_v6 = vadd.f32 %v10863_v42, %v10602_v14  ;;  %v19984_v0 = vld [vmem:[#allocation62_spill] sm:$0xff]  ;;  %v19985_v4 = vld [vmem:[#allocation84_spill] sm:$0xff] }
 0x590   : > { %v14331_v35 = vpop.f32.mrf.mxu0  ;;  %v9836_v52 = vadd.f32 %v19984_v0, %v19983_v44  ;;  %v10222_v34 = vadd.f32 %v19985_v4, %v9833_v48  ;;  %v10612_v38 = vadd.f32 %v19063_v15, %v10224_v54  ;;  %v20000_v0 = vld [vmem:[#allocation39_spill] sm:$0xff] }
 0x591   : > { %11092 = vst.msk [vmem:[%s19033_s9 + $0x30] sm:$0xff] %vm11085_vm7, %v11059_v57  ;;  %v11062_v10 = vmax.f32 %v11030_v28, 0.0  ;;  %v11029_v30 = vadd.f32 %v19019_v24, %v10990_v6  ;;  %v10993_v2 = vadd.f32 %v14331_v35, %v10605_v60  ;;  %v10608_v60 = vadd.f32 %v19002_v58, %v10220_v3 }
 0x592   : > { %v10873_v32 = vpop.f32.mrf.mxu0  ;;  %v10610_v62 = vadd.f32 %v19026_v7, %v10222_v34 }
 0x593   : > { %11095 = vst.msk [vmem:[%s19033_s9 + $0x48] sm:$0xff] %vm11085_vm7, %v11062_v10  ;;  %v11061_v63 = vmax.f32 %v11029_v30, 0.0  ;;  %v11032_v59 = vadd.f32 %v19019_v24, %v10993_v2  ;;  %v10992_v20 = vadd.f32 %v10873_v32, %v10604_v1  ;;  %v19988_v1 = vld [vmem:[#allocation97_spill] sm:$0xff] }
 0x594   : > { %v14334_v50 = vpop.f32.mrf.mxu0  ;;  %v10225_v10 = vadd.f32 %v19988_v1, %v9836_v52  ;;  %v20004_v1 = vld [vmem:[#allocation44_spill] sm:$0xff] }
 0x595   : > { %11094 = vst.msk [vmem:[%s19033_s9 + $0x40] sm:$0xff] %vm11085_vm7, %v11061_v63  ;;  %v11064_v11 = vmax.f32 %v11032_v59, 0.0  ;;  %v11031_v46 = vadd.f32 %v19019_v24, %v10992_v20  ;;  %v10995_v51 = vadd.f32 %v14334_v50, %v10607_v5  ;;  %v14300_v5 = vpop.f32.mrf.mxu1  ;;  %v19992_v20 = vld [vmem:[#allocation83_spill] sm:$0xff] }
 0x596   : > { %v10883_v39 = vpop.f32.mrf.mxu0  ;;  %v9837_v9 = vadd.f32 %v19993_v47, %v19992_v20  ;;  %v10613_v50 = vadd.f32 %v19047_v17, %v10225_v10  ;;  %v20005_v10 = vld [vmem:[#allocation67_spill] sm:$0xff] }
 0x597   : > { %11097 = vst.msk [vmem:[%s19033_s9 + $0x58] sm:$0xff] %vm11085_vm7, %v11064_v11  ;;  %v11063_v25 = vmax.f32 %v11031_v46, 0.0  ;;  %v11034_v14 = vadd.f32 %v19019_v24, %v10995_v51  ;;  %v10994_v55 = vadd.f32 %v10883_v39, %v10606_v26  ;;  %v19995_v11 = vld [vmem:[#allocation31_spill] sm:$0xff]  ;;  %v19996_v46 = vld [vmem:[#allocation45_spill] sm:$0xff]  ;;  %v10555_v48 = vpop.f32.mrf.mxu1 }
 0x598   : > { %v14337_v42 = vpop.f32.mrf.mxu0  ;;  %v9840_v51 = vadd.f32 %v19996_v46, %v19995_v11  ;;  %v10226_v45 = vadd.f32 %v19997_v8, %v9837_v9  ;;  %v20013_v8 = vld [vmem:[#allocation74_spill] sm:$0xff] }
 0x599   : > { %11096 = vst.msk [vmem:[%s19033_s9 + $0x50] sm:$0xff] %vm11085_vm7, %v11063_v25  ;;  %v11066_v57 = vmax.f32 %v11034_v14, 0.0  ;;  %v11033_v28 = vadd.f32 %v19019_v24, %v10994_v55  ;;  %v10997_v6 = vadd.f32 %v14337_v42, %v10609_v53  ;;  %v19998_v53 = vld [vmem:[#allocation49_spill] sm:$0xff]  ;;  %v19999_v25 = vld [vmem:[#allocation78_spill] sm:$0xff]  ;;  %v10615_v55 = vadd.f32 %v19079_v27, %v10227_v49  ;;  %v20001_v42 = vld [vmem:[#allocation20_spill] sm:$0xff] }
 0x59a   : > { %v10893_v35 = vpop.f32.mrf.mxu0  ;;  %v9839_v14 = vadd.f32 %v19999_v25, %v19998_v53  ;;  %v10229_v52 = vadd.f32 %v20000_v0, %v9840_v51  ;;  %v20010_v49 = vld [vmem:[#allocation88_spill] sm:$0xff] }
 0x59b   : > { %11099 = vst.msk [vmem:[%s19033_s9 + $0x68] sm:$0xff] %vm11085_vm7, %v11066_v57  ;;  %v11065_v30 = vmax.f32 %v11033_v28, 0.0  ;;  %v11036_v58 = vadd.f32 %v19019_v24, %v10997_v6  ;;  %v10996_v2 = vadd.f32 %v10893_v35, %v10608_v60  ;;  %v20002_v60 = vld [vmem:[#allocation90_spill] sm:$0xff]  ;;  %v10614_v28 = vadd.f32 %v19095_v37, %v10226_v45  ;;  %v14303_v6 = vpop.f32.mrf.mxu1  ;;  %v20014_v45 = vld [vmem:[#allocation93_spill] sm:$0xff] }
 0x59c   : > { %v14340_v32 = vpop.f32.mrf.mxu0  ;;  %v9842_v57 = vadd.f32 %v20002_v60, %v20001_v42  ;;  %v10228_v61 = vadd.f32 %v20003_v41, %v9839_v14  ;;  %v10617_v33 = vadd.f32 %v19111_v23, %v10229_v52  ;;  %v20018_v52 = vld [vmem:[#allocation5_spill] sm:$0xff]  ;;  %v20021_v41 = vld [vmem:[#allocation58_spill] sm:$0xff] }
 0x59d   : > { %11098 = vst.msk [vmem:[%s19033_s9 + $0x60] sm:$0xff] %vm11085_vm7, %v11065_v30  ;;  %v11068_v43 = vmax.f32 %v11036_v58, 0.0  ;;  %v11035_v63 = vadd.f32 %v19019_v24, %v10996_v2  ;;  %v10999_v59 = vadd.f32 %v14340_v32, %v10611_v36  ;;  %v9841_v30 = vadd.f32 %v20005_v10, %v20004_v1  ;;  %v20006_v58 = vld [vmem:[#allocation89_spill] sm:$0xff]  ;;  %v20007_v32 = vld [vmem:[#allocation91_spill] sm:$0xff] }
 0x59e   : > { %v10903_v26 = vpop.f32.mrf.mxu0  ;;  %v10231_v2 = vadd.f32 %v20006_v58, %v9842_v57  ;;  %v9844_v54 = vadd.f32 %v20008_v22, %v20007_v32  ;;  %v10616_v47 = vadd.f32 %v19127_v19, %v10228_v61  ;;  %v20019_v57 = vld [vmem:[#allocation94_spill] sm:$0xff]  ;;  %v20023_v58 = vld [vmem:[#allocation47_spill] sm:$0xff] }
 0x59f   : > { %11101 = vst.msk [vmem:[%s19033_s9 + $0x78] sm:$0xff] %vm11085_vm7, %v11068_v43  ;;  %v11067_v7 = vmax.f32 %v11035_v63, 0.0  ;;  %v11038_v40 = vadd.f32 %v19019_v24, %v10999_v59  ;;  %v10998_v3 = vadd.f32 %v10903_v26, %v10610_v62  ;;  %v20009_v43 = vld [vmem:[#allocation100_spill] sm:$0xff]  ;;  %v10565_v59 = vpop.f32.mrf.mxu1 }
 0x5a0   : > { %v14343_v16 = vpop.f32.mrf.mxu0  ;;  %v10230_v63 = vadd.f32 %v20009_v43, %v9841_v30  ;;  %v20011_v26 = vld [vmem:[#allocation80_spill] sm:$0xff]  ;;  %v20022_v30 = vld [vmem:[#allocation86_spill] sm:$0xff] }
 0x5a1   : > { %11100 = vst.msk [vmem:[%s19033_s9 + $0x70] sm:$0xff] %vm11085_vm7, %v11067_v7  ;;  %v11070_v39 = vmax.f32 %v11038_v40, 0.0  ;;  %v11037_v17 = vadd.f32 %v19019_v24, %v10998_v3  ;;  %v11001_v21 = vadd.f32 %v14343_v16, %v10613_v50  ;;  %v9843_v50 = vadd.f32 %v20011_v26, %v20010_v49  ;;  %v20012_v3 = vld [vmem:[#allocation6_spill] sm:$0xff] }
 0x5a2   : > { %v10913_v44 = vpop.f32.mrf.mxu0  ;;  %v10619_v7 = vadd.f32 %v14300_v5, %v10231_v2  ;;  %v10233_v11 = vadd.f32 %v20012_v3, %v9844_v54  ;;  %v9846_v16 = vadd.f32 %v20014_v45, %v20013_v8  ;;  %v9847_v2 = vadd.f32 %v20023_v58, %v20022_v30 }
 0x5a3   : > { %11103 = vst.msk [vmem:[%s19033_s9 + $0x88] sm:$0xff] %vm11085_vm7, %v11070_v39  ;;  %v11069_v4 = vmax.f32 %v11037_v17, 0.0  ;;  %v11040_v15 = vadd.f32 %v19019_v24, %v11001_v21  ;;  %v11000_v34 = vadd.f32 %v10913_v44, %v10612_v38  ;;  %v10618_v38 = vadd.f32 %v10555_v48, %v10230_v63  ;;  %v14306_v39 = vpop.f32.mrf.mxu1  ;;  %v20015_v21 = vld [vmem:[#allocation19_spill] sm:$0xff] }
 0x5a4   : > { %v14346_v56 = vpop.f32.mrf.mxu0  ;;  %v10232_v53 = vadd.f32 %v20015_v21, %v9843_v50  ;;  %v20017_v44 = vld [vmem:[#allocation35_spill] sm:$0xff]  ;;  %v10236_v63 = vadd.f32 %v19008_v13, %v9847_v2 }
 0x5a5   : > { %11102 = vst.msk [vmem:[%s19033_s9 + $0x80] sm:$0xff] %vm11085_vm7, %v11069_v4  ;;  %v11072_v27 = vmax.f32 %v11040_v15, 0.0  ;;  %v11039_v36 = vadd.f32 %v19019_v24, %v11000_v34  ;;  %v11003_v35 = vadd.f32 %v14346_v56, %v10615_v55  ;;  %v20016_v55 = vld [vmem:[#allocation82_spill] sm:$0xff]  ;;  %v10235_v4 = vadd.f32 %v20018_v52, %v9846_v16 }
 0x5a6   : > { %v10923_v12 = vpop.f32.mrf.mxu0  ;;  %v9845_v0 = vadd.f32 %v20017_v44, %v20016_v55  ;;  %v10621_v34 = vadd.f32 %v14303_v6, %v10233_v11 }
 0x5a7   : > { %11105 = vst.msk [vmem:[%s19033_s9 + $0x98] sm:$0xff] %vm11085_vm7, %v11072_v27  ;;  %v11071_v37 = vmax.f32 %v11039_v36, 0.0  ;;  %v11042_v31 = vadd.f32 %v19019_v24, %v11003_v35  ;;  %v11002_v62 = vadd.f32 %v10923_v12, %v10614_v28  ;;  %v20020_v28 = vld [vmem:[#allocation48_spill] sm:$0xff]  ;;  %v10575_v27 = vpop.f32.mrf.mxu1  ;;  %v10620_v35 = vadd.f32 %v10565_v59, %v10232_v53 }
 0x5a8   : > { %v14349_v20 = vpop.f32.mrf.mxu0  ;;  %v9848_v56 = vadd.f32 %v20020_v28, %v20019_v57  ;;  %v10234_v61 = vadd.f32 %v20021_v41, %v9845_v0  ;;  %v10623_v12 = vadd.f32 %v14306_v39, %v10235_v4 }
 0x5a9   : > { %11104 = vst.msk [vmem:[%s19033_s9 + $0x90] sm:$0xff] %vm11085_vm7, %v11071_v37  ;;  %v11074_v9 = vmax.f32 %v11042_v31, 0.0  ;;  %v11041_v23 = vadd.f32 %v19019_v24, %v11002_v62  ;;  %v11005_v29 = vadd.f32 %v14349_v20, %v10617_v33  ;;  %v14309_v33 = vpop.f32.mrf.mxu1 }
 0x5aa   : > { %v10933_v40 = vpop.f32.mrf.mxu0  ;;  %v10237_v31 = vadd.f32 %v19004_v18, %v9848_v56  ;;  %v10622_v54 = vadd.f32 %v10575_v27, %v10234_v61 }
 0x5ab   : > { %11107 = vst.msk [vmem:[%s19033_s9 + $0xa8] sm:$0xff] %vm11085_vm7, %v11074_v9  ;;  %v11073_v46 = vmax.f32 %v11041_v23, 0.0  ;;  %v11044_v19 = vadd.f32 %v19019_v24, %v11005_v29  ;;  %v11004_v51 = vadd.f32 %v10933_v40, %v10616_v47  ;;  %v10585_v9 = vpop.f32.mrf.mxu1 }
 0x5ac   : > { %v14352_v17 = vpop.f32.mrf.mxu0  ;;  %v10625_v23 = vadd.f32 %v14309_v33, %v10237_v31  ;;  %v10624_v13 = vadd.f32 %v10585_v9, %v10236_v63 }
 0x5ad   : > { %11106 = vst.msk [vmem:[%s19033_s9 + $0xa0] sm:$0xff] %vm11085_vm7, %v11073_v46  ;;  %v11076_v5 = vmax.f32 %v11044_v19, 0.0  ;;  %v11043_v25 = vadd.f32 %v19019_v24, %v11004_v51  ;;  %v11007_v14 = vadd.f32 %v14352_v17, %v10619_v7 }
 0x5ae   : > { %v10943_v15 = vpop.f32.mrf.mxu0 }
 0x5af   : > { %11109 = vst.msk [vmem:[%s19033_s9 + $0xb8] sm:$0xff] %vm11085_vm7, %v11076_v5  ;;  %v11075_v48 = vmax.f32 %v11043_v25, 0.0  ;;  %v11046_v42 = vadd.f32 %v19019_v24, %v11007_v14  ;;  %v11006_v60 = vadd.f32 %v10943_v15, %v10618_v38 }
 0x5b0   : > { %v14355_v36 = vpop.f32.mrf.mxu0 }
 0x5b1   : > { %11108 = vst.msk [vmem:[%s19033_s9 + $0xb0] sm:$0xff] %vm11085_vm7, %v11075_v48  ;;  %v11078_v1 = vmax.f32 %v11046_v42, 0.0  ;;  %v11045_v6 = vadd.f32 %v19019_v24, %v11006_v60  ;;  %v11009_v10 = vadd.f32 %v14355_v36, %v10621_v34 }
 0x5b2   : > { %v10953_v37 = vpop.f32.mrf.mxu0 }
 0x5b3   : > { %11111 = vst.msk [vmem:[%s19033_s9 + $0xc8] sm:$0xff] %vm11085_vm7, %v11078_v1  ;;  %v11077_v62 = vmax.f32 %v11045_v6, 0.0  ;;  %v11048_v32 = vadd.f32 %v19019_v24, %v11009_v10  ;;  %v11008_v22 = vadd.f32 %v10953_v37, %v10620_v35 }
 0x5b4   : > { %v14358_v43 = vpop.f32.mrf.mxu0 }
 0x5b5   : > { %11110 = vst.msk [vmem:[%s19033_s9 + $0xc0] sm:$0xff] %vm11085_vm7, %v11077_v62  ;;  %v11080_v59 = vmax.f32 %v11048_v32, 0.0  ;;  %v11047_v20 = vadd.f32 %v19019_v24, %v11008_v22  ;;  %v11011_v47 = vadd.f32 %v14358_v43, %v10623_v12 }
 0x5b6   : > { %v10963_v18 = vpop.f32.mrf.mxu0 }
 0x5b7   : > { %11113 = vst.msk [vmem:[%s19033_s9 + $0xd8] sm:$0xff] %vm11085_vm7, %v11080_v59  ;;  %v11079_v29 = vmax.f32 %v11047_v20, 0.0  ;;  %v11050_v49 = vadd.f32 %v19019_v24, %v11011_v47  ;;  %v11010_v26 = vadd.f32 %v10963_v18, %v10622_v54 }
 0x5b8   : > { %v14361_v50 = vpop.f32.mrf.mxu0 }
 0x5b9   : > { %11112 = vst.msk [vmem:[%s19033_s9 + $0xd0] sm:$0xff] %vm11085_vm7, %v11079_v29  ;;  %v11082_v7 = vmax.f32 %v11050_v49, 0.0  ;;  %v11049_v40 = vadd.f32 %v19019_v24, %v11010_v26  ;;  %v11013_v3 = vadd.f32 %v14361_v50, %v10625_v23 }
 0x5ba   : > { %v10973_v11 = vpop.f32.mrf.mxu0 }
 0x5bb   : > { %11115 = vst.msk [vmem:[%s19033_s9 + $0xe8] sm:$0xff] %vm11085_vm7, %v11082_v7  ;;  %v11081_v46 = vmax.f32 %v11049_v40, 0.0  ;;  %v11052_v19 = vadd.f32 %v19019_v24, %v11013_v3  ;;  %v11012_v51 = vadd.f32 %v10973_v11, %v10624_v13 }
 0x5bd   : > { %11114 = vst.msk [vmem:[%s19033_s9 + $0xe0] sm:$0xff] %vm11085_vm7, %v11081_v46  ;;  %v11084_v8 = vmax.f32 %v11052_v19, 0.0  ;;  %v11051_v45 = vadd.f32 %v19019_v24, %v11012_v51 }
 0x5bf   : > { %11117 = vst.msk [vmem:[%s19033_s9 + $0xf8] sm:$0xff] %vm11085_vm7, %v11084_v8  ;;  %v11083_v16 = vmax.f32 %v11051_v45, 0.0 }
 0x5c1   : > { %11116 = vst.msk [vmem:[%s19033_s9 + $0xf0] sm:$0xff] %vm11085_vm7, %v11083_v16 }
 0x5c2 PF: > { %s17_s24 = sadd.s32 1, %s14380_s24  }
 0x5c3   : > { %p14_p4 = scmp.ge.s32.totalorder %s17_s24, 4  }
 0x5c5   :  { %16 = sbr.rel (!%p14_p4) target bundleno = 1 (0x1), region = 108 }

</bundles_post_ra>
